<compile_context>
chip_gen: v7x
topology: tpu7x:2x2x1
jax: 0.10.0
libtpu: 0.0.40
codegen_flags: <defaults>
</compile_context>

<pallas_src>
import numpy as np
import jax
import jax.numpy as jnp
from jax import lax
from jax.experimental import pallas as pl
from jax.experimental.pallas import tpu as pltpu


# -----------------------------------------------------------------------------
# Fused forward kernel: conv1 + ReLU + conv2 + ReLU + 2x2/2 max-pool + head.
# Grid = (B // BLK,), BLK images per step, everything resident in VMEM.
# -----------------------------------------------------------------------------
def _fwd_kernel(x_ref, w1k_ref, b1t_ref, w2g_ref, b2t_ref,
                w1l_ref, b1l_ref, w2l_ref, b2l_ref,
                o_ref, h1_ref, pool_ref):
    f32 = jnp.float32
    bf16 = jnp.bfloat16
    blk = pool_ref.shape[0]
    hid = w1l_ref.shape[2]

    def conv_img(b, carry):
        # ---- conv1 (+bias+ReLU) for image b: a single matmul --------------
        # x rows are parity-ordered: rows [0,16) hold even image rows y=2j,
        # rows [16,32) hold odd rows y=2j+1; lanes = (ky, cin, x_in) taps.
        a = x_ref[pl.ds(b * 32, 32), :].astype(bf16)                 # (32, K1)
        c1 = jnp.dot(a, w1k_ref[...], preferred_element_type=f32)    # (32, 832)
        h1_ref[...] = jnp.maximum(c1 + b1t_ref[...], 0.0)            # x*32+c lanes

        # ---- conv2 (+bias+ReLU) + 2x2 max-pool, 4 output columns at a time -
        for g in range(6):
            l0 = 128 * g
            acc_q = []
            for q in (0, 1):                       # output-row parity
                acc = None
                for ky in range(3):
                    y0 = q + ky                    # h1 row for pool row i=0
                    start = (y0 // 2) if (y0 % 2 == 0) else 16 + (y0 // 2)
                    lhs = h1_ref[start:start + 12, l0:l0 + 192].astype(bf16)
                    d = jnp.dot(lhs, w2g_ref[ky], preferred_element_type=f32)
                    acc = d if acc is None else acc + d              # (12, 256)
                acc_q.append(acc)
            # lanes of acc are (x-parity | pool-col-local | channel):
            rmax = jnp.maximum(acc_q[0], acc_q[1])                   # pool rows
            cmax = jnp.maximum(rmax[:, 0:128], rmax[:, 128:256])     # pool cols
            pooled = jnp.maximum(cmax + b2t_ref[...], 0.0)           # bias+ReLU
            pool_ref[b, :, l0:l0 + 128] = pooled                     # px*64+c
        return carry

    lax.fori_loop(0, blk, conv_img, 0)

    # ---- head: linear_1 + ReLU + linear_2 -------------------------------
    # TODO(synk): dropout_1 / dropout_2 are inference-mode identities (no RNG).
    hacc = jnp.zeros((blk, hid), f32)
    for py in range(12):
        hacc = hacc + jnp.dot(pool_ref[:, py, :].astype(bf16), w1l_ref[py],
                              preferred_element_type=f32)
    h = jnp.maximum(hacc + b1l_ref[...], 0.0)
    o_ref[0] = (jnp.dot(h, w2l_ref[...], preferred_element_type=f32)
                + b2l_ref[...])


def _pick_block(batch):
    """Images per grid step: batch the per-step overhead away but keep the grid
    length >= 2 when possible so v7x megacore can split it."""
    for d in (8, 4, 2, 1):
        if batch % d == 0 and batch // d >= 2:
            return d
    return batch


def cnn_dropout_forward(x_nchw, prepared):
    """Pallas forward of CNN_DropOut. x: (B, C, 28, 28) f32 -> (B, ncls) f32."""
    (w1k, b1t, w2g, b2t, w1l3, b1l, w2l, b2l) = prepared
    B, cin, H, W = x_nchw.shape
    assert (H, W) == (28, 28), "linear_1(9216) pins the input to 28x28"
    k1 = w1k.shape[0]
    assert k1 == 3 * cin * 28, "prepared params / input channel mismatch"
    hid = w1l3.shape[2]
    ncls = w2l.shape[1]
    npad = ((ncls + 63) // 64) * 64
    w2lp = jnp.pad(w2l, ((0, 0), (0, npad - ncls)))
    b2lp = jnp.pad(b2l, ((0, 0), (0, npad - ncls)))

    blk = _pick_block(B)
    steps = B // blk

    # Wrapper-side layout plumbing (tiny): pad image rows 28->32, build the 3
    # ky-shifted tap copies (conv1 im2col over ky x cin, K=84 per channel) and
    # reorder rows so even/odd rows form two contiguous 16-row slabs (lets the
    # kernel read contiguous row slices per pooling parity).
    xp = jnp.pad(x_nchw, ((0, 0), (0, 0), (0, 4), (0, 0)))            # (B,C,32,28)
    t1 = jnp.pad(xp[:, :, 1:, :], ((0, 0), (0, 0), (0, 1), (0, 0)))
    t2 = jnp.pad(xp[:, :, 2:, :], ((0, 0), (0, 0), (0, 2), (0, 0)))
    taps = jnp.stack([xp, t1, t2], axis=2)                            # (B,C,3,32,28)
    taps = jnp.transpose(taps, (0, 3, 2, 1, 4)).reshape(B, 32, k1)    # (B,32,K1)
    taps = jnp.concatenate([taps[:, 0::2, :], taps[:, 1::2, :]], axis=1)
    x_taps = taps.reshape(B * 32, k1).astype(jnp.float32)

    flops = 2 * B * (32 * k1 * 832 + 36 * 12 * 192 * 256
                     + 12 * 768 * hid + hid * npad)
    bytes_accessed = (x_taps.size * 4 + w1k.size * 2 + b1t.size * 4
                      + w2g.size * 2 + b2t.size * 4 + w1l3.size * 2
                      + b1l.size * 4 + 128 * npad * 4 + npad * 4
                      + B * npad * 4)

    out = pl.pallas_call(
        _fwd_kernel,
        out_shape=jax.ShapeDtypeStruct((steps, blk, npad), jnp.float32),
        grid=(steps,),
        in_specs=[
            pl.BlockSpec((blk * 32, k1), lambda i: (i, 0)),        # conv1 taps
            pl.BlockSpec((k1, 832), lambda i: (0, 0)),             # W1 structured (bf16)
            pl.BlockSpec((1, 832), lambda i: (0, 0)),              # conv1 bias (tiled)
            pl.BlockSpec((3, 192, 256), lambda i: (0, 0, 0)),      # W2 group (bf16)
            pl.BlockSpec((1, 128), lambda i: (0, 0)),              # conv2 bias (tiled)
            pl.BlockSpec((12, 768, hid), lambda i: (0, 0, 0)),     # linear_1 W (bf16)
            pl.BlockSpec((1, hid), lambda i: (0, 0)),              # linear_1 bias
            pl.BlockSpec((hid, npad), lambda i: (0, 0)),           # linear_2 W
            pl.BlockSpec((1, npad), lambda i: (0, 0)),             # linear_2 bias
        ],
        out_specs=pl.BlockSpec((1, blk, npad), lambda i: (i, 0, 0)),
        scratch_shapes=[
            pltpu.VMEM((32, 832), jnp.float32),                    # per-image h1
            pltpu.VMEM((blk, 12, 768), jnp.float32),               # pooled block
        ],
        compiler_params=pltpu.CompilerParams(
            dimension_semantics=("parallel",)),
        cost_estimate=pl.CostEstimate(flops=int(flops), transcendentals=0,
                                      bytes_accessed=int(bytes_accessed)),
    )(x_taps, w1k, b1t, w2g, b2t, w1l3, b1l, w2lp, b2lp)

    return out.reshape(B, npad)[:, :ncls]


# -----------------------------------------------------------------------------
# One-time parameter preparation (all PyTorch->TPU layout work hoisted here).
# -----------------------------------------------------------------------------
def prepare_params(params):
    c1w, c1b, c2w, c2b, l1w, l1b, l2w, l2b = [np.asarray(p, np.float32)
                                              for p in params]
    assert c1w.shape[0] == 32 and c1w.shape[2:] == (3, 3)
    assert c2w.shape[:2] == (64, 32) and c2w.shape[2:] == (3, 3)
    assert l1w.shape[1] == 9216
    cin = c1w.shape[1]
    k1 = 3 * cin * 28

    # conv1 as one matmul: K = (ky, cin, x_in), N = (x_out, cout), Toeplitz in x.
    w1k = np.zeros((k1, 26 * 32), np.float32)
    for ky in range(3):
        for kx in range(3):
            tap = c1w[:, :, ky, kx].T                                # (cin, 32)
            for xo in range(26):
                rows = (ky * cin + np.arange(cin)) * 28 + xo + kx
                w1k[rows, xo * 32:(xo + 1) * 32] = tap
    b1t = np.tile(c1b, 26)[None, :]                                   # (1, 832)

    # conv2 group weight: K = (dx, cin) over a 6-wide input window; the 4 output
    # columns of the window are packed as (col parity | pool col | cout) so the
    # 2x2 max-pool becomes two contiguous 128-lane maxima in the kernel.
    w2g = np.zeros((3, 192, 256), np.float32)
    for ky in range(3):
        for xg in range(4):
            lane0 = (xg % 2) * 128 + (xg // 2) * 64
            for kx in range(3):
                uu = xg + kx
                w2g[ky, uu * 32:(uu + 1) * 32, lane0:lane0 + 64] = \
                    c2w[:, :, ky, kx].T                              # (32, 64)
    b2t = np.tile(c2b, 2)[None, :]                                    # (1, 128)

    # linear_1: permute torch's NCHW flatten order (c*144 + py*12 + px) to the
    # kernel's pooled layout (py*768 + px*64 + c) and split K per pooled row.
    hid = l1w.shape[0]
    w1l3 = (l1w.reshape(hid, 64, 12, 12).transpose(0, 2, 3, 1)
            .reshape(hid, 9216).T.reshape(12, 768, hid))              # (12,768,hid)
    b1l = l1b[None, :]
    w2l = l2w.T                                                       # (hid, ncls)
    b2l = l2b[None, :]

    j = jnp.asarray
    return (j(w1k, jnp.bfloat16), j(b1t, jnp.float32),
            j(w2g, jnp.bfloat16), j(b2t, jnp.float32),
            j(w1l3, jnp.bfloat16), j(b1l, jnp.float32),
            j(w2l, jnp.float32), j(b2l, jnp.float32))


# -----------------------------------------------------------------------------
# Pure-JAX reference with PyTorch semantics.
# -----------------------------------------------------------------------------
def reference_forward(x_nchw, params):
    (c1w, c1b, c2w, c2b, l1w, l1b, l2w, l2b) = params
    B = x_nchw.shape[0]
    hp = lax.Precision.HIGHEST
    dn = ('NHWC', 'HWIO', 'NHWC')
    x = jnp.transpose(x_nchw, (0, 2, 3, 1))
    h = lax.conv_general_dilated(x, jnp.transpose(c1w, (2, 3, 1, 0)), (1, 1),
                                 'VALID', dimension_numbers=dn, precision=hp) + c1b
    h = jax.nn.relu(h)
    h = lax.conv_general_dilated(h, jnp.transpose(c2w, (2, 3, 1, 0)), (1, 1),
                                 'VALID', dimension_numbers=dn, precision=hp) + c2b
    h = jax.nn.relu(h)
    h = lax.reduce_window(h, -jnp.inf, lax.max, (1, 2, 2, 1), (1, 2, 2, 1), 'VALID')
    flat = jnp.transpose(h, (0, 3, 1, 2)).reshape(B, -1)   # torch NCHW flatten
    h = jax.nn.relu(jnp.dot(flat, l1w.T, precision=hp) + l1b)
    return jnp.dot(h, l2w.T, precision=hp) + l2b


if __name__ == "__main__":
    B, CIN, H, W = 2, 1, 28, 28
    NCLS = 62                                                # only_digits=False

    key = jax.random.PRNGKey(0)
    ks = jax.random.split(key, 9)
    x = jax.random.normal(ks[0], (B, CIN, H, W), jnp.float32)

    params = (
        jax.random.normal(ks[1], (32, CIN, 3, 3), jnp.float32) * 0.10,  # conv2d_1.weight
        jax.random.normal(ks[2], (32,), jnp.float32) * 0.10,            # conv2d_1.bias
        jax.random.normal(ks[3], (64, 32, 3, 3), jnp.float32) * 0.05,   # conv2d_2.weight
        jax.random.normal(ks[4], (64,), jnp.float32) * 0.05,            # conv2d_2.bias
        jax.random.normal(ks[5], (128, 9216), jnp.float32) * 0.02,      # linear_1.weight
        jax.random.normal(ks[6], (128,), jnp.float32) * 0.02,           # linear_1.bias
        jax.random.normal(ks[7], (NCLS, 128), jnp.float32) * 0.05,      # linear_2.weight
        jax.random.normal(ks[8], (NCLS,), jnp.float32) * 0.05,          # linear_2.bias
    )

    prepared = prepare_params(params)                        # hoisted, one-time
    fwd = jax.jit(cnn_dropout_forward)

    out = jax.block_until_ready(fwd(x, prepared))
    assert out.shape == (B, NCLS) and out.dtype == jnp.float32

    ref = jax.block_until_ready(reference_forward(x, params))
    err = float(jnp.max(jnp.abs(out - ref)))
    assert err < 5e-2, f"Pallas/reference mismatch: max abs err = {err}"

    print("KERNEL_OK")
</pallas_src>

<mosaic_0001>
module attributes {stable_mosaic.version = 11 : i64} {
  func.func @_fwd_kernel(%arg0: i32, %arg1: memref<32x84xf32, #tpu.memory_space<vmem>>, %arg2: memref<84x832xbf16, #tpu.memory_space<vmem>>, %arg3: memref<1x832xf32, #tpu.memory_space<vmem>>, %arg4: memref<3x192x256xbf16, #tpu.memory_space<vmem>>, %arg5: memref<1x128xf32, #tpu.memory_space<vmem>>, %arg6: memref<12x768x128xbf16, #tpu.memory_space<vmem>>, %arg7: memref<1x128xf32, #tpu.memory_space<vmem>>, %arg8: memref<128x64xf32, #tpu.memory_space<vmem>>, %arg9: memref<1x64xf32, #tpu.memory_space<vmem>>, %arg10: memref<1x1x64xf32, #tpu.memory_space<vmem>>, %arg11: memref<32x832xf32, #tpu.memory_space<vmem>>, %arg12: memref<1x12x768xf32, #tpu.memory_space<vmem>>) attributes {dimension_semantics = [#tpu.dimension_semantics<parallel>], iteration_bounds = array<i64: 2>, scalar_prefetch = 0 : i64, scratch_operands = 2 : i64, tpu.core_type = #tpu.core_type<tc>, window_params = [{transform_indices = @transform_0, window_bounds = array<i64: 32, 84>}, {pipeline_mode = #tpu.pipeline_mode<synchronous>, transform_indices = @transform_1, window_bounds = array<i64: 84, 832>}, {pipeline_mode = #tpu.pipeline_mode<synchronous>, transform_indices = @transform_2, window_bounds = array<i64: 1, 832>}, {pipeline_mode = #tpu.pipeline_mode<synchronous>, transform_indices = @transform_3, window_bounds = array<i64: 3, 192, 256>}, {pipeline_mode = #tpu.pipeline_mode<synchronous>, transform_indices = @transform_4, window_bounds = array<i64: 1, 128>}, {pipeline_mode = #tpu.pipeline_mode<synchronous>, transform_indices = @transform_5, window_bounds = array<i64: 12, 768, 128>}, {pipeline_mode = #tpu.pipeline_mode<synchronous>, transform_indices = @transform_6, window_bounds = array<i64: 1, 128>}, {pipeline_mode = #tpu.pipeline_mode<synchronous>, transform_indices = @transform_7, window_bounds = array<i64: 128, 64>}, {pipeline_mode = #tpu.pipeline_mode<synchronous>, transform_indices = @transform_8, window_bounds = array<i64: 1, 64>}, {transform_indices = @transform_9, window_bounds = array<i64: 1, 1, 64>}]} {
    %c0_i32 = arith.constant 0 : i32
    %c32_i32 = arith.constant 32 : i32
    %0 = arith.muli %c0_i32, %c32_i32 : i32
    %1 = arith.index_cast %0 : i32 to index
    %c0 = arith.constant 0 : index
    %2 = vector.load %arg1[%1, %c0] : memref<32x84xf32, #tpu.memory_space<vmem>>, vector<32x84xf32>
    %3 = arith.truncf %2 : vector<32x84xf32> to vector<32x84xbf16>
    %c0_0 = arith.constant 0 : index
    %c0_1 = arith.constant 0 : index
    %4 = vector.load %arg2[%c0_0, %c0_1] : memref<84x832xbf16, #tpu.memory_space<vmem>>, vector<84x832xbf16>
    %cst = arith.constant dense<0.000000e+00> : vector<32x832xf32>
    %5 = tpu.matmul %3, %4, %cst {dimension_numbers = #tpu.dot_dimension_numbers<[1], [0], [0], [1], [0, 0, 1, 1], [], []>} : vector<32x84xbf16>, vector<84x832xbf16>, vector<32x832xf32> -> vector<32x832xf32>
    %c0_2 = arith.constant 0 : index
    %c0_3 = arith.constant 0 : index
    %6 = vector.load %arg3[%c0_2, %c0_3] : memref<1x832xf32, #tpu.memory_space<vmem>>, vector<1x832xf32>
    %7 = vector.broadcast %6 : vector<1x832xf32> to vector<32x832xf32>
    %8 = arith.addf %5, %7 : vector<32x832xf32>
    %cst_4 = arith.constant 0.000000e+00 : f32
    %9 = vector.broadcast %cst_4 : f32 to vector<32x832xf32>
    %10 = arith.maximumf %8, %9 : vector<32x832xf32>
    %c0_5 = arith.constant 0 : index
    %c0_6 = arith.constant 0 : index
    %11 = vector.load %arg11[%c0_5, %c0_6] : memref<32x832xf32, #tpu.memory_space<vmem>>, vector<32x832xf32>
    tpu.vector_store %arg11[%c0_5, %c0_6], %10 {strides = array<i32>} : memref<32x832xf32, #tpu.memory_space<vmem>>, vector<32x832xf32>,
    %c0_7 = arith.constant 0 : index
    %c0_8 = arith.constant 0 : index
    %12 = vector.load %arg11[%c0_7, %c0_8] : memref<32x832xf32, #tpu.memory_space<vmem>>, vector<12x192xf32>
    %13 = arith.truncf %12 : vector<12x192xf32> to vector<12x192xbf16>
    %c0_9 = arith.constant 0 : index
    %c0_10 = arith.constant 0 : index
    %c0_11 = arith.constant 0 : index
    %14 = vector.load %arg4[%c0_9, %c0_10, %c0_11] : memref<3x192x256xbf16, #tpu.memory_space<vmem>>, vector<1x192x256xbf16>
    %15 = vector.shape_cast %14 : vector<1x192x256xbf16> to vector<192x256xbf16>
    %cst_12 = arith.constant dense<0.000000e+00> : vector<12x256xf32>
    %16 = tpu.matmul %13, %15, %cst_12 {dimension_numbers = #tpu.dot_dimension_numbers<[1], [0], [0], [1], [0, 0, 1, 1], [], []>} : vector<12x192xbf16>, vector<192x256xbf16>, vector<12x256xf32> -> vector<12x256xf32>
    %c16 = arith.constant 16 : index
    %c0_13 = arith.constant 0 : index
    %17 = vector.load %arg11[%c16, %c0_13] : memref<32x832xf32, #tpu.memory_space<vmem>>, vector<12x192xf32>
    %18 = arith.truncf %17 : vector<12x192xf32> to vector<12x192xbf16>
    %c1 = arith.constant 1 : index
    %c0_14 = arith.constant 0 : index
    %c0_15 = arith.constant 0 : index
    %19 = vector.load %arg4[%c1, %c0_14, %c0_15] : memref<3x192x256xbf16, #tpu.memory_space<vmem>>, vector<1x192x256xbf16>
    %20 = vector.shape_cast %19 : vector<1x192x256xbf16> to vector<192x256xbf16>
    %cst_16 = arith.constant dense<0.000000e+00> : vector<12x256xf32>
    %21 = tpu.matmul %18, %20, %cst_16 {dimension_numbers = #tpu.dot_dimension_numbers<[1], [0], [0], [1], [0, 0, 1, 1], [], []>} : vector<12x192xbf16>, vector<192x256xbf16>, vector<12x256xf32> -> vector<12x256xf32>
    %22 = arith.addf %16, %21 : vector<12x256xf32>
    %c1_17 = arith.constant 1 : index
    %c0_18 = arith.constant 0 : index
    %23 = vector.load %arg11[%c1_17, %c0_18] : memref<32x832xf32, #tpu.memory_space<vmem>>, vector<12x192xf32>
    %24 = arith.truncf %23 : vector<12x192xf32> to vector<12x192xbf16>
    %c2 = arith.constant 2 : index
    %c0_19 = arith.constant 0 : index
    %c0_20 = arith.constant 0 : index
    %25 = vector.load %arg4[%c2, %c0_19, %c0_20] : memref<3x192x256xbf16, #tpu.memory_space<vmem>>, vector<1x192x256xbf16>
    %26 = vector.shape_cast %25 : vector<1x192x256xbf16> to vector<192x256xbf16>
    %cst_21 = arith.constant dense<0.000000e+00> : vector<12x256xf32>
    %27 = tpu.matmul %24, %26, %cst_21 {dimension_numbers = #tpu.dot_dimension_numbers<[1], [0], [0], [1], [0, 0, 1, 1], [], []>} : vector<12x192xbf16>, vector<192x256xbf16>, vector<12x256xf32> -> vector<12x256xf32>
    %28 = arith.addf %22, %27 : vector<12x256xf32>
    %c16_22 = arith.constant 16 : index
    %c0_23 = arith.constant 0 : index
    %29 = vector.load %arg11[%c16_22, %c0_23] : memref<32x832xf32, #tpu.memory_space<vmem>>, vector<12x192xf32>
    %30 = arith.truncf %29 : vector<12x192xf32> to vector<12x192xbf16>
    %c0_24 = arith.constant 0 : index
    %c0_25 = arith.constant 0 : index
    %c0_26 = arith.constant 0 : index
    %31 = vector.load %arg4[%c0_24, %c0_25, %c0_26] : memref<3x192x256xbf16, #tpu.memory_space<vmem>>, vector<1x192x256xbf16>
    %32 = vector.shape_cast %31 : vector<1x192x256xbf16> to vector<192x256xbf16>
    %cst_27 = arith.constant dense<0.000000e+00> : vector<12x256xf32>
    %33 = tpu.matmul %30, %32, %cst_27 {dimension_numbers = #tpu.dot_dimension_numbers<[1], [0], [0], [1], [0, 0, 1, 1], [], []>} : vector<12x192xbf16>, vector<192x256xbf16>, vector<12x256xf32> -> vector<12x256xf32>
    %c1_28 = arith.constant 1 : index
    %c0_29 = arith.constant 0 : index
    %34 = vector.load %arg11[%c1_28, %c0_29] : memref<32x832xf32, #tpu.memory_space<vmem>>, vector<12x192xf32>
    %35 = arith.truncf %34 : vector<12x192xf32> to vector<12x192xbf16>
    %c1_30 = arith.constant 1 : index
    %c0_31 = arith.constant 0 : index
    %c0_32 = arith.constant 0 : index
    %36 = vector.load %arg4[%c1_30, %c0_31, %c0_32] : memref<3x192x256xbf16, #tpu.memory_space<vmem>>, vector<1x192x256xbf16>
    %37 = vector.shape_cast %36 : vector<1x192x256xbf16> to vector<192x256xbf16>
    %cst_33 = arith.constant dense<0.000000e+00> : vector<12x256xf32>
    %38 = tpu.matmul %35, %37, %cst_33 {dimension_numbers = #tpu.dot_dimension_numbers<[1], [0], [0], [1], [0, 0, 1, 1], [], []>} : vector<12x192xbf16>, vector<192x256xbf16>, vector<12x256xf32> -> vector<12x256xf32>
    %39 = arith.addf %33, %38 : vector<12x256xf32>
    %c17 = arith.constant 17 : index
    %c0_34 = arith.constant 0 : index
    %40 = vector.load %arg11[%c17, %c0_34] : memref<32x832xf32, #tpu.memory_space<vmem>>, vector<12x192xf32>
    %41 = arith.truncf %40 : vector<12x192xf32> to vector<12x192xbf16>
    %c2_35 = arith.constant 2 : index
    %c0_36 = arith.constant 0 : index
    %c0_37 = arith.constant 0 : index
    %42 = vector.load %arg4[%c2_35, %c0_36, %c0_37] : memref<3x192x256xbf16, #tpu.memory_space<vmem>>, vector<1x192x256xbf16>
    %43 = vector.shape_cast %42 : vector<1x192x256xbf16> to vector<192x256xbf16>
    %cst_38 = arith.constant dense<0.000000e+00> : vector<12x256xf32>
    %44 = tpu.matmul %41, %43, %cst_38 {dimension_numbers = #tpu.dot_dimension_numbers<[1], [0], [0], [1], [0, 0, 1, 1], [], []>} : vector<12x192xbf16>, vector<192x256xbf16>, vector<12x256xf32> -> vector<12x256xf32>
    %45 = arith.addf %39, %44 : vector<12x256xf32>
    %46 = arith.maximumf %28, %45 : vector<12x256xf32>
    %47 = vector.extract_strided_slice %46 {offsets = [0, 0], sizes = [12, 128], strides = [1, 1]} : vector<12x256xf32> to vector<12x128xf32>
    %48 = vector.extract_strided_slice %46 {offsets = [0, 128], sizes = [12, 128], strides = [1, 1]} : vector<12x256xf32> to vector<12x128xf32>
    %49 = arith.maximumf %47, %48 : vector<12x128xf32>
    %c0_39 = arith.constant 0 : index
    %c0_40 = arith.constant 0 : index
    %50 = vector.load %arg5[%c0_39, %c0_40] : memref<1x128xf32, #tpu.memory_space<vmem>>, vector<1x128xf32>
    %51 = vector.broadcast %50 : vector<1x128xf32> to vector<12x128xf32>
    %52 = arith.addf %49, %51 : vector<12x128xf32>
    %cst_41 = arith.constant 0.000000e+00 : f32
    %53 = vector.broadcast %cst_41 : f32 to vector<12x128xf32>
    %54 = arith.maximumf %52, %53 : vector<12x128xf32>
    %55 = arith.index_cast %c0_i32 : i32 to index
    %c0_42 = arith.constant 0 : index
    %c0_43 = arith.constant 0 : index
    %56 = vector.load %arg12[%55, %c0_42, %c0_43] : memref<1x12x768xf32, #tpu.memory_space<vmem>>, vector<1x12x128xf32>
    %57 = vector.shape_cast %56 : vector<1x12x128xf32> to vector<12x128xf32>
    %58 = vector.shape_cast %54 : vector<12x128xf32> to vector<1x12x128xf32>
    tpu.vector_store %arg12[%55, %c0_42, %c0_43], %58 {strides = array<i32>} : memref<1x12x768xf32, #tpu.memory_space<vmem>>, vector<1x12x128xf32>,
    %c0_44 = arith.constant 0 : index
    %c128 = arith.constant 128 : index
    %59 = vector.load %arg11[%c0_44, %c128] : memref<32x832xf32, #tpu.memory_space<vmem>>, vector<12x192xf32>
    %60 = arith.truncf %59 : vector<12x192xf32> to vector<12x192xbf16>
    %c0_45 = arith.constant 0 : index
    %c0_46 = arith.constant 0 : index
    %c0_47 = arith.constant 0 : index
    %61 = vector.load %arg4[%c0_45, %c0_46, %c0_47] : memref<3x192x256xbf16, #tpu.memory_space<vmem>>, vector<1x192x256xbf16>
    %62 = vector.shape_cast %61 : vector<1x192x256xbf16> to vector<192x256xbf16>
    %cst_48 = arith.constant dense<0.000000e+00> : vector<12x256xf32>
    %63 = tpu.matmul %60, %62, %cst_48 {dimension_numbers = #tpu.dot_dimension_numbers<[1], [0], [0], [1], [0, 0, 1, 1], [], []>} : vector<12x192xbf16>, vector<192x256xbf16>, vector<12x256xf32> -> vector<12x256xf32>
    %c16_49 = arith.constant 16 : index
    %c128_50 = arith.constant 128 : index
    %64 = vector.load %arg11[%c16_49, %c128_50] : memref<32x832xf32, #tpu.memory_space<vmem>>, vector<12x192xf32>
    %65 = arith.truncf %64 : vector<12x192xf32> to vector<12x192xbf16>
    %c1_51 = arith.constant 1 : index
    %c0_52 = arith.constant 0 : index
    %c0_53 = arith.constant 0 : index
    %66 = vector.load %arg4[%c1_51, %c0_52, %c0_53] : memref<3x192x256xbf16, #tpu.memory_space<vmem>>, vector<1x192x256xbf16>
    %67 = vector.shape_cast %66 : vector<1x192x256xbf16> to vector<192x256xbf16>
    %cst_54 = arith.constant dense<0.000000e+00> : vector<12x256xf32>
    %68 = tpu.matmul %65, %67, %cst_54 {dimension_numbers = #tpu.dot_dimension_numbers<[1], [0], [0], [1], [0, 0, 1, 1], [], []>} : vector<12x192xbf16>, vector<192x256xbf16>, vector<12x256xf32> -> vector<12x256xf32>
    %69 = arith.addf %63, %68 : vector<12x256xf32>
    %c1_55 = arith.constant 1 : index
    %c128_56 = arith.constant 128 : index
    %70 = vector.load %arg11[%c1_55, %c128_56] : memref<32x832xf32, #tpu.memory_space<vmem>>, vector<12x192xf32>
    %71 = arith.truncf %70 : vector<12x192xf32> to vector<12x192xbf16>
    %c2_57 = arith.constant 2 : index
    %c0_58 = arith.constant 0 : index
    %c0_59 = arith.constant 0 : index
    %72 = vector.load %arg4[%c2_57, %c0_58, %c0_59] : memref<3x192x256xbf16, #tpu.memory_space<vmem>>, vector<1x192x256xbf16>
    %73 = vector.shape_cast %72 : vector<1x192x256xbf16> to vector<192x256xbf16>
    %cst_60 = arith.constant dense<0.000000e+00> : vector<12x256xf32>
    %74 = tpu.matmul %71, %73, %cst_60 {dimension_numbers = #tpu.dot_dimension_numbers<[1], [0], [0], [1], [0, 0, 1, 1], [], []>} : vector<12x192xbf16>, vector<192x256xbf16>, vector<12x256xf32> -> vector<12x256xf32>
    %75 = arith.addf %69, %74 : vector<12x256xf32>
    %c16_61 = arith.constant 16 : index
    %c128_62 = arith.constant 128 : index
    %76 = vector.load %arg11[%c16_61, %c128_62] : memref<32x832xf32, #tpu.memory_space<vmem>>, vector<12x192xf32>
    %77 = arith.truncf %76 : vector<12x192xf32> to vector<12x192xbf16>
    %c0_63 = arith.constant 0 : index
    %c0_64 = arith.constant 0 : index
    %c0_65 = arith.constant 0 : index
    %78 = vector.load %arg4[%c0_63, %c0_64, %c0_65] : memref<3x192x256xbf16, #tpu.memory_space<vmem>>, vector<1x192x256xbf16>
    %79 = vector.shape_cast %78 : vector<1x192x256xbf16> to vector<192x256xbf16>
    %cst_66 = arith.constant dense<0.000000e+00> : vector<12x256xf32>
    %80 = tpu.matmul %77, %79, %cst_66 {dimension_numbers = #tpu.dot_dimension_numbers<[1], [0], [0], [1], [0, 0, 1, 1], [], []>} : vector<12x192xbf16>, vector<192x256xbf16>, vector<12x256xf32> -> vector<12x256xf32>
    %c1_67 = arith.constant 1 : index
    %c128_68 = arith.constant 128 : index
    %81 = vector.load %arg11[%c1_67, %c128_68] : memref<32x832xf32, #tpu.memory_space<vmem>>, vector<12x192xf32>
    %82 = arith.truncf %81 : vector<12x192xf32> to vector<12x192xbf16>
    %c1_69 = arith.constant 1 : index
    %c0_70 = arith.constant 0 : index
    %c0_71 = arith.constant 0 : index
    %83 = vector.load %arg4[%c1_69, %c0_70, %c0_71] : memref<3x192x256xbf16, #tpu.memory_space<vmem>>, vector<1x192x256xbf16>
    %84 = vector.shape_cast %83 : vector<1x192x256xbf16> to vector<192x256xbf16>
    %cst_72 = arith.constant dense<0.000000e+00> : vector<12x256xf32>
    %85 = tpu.matmul %82, %84, %cst_72 {dimension_numbers = #tpu.dot_dimension_numbers<[1], [0], [0], [1], [0, 0, 1, 1], [], []>} : vector<12x192xbf16>, vector<192x256xbf16>, vector<12x256xf32> -> vector<12x256xf32>
    %86 = arith.addf %80, %85 : vector<12x256xf32>
    %c17_73 = arith.constant 17 : index
    %c128_74 = arith.constant 128 : index
    %87 = vector.load %arg11[%c17_73, %c128_74] : memref<32x832xf32, #tpu.memory_space<vmem>>, vector<12x192xf32>
    %88 = arith.truncf %87 : vector<12x192xf32> to vector<12x192xbf16>
    %c2_75 = arith.constant 2 : index
    %c0_76 = arith.constant 0 : index
    %c0_77 = arith.constant 0 : index
    %89 = vector.load %arg4[%c2_75, %c0_76, %c0_77] : memref<3x192x256xbf16, #tpu.memory_space<vmem>>, vector<1x192x256xbf16>
    %90 = vector.shape_cast %89 : vector<1x192x256xbf16> to vector<192x256xbf16>
    %cst_78 = arith.constant dense<0.000000e+00> : vector<12x256xf32>
    %91 = tpu.matmul %88, %90, %cst_78 {dimension_numbers = #tpu.dot_dimension_numbers<[1], [0], [0], [1], [0, 0, 1, 1], [], []>} : vector<12x192xbf16>, vector<192x256xbf16>, vector<12x256xf32> -> vector<12x256xf32>
    %92 = arith.addf %86, %91 : vector<12x256xf32>
    %93 = arith.maximumf %75, %92 : vector<12x256xf32>
    %94 = vector.extract_strided_slice %93 {offsets = [0, 0], sizes = [12, 128], strides = [1, 1]} : vector<12x256xf32> to vector<12x128xf32>
    %95 = vector.extract_strided_slice %93 {offsets = [0, 128], sizes = [12, 128], strides = [1, 1]} : vector<12x256xf32> to vector<12x128xf32>
    %96 = arith.maximumf %94, %95 : vector<12x128xf32>
    %c0_79 = arith.constant 0 : index
    %c0_80 = arith.constant 0 : index
    %97 = vector.load %arg5[%c0_79, %c0_80] : memref<1x128xf32, #tpu.memory_space<vmem>>, vector<1x128xf32>
    %98 = vector.broadcast %97 : vector<1x128xf32> to vector<12x128xf32>
    %99 = arith.addf %96, %98 : vector<12x128xf32>
    %cst_81 = arith.constant 0.000000e+00 : f32
    %100 = vector.broadcast %cst_81 : f32 to vector<12x128xf32>
    %101 = arith.maximumf %99, %100 : vector<12x128xf32>
    %102 = arith.index_cast %c0_i32 : i32 to index
    %c0_82 = arith.constant 0 : index
    %c128_83 = arith.constant 128 : index
    %103 = vector.load %arg12[%102, %c0_82, %c128_83] : memref<1x12x768xf32, #tpu.memory_space<vmem>>, vector<1x12x128xf32>
    %104 = vector.shape_cast %103 : vector<1x12x128xf32> to vector<12x128xf32>
    %105 = vector.shape_cast %101 : vector<12x128xf32> to vector<1x12x128xf32>
    tpu.vector_store %arg12[%102, %c0_82, %c128_83], %105 {strides = array<i32>} : memref<1x12x768xf32, #tpu.memory_space<vmem>>, vector<1x12x128xf32>,
    %c0_84 = arith.constant 0 : index
    %c256 = arith.constant 256 : index
    %106 = vector.load %arg11[%c0_84, %c256] : memref<32x832xf32, #tpu.memory_space<vmem>>, vector<12x192xf32>
    %107 = arith.truncf %106 : vector<12x192xf32> to vector<12x192xbf16>
    %c0_85 = arith.constant 0 : index
    %c0_86 = arith.constant 0 : index
    %c0_87 = arith.constant 0 : index
    %108 = vector.load %arg4[%c0_85, %c0_86, %c0_87] : memref<3x192x256xbf16, #tpu.memory_space<vmem>>, vector<1x192x256xbf16>
    %109 = vector.shape_cast %108 : vector<1x192x256xbf16> to vector<192x256xbf16>
    %cst_88 = arith.constant dense<0.000000e+00> : vector<12x256xf32>
    %110 = tpu.matmul %107, %109, %cst_88 {dimension_numbers = #tpu.dot_dimension_numbers<[1], [0], [0], [1], [0, 0, 1, 1], [], []>} : vector<12x192xbf16>, vector<192x256xbf16>, vector<12x256xf32> -> vector<12x256xf32>
    %c16_89 = arith.constant 16 : index
    %c256_90 = arith.constant 256 : index
    %111 = vector.load %arg11[%c16_89, %c256_90] : memref<32x832xf32, #tpu.memory_space<vmem>>, vector<12x192xf32>
    %112 = arith.truncf %111 : vector<12x192xf32> to vector<12x192xbf16>
    %c1_91 = arith.constant 1 : index
    %c0_92 = arith.constant 0 : index
    %c0_93 = arith.constant 0 : index
    %113 = vector.load %arg4[%c1_91, %c0_92, %c0_93] : memref<3x192x256xbf16, #tpu.memory_space<vmem>>, vector<1x192x256xbf16>
    %114 = vector.shape_cast %113 : vector<1x192x256xbf16> to vector<192x256xbf16>
    %cst_94 = arith.constant dense<0.000000e+00> : vector<12x256xf32>
    %115 = tpu.matmul %112, %114, %cst_94 {dimension_numbers = #tpu.dot_dimension_numbers<[1], [0], [0], [1], [0, 0, 1, 1], [], []>} : vector<12x192xbf16>, vector<192x256xbf16>, vector<12x256xf32> -> vector<12x256xf32>
    %116 = arith.addf %110, %115 : vector<12x256xf32>
    %c1_95 = arith.constant 1 : index
    %c256_96 = arith.constant 256 : index
    %117 = vector.load %arg11[%c1_95, %c256_96] : memref<32x832xf32, #tpu.memory_space<vmem>>, vector<12x192xf32>
    %118 = arith.truncf %117 : vector<12x192xf32> to vector<12x192xbf16>
    %c2_97 = arith.constant 2 : index
    %c0_98 = arith.constant 0 : index
    %c0_99 = arith.constant 0 : index
    %119 = vector.load %arg4[%c2_97, %c0_98, %c0_99] : memref<3x192x256xbf16, #tpu.memory_space<vmem>>, vector<1x192x256xbf16>
    %120 = vector.shape_cast %119 : vector<1x192x256xbf16> to vector<192x256xbf16>
    %cst_100 = arith.constant dense<0.000000e+00> : vector<12x256xf32>
    %121 = tpu.matmul %118, %120, %cst_100 {dimension_numbers = #tpu.dot_dimension_numbers<[1], [0], [0], [1], [0, 0, 1, 1], [], []>} : vector<12x192xbf16>, vector<192x256xbf16>, vector<12x256xf32> -> vector<12x256xf32>
    %122 = arith.addf %116, %121 : vector<12x256xf32>
    %c16_101 = arith.constant 16 : index
    %c256_102 = arith.constant 256 : index
    %123 = vector.load %arg11[%c16_101, %c256_102] : memref<32x832xf32, #tpu.memory_space<vmem>>, vector<12x192xf32>
    %124 = arith.truncf %123 : vector<12x192xf32> to vector<12x192xbf16>
    %c0_103 = arith.constant 0 : index
    %c0_104 = arith.constant 0 : index
    %c0_105 = arith.constant 0 : index
    %125 = vector.load %arg4[%c0_103, %c0_104, %c0_105] : memref<3x192x256xbf16, #tpu.memory_space<vmem>>, vector<1x192x256xbf16>
    %126 = vector.shape_cast %125 : vector<1x192x256xbf16> to vector<192x256xbf16>
    %cst_106 = arith.constant dense<0.000000e+00> : vector<12x256xf32>
    %127 = tpu.matmul %124, %126, %cst_106 {dimension_numbers = #tpu.dot_dimension_numbers<[1], [0], [0], [1], [0, 0, 1, 1], [], []>} : vector<12x192xbf16>, vector<192x256xbf16>, vector<12x256xf32> -> vector<12x256xf32>
    %c1_107 = arith.constant 1 : index
    %c256_108 = arith.constant 256 : index
    %128 = vector.load %arg11[%c1_107, %c256_108] : memref<32x832xf32, #tpu.memory_space<vmem>>, vector<12x192xf32>
    %129 = arith.truncf %128 : vector<12x192xf32> to vector<12x192xbf16>
    %c1_109 = arith.constant 1 : index
    %c0_110 = arith.constant 0 : index
    %c0_111 = arith.constant 0 : index
    %130 = vector.load %arg4[%c1_109, %c0_110, %c0_111] : memref<3x192x256xbf16, #tpu.memory_space<vmem>>, vector<1x192x256xbf16>
    %131 = vector.shape_cast %130 : vector<1x192x256xbf16> to vector<192x256xbf16>
    %cst_112 = arith.constant dense<0.000000e+00> : vector<12x256xf32>
    %132 = tpu.matmul %129, %131, %cst_112 {dimension_numbers = #tpu.dot_dimension_numbers<[1], [0], [0], [1], [0, 0, 1, 1], [], []>} : vector<12x192xbf16>, vector<192x256xbf16>, vector<12x256xf32> -> vector<12x256xf32>
    %133 = arith.addf %127, %132 : vector<12x256xf32>
    %c17_113 = arith.constant 17 : index
    %c256_114 = arith.constant 256 : index
    %134 = vector.load %arg11[%c17_113, %c256_114] : memref<32x832xf32, #tpu.memory_space<vmem>>, vector<12x192xf32>
    %135 = arith.truncf %134 : vector<12x192xf32> to vector<12x192xbf16>
    %c2_115 = arith.constant 2 : index
    %c0_116 = arith.constant 0 : index
    %c0_117 = arith.constant 0 : index
    %136 = vector.load %arg4[%c2_115, %c0_116, %c0_117] : memref<3x192x256xbf16, #tpu.memory_space<vmem>>, vector<1x192x256xbf16>
    %137 = vector.shape_cast %136 : vector<1x192x256xbf16> to vector<192x256xbf16>
    %cst_118 = arith.constant dense<0.000000e+00> : vector<12x256xf32>
    %138 = tpu.matmul %135, %137, %cst_118 {dimension_numbers = #tpu.dot_dimension_numbers<[1], [0], [0], [1], [0, 0, 1, 1], [], []>} : vector<12x192xbf16>, vector<192x256xbf16>, vector<12x256xf32> -> vector<12x256xf32>
    %139 = arith.addf %133, %138 : vector<12x256xf32>
    %140 = arith.maximumf %122, %139 : vector<12x256xf32>
    %141 = vector.extract_strided_slice %140 {offsets = [0, 0], sizes = [12, 128], strides = [1, 1]} : vector<12x256xf32> to vector<12x128xf32>
    %142 = vector.extract_strided_slice %140 {offsets = [0, 128], sizes = [12, 128], strides = [1, 1]} : vector<12x256xf32> to vector<12x128xf32>
    %143 = arith.maximumf %141, %142 : vector<12x128xf32>
    %c0_119 = arith.constant 0 : index
    %c0_120 = arith.constant 0 : index
    %144 = vector.load %arg5[%c0_119, %c0_120] : memref<1x128xf32, #tpu.memory_space<vmem>>, vector<1x128xf32>
    %145 = vector.broadcast %144 : vector<1x128xf32> to vector<12x128xf32>
    %146 = arith.addf %143, %145 : vector<12x128xf32>
    %cst_121 = arith.constant 0.000000e+00 : f32
    %147 = vector.broadcast %cst_121 : f32 to vector<12x128xf32>
    %148 = arith.maximumf %146, %147 : vector<12x128xf32>
    %149 = arith.index_cast %c0_i32 : i32 to index
    %c0_122 = arith.constant 0 : index
    %c256_123 = arith.constant 256 : index
    %150 = vector.load %arg12[%149, %c0_122, %c256_123] : memref<1x12x768xf32, #tpu.memory_space<vmem>>, vector<1x12x128xf32>
    %151 = vector.shape_cast %150 : vector<1x12x128xf32> to vector<12x128xf32>
    %152 = vector.shape_cast %148 : vector<12x128xf32> to vector<1x12x128xf32>
    tpu.vector_store %arg12[%149, %c0_122, %c256_123], %152 {strides = array<i32>} : memref<1x12x768xf32, #tpu.memory_space<vmem>>, vector<1x12x128xf32>,
    %c0_124 = arith.constant 0 : index
    %c384 = arith.constant 384 : index
    %153 = vector.load %arg11[%c0_124, %c384] : memref<32x832xf32, #tpu.memory_space<vmem>>, vector<12x192xf32>
    %154 = arith.truncf %153 : vector<12x192xf32> to vector<12x192xbf16>
    %c0_125 = arith.constant 0 : index
    %c0_126 = arith.constant 0 : index
    %c0_127 = arith.constant 0 : index
    %155 = vector.load %arg4[%c0_125, %c0_126, %c0_127] : memref<3x192x256xbf16, #tpu.memory_space<vmem>>, vector<1x192x256xbf16>
    %156 = vector.shape_cast %155 : vector<1x192x256xbf16> to vector<192x256xbf16>
    %cst_128 = arith.constant dense<0.000000e+00> : vector<12x256xf32>
    %157 = tpu.matmul %154, %156, %cst_128 {dimension_numbers = #tpu.dot_dimension_numbers<[1], [0], [0], [1], [0, 0, 1, 1], [], []>} : vector<12x192xbf16>, vector<192x256xbf16>, vector<12x256xf32> -> vector<12x256xf32>
    %c16_129 = arith.constant 16 : index
    %c384_130 = arith.constant 384 : index
    %158 = vector.load %arg11[%c16_129, %c384_130] : memref<32x832xf32, #tpu.memory_space<vmem>>, vector<12x192xf32>
    %159 = arith.truncf %158 : vector<12x192xf32> to vector<12x192xbf16>
    %c1_131 = arith.constant 1 : index
    %c0_132 = arith.constant 0 : index
    %c0_133 = arith.constant 0 : index
    %160 = vector.load %arg4[%c1_131, %c0_132, %c0_133] : memref<3x192x256xbf16, #tpu.memory_space<vmem>>, vector<1x192x256xbf16>
    %161 = vector.shape_cast %160 : vector<1x192x256xbf16> to vector<192x256xbf16>
    %cst_134 = arith.constant dense<0.000000e+00> : vector<12x256xf32>
    %162 = tpu.matmul %159, %161, %cst_134 {dimension_numbers = #tpu.dot_dimension_numbers<[1], [0], [0], [1], [0, 0, 1, 1], [], []>} : vector<12x192xbf16>, vector<192x256xbf16>, vector<12x256xf32> -> vector<12x256xf32>
    %163 = arith.addf %157, %162 : vector<12x256xf32>
    %c1_135 = arith.constant 1 : index
    %c384_136 = arith.constant 384 : index
    %164 = vector.load %arg11[%c1_135, %c384_136] : memref<32x832xf32, #tpu.memory_space<vmem>>, vector<12x192xf32>
    %165 = arith.truncf %164 : vector<12x192xf32> to vector<12x192xbf16>
    %c2_137 = arith.constant 2 : index
    %c0_138 = arith.constant 0 : index
    %c0_139 = arith.constant 0 : index
    %166 = vector.load %arg4[%c2_137, %c0_138, %c0_139] : memref<3x192x256xbf16, #tpu.memory_space<vmem>>, vector<1x192x256xbf16>
    %167 = vector.shape_cast %166 : vector<1x192x256xbf16> to vector<192x256xbf16>
    %cst_140 = arith.constant dense<0.000000e+00> : vector<12x256xf32>
    %168 = tpu.matmul %165, %167, %cst_140 {dimension_numbers = #tpu.dot_dimension_numbers<[1], [0], [0], [1], [0, 0, 1, 1], [], []>} : vector<12x192xbf16>, vector<192x256xbf16>, vector<12x256xf32> -> vector<12x256xf32>
    %169 = arith.addf %163, %168 : vector<12x256xf32>
    %c16_141 = arith.constant 16 : index
    %c384_142 = arith.constant 384 : index
    %170 = vector.load %arg11[%c16_141, %c384_142] : memref<32x832xf32, #tpu.memory_space<vmem>>, vector<12x192xf32>
    %171 = arith.truncf %170 : vector<12x192xf32> to vector<12x192xbf16>
    %c0_143 = arith.constant 0 : index
    %c0_144 = arith.constant 0 : index
    %c0_145 = arith.constant 0 : index
    %172 = vector.load %arg4[%c0_143, %c0_144, %c0_145] : memref<3x192x256xbf16, #tpu.memory_space<vmem>>, vector<1x192x256xbf16>
    %173 = vector.shape_cast %172 : vector<1x192x256xbf16> to vector<192x256xbf16>
    %cst_146 = arith.constant dense<0.000000e+00> : vector<12x256xf32>
    %174 = tpu.matmul %171, %173, %cst_146 {dimension_numbers = #tpu.dot_dimension_numbers<[1], [0], [0], [1], [0, 0, 1, 1], [], []>} : vector<12x192xbf16>, vector<192x256xbf16>, vector<12x256xf32> -> vector<12x256xf32>
    %c1_147 = arith.constant 1 : index
    %c384_148 = arith.constant 384 : index
    %175 = vector.load %arg11[%c1_147, %c384_148] : memref<32x832xf32, #tpu.memory_space<vmem>>, vector<12x192xf32>
    %176 = arith.truncf %175 : vector<12x192xf32> to vector<12x192xbf16>
    %c1_149 = arith.constant 1 : index
    %c0_150 = arith.constant 0 : index
    %c0_151 = arith.constant 0 : index
    %177 = vector.load %arg4[%c1_149, %c0_150, %c0_151] : memref<3x192x256xbf16, #tpu.memory_space<vmem>>, vector<1x192x256xbf16>
    %178 = vector.shape_cast %177 : vector<1x192x256xbf16> to vector<192x256xbf16>
    %cst_152 = arith.constant dense<0.000000e+00> : vector<12x256xf32>
    %179 = tpu.matmul %176, %178, %cst_152 {dimension_numbers = #tpu.dot_dimension_numbers<[1], [0], [0], [1], [0, 0, 1, 1], [], []>} : vector<12x192xbf16>, vector<192x256xbf16>, vector<12x256xf32> -> vector<12x256xf32>
    %180 = arith.addf %174, %179 : vector<12x256xf32>
    %c17_153 = arith.constant 17 : index
    %c384_154 = arith.constant 384 : index
    %181 = vector.load %arg11[%c17_153, %c384_154] : memref<32x832xf32, #tpu.memory_space<vmem>>, vector<12x192xf32>
    %182 = arith.truncf %181 : vector<12x192xf32> to vector<12x192xbf16>
    %c2_155 = arith.constant 2 : index
    %c0_156 = arith.constant 0 : index
    %c0_157 = arith.constant 0 : index
    %183 = vector.load %arg4[%c2_155, %c0_156, %c0_157] : memref<3x192x256xbf16, #tpu.memory_space<vmem>>, vector<1x192x256xbf16>
    %184 = vector.shape_cast %183 : vector<1x192x256xbf16> to vector<192x256xbf16>
    %cst_158 = arith.constant dense<0.000000e+00> : vector<12x256xf32>
    %185 = tpu.matmul %182, %184, %cst_158 {dimension_numbers = #tpu.dot_dimension_numbers<[1], [0], [0], [1], [0, 0, 1, 1], [], []>} : vector<12x192xbf16>, vector<192x256xbf16>, vector<12x256xf32> -> vector<12x256xf32>
    %186 = arith.addf %180, %185 : vector<12x256xf32>
    %187 = arith.maximumf %169, %186 : vector<12x256xf32>
    %188 = vector.extract_strided_slice %187 {offsets = [0, 0], sizes = [12, 128], strides = [1, 1]} : vector<12x256xf32> to vector<12x128xf32>
    %189 = vector.extract_strided_slice %187 {offsets = [0, 128], sizes = [12, 128], strides = [1, 1]} : vector<12x256xf32> to vector<12x128xf32>
    %190 = arith.maximumf %188, %189 : vector<12x128xf32>
    %c0_159 = arith.constant 0 : index
    %c0_160 = arith.constant 0 : index
    %191 = vector.load %arg5[%c0_159, %c0_160] : memref<1x128xf32, #tpu.memory_space<vmem>>, vector<1x128xf32>
    %192 = vector.broadcast %191 : vector<1x128xf32> to vector<12x128xf32>
    %193 = arith.addf %190, %192 : vector<12x128xf32>
    %cst_161 = arith.constant 0.000000e+00 : f32
    %194 = vector.broadcast %cst_161 : f32 to vector<12x128xf32>
    %195 = arith.maximumf %193, %194 : vector<12x128xf32>
    %196 = arith.index_cast %c0_i32 : i32 to index
    %c0_162 = arith.constant 0 : index
    %c384_163 = arith.constant 384 : index
    %197 = vector.load %arg12[%196, %c0_162, %c384_163] : memref<1x12x768xf32, #tpu.memory_space<vmem>>, vector<1x12x128xf32>
    %198 = vector.shape_cast %197 : vector<1x12x128xf32> to vector<12x128xf32>
    %199 = vector.shape_cast %195 : vector<12x128xf32> to vector<1x12x128xf32>
    tpu.vector_store %arg12[%196, %c0_162, %c384_163], %199 {strides = array<i32>} : memref<1x12x768xf32, #tpu.memory_space<vmem>>, vector<1x12x128xf32>,
    %c0_164 = arith.constant 0 : index
    %c512 = arith.constant 512 : index
    %200 = vector.load %arg11[%c0_164, %c512] : memref<32x832xf32, #tpu.memory_space<vmem>>, vector<12x192xf32>
    %201 = arith.truncf %200 : vector<12x192xf32> to vector<12x192xbf16>
    %c0_165 = arith.constant 0 : index
    %c0_166 = arith.constant 0 : index
    %c0_167 = arith.constant 0 : index
    %202 = vector.load %arg4[%c0_165, %c0_166, %c0_167] : memref<3x192x256xbf16, #tpu.memory_space<vmem>>, vector<1x192x256xbf16>
    %203 = vector.shape_cast %202 : vector<1x192x256xbf16> to vector<192x256xbf16>
    %cst_168 = arith.constant dense<0.000000e+00> : vector<12x256xf32>
    %204 = tpu.matmul %201, %203, %cst_168 {dimension_numbers = #tpu.dot_dimension_numbers<[1], [0], [0], [1], [0, 0, 1, 1], [], []>} : vector<12x192xbf16>, vector<192x256xbf16>, vector<12x256xf32> -> vector<12x256xf32>
    %c16_169 = arith.constant 16 : index
    %c512_170 = arith.constant 512 : index
    %205 = vector.load %arg11[%c16_169, %c512_170] : memref<32x832xf32, #tpu.memory_space<vmem>>, vector<12x192xf32>
    %206 = arith.truncf %205 : vector<12x192xf32> to vector<12x192xbf16>
    %c1_171 = arith.constant 1 : index
    %c0_172 = arith.constant 0 : index
    %c0_173 = arith.constant 0 : index
    %207 = vector.load %arg4[%c1_171, %c0_172, %c0_173] : memref<3x192x256xbf16, #tpu.memory_space<vmem>>, vector<1x192x256xbf16>
    %208 = vector.shape_cast %207 : vector<1x192x256xbf16> to vector<192x256xbf16>
    %cst_174 = arith.constant dense<0.000000e+00> : vector<12x256xf32>
    %209 = tpu.matmul %206, %208, %cst_174 {dimension_numbers = #tpu.dot_dimension_numbers<[1], [0], [0], [1], [0, 0, 1, 1], [], []>} : vector<12x192xbf16>, vector<192x256xbf16>, vector<12x256xf32> -> vector<12x256xf32>
    %210 = arith.addf %204, %209 : vector<12x256xf32>
    %c1_175 = arith.constant 1 : index
    %c512_176 = arith.constant 512 : index
    %211 = vector.load %arg11[%c1_175, %c512_176] : memref<32x832xf32, #tpu.memory_space<vmem>>, vector<12x192xf32>
    %212 = arith.truncf %211 : vector<12x192xf32> to vector<12x192xbf16>
    %c2_177 = arith.constant 2 : index
    %c0_178 = arith.constant 0 : index
    %c0_179 = arith.constant 0 : index
    %213 = vector.load %arg4[%c2_177, %c0_178, %c0_179] : memref<3x192x256xbf16, #tpu.memory_space<vmem>>, vector<1x192x256xbf16>
    %214 = vector.shape_cast %213 : vector<1x192x256xbf16> to vector<192x256xbf16>
    %cst_180 = arith.constant dense<0.000000e+00> : vector<12x256xf32>
    %215 = tpu.matmul %212, %214, %cst_180 {dimension_numbers = #tpu.dot_dimension_numbers<[1], [0], [0], [1], [0, 0, 1, 1], [], []>} : vector<12x192xbf16>, vector<192x256xbf16>, vector<12x256xf32> -> vector<12x256xf32>
    %216 = arith.addf %210, %215 : vector<12x256xf32>
    %c16_181 = arith.constant 16 : index
    %c512_182 = arith.constant 512 : index
    %217 = vector.load %arg11[%c16_181, %c512_182] : memref<32x832xf32, #tpu.memory_space<vmem>>, vector<12x192xf32>
    %218 = arith.truncf %217 : vector<12x192xf32> to vector<12x192xbf16>
    %c0_183 = arith.constant 0 : index
    %c0_184 = arith.constant 0 : index
    %c0_185 = arith.constant 0 : index
    %219 = vector.load %arg4[%c0_183, %c0_184, %c0_185] : memref<3x192x256xbf16, #tpu.memory_space<vmem>>, vector<1x192x256xbf16>
    %220 = vector.shape_cast %219 : vector<1x192x256xbf16> to vector<192x256xbf16>
    %cst_186 = arith.constant dense<0.000000e+00> : vector<12x256xf32>
    %221 = tpu.matmul %218, %220, %cst_186 {dimension_numbers = #tpu.dot_dimension_numbers<[1], [0], [0], [1], [0, 0, 1, 1], [], []>} : vector<12x192xbf16>, vector<192x256xbf16>, vector<12x256xf32> -> vector<12x256xf32>
    %c1_187 = arith.constant 1 : index
    %c512_188 = arith.constant 512 : index
    %222 = vector.load %arg11[%c1_187, %c512_188] : memref<32x832xf32, #tpu.memory_space<vmem>>, vector<12x192xf32>
    %223 = arith.truncf %222 : vector<12x192xf32> to vector<12x192xbf16>
    %c1_189 = arith.constant 1 : index
    %c0_190 = arith.constant 0 : index
    %c0_191 = arith.constant 0 : index
    %224 = vector.load %arg4[%c1_189, %c0_190, %c0_191] : memref<3x192x256xbf16, #tpu.memory_space<vmem>>, vector<1x192x256xbf16>
    %225 = vector.shape_cast %224 : vector<1x192x256xbf16> to vector<192x256xbf16>
    %cst_192 = arith.constant dense<0.000000e+00> : vector<12x256xf32>
    %226 = tpu.matmul %223, %225, %cst_192 {dimension_numbers = #tpu.dot_dimension_numbers<[1], [0], [0], [1], [0, 0, 1, 1], [], []>} : vector<12x192xbf16>, vector<192x256xbf16>, vector<12x256xf32> -> vector<12x256xf32>
    %227 = arith.addf %221, %226 : vector<12x256xf32>
    %c17_193 = arith.constant 17 : index
    %c512_194 = arith.constant 512 : index
    %228 = vector.load %arg11[%c17_193, %c512_194] : memref<32x832xf32, #tpu.memory_space<vmem>>, vector<12x192xf32>
    %229 = arith.truncf %228 : vector<12x192xf32> to vector<12x192xbf16>
    %c2_195 = arith.constant 2 : index
    %c0_196 = arith.constant 0 : index
    %c0_197 = arith.constant 0 : index
    %230 = vector.load %arg4[%c2_195, %c0_196, %c0_197] : memref<3x192x256xbf16, #tpu.memory_space<vmem>>, vector<1x192x256xbf16>
    %231 = vector.shape_cast %230 : vector<1x192x256xbf16> to vector<192x256xbf16>
    %cst_198 = arith.constant dense<0.000000e+00> : vector<12x256xf32>
    %232 = tpu.matmul %229, %231, %cst_198 {dimension_numbers = #tpu.dot_dimension_numbers<[1], [0], [0], [1], [0, 0, 1, 1], [], []>} : vector<12x192xbf16>, vector<192x256xbf16>, vector<12x256xf32> -> vector<12x256xf32>
    %233 = arith.addf %227, %232 : vector<12x256xf32>
    %234 = arith.maximumf %216, %233 : vector<12x256xf32>
    %235 = vector.extract_strided_slice %234 {offsets = [0, 0], sizes = [12, 128], strides = [1, 1]} : vector<12x256xf32> to vector<12x128xf32>
    %236 = vector.extract_strided_slice %234 {offsets = [0, 128], sizes = [12, 128], strides = [1, 1]} : vector<12x256xf32> to vector<12x128xf32>
    %237 = arith.maximumf %235, %236 : vector<12x128xf32>
    %c0_199 = arith.constant 0 : index
    %c0_200 = arith.constant 0 : index
    %238 = vector.load %arg5[%c0_199, %c0_200] : memref<1x128xf32, #tpu.memory_space<vmem>>, vector<1x128xf32>
    %239 = vector.broadcast %238 : vector<1x128xf32> to vector<12x128xf32>
    %240 = arith.addf %237, %239 : vector<12x128xf32>
    %cst_201 = arith.constant 0.000000e+00 : f32
    %241 = vector.broadcast %cst_201 : f32 to vector<12x128xf32>
    %242 = arith.maximumf %240, %241 : vector<12x128xf32>
    %243 = arith.index_cast %c0_i32 : i32 to index
    %c0_202 = arith.constant 0 : index
    %c512_203 = arith.constant 512 : index
    %244 = vector.load %arg12[%243, %c0_202, %c512_203] : memref<1x12x768xf32, #tpu.memory_space<vmem>>, vector<1x12x128xf32>
    %245 = vector.shape_cast %244 : vector<1x12x128xf32> to vector<12x128xf32>
    %246 = vector.shape_cast %242 : vector<12x128xf32> to vector<1x12x128xf32>
    tpu.vector_store %arg12[%243, %c0_202, %c512_203], %246 {strides = array<i32>} : memref<1x12x768xf32, #tpu.memory_space<vmem>>, vector<1x12x128xf32>,
    %c0_204 = arith.constant 0 : index
    %c640 = arith.constant 640 : index
    %247 = vector.load %arg11[%c0_204, %c640] : memref<32x832xf32, #tpu.memory_space<vmem>>, vector<12x192xf32>
    %248 = arith.truncf %247 : vector<12x192xf32> to vector<12x192xbf16>
    %c0_205 = arith.constant 0 : index
    %c0_206 = arith.constant 0 : index
    %c0_207 = arith.constant 0 : index
    %249 = vector.load %arg4[%c0_205, %c0_206, %c0_207] : memref<3x192x256xbf16, #tpu.memory_space<vmem>>, vector<1x192x256xbf16>
    %250 = vector.shape_cast %249 : vector<1x192x256xbf16> to vector<192x256xbf16>
    %cst_208 = arith.constant dense<0.000000e+00> : vector<12x256xf32>
    %251 = tpu.matmul %248, %250, %cst_208 {dimension_numbers = #tpu.dot_dimension_numbers<[1], [0], [0], [1], [0, 0, 1, 1], [], []>} : vector<12x192xbf16>, vector<192x256xbf16>, vector<12x256xf32> -> vector<12x256xf32>
    %c16_209 = arith.constant 16 : index
    %c640_210 = arith.constant 640 : index
    %252 = vector.load %arg11[%c16_209, %c640_210] : memref<32x832xf32, #tpu.memory_space<vmem>>, vector<12x192xf32>
    %253 = arith.truncf %252 : vector<12x192xf32> to vector<12x192xbf16>
    %c1_211 = arith.constant 1 : index
    %c0_212 = arith.constant 0 : index
    %c0_213 = arith.constant 0 : index
    %254 = vector.load %arg4[%c1_211, %c0_212, %c0_213] : memref<3x192x256xbf16, #tpu.memory_space<vmem>>, vector<1x192x256xbf16>
    %255 = vector.shape_cast %254 : vector<1x192x256xbf16> to vector<192x256xbf16>
    %cst_214 = arith.constant dense<0.000000e+00> : vector<12x256xf32>
    %256 = tpu.matmul %253, %255, %cst_214 {dimension_numbers = #tpu.dot_dimension_numbers<[1], [0], [0], [1], [0, 0, 1, 1], [], []>} : vector<12x192xbf16>, vector<192x256xbf16>, vector<12x256xf32> -> vector<12x256xf32>
    %257 = arith.addf %251, %256 : vector<12x256xf32>
    %c1_215 = arith.constant 1 : index
    %c640_216 = arith.constant 640 : index
    %258 = vector.load %arg11[%c1_215, %c640_216] : memref<32x832xf32, #tpu.memory_space<vmem>>, vector<12x192xf32>
    %259 = arith.truncf %258 : vector<12x192xf32> to vector<12x192xbf16>
    %c2_217 = arith.constant 2 : index
    %c0_218 = arith.constant 0 : index
    %c0_219 = arith.constant 0 : index
    %260 = vector.load %arg4[%c2_217, %c0_218, %c0_219] : memref<3x192x256xbf16, #tpu.memory_space<vmem>>, vector<1x192x256xbf16>
    %261 = vector.shape_cast %260 : vector<1x192x256xbf16> to vector<192x256xbf16>
    %cst_220 = arith.constant dense<0.000000e+00> : vector<12x256xf32>
    %262 = tpu.matmul %259, %261, %cst_220 {dimension_numbers = #tpu.dot_dimension_numbers<[1], [0], [0], [1], [0, 0, 1, 1], [], []>} : vector<12x192xbf16>, vector<192x256xbf16>, vector<12x256xf32> -> vector<12x256xf32>
    %263 = arith.addf %257, %262 : vector<12x256xf32>
    %c16_221 = arith.constant 16 : index
    %c640_222 = arith.constant 640 : index
    %264 = vector.load %arg11[%c16_221, %c640_222] : memref<32x832xf32, #tpu.memory_space<vmem>>, vector<12x192xf32>
    %265 = arith.truncf %264 : vector<12x192xf32> to vector<12x192xbf16>
    %c0_223 = arith.constant 0 : index
    %c0_224 = arith.constant 0 : index
    %c0_225 = arith.constant 0 : index
    %266 = vector.load %arg4[%c0_223, %c0_224, %c0_225] : memref<3x192x256xbf16, #tpu.memory_space<vmem>>, vector<1x192x256xbf16>
    %267 = vector.shape_cast %266 : vector<1x192x256xbf16> to vector<192x256xbf16>
    %cst_226 = arith.constant dense<0.000000e+00> : vector<12x256xf32>
    %268 = tpu.matmul %265, %267, %cst_226 {dimension_numbers = #tpu.dot_dimension_numbers<[1], [0], [0], [1], [0, 0, 1, 1], [], []>} : vector<12x192xbf16>, vector<192x256xbf16>, vector<12x256xf32> -> vector<12x256xf32>
    %c1_227 = arith.constant 1 : index
    %c640_228 = arith.constant 640 : index
    %269 = vector.load %arg11[%c1_227, %c640_228] : memref<32x832xf32, #tpu.memory_space<vmem>>, vector<12x192xf32>
    %270 = arith.truncf %269 : vector<12x192xf32> to vector<12x192xbf16>
    %c1_229 = arith.constant 1 : index
    %c0_230 = arith.constant 0 : index
    %c0_231 = arith.constant 0 : index
    %271 = vector.load %arg4[%c1_229, %c0_230, %c0_231] : memref<3x192x256xbf16, #tpu.memory_space<vmem>>, vector<1x192x256xbf16>
    %272 = vector.shape_cast %271 : vector<1x192x256xbf16> to vector<192x256xbf16>
    %cst_232 = arith.constant dense<0.000000e+00> : vector<12x256xf32>
    %273 = tpu.matmul %270, %272, %cst_232 {dimension_numbers = #tpu.dot_dimension_numbers<[1], [0], [0], [1], [0, 0, 1, 1], [], []>} : vector<12x192xbf16>, vector<192x256xbf16>, vector<12x256xf32> -> vector<12x256xf32>
    %274 = arith.addf %268, %273 : vector<12x256xf32>
    %c17_233 = arith.constant 17 : index
    %c640_234 = arith.constant 640 : index
    %275 = vector.load %arg11[%c17_233, %c640_234] : memref<32x832xf32, #tpu.memory_space<vmem>>, vector<12x192xf32>
    %276 = arith.truncf %275 : vector<12x192xf32> to vector<12x192xbf16>
    %c2_235 = arith.constant 2 : index
    %c0_236 = arith.constant 0 : index
    %c0_237 = arith.constant 0 : index
    %277 = vector.load %arg4[%c2_235, %c0_236, %c0_237] : memref<3x192x256xbf16, #tpu.memory_space<vmem>>, vector<1x192x256xbf16>
    %278 = vector.shape_cast %277 : vector<1x192x256xbf16> to vector<192x256xbf16>
    %cst_238 = arith.constant dense<0.000000e+00> : vector<12x256xf32>
    %279 = tpu.matmul %276, %278, %cst_238 {dimension_numbers = #tpu.dot_dimension_numbers<[1], [0], [0], [1], [0, 0, 1, 1], [], []>} : vector<12x192xbf16>, vector<192x256xbf16>, vector<12x256xf32> -> vector<12x256xf32>
    %280 = arith.addf %274, %279 : vector<12x256xf32>
    %281 = arith.maximumf %263, %280 : vector<12x256xf32>
    %282 = vector.extract_strided_slice %281 {offsets = [0, 0], sizes = [12, 128], strides = [1, 1]} : vector<12x256xf32> to vector<12x128xf32>
    %283 = vector.extract_strided_slice %281 {offsets = [0, 128], sizes = [12, 128], strides = [1, 1]} : vector<12x256xf32> to vector<12x128xf32>
    %284 = arith.maximumf %282, %283 : vector<12x128xf32>
    %c0_239 = arith.constant 0 : index
    %c0_240 = arith.constant 0 : index
    %285 = vector.load %arg5[%c0_239, %c0_240] : memref<1x128xf32, #tpu.memory_space<vmem>>, vector<1x128xf32>
    %286 = vector.broadcast %285 : vector<1x128xf32> to vector<12x128xf32>
    %287 = arith.addf %284, %286 : vector<12x128xf32>
    %cst_241 = arith.constant 0.000000e+00 : f32
    %288 = vector.broadcast %cst_241 : f32 to vector<12x128xf32>
    %289 = arith.maximumf %287, %288 : vector<12x128xf32>
    %290 = arith.index_cast %c0_i32 : i32 to index
    %c0_242 = arith.constant 0 : index
    %c640_243 = arith.constant 640 : index
    %291 = vector.load %arg12[%290, %c0_242, %c640_243] : memref<1x12x768xf32, #tpu.memory_space<vmem>>, vector<1x12x128xf32>
    %292 = vector.shape_cast %291 : vector<1x12x128xf32> to vector<12x128xf32>
    %293 = vector.shape_cast %289 : vector<12x128xf32> to vector<1x12x128xf32>
    tpu.vector_store %arg12[%290, %c0_242, %c640_243], %293 {strides = array<i32>} : memref<1x12x768xf32, #tpu.memory_space<vmem>>, vector<1x12x128xf32>,
    %c1_i32 = arith.constant 1 : i32
    %cst_244 = arith.constant 0.000000e+00 : f32
    %294 = vector.broadcast %cst_244 : f32 to vector<1x128xf32>
    %c0_245 = arith.constant 0 : index
    %c0_246 = arith.constant 0 : index
    %c0_247 = arith.constant 0 : index
    %295 = vector.load %arg12[%c0_245, %c0_246, %c0_247] : memref<1x12x768xf32, #tpu.memory_space<vmem>>, vector<1x1x768xf32>
    %296 = vector.shape_cast %295 : vector<1x1x768xf32> to vector<1x768xf32>
    %297 = arith.truncf %296 : vector<1x768xf32> to vector<1x768xbf16>
    %c0_248 = arith.constant 0 : index
    %c0_249 = arith.constant 0 : index
    %c0_250 = arith.constant 0 : index
    %298 = vector.load %arg6[%c0_248, %c0_249, %c0_250] : memref<12x768x128xbf16, #tpu.memory_space<vmem>>, vector<1x768x128xbf16>
    %299 = vector.shape_cast %298 : vector<1x768x128xbf16> to vector<768x128xbf16>
    %cst_251 = arith.constant dense<0.000000e+00> : vector<1x128xf32>
    %300 = tpu.matmul %297, %299, %cst_251 {dimension_numbers = #tpu.dot_dimension_numbers<[1], [0], [0], [1], [0, 0, 1, 1], [], []>} : vector<1x768xbf16>, vector<768x128xbf16>, vector<1x128xf32> -> vector<1x128xf32>
    %301 = arith.addf %294, %300 : vector<1x128xf32>
    %c0_252 = arith.constant 0 : index
    %c1_253 = arith.constant 1 : index
    %c0_254 = arith.constant 0 : index
    %302 = vector.load %arg12[%c0_252, %c1_253, %c0_254] : memref<1x12x768xf32, #tpu.memory_space<vmem>>, vector<1x1x768xf32>
    %303 = vector.shape_cast %302 : vector<1x1x768xf32> to vector<1x768xf32>
    %304 = arith.truncf %303 : vector<1x768xf32> to vector<1x768xbf16>
    %c1_255 = arith.constant 1 : index
    %c0_256 = arith.constant 0 : index
    %c0_257 = arith.constant 0 : index
    %305 = vector.load %arg6[%c1_255, %c0_256, %c0_257] : memref<12x768x128xbf16, #tpu.memory_space<vmem>>, vector<1x768x128xbf16>
    %306 = vector.shape_cast %305 : vector<1x768x128xbf16> to vector<768x128xbf16>
    %cst_258 = arith.constant dense<0.000000e+00> : vector<1x128xf32>
    %307 = tpu.matmul %304, %306, %cst_258 {dimension_numbers = #tpu.dot_dimension_numbers<[1], [0], [0], [1], [0, 0, 1, 1], [], []>} : vector<1x768xbf16>, vector<768x128xbf16>, vector<1x128xf32> -> vector<1x128xf32>
    %308 = arith.addf %301, %307 : vector<1x128xf32>
    %c0_259 = arith.constant 0 : index
    %c2_260 = arith.constant 2 : index
    %c0_261 = arith.constant 0 : index
    %309 = vector.load %arg12[%c0_259, %c2_260, %c0_261] : memref<1x12x768xf32, #tpu.memory_space<vmem>>, vector<1x1x768xf32>
    %310 = vector.shape_cast %309 : vector<1x1x768xf32> to vector<1x768xf32>
    %311 = arith.truncf %310 : vector<1x768xf32> to vector<1x768xbf16>
    %c2_262 = arith.constant 2 : index
    %c0_263 = arith.constant 0 : index
    %c0_264 = arith.constant 0 : index
    %312 = vector.load %arg6[%c2_262, %c0_263, %c0_264] : memref<12x768x128xbf16, #tpu.memory_space<vmem>>, vector<1x768x128xbf16>
    %313 = vector.shape_cast %312 : vector<1x768x128xbf16> to vector<768x128xbf16>
    %cst_265 = arith.constant dense<0.000000e+00> : vector<1x128xf32>
    %314 = tpu.matmul %311, %313, %cst_265 {dimension_numbers = #tpu.dot_dimension_numbers<[1], [0], [0], [1], [0, 0, 1, 1], [], []>} : vector<1x768xbf16>, vector<768x128xbf16>, vector<1x128xf32> -> vector<1x128xf32>
    %315 = arith.addf %308, %314 : vector<1x128xf32>
    %c0_266 = arith.constant 0 : index
    %c3 = arith.constant 3 : index
    %c0_267 = arith.constant 0 : index
    %316 = vector.load %arg12[%c0_266, %c3, %c0_267] : memref<1x12x768xf32, #tpu.memory_space<vmem>>, vector<1x1x768xf32>
    %317 = vector.shape_cast %316 : vector<1x1x768xf32> to vector<1x768xf32>
    %318 = arith.truncf %317 : vector<1x768xf32> to vector<1x768xbf16>
    %c3_268 = arith.constant 3 : index
    %c0_269 = arith.constant 0 : index
    %c0_270 = arith.constant 0 : index
    %319 = vector.load %arg6[%c3_268, %c0_269, %c0_270] : memref<12x768x128xbf16, #tpu.memory_space<vmem>>, vector<1x768x128xbf16>
    %320 = vector.shape_cast %319 : vector<1x768x128xbf16> to vector<768x128xbf16>
    %cst_271 = arith.constant dense<0.000000e+00> : vector<1x128xf32>
    %321 = tpu.matmul %318, %320, %cst_271 {dimension_numbers = #tpu.dot_dimension_numbers<[1], [0], [0], [1], [0, 0, 1, 1], [], []>} : vector<1x768xbf16>, vector<768x128xbf16>, vector<1x128xf32> -> vector<1x128xf32>
    %322 = arith.addf %315, %321 : vector<1x128xf32>
    %c0_272 = arith.constant 0 : index
    %c4 = arith.constant 4 : index
    %c0_273 = arith.constant 0 : index
    %323 = vector.load %arg12[%c0_272, %c4, %c0_273] : memref<1x12x768xf32, #tpu.memory_space<vmem>>, vector<1x1x768xf32>
    %324 = vector.shape_cast %323 : vector<1x1x768xf32> to vector<1x768xf32>
    %325 = arith.truncf %324 : vector<1x768xf32> to vector<1x768xbf16>
    %c4_274 = arith.constant 4 : index
    %c0_275 = arith.constant 0 : index
    %c0_276 = arith.constant 0 : index
    %326 = vector.load %arg6[%c4_274, %c0_275, %c0_276] : memref<12x768x128xbf16, #tpu.memory_space<vmem>>, vector<1x768x128xbf16>
    %327 = vector.shape_cast %326 : vector<1x768x128xbf16> to vector<768x128xbf16>
    %cst_277 = arith.constant dense<0.000000e+00> : vector<1x128xf32>
    %328 = tpu.matmul %325, %327, %cst_277 {dimension_numbers = #tpu.dot_dimension_numbers<[1], [0], [0], [1], [0, 0, 1, 1], [], []>} : vector<1x768xbf16>, vector<768x128xbf16>, vector<1x128xf32> -> vector<1x128xf32>
    %329 = arith.addf %322, %328 : vector<1x128xf32>
    %c0_278 = arith.constant 0 : index
    %c5 = arith.constant 5 : index
    %c0_279 = arith.constant 0 : index
    %330 = vector.load %arg12[%c0_278, %c5, %c0_279] : memref<1x12x768xf32, #tpu.memory_space<vmem>>, vector<1x1x768xf32>
    %331 = vector.shape_cast %330 : vector<1x1x768xf32> to vector<1x768xf32>
    %332 = arith.truncf %331 : vector<1x768xf32> to vector<1x768xbf16>
    %c5_280 = arith.constant 5 : index
    %c0_281 = arith.constant 0 : index
    %c0_282 = arith.constant 0 : index
    %333 = vector.load %arg6[%c5_280, %c0_281, %c0_282] : memref<12x768x128xbf16, #tpu.memory_space<vmem>>, vector<1x768x128xbf16>
    %334 = vector.shape_cast %333 : vector<1x768x128xbf16> to vector<768x128xbf16>
    %cst_283 = arith.constant dense<0.000000e+00> : vector<1x128xf32>
    %335 = tpu.matmul %332, %334, %cst_283 {dimension_numbers = #tpu.dot_dimension_numbers<[1], [0], [0], [1], [0, 0, 1, 1], [], []>} : vector<1x768xbf16>, vector<768x128xbf16>, vector<1x128xf32> -> vector<1x128xf32>
    %336 = arith.addf %329, %335 : vector<1x128xf32>
    %c0_284 = arith.constant 0 : index
    %c6 = arith.constant 6 : index
    %c0_285 = arith.constant 0 : index
    %337 = vector.load %arg12[%c0_284, %c6, %c0_285] : memref<1x12x768xf32, #tpu.memory_space<vmem>>, vector<1x1x768xf32>
    %338 = vector.shape_cast %337 : vector<1x1x768xf32> to vector<1x768xf32>
    %339 = arith.truncf %338 : vector<1x768xf32> to vector<1x768xbf16>
    %c6_286 = arith.constant 6 : index
    %c0_287 = arith.constant 0 : index
    %c0_288 = arith.constant 0 : index
    %340 = vector.load %arg6[%c6_286, %c0_287, %c0_288] : memref<12x768x128xbf16, #tpu.memory_space<vmem>>, vector<1x768x128xbf16>
    %341 = vector.shape_cast %340 : vector<1x768x128xbf16> to vector<768x128xbf16>
    %cst_289 = arith.constant dense<0.000000e+00> : vector<1x128xf32>
    %342 = tpu.matmul %339, %341, %cst_289 {dimension_numbers = #tpu.dot_dimension_numbers<[1], [0], [0], [1], [0, 0, 1, 1], [], []>} : vector<1x768xbf16>, vector<768x128xbf16>, vector<1x128xf32> -> vector<1x128xf32>
    %343 = arith.addf %336, %342 : vector<1x128xf32>
    %c0_290 = arith.constant 0 : index
    %c7 = arith.constant 7 : index
    %c0_291 = arith.constant 0 : index
    %344 = vector.load %arg12[%c0_290, %c7, %c0_291] : memref<1x12x768xf32, #tpu.memory_space<vmem>>, vector<1x1x768xf32>
    %345 = vector.shape_cast %344 : vector<1x1x768xf32> to vector<1x768xf32>
    %346 = arith.truncf %345 : vector<1x768xf32> to vector<1x768xbf16>
    %c7_292 = arith.constant 7 : index
    %c0_293 = arith.constant 0 : index
    %c0_294 = arith.constant 0 : index
    %347 = vector.load %arg6[%c7_292, %c0_293, %c0_294] : memref<12x768x128xbf16, #tpu.memory_space<vmem>>, vector<1x768x128xbf16>
    %348 = vector.shape_cast %347 : vector<1x768x128xbf16> to vector<768x128xbf16>
    %cst_295 = arith.constant dense<0.000000e+00> : vector<1x128xf32>
    %349 = tpu.matmul %346, %348, %cst_295 {dimension_numbers = #tpu.dot_dimension_numbers<[1], [0], [0], [1], [0, 0, 1, 1], [], []>} : vector<1x768xbf16>, vector<768x128xbf16>, vector<1x128xf32> -> vector<1x128xf32>
    %350 = arith.addf %343, %349 : vector<1x128xf32>
    %c0_296 = arith.constant 0 : index
    %c8 = arith.constant 8 : index
    %c0_297 = arith.constant 0 : index
    %351 = vector.load %arg12[%c0_296, %c8, %c0_297] : memref<1x12x768xf32, #tpu.memory_space<vmem>>, vector<1x1x768xf32>
    %352 = vector.shape_cast %351 : vector<1x1x768xf32> to vector<1x768xf32>
    %353 = arith.truncf %352 : vector<1x768xf32> to vector<1x768xbf16>
    %c8_298 = arith.constant 8 : index
    %c0_299 = arith.constant 0 : index
    %c0_300 = arith.constant 0 : index
    %354 = vector.load %arg6[%c8_298, %c0_299, %c0_300] : memref<12x768x128xbf16, #tpu.memory_space<vmem>>, vector<1x768x128xbf16>
    %355 = vector.shape_cast %354 : vector<1x768x128xbf16> to vector<768x128xbf16>
    %cst_301 = arith.constant dense<0.000000e+00> : vector<1x128xf32>
    %356 = tpu.matmul %353, %355, %cst_301 {dimension_numbers = #tpu.dot_dimension_numbers<[1], [0], [0], [1], [0, 0, 1, 1], [], []>} : vector<1x768xbf16>, vector<768x128xbf16>, vector<1x128xf32> -> vector<1x128xf32>
    %357 = arith.addf %350, %356 : vector<1x128xf32>
    %c0_302 = arith.constant 0 : index
    %c9 = arith.constant 9 : index
    %c0_303 = arith.constant 0 : index
    %358 = vector.load %arg12[%c0_302, %c9, %c0_303] : memref<1x12x768xf32, #tpu.memory_space<vmem>>, vector<1x1x768xf32>
    %359 = vector.shape_cast %358 : vector<1x1x768xf32> to vector<1x768xf32>
    %360 = arith.truncf %359 : vector<1x768xf32> to vector<1x768xbf16>
    %c9_304 = arith.constant 9 : index
    %c0_305 = arith.constant 0 : index
    %c0_306 = arith.constant 0 : index
    %361 = vector.load %arg6[%c9_304, %c0_305, %c0_306] : memref<12x768x128xbf16, #tpu.memory_space<vmem>>, vector<1x768x128xbf16>
    %362 = vector.shape_cast %361 : vector<1x768x128xbf16> to vector<768x128xbf16>
    %cst_307 = arith.constant dense<0.000000e+00> : vector<1x128xf32>
    %363 = tpu.matmul %360, %362, %cst_307 {dimension_numbers = #tpu.dot_dimension_numbers<[1], [0], [0], [1], [0, 0, 1, 1], [], []>} : vector<1x768xbf16>, vector<768x128xbf16>, vector<1x128xf32> -> vector<1x128xf32>
    %364 = arith.addf %357, %363 : vector<1x128xf32>
    %c0_308 = arith.constant 0 : index
    %c10 = arith.constant 10 : index
    %c0_309 = arith.constant 0 : index
    %365 = vector.load %arg12[%c0_308, %c10, %c0_309] : memref<1x12x768xf32, #tpu.memory_space<vmem>>, vector<1x1x768xf32>
    %366 = vector.shape_cast %365 : vector<1x1x768xf32> to vector<1x768xf32>
    %367 = arith.truncf %366 : vector<1x768xf32> to vector<1x768xbf16>
    %c10_310 = arith.constant 10 : index
    %c0_311 = arith.constant 0 : index
    %c0_312 = arith.constant 0 : index
    %368 = vector.load %arg6[%c10_310, %c0_311, %c0_312] : memref<12x768x128xbf16, #tpu.memory_space<vmem>>, vector<1x768x128xbf16>
    %369 = vector.shape_cast %368 : vector<1x768x128xbf16> to vector<768x128xbf16>
    %cst_313 = arith.constant dense<0.000000e+00> : vector<1x128xf32>
    %370 = tpu.matmul %367, %369, %cst_313 {dimension_numbers = #tpu.dot_dimension_numbers<[1], [0], [0], [1], [0, 0, 1, 1], [], []>} : vector<1x768xbf16>, vector<768x128xbf16>, vector<1x128xf32> -> vector<1x128xf32>
    %371 = arith.addf %364, %370 : vector<1x128xf32>
    %c0_314 = arith.constant 0 : index
    %c11 = arith.constant 11 : index
    %c0_315 = arith.constant 0 : index
    %372 = vector.load %arg12[%c0_314, %c11, %c0_315] : memref<1x12x768xf32, #tpu.memory_space<vmem>>, vector<1x1x768xf32>
    %373 = vector.shape_cast %372 : vector<1x1x768xf32> to vector<1x768xf32>
    %374 = arith.truncf %373 : vector<1x768xf32> to vector<1x768xbf16>
    %c11_316 = arith.constant 11 : index
    %c0_317 = arith.constant 0 : index
    %c0_318 = arith.constant 0 : index
    %375 = vector.load %arg6[%c11_316, %c0_317, %c0_318] : memref<12x768x128xbf16, #tpu.memory_space<vmem>>, vector<1x768x128xbf16>
    %376 = vector.shape_cast %375 : vector<1x768x128xbf16> to vector<768x128xbf16>
    %cst_319 = arith.constant dense<0.000000e+00> : vector<1x128xf32>
    %377 = tpu.matmul %374, %376, %cst_319 {dimension_numbers = #tpu.dot_dimension_numbers<[1], [0], [0], [1], [0, 0, 1, 1], [], []>} : vector<1x768xbf16>, vector<768x128xbf16>, vector<1x128xf32> -> vector<1x128xf32>
    %378 = arith.addf %371, %377 : vector<1x128xf32>
    %c0_320 = arith.constant 0 : index
    %c0_321 = arith.constant 0 : index
    %379 = vector.load %arg7[%c0_320, %c0_321] : memref<1x128xf32, #tpu.memory_space<vmem>>, vector<1x128xf32>
    %380 = arith.addf %378, %379 : vector<1x128xf32>
    %cst_322 = arith.constant 0.000000e+00 : f32
    %381 = vector.broadcast %cst_322 : f32 to vector<1x128xf32>
    %382 = arith.maximumf %380, %381 : vector<1x128xf32>
    %c0_323 = arith.constant 0 : index
    %c0_324 = arith.constant 0 : index
    %383 = vector.load %arg8[%c0_323, %c0_324] : memref<128x64xf32, #tpu.memory_space<vmem>>, vector<128x64xf32>
    %cst_325 = arith.constant dense<0.000000e+00> : vector<1x64xf32>
    %384 = tpu.matmul %382, %383, %cst_325 {dimension_numbers = #tpu.dot_dimension_numbers<[1], [0], [0], [1], [0, 0, 1, 1], [], []>} : vector<1x128xf32>, vector<128x64xf32>, vector<1x64xf32> -> vector<1x64xf32>
    %c0_326 = arith.constant 0 : index
    %c0_327 = arith.constant 0 : index
    %385 = vector.load %arg9[%c0_326, %c0_327] : memref<1x64xf32, #tpu.memory_space<vmem>>, vector<1x64xf32>
    %386 = arith.addf %384, %385 : vector<1x64xf32>
    %c0_328 = arith.constant 0 : index
    %c0_329 = arith.constant 0 : index
    %c0_330 = arith.constant 0 : index
    %387 = vector.load %arg10[%c0_328, %c0_329, %c0_330] : memref<1x1x64xf32, #tpu.memory_space<vmem>>, vector<1x1x64xf32>
    %388 = vector.shape_cast %387 : vector<1x1x64xf32> to vector<1x64xf32>
    %389 = vector.shape_cast %386 : vector<1x64xf32> to vector<1x1x64xf32>
    tpu.vector_store %arg10[%c0_328, %c0_329, %c0_330], %389 {strides = array<i32>} : memref<1x1x64xf32, #tpu.memory_space<vmem>>, vector<1x1x64xf32>,
    return
  }
  func.func @transform_0(%arg0: i32) -> (i32, i32) {
    %c0_i32 = arith.constant 0 : i32
    %c0_i32_0 = arith.constant 0 : i32
    return %arg0, %c0_i32 : i32, i32
  }
  func.func @transform_1(%arg0: i32) -> (i32, i32) {
    %c0_i32 = arith.constant 0 : i32
    %c0_i32_0 = arith.constant 0 : i32
    %c0_i32_1 = arith.constant 0 : i32
    return %c0_i32, %c0_i32_0 : i32, i32
  }
  func.func @transform_2(%arg0: i32) -> (i32, i32) {
    %c0_i32 = arith.constant 0 : i32
    %c0_i32_0 = arith.constant 0 : i32
    %c0_i32_1 = arith.constant 0 : i32
    return %c0_i32, %c0_i32_0 : i32, i32
  }
  func.func @transform_3(%arg0: i32) -> (i32, i32, i32) {
    %c0_i32 = arith.constant 0 : i32
    %c0_i32_0 = arith.constant 0 : i32
    %c0_i32_1 = arith.constant 0 : i32
    %c0_i32_2 = arith.constant 0 : i32
    return %c0_i32, %c0_i32_0, %c0_i32_1 : i32, i32, i32
  }
  func.func @transform_4(%arg0: i32) -> (i32, i32) {
    %c0_i32 = arith.constant 0 : i32
    %c0_i32_0 = arith.constant 0 : i32
    %c0_i32_1 = arith.constant 0 : i32
    return %c0_i32, %c0_i32_0 : i32, i32
  }
  func.func @transform_5(%arg0: i32) -> (i32, i32, i32) {
    %c0_i32 = arith.constant 0 : i32
    %c0_i32_0 = arith.constant 0 : i32
    %c0_i32_1 = arith.constant 0 : i32
    %c0_i32_2 = arith.constant 0 : i32
    return %c0_i32, %c0_i32_0, %c0_i32_1 : i32, i32, i32
  }
  func.func @transform_6(%arg0: i32) -> (i32, i32) {
    %c0_i32 = arith.constant 0 : i32
    %c0_i32_0 = arith.constant 0 : i32
    %c0_i32_1 = arith.constant 0 : i32
    return %c0_i32, %c0_i32_0 : i32, i32
  }
  func.func @transform_7(%arg0: i32) -> (i32, i32) {
    %c0_i32 = arith.constant 0 : i32
    %c0_i32_0 = arith.constant 0 : i32
    %c0_i32_1 = arith.constant 0 : i32
    return %c0_i32, %c0_i32_0 : i32, i32
  }
  func.func @transform_8(%arg0: i32) -> (i32, i32) {
    %c0_i32 = arith.constant 0 : i32
    %c0_i32_0 = arith.constant 0 : i32
    %c0_i32_1 = arith.constant 0 : i32
    return %c0_i32, %c0_i32_0 : i32, i32
  }
  func.func @transform_9(%arg0: i32) -> (i32, i32, i32) {
    %c0_i32 = arith.constant 0 : i32
    %c0_i32_0 = arith.constant 0 : i32
    %c0_i32_1 = arith.constant 0 : i32
    return %arg0, %c0_i32, %c0_i32_0 : i32, i32, i32
  }
}

</mosaic_0001>

<bundles_post_ra>
// kernel: cnn_dropout_forward.1
= control target key start
LH: loop header
LB: loop body
LE: loop exit
PB: predicated region body
PF: predicated region fallthrough
CT: control target
= control target key end

     0   :  { %s17655_s0 = inlined_call_operand.vmem [shape: f32[64,84], index: 0, kind: input, shape index: {}]   ;;  %s17656_s1 = inlined_call_operand.hbm [shape: bf16[84,832], index: 1, kind: input, shape index: {}]   ;;  %s17657_s2 = inlined_call_operand.hbm [shape: f32[1,832], index: 2, kind: input, shape index: {}]   ;;  %s17658_s3 = inlined_call_operand.hbm [shape: bf16[3,192,256], index: 3, kind: input, shape index: {}]   ;;  %s17659_s4 = inlined_call_operand.hbm [shape: f32[1,128], index: 4, kind: input, shape index: {}]   ;;  %s17660_s5 = inlined_call_operand.hbm [shape: bf16[12,768,128], index: 5, kind: input, shape index: {}]   ;;  %s17661_s6 = inlined_call_operand.hbm [shape: f32[1,128], index: 6, kind: input, shape index: {}]   ;;  %s17662_s7 = inlined_call_operand.vmem [shape: f32[128,64], index: 7, kind: input, shape index: {}]   ;;  %s17663_s8 = inlined_call_operand.vmem [shape: f32[1,64], index: 8, kind: input, shape index: {}]   ;;  %s17664_s9 = inlined_call_operand.hbm [shape: f32[2,1,64], index: 9, kind: output, shape index: {}]  }
   0x1   :  { %17756 = sst [smem:[#allocation54_spill]] %s17657_s2 }
   0x2   :  { %17757 = sst [smem:[#allocation55_spill]] %s17659_s4 }
   0x3   :  { %14 = vsyncpa [#allocation5], 0 }
   0x4   :  { %15 = vsyncpa [#allocation8], 0 }
   0x5   :  { %16 = vsyncpa [#allocation11], 0 }
   0x6   :  { %17 = vsyncpa [#allocation14], 0 }
   0x7   :  { %18 = vsyncpa [#allocation6], 0 }
   0x8   :  { %20 = vsyncpa [#allocation6 + $0x1], 0  ;;  %s16056_s30 = smov 0   ;;  %s16058_s10 = smov 0  }
   0x9   :  { %s16060_s11 = smov 0   ;;  %s16062_s12 = smov 0  }
   0xa LB: > { %17758 = sst [smem:[#allocation21_spill]] %s15983_s11  ;;  %s16077_s13 = sadd.s32 4294967295, %s15987_s12   ;;  %s15987_s12 = sphi %s16062_s12, %s17865_s12   ;;  %s15983_s11 = sphi %s16060_s11, %s17867_s11   ;;  %s15979_s10 = sphi %s16058_s10, %s17869_s10   ;;  %s15975_s30 = sphi %s16056_s30, %s17868_s30  }
   0xb   : > { %s12474_s14 = sadd.s32 4294967294, %s15987_s12   ;;  %s16081_s15 = sadd.s32 1, %s15987_s12  }
   0xc   : > { %17759 = sst [smem:[#allocation22_spill]] %s16081_s15  ;;  %s227_s16 = sadd.s32 1, %s15983_s11 }
   0xd   : > { %s224_s17 = ssub.s32 %s15987_s12, %s16081_s15  ;;  %p237_p0 = scmp.ne.s32.totalorder %s15983_s11, %s15979_s10 }
   0xe   : > { %p225_p1 = scmp.eq.s32.totalorder %s224_s17, 0  ;;  %p238_p2 = scmp.eq.s32.totalorder %s16077_s13, 1 }
   0xf   : > { %p243_p3 = scmp.ne.s32.totalorder %s15979_s10, %s15975_s30  ;;  %p244_p4 = scmp.eq.s32.totalorder %s12474_s14, 1 }
  0x10   : > { %s16092_s18 = scalar_select %p225_p1, %s15983_s11, %s227_s16  }
  0x11   : > { %p16094_p5 = por %p238_p2, %p237_p0  ;;  %p16098_p6 = por %p244_p4, %p243_p3 }
  0x12   : > { %17760 = sst [smem:[#allocation23_spill]] %s16092_s18  ;;  %p12475_p7 = scmp.ge.s32.totalorder %s15987_s12, 1 }
  0x13   : > { %s17761_s19 = scalar_select %p16094_p5, 1, 0 }
  0x14   : > { %s17762_s20 = scalar_select %p16098_p6, 1, 0 }
  0x15   : > { %p251_p8 = scmp.lt.s32.totalorder %s15987_s12, 3  ;;  %p17665_p9 = scmp.eq.s32.totalorder %s16077_s13, 0 }
  0x16   : > { %s15989_s22 = smov [#allocation7]   ;;  %s15990_s24 = smov [#allocation10]  }
  0x17   : > { %p16105_p10 = pnand %p12475_p7, %p251_p8  ;;  %s277_s23 = sshll.u32 %s15989_s22, 4  ;;  %s278_s23 = int_to_ptr.vmem [resolvable:$true] %s277_s23 }
  0x18   : > { %s301_s25 = sshll.u32 %s15990_s24, 4  ;;  %s15991_s27 = smov [#allocation4]   ;;  %s16117_s25 = int_to_ptr.vmem [resolvable:$true] %s301_s25 }
  0x19   : > { %s17763_s21 = scalar_select %p16105_p10, 1, 0 }
  0x1a   : > { %p14613_p11 = pneg %p16105_p10  ;;  %s263_s28 = sshll.u32 %s15991_s27, 4  ;;  %s16119_s28 = int_to_ptr.vmem [resolvable:$true] %s263_s28 }
  0x1b   : > { %s17765_s2 = sld [smem:[#allocation54_spill]] }
  0x1c   : > { %p16113_p12 = pnand %p17665_p9, %p14613_p11 }
  0x1e   : > { %p16129_p0 = pneg %p16113_p12 }
  0x21   : > { %s15741_s16 = scalar_lea.hbm %s17765_s2, 112 }
  0x22   : > { %p15742_p13 = scmp.ne.s32.totalorder %s17765_s2, %s15741_s16  ;;  %p15748_p3 = scmp.lt.u32.totalorder %s15741_s16, %s17765_s2 }
  0x24   : > { %p15744_p1 = pnand %p16129_p0, %p15742_p13 }
  0x26   : > { %p15745_p2 = pneg %p15744_p1 }
  0x28   : > { %p15750_p4 = pnand %p15748_p3, %p15745_p2 }
  0x2a   : > { %15753 = shalt.err (!%p15750_p4)
}
  0x2b   : > { %s15754_s29 = scalar_lea.vmem %s278_s23, 112  ;;  %s15761_s14 = scalar_lea.vmem %s278_s23, 128 }
  0x2c   : > { %p15755_p7 = scmp.ne.s32.totalorder %s278_s23, %s15754_s29  ;;  %p15762_p9 = scmp.lt.s32.totalorder %s278_s23, %s278_s23 }
  0x2d   : > { %p15763_p6 = scmp.lt.s32.totalorder %s15761_s14, %s15754_s29 }
  0x2e   : > { %p15757_p8 = pnand %p15755_p7, %p16129_p0 }
  0x2f   : > { %p15764_p5 = por %p15763_p6, %p15762_p9 }
  0x30   : > { %p15758_p11 = pneg %p15757_p8 }
  0x32   : > { %p15765_p10 = pnand %p15764_p5, %p15758_p11 }
  0x34   : > { %15768 = shalt.err (!%p15765_p10)
}
  0x35   : > { %14619 = dma.hbm_to_vmem [thread:$0]  (!%p16113_p12), %s17765_s2, 112, %s278_s23, [#allocation8]  }
  0x36   : > { %s17767_s4 = sld [smem:[#allocation55_spill]] }
  0x3c   : > { %s15769_s27 = scalar_lea.hbm %s17767_s4, 16 }
  0x3d   : > { %p15770_p13 = scmp.ne.s32.totalorder %s17767_s4, %s15769_s27  ;;  %p15776_p5 = scmp.lt.u32.totalorder %s15769_s27, %s17767_s4 }
  0x3f   : > { %p15772_p1 = pnand %p15770_p13, %p16129_p0 }
  0x41   : > { %p15773_p6 = pneg %p15772_p1 }
  0x43   : > { %p15778_p9 = pnand %p15776_p5, %p15773_p6 }
  0x45   : > { %15781 = shalt.err (!%p15778_p9)
}
  0x46   : > { %s15782_s23 = scalar_lea.vmem %s16117_s25, 16  ;;  %s15789_s11 = scalar_lea.vmem %s16117_s25, 32 }
  0x47   : > { %p15783_p10 = scmp.ne.s32.totalorder %s16117_s25, %s15782_s23  ;;  %p15790_p4 = scmp.lt.s32.totalorder %s16117_s25, %s16117_s25 }
  0x48   : > { %p15791_p7 = scmp.lt.s32.totalorder %s15789_s11, %s15782_s23 }
  0x49   : > { %p15785_p2 = pnand %p15783_p10, %p16129_p0 }
  0x4a   : > { %p15792_p8 = por %p15791_p7, %p15790_p4 }
  0x4b   : > { %p15786_p3 = pneg %p15785_p2 }
  0x4d   : > { %p15793_p11 = pnand %p15792_p8, %p15786_p3 }
  0x4f   : > { %15796 = shalt.err (!%p15793_p11)
}
  0x50   : > { %14625 = dma.hbm_to_vmem [thread:$0]  (!%p16113_p12), %s17767_s4, 16, %s16117_s25, [#allocation11]  }
  0x51   : > { %s15797_s16 = scalar_lea.hbm %s17656_s1, 4928 }
  0x52   : > { %p15798_p13 = scmp.ne.s32.totalorder %s17656_s1, %s15797_s16  ;;  %p15804_p5 = scmp.lt.u32.totalorder %s15797_s16, %s17656_s1 }
  0x54   : > { %p15800_p1 = pnand %p15798_p13, %p16129_p0 }
  0x56   : > { %p15801_p6 = pneg %p15800_p1 }
  0x58   : > { %p15806_p9 = pnand %p15804_p5, %p15801_p6 }
  0x5a   : > { %15809 = shalt.err (!%p15806_p9)
}
  0x5b   : > { %s15810_s25 = scalar_lea.vmem %s16119_s28, 4928  ;;  %p15818_p4 = scmp.lt.s32.totalorder %s16119_s28, %s16119_s28 }
  0x5c   : > { %p15811_p10 = scmp.ne.s32.totalorder %s16119_s28, %s15810_s25  ;;  %p15819_p7 = scmp.lt.s32.totalorder %s15810_s25, %s15810_s25 }
  0x5e   : > { %p15813_p2 = pnand %p15811_p10, %p16129_p0  ;;  %p15820_p8 = por %p15819_p7, %p15818_p4 }
  0x60   : > { %p15814_p3 = pneg %p15813_p2 }
  0x62   : > { %p15821_p11 = pnand %p15820_p8, %p15814_p3 }
  0x64   : > { %15824 = shalt.err (!%p15821_p11)
}
  0x65   : > { %s15992_s11 = smov 448   ;;  %s15993_s15 = smov 28  }
  0x66   : > { %14616 = dma.hbm_to_vmem [thread:$0]  (!%p16113_p12), %s17656_s1, 4928, %s16119_s28, [#allocation5], %s15992_s11, %s15992_s11, %s15993_s15  }
  0x67   : > { %s15994_s18 = smov [#allocation9]   ;;  %s15825_s14 = scalar_lea.hbm %s17658_s3, 9216 }
  0x68   : > { %s287_s16 = sshll.u32 %s15994_s18, 4  ;;  %p15826_p13 = scmp.ne.s32.totalorder %s17658_s3, %s15825_s14  ;;  %s288_s16 = int_to_ptr.vmem [resolvable:$true] %s287_s16 }
  0x69   : > { %p15832_p5 = scmp.lt.u32.totalorder %s15825_s14, %s17658_s3 }
  0x6a   : > { %p15828_p1 = pnand %p15826_p13, %p16129_p0 }
  0x6c   : > { %p15829_p6 = pneg %p15828_p1 }
  0x6e   : > { %p15834_p9 = pnand %p15832_p5, %p15829_p6 }
  0x70   : > { %15837 = shalt.err (!%p15834_p9)
}
  0x71   : > { %s15838_s28 = scalar_lea.vmem %s288_s16, 9216  ;;  %p15846_p4 = scmp.lt.s32.totalorder %s288_s16, %s288_s16 }
  0x72   : > { %p15839_p10 = scmp.ne.s32.totalorder %s288_s16, %s15838_s28  ;;  %p15847_p7 = scmp.lt.s32.totalorder %s15838_s28, %s15838_s28 }
  0x74   : > { %p15841_p2 = pnand %p15839_p10, %p16129_p0  ;;  %p15848_p8 = por %p15847_p7, %p15846_p4 }
  0x76   : > { %p15842_p3 = pneg %p15841_p2 }
  0x78   : > { %p15849_p11 = pnand %p15848_p8, %p15842_p3 }
  0x7a   : > { %15852 = shalt.err (!%p15849_p11)
}
  0x7b   : > { %s15995_s11 = smov 128   ;;  %s15996_s15 = smov 8  }
  0x7c   : > { %14622 = dma.hbm_to_vmem [thread:$0]  (!%p16113_p12), %s17658_s3, 9216, %s288_s16, [#allocation8], %s15995_s11, %s15995_s11, %s15996_s15  }
  0x7d   : > { %s15997_s17 = smov [#allocation12]   ;;  %s15853_s29 = scalar_lea.hbm %s17660_s5, 73728 }
  0x7e   : > { %s311_s22 = sshll.u32 %s15997_s17, 4  ;;  %p15854_p13 = scmp.ne.s32.totalorder %s17660_s5, %s15853_s29  ;;  %s312_s22 = int_to_ptr.vmem [resolvable:$true] %s311_s22 }
  0x7f   : > { %p15860_p5 = scmp.lt.u32.totalorder %s15853_s29, %s17660_s5 }
  0x80   : > { %p15856_p1 = pnand %p15854_p13, %p16129_p0 }
  0x82   : > { %p15857_p6 = pneg %p15856_p1 }
  0x84   : > { %p15862_p9 = pnand %p15860_p5, %p15857_p6 }
  0x86   : > { %15865 = shalt.err (!%p15862_p9)
}
  0x87   : > { %s15866_s16 = scalar_lea.vmem %s312_s22, 73728  ;;  %p15874_p4 = scmp.lt.s32.totalorder %s312_s22, %s312_s22 }
  0x88   : > { %p15867_p10 = scmp.ne.s32.totalorder %s312_s22, %s15866_s16  ;;  %p15875_p7 = scmp.lt.s32.totalorder %s15866_s16, %s15866_s16 }
  0x8a   : > { %p15869_p2 = pnand %p15867_p10, %p16129_p0  ;;  %p15876_p8 = por %p15875_p7, %p15874_p4 }
  0x8c   : > { %p15870_p3 = pneg %p15869_p2 }
  0x8e   : > { %p15877_p11 = pnand %p15876_p8, %p15870_p3 }
  0x90   : > { %15880 = shalt.err (!%p15877_p11)
}
  0x91   : > { %s15998_s11 = smov 64   ;;  %s15999_s15 = smov 4  }
  0x92   : > { %14628 = dma.hbm_to_vmem [thread:$0]  (!%p16113_p12), %s17660_s5, 73728, %s312_s22, [#allocation11], %s15998_s11, %s15998_s11, %s15999_s15  }
  0x93   : > { %s16000_s17 = smov [#allocation13]   ;;  %s15881_s14 = scalar_lea.hbm %s17661_s6, 16 }
  0x94   : > { %s325_s18 = sshll.u32 %s16000_s17, 4  ;;  %p15882_p13 = scmp.ne.s32.totalorder %s17661_s6, %s15881_s14  ;;  %s326_s18 = int_to_ptr.vmem [resolvable:$true] %s325_s18 }
  0x95   : > { %p15888_p5 = scmp.lt.u32.totalorder %s15881_s14, %s17661_s6 }
  0x96   : > { %p15884_p1 = pnand %p15882_p13, %p16129_p0 }
  0x98   : > { %p15885_p6 = pneg %p15884_p1 }
  0x9a   : > { %p15890_p9 = pnand %p15888_p5, %p15885_p6 }
  0x9c   : > { %15893 = shalt.err (!%p15890_p9)
}
  0x9d   : > { %s15894_s22 = scalar_lea.vmem %s326_s18, 16  ;;  %s15901_s11 = scalar_lea.vmem %s326_s18, 32 }
  0x9e   : > { %p15895_p10 = scmp.ne.s32.totalorder %s326_s18, %s15894_s22  ;;  %p15902_p4 = scmp.lt.s32.totalorder %s326_s18, %s326_s18 }
  0x9f   : > { %p15903_p7 = scmp.lt.s32.totalorder %s15901_s11, %s15894_s22 }
  0xa0   : > { %p15897_p2 = pnand %p15895_p10, %p16129_p0 }
  0xa1   : > { %p15904_p8 = por %p15903_p7, %p15902_p4 }
  0xa2   : > { %p15898_p3 = pneg %p15897_p2 }
  0xa4   : > { %p15905_p11 = pnand %p15904_p8, %p15898_p3 }
  0xa6   : > { %15908 = shalt.err (!%p15905_p11)
}
  0xa7   : > { %14631 = dma.hbm_to_vmem [thread:$0]  (!%p16113_p12), %s17661_s6, 16, %s326_s18, [#allocation14]  }
  0xa8   : > { %p17768_p13 = scmp.ne.s32.totalorder %s17763_s21, 0 }
  0xaa   : > { %353 = sbr.rel (%p17768_p13) target bundleno = 2503 (0x9c7), region = 56 }
  0xb1   : > { %p17769_p1 = scmp.eq.s32.totalorder %s16077_s13, 0 }
  0xb3   : > { %15954 = dma.done.wait (%p17769_p1), [#allocation5], 4928   ;;  %p17770_p0 = pmov %p17769_p1 }
  0xb5   : > { %15956 = vsyncadd (%p17770_p0), [#allocation5], 4294962368  ;;  %p17771_p6 = pmov %p17770_p0 }
  0xb6   : > { %p17772_p5 = pmov %p17770_p0 }
  0xb7   : > { %15958 = dma.done.wait (%p17771_p6), [#allocation8], 9328  }
  0xb8   : > { %15960 = vsyncadd (%p17772_p5), [#allocation8], 4294957968  ;;  %p17773_p9 = pmov %p17770_p0 }
  0xb9   : > { %p17774_p12 = pmov %p17770_p0 }
  0xba   : > { %15962 = dma.done.wait (%p17773_p9), [#allocation11], 73744  }
  0xbb   : > { %15964 = vsyncadd (%p17774_p12), [#allocation11], 4294893552  ;;  %p17775_p10 = pmov %p17770_p0 }
  0xbc   : > { %p17776_p2 = pmov %p17770_p0 }
  0xbd   : > { %15966 = dma.done.wait (%p17775_p10), [#allocation14], 16  }
  0xbe   : > { %15968 = vsyncadd (%p17776_p2), [#allocation14], 4294967280  ;;  %v16001_v0 = vmov 0   ;;  %v14697_v1 = vld [vmem:[#allocation4 + $0x4] ss:$28 sps:$4 sm:$0xff]   ;;  %s12490_s21 = sshll.u32 %s16077_s13, 2 }
  0xbf   : > { %761 = vmatprep.mubr.bf16.mxu1 %v16001_v0  ;;  %867 = vmatprep.mubr.bf16.mxu0 %v16001_v0  ;;  %v14699_v2 = vld [vmem:[#allocation4] ss:$28 sps:$4 sm:$0xff]   ;;  %v14702_v4 = vld [vmem:[#allocation4 + $0x38] ss:$28 sps:$4 sm:$0xff]   ;;  %p409_p3 = scmp.lt.s32.totalorder %s12490_s21, 7  ;;  %vm707_vm0 = vcmask 1041408  }
  0xc0   : > { %729 = vmatprep.subr.bf16.mxu1 %v14697_v1  ;;  %v14700_v3 = vld [vmem:[#allocation4 + $0x3c] ss:$28 sps:$4 sm:$0xff]   ;;  %v14703_v5 = vld [vmem:[#allocation4 + $0x74] ss:$28 sps:$4 sm:$0xff]   ;;  %v14706_v7 = vld [vmem:[#allocation4 + $0xac] ss:$28 sps:$4 sm:$0xff]  }
  0xc1   : > { %730 = vmatpush1.bf16.msra.mxu1 %v14699_v2  ;;  %v14705_v6 = vld [vmem:[#allocation4 + $0x70] ss:$28 sps:$4 sm:$0xff]   ;;  %s17871_s21 = smov (!%p409_p3, %s12490_s21), 7  ;;  %v14708_v8 = vld [vmem:[#allocation4 + $0xa8] ss:$28 sps:$4 sm:$0xff]   ;;  %vm700_vm1 = vcmask 687104  }
  0xc2   : > { %731 = vmatprep.subr.bf16.mxu1 %v14700_v3  ;;  %s12491_s26 = sshll.u32 %s17871_s21, 3  ;;  %v14709_v9 = vld [vmem:[#allocation4 + $0xe4] ss:$28 sps:$4 sm:$0xff]   ;;  %v461_v10 = vld [vmem:[#allocation4 + $0x118] sm:$0x33]  ;;  %vm971_vm2 = vcmask 523264  }
  0xc3   : > { %s16270_s17 = scalar_lea.vmem %s17655_s0, %s12491_s26  ;;  %v14711_v11 = vld [vmem:[#allocation4 + $0xe0] ss:$28 sps:$4 sm:$0xff]   ;;  %v12528_v12 = vcombine.high %v461_v10, %v461_v10  ;;  %v12527_v13 = vcombine.low %v461_v10, %v461_v10  ;;  %v14731_v14 = vld [vmem:[#allocation4 + $0x14] ss:$28 sps:$4 sm:$0xff]   ;;  %v14735_v18 = vld [vmem:[#allocation4 + $0x4c] ss:$28 sps:$4 sm:$0xff]  }
  0xc4   : > { %v415_v15 = vld [vmem:[%s16270_s17] sm:$0xff]  ;;  %v416_v16 = vld [vmem:[%s16270_s17 + $0x8] sm:$0xff]  ;;  %835 = vmatprep.subr.bf16.mxu0 %v14731_v14  ;;  %v14743_v27 = vld [vmem:[#allocation4 + $0xbc] ss:$28 sps:$4 sm:$0xff]   ;;  %vm16003_vm3 = vmmov 0   ;;  %s406_s4 = sand.u32 1, %s15979_s10  }
  0xc5   : > { %732 = vmatpush1.bf16.msra.mxu1 %v14702_v4  ;;  %v14734_v17 = vld [vmem:[#allocation4 + $0x10] ss:$28 sps:$4 sm:$0xff]   ;;  %v14738_v20 = vld [vmem:[#allocation4 + $0x48] ss:$28 sps:$4 sm:$0xff]   ;;  %v709_v21 = vsel %vm707_vm0, %v12527_v13, 0  ;;  %v16276_v23 = vpack.c.bf16 %v416_v16, %v415_v15  ;;  %v418_v29 = vld [vmem:[%s16270_s17 + $0x18] sm:$0xff] }
  0xc6   : > { %733 = vmatprep.subr.bf16.mxu1 %v14703_v5  ;;  %v14716_v19 = vld [vmem:[#allocation4 + $0xc] ss:$28 sps:$4 sm:$0xff]   ;;  %836 = vmatpush1.bf16.msra.mxu0 %v14734_v17  ;;  %v14739_v22 = vld [vmem:[#allocation4 + $0x84] ss:$28 sps:$4 sm:$0xff]   ;;  %v417_v28 = vld [vmem:[%s16270_s17 + $0x10] sm:$0xff]  ;;  %v467_v17 = vlaneseq  ;;  %s13595_s27 = sshll.u32 %s16077_s13, 4 }
  0xc7   : > { %837 = vmatprep.subr.bf16.mxu0 %v14735_v18  ;;  %v14714_v24 = vld [vmem:[#allocation4 + $0x8] ss:$28 sps:$4 sm:$0xff]   ;;  %v14742_v26 = vld [vmem:[#allocation4 + $0x80] ss:$28 sps:$4 sm:$0xff]   ;;  %v14746_v32 = vld [vmem:[#allocation4 + $0xb8] ss:$28 sps:$4 sm:$0xff]   ;;  %v16283_v34 = vpack.c.bf16 %v418_v29, %v417_v28  ;;  %s17613_s28 = scalar_lea.hbm %s17664_s9, %s13595_s27 }
  0xc8   : > { %v14719_v25 = vld [vmem:[#allocation4 + $0x44] ss:$28 sps:$4 sm:$0xff]   ;;  %v14722_v31 = vld [vmem:[#allocation4 + $0x7c] ss:$28 sps:$4 sm:$0xff]   ;;  %v14747_v33 = vld [vmem:[#allocation4 + $0xf4] ss:$28 sps:$4 sm:$0xff]  }
  0xc9   : > { %734 = vmatpush1.bf16.msra.mxu1 %v14705_v6  ;;  %v14717_v30 = vld [vmem:[#allocation4 + $0x40] ss:$28 sps:$4 sm:$0xff]   ;;  %v14720_v35 = vld [vmem:[#allocation4 + $0x78] ss:$28 sps:$4 sm:$0xff]   ;;  %v463_v36 = vld [vmem:[#allocation4 + $0x128] sm:$0x33] }
  0xca   : > { %735 = vmatprep.subr.bf16.mxu1 %v14706_v7  ;;  %838 = vmatpush1.bf16.msra.mxu0 %v14738_v20  ;;  %v14725_v37 = vld [vmem:[#allocation4 + $0xb4] ss:$28 sps:$4 sm:$0xff]   ;;  %v12532_v39 = vcombine.high %v463_v36, %v463_v36  ;;  %v12531_v40 = vcombine.low %v463_v36, %v463_v36  ;;  %v14728_v42 = vld [vmem:[#allocation4 + $0xec] ss:$28 sps:$4 sm:$0xff]   ;;  %v462_v43 = vld [vmem:[#allocation4 + $0x120] sm:$0x33] }
  0xcb   : > { %839 = vmatprep.subr.bf16.mxu0 %v14739_v22  ;;  %v14750_v38 = vld [vmem:[#allocation4 + $0xf0] ss:$28 sps:$4 sm:$0xff]   ;;  %v14726_v44 = vld [vmem:[#allocation4 + $0xe8] ss:$28 sps:$4 sm:$0xff]   ;;  %v12530_v47 = vcombine.high %v462_v43, %v462_v43  ;;  %v12529_v48 = vcombine.low %v462_v43, %v462_v43  ;;  %v14733_v51 = vld [vmem:[#allocation4 + $0x18] ss:$28 sps:$4 sm:$0xff]  }
  0xcc   : > { %v14723_v41 = vld [vmem:[#allocation4 + $0xb0] ss:$28 sps:$4 sm:$0xff]   ;;  %v721_v45 = vsel %vm707_vm0, %v12531_v40, 0  ;;  %v14756_v46 = vld [vmem:[#allocation9 + $0xc4] ss:$8 sps:$4 sm:$0xff]   ;;  %v16308_v18 = vshrl.u32 %v467_v17, 7 }
  0xcd   : > { %736 = vmatpush1.bf16.msra.mxu1 %v14708_v8  ;;  %v14754_v49 = vld [vmem:[#allocation9 + $0xc0] ss:$8 sps:$4 sm:$0xff]   ;;  %v14759_v50 = vld [vmem:[#allocation9 + $0xd4] ss:$8 sps:$4 sm:$0xff]   ;;  %v715_v52 = vsel %vm707_vm0, %v12529_v48, 0  ;;  %s407_s29 = scalar_lea.vmem [#allocation15], %s406_s4 }
  0xce   : > { %737 = vmatprep.subr.bf16.mxu1 %v14709_v9  ;;  %840 = vmatpush1.bf16.msra.mxu0 %v14742_v26  ;;  %v14757_v53 = vld [vmem:[#allocation9 + $0xd0] ss:$8 sps:$4 sm:$0xff]   ;;  %v14762_v54 = vld [vmem:[#allocation9 + $0xe4] ss:$8 sps:$4 sm:$0xff]   ;;  %v14760_v56 = vld [vmem:[#allocation9 + $0xe0] ss:$8 sps:$4 sm:$0xff]  }
  0xcf   : > { %841 = vmatprep.subr.bf16.mxu0 %v14743_v27  ;;  %v14737_v55 = vld [vmem:[#allocation4 + $0x50] ss:$28 sps:$4 sm:$0xff]   ;;  %v14741_v58 = vld [vmem:[#allocation4 + $0x88] ss:$28 sps:$4 sm:$0xff]   ;;  %v14745_v61 = vld [vmem:[#allocation4 + $0xc0] ss:$28 sps:$4 sm:$0xff]  }
  0xd0   : > { %v14765_v57 = vld [vmem:[#allocation9 + $0xf4] ss:$8 sps:$4 sm:$0xff]   ;;  %v14763_v59 = vld [vmem:[#allocation9 + $0xf0] ss:$8 sps:$4 sm:$0xff]   ;;  %v14768_v60 = vld [vmem:[#allocation9 + $0x104] ss:$8 sps:$4 sm:$0xff]  }
  0xd1   : > { %738 = vmatpush1.bf16.msra.mxu1 %v14711_v11  ;;  %v14766_v62 = vld [vmem:[#allocation9 + $0x100] ss:$8 sps:$4 sm:$0xff]   ;;  %v14771_v63 = vld [vmem:[#allocation9 + $0x114] ss:$8 sps:$4 sm:$0xff]   ;;  %v14769_v1 = vld [vmem:[#allocation9 + $0x110] ss:$8 sps:$4 sm:$0xff]  }
  0xd2   : > { %12534 = vmatprep.subr.msk.bf16.mxu1 %vm707_vm0, %v12528_v12  ;;  %842 = vmatpush1.bf16.msra.mxu0 %v14746_v32  ;;  %v14752_v2 = vld [vmem:[#allocation4 + $0x130] ss:$0 sps:$4 sm:$0x33]   ;;  %v14774_v4 = vld [vmem:[#allocation9 + $0x124] ss:$8 sps:$4 sm:$0xff]   ;;  %v16314_v20 = vsub.s32 1, %v16308_v18 }
  0xd3   : > { %843 = vmatprep.subr.bf16.mxu0 %v14747_v33  ;;  %v727_v3 = vsel %vm707_vm0, %v14752_v2, 0  ;;  %v14772_v5 = vld [vmem:[#allocation9 + $0x120] ss:$8 sps:$4 sm:$0xff]   ;;  %v14777_v6 = vld [vmem:[#allocation9 + $0x134] ss:$8 sps:$4 sm:$0xff]   ;;  %s12359_s14 = sshll.u32 %s407_s29, 4  ;;  %s17615_s14 = int_to_ptr.vmem [resolvable:$true] %s12359_s14 }
  0xd4   : > { %v14775_v7 = vld [vmem:[#allocation9 + $0x130] ss:$8 sps:$4 sm:$0xff]   ;;  %v14780_v8 = vld [vmem:[#allocation9 + $0x144] ss:$8 sps:$4 sm:$0xff]   ;;  %v14778_v9 = vld [vmem:[#allocation9 + $0x140] ss:$8 sps:$4 sm:$0xff]  }
  0xd5   : > { %740 = vmatpush1.bf16.msra.mxu1 %v709_v21  ;;  %v14783_v10 = vld [vmem:[#allocation9 + $0x154] ss:$8 sps:$4 sm:$0xff]   ;;  %v14781_v11 = vld [vmem:[#allocation9 + $0x150] ss:$8 sps:$4 sm:$0xff]   ;;  %v14786_v12 = vld [vmem:[#allocation9 + $0x164] ss:$8 sps:$4 sm:$0xff]  }
  0xd6   : > { %782 = vmatprep.subr.bf16.mxu1 %v14716_v19  ;;  %844 = vmatpush1.bf16.msra.mxu0 %v14750_v38  ;;  %v14784_v13 = vld [vmem:[#allocation9 + $0x160] ss:$8 sps:$4 sm:$0xff]   ;;  %v14787_v14 = vld [vmem:[#allocation9 + $0x170] ss:$8 sps:$4 sm:$0xff]   ;;  %v14789_v15 = vld [vmem:[#allocation9 + $0x174] ss:$8 sps:$4 sm:$0xff]  }
  0xd7   : > { %12540 = vmatprep.subr.msk.bf16.mxu0 %vm707_vm0, %v12532_v39  ;;  %v14792_v16 = vld [vmem:[#allocation9 + $0x4] ss:$8 sps:$4 sm:$0xff]   ;;  %v16311_v19 = vsub.s32 0, %v16308_v18  ;;  %17778 = vst [vmem:[#allocation25_spill] sm:$0xff] %v16314_v20  ;;  %v16316_v21 = vld [vmem:[#allocation7] sm:$0x7f] }
  0xd8   : > { %12535 = vmatmul.mubr.msk.bf16.vlgmr.msra.gmra.mrb[0].mxu1 %vm700_vm1, %v16276_v23  ;;  %vm12344_vm4 = vcmask 516096   ;;  %s12347_s16 = scalar_lea.sflag [#allocation6], %s406_s4  ;;  %s15909_s22 = scalar_lea.vmem %s17615_s14, 16 }
  0xd9   : > { %771 = vmatprep.mubr.bf16.mxu1 %v16001_v0  ;;  %783 = vmatpush1.bf16.msra.mxu1 %v14714_v24  ;;  %17777 = vst [vmem:[#allocation24_spill] sm:$0xff] %v16311_v19  ;;  %v470_v22 = vrot.slane %v16316_v21, %v16311_v19  ;;  %p15910_p4 = scmp.ne.s32.totalorder %s17615_s14, %s15909_s22  ;;  %p17863_p7 = scmp.ne.s32.totalorder %s17761_s19, 0 }
  0xda   : > { %784 = vmatprep.subr.bf16.mxu1 %v14719_v25  ;;  %846 = vmatpush1.bf16.msra.mxu0 %v721_v45  ;;  %s16005_s13 = smov [#allocation15]  }
  0xdb   : > { %1178 = vmatprep.subr.bf16.mxu0 %v14756_v46  ;;  %p15911_p8 = pnand %p15910_p4, %p17863_p7  ;;  %s15913_s11 = sshll.u32 %s16005_s13, 4  ;;  %s15914_s11 = int_to_ptr.vmem [resolvable:$false] %s15913_s11 }
  0xdc   : > { %s15915_s15 = scalar_lea.vmem %s15914_s11, 32  ;;  %p15916_p13 = scmp.lt.s32.totalorder %s17615_s14, %s15914_s11 }
  0xdd   : > { %785 = vmatpush1.bf16.msra.mxu1 %v14717_v30  ;;  %12541 = vmatmul.mubr.msk.bf16.vlgmr.msra.gmra.mrb[0].mxu0 %vm700_vm1, %v16276_v23  ;;  %p15912_p11 = pneg %p15911_p8  ;;  %p15917_p1 = scmp.lt.s32.totalorder %s15915_s15, %s15909_s22 }
  0xde   : > { %786 = vmatprep.subr.bf16.mxu1 %v14722_v31  ;;  %1179 = vmatpush1.bf16.msra.mxu0 %v14754_v49 }
  0xdf   : > { %1180 = vmatprep.subr.bf16.mxu0 %v14759_v50  ;;  %877 = vmatprep.mubr.bf16.mxu0 %v16001_v0  ;;  %p15918_p0 = por %p15917_p1, %p15916_p13 }
  0xe0   : > { %12536 = vmatmul.mubr.msk.bf16.gmra.mrb[4].mxu1 %vm700_vm1, %v16283_v34 }
  0xe1   : > { %787 = vmatpush1.bf16.msra.mxu1 %v14720_v35  ;;  %814 = vmatprep.mubr.bf16.mxu1 %v16001_v0  ;;  %p15919_p6 = pnand %p15918_p0, %p15912_p11 }
  0xe2   : > { %788 = vmatprep.subr.bf16.mxu1 %v14725_v37  ;;  %1181 = vmatpush1.bf16.msra.mxu0 %v14757_v53 }
  0xe3   : > { %1182 = vmatprep.subr.bf16.mxu0 %v14762_v54 }
  0xe5   : > { %789 = vmatpush1.bf16.msra.mxu1 %v14723_v41  ;;  %12542 = vmatmul.mubr.msk.bf16.gmra.mrb[4].mxu0 %vm700_vm1, %v16283_v34 }
  0xe6   : > { %790 = vmatprep.subr.bf16.mxu1 %v14728_v42  ;;  %1183 = vmatpush1.bf16.msra.mxu0 %v14760_v56 }
  0xe7   : > { %1184 = vmatprep.subr.bf16.mxu0 %v14765_v57 }
  0xe9   : > { %791 = vmatpush1.bf16.msra.mxu1 %v14726_v44 }
  0xea   : > { %12537 = vmatprep.subr.msk.bf16.mxu1 %vm707_vm0, %v12530_v47  ;;  %1185 = vmatpush1.bf16.msra.mxu0 %v14763_v59 }
  0xeb   : > { %1186 = vmatprep.subr.bf16.mxu0 %v14768_v60 }
  0xed   : > { %793 = vmatpush1.bf16.msra.mxu1 %v715_v52 }
  0xee   : > { %14415 = vmatprep.subr.bf16.mxu1 %v14733_v51  ;;  %1187 = vmatpush1.bf16.msra.mxu0 %v14766_v62 }
  0xef   : > { %1188 = vmatprep.subr.bf16.mxu0 %v14771_v63 }
  0xf0   : > { %12538 = vmatmul.mubr.msk.bf16.vlgmr.msra.gmra.mrb[8].mxu1 %vm700_vm1, %v16276_v23 }
  0xf1   : > { %824 = vmatprep.mubr.bf16.mxu1 %v16001_v0  ;;  %14416 = vmatpush3.bf16.msra.mxu1 %v14733_v51  ;;  %v14749_v0 = vld [vmem:[#allocation4 + $0xf8] ss:$28 sps:$4 sm:$0xff]  }
  0xf2   : > { %14417 = vmatprep.subr.bf16.mxu1 %v14737_v55  ;;  %1189 = vmatpush1.bf16.msra.mxu0 %v14769_v1 }
  0xf3   : > { %1190 = vmatprep.subr.bf16.mxu0 %v14774_v4 }
  0xf5   : > { %14418 = vmatpush3.bf16.msra.mxu1 %v14737_v55 }
  0xf6   : > { %14419 = vmatprep.subr.bf16.mxu1 %v14741_v58  ;;  %1191 = vmatpush1.bf16.msra.mxu0 %v14772_v5 }
  0xf7   : > { %1192 = vmatprep.subr.bf16.mxu0 %v14777_v6 }
  0xf8   : > { %12539 = vmatmul.mubr.msk.bf16.gmra.mrb[12].mxu1 %vm700_vm1, %v16283_v34 }
  0xf9   : > { %14420 = vmatpush3.bf16.msra.mxu1 %v14741_v58  ;;  %14427 = vmatprep.mubr.msk.bf16.mxu1 %vm700_vm1, %v16276_v23  ;;  %v474_v23 = vrot.slane %v16316_v21, %v16314_v20 }
  0xfa   : > { %14421 = vmatprep.subr.bf16.mxu1 %v14745_v61  ;;  %1193 = vmatpush1.bf16.msra.mxu0 %v14775_v7 }
  0xfb   : > { %1194 = vmatprep.subr.bf16.mxu0 %v14780_v8 }
  0xfd   : > { %14422 = vmatpush3.bf16.msra.mxu1 %v14745_v61 }
  0xfe   : > { %14423 = vmatprep.subr.bf16.mxu1 %v14749_v0  ;;  %1195 = vmatpush1.bf16.msra.mxu0 %v14778_v9 }
  0xff   : > { %1196 = vmatprep.subr.bf16.mxu0 %v14783_v10 }
 0x101   : > { %14424 = vmatpush3.bf16.msra.mxu1 %v14749_v0 }
 0x102   : > { %14586 = vmatprep.subr.msk.bf16.mxu1 %vm707_vm0, %v14752_v2  ;;  %1197 = vmatpush1.bf16.msra.mxu0 %v14781_v11 }
 0x103   : > { %1198 = vmatprep.subr.bf16.mxu0 %v14786_v12 }
 0x105   : > { %14426 = vmatpush3.bf16.msra.mxu1 %v727_v3 }
 0x106   : > { %1603 = vmatprep.subr.bf16.mxu1 %v14756_v46  ;;  %1199 = vmatpush1.bf16.msra.mxu0 %v14784_v13 }
 0x107   : > { %1200 = vmatprep.subr.bf16.mxu0 %v14789_v15 }
 0x108   : > { %14428 = vmatmul.mubr.msk.bf16.vlgmr.msra.gmra.mrb[16].mxu1 %vm700_vm1, %v16283_v34 }
 0x109   : > { %1604 = vmatpush1.bf16.msra.mxu1 %v14754_v49 }
 0x10a   : > { %1605 = vmatprep.subr.bf16.mxu1 %v14759_v50  ;;  %1201 = vmatpush1.bf16.msra.mxu0 %v14787_v14 }
 0x10b   : > { %1344 = vmatprep.subr.bf16.mxu0 %v14792_v16 }
 0x10d   : > { %1606 = vmatpush1.bf16.msra.mxu1 %v14757_v53 }
 0x10e   : > { %1607 = vmatprep.subr.bf16.mxu1 %v14762_v54 }
 0x111   : > { %1608 = vmatpush1.bf16.msra.mxu1 %v14760_v56 }
 0x112   : > { %1609 = vmatprep.subr.bf16.mxu1 %v14765_v57  ;;  %v16331_v57 = vsub.s32 2, %v16308_v18 }
 0x114   : > { %17779 = vst [vmem:[#allocation26_spill] sm:$0xff] %v16331_v57 }
 0x115   : > { %1610 = vmatpush1.bf16.msra.mxu1 %v14763_v59 }
 0x116   : > { %1611 = vmatprep.subr.bf16.mxu1 %v14768_v60  ;;  %v16334_v60 = vsub.s32 3, %v16308_v18 }
 0x118   : > { %17780 = vst [vmem:[#allocation27_spill] sm:$0xff] %v16334_v60 }
 0x119   : > { %1612 = vmatpush1.bf16.msra.mxu1 %v14766_v62 }
 0x11a   : > { %1613 = vmatprep.subr.bf16.mxu1 %v14771_v63  ;;  %v14790_v63 = vld [vmem:[#allocation9] ss:$8 sps:$4 sm:$0xff]  }
 0x11d   : > { %1614 = vmatpush1.bf16.msra.mxu1 %v14769_v1 }
 0x11e   : > { %1615 = vmatprep.subr.bf16.mxu1 %v14774_v4  ;;  %v478_v4 = vrot.slane %v16316_v21, %v16331_v57 }
 0x121   : > { %1616 = vmatpush1.bf16.msra.mxu1 %v14772_v5 }
 0x122   : > { %1617 = vmatprep.subr.bf16.mxu1 %v14777_v6 }
 0x125   : > { %1618 = vmatpush1.bf16.msra.mxu1 %v14775_v7  ;;  %v482_v7 = vrot.slane %v16316_v21, %v16334_v60 }
 0x126   : > { %1619 = vmatprep.subr.bf16.mxu1 %v14780_v8 }
 0x129   : > { %1620 = vmatpush1.bf16.msra.mxu1 %v14778_v9  ;;  %v14795_v9 = vld [vmem:[#allocation9 + $0x14] ss:$8 sps:$4 sm:$0xff]  }
 0x12a   : > { %1621 = vmatprep.subr.bf16.mxu1 %v14783_v10 }
 0x12d   : > { %1622 = vmatpush1.bf16.msra.mxu1 %v14781_v11 }
 0x12e   : > { %1623 = vmatprep.subr.bf16.mxu1 %v14786_v12 }
 0x131   : > { %1624 = vmatpush1.bf16.msra.mxu1 %v14784_v13  ;;  %v14793_v13 = vld [vmem:[#allocation9 + $0x10] ss:$8 sps:$4 sm:$0xff]  }
 0x132   : > { %1625 = vmatprep.subr.bf16.mxu1 %v14789_v15 }
 0x135   : > { %1626 = vmatpush1.bf16.msra.mxu1 %v14787_v14 }
 0x136   : > { %1646 = vmatprep.subr.bf16.mxu1 %v14792_v16  ;;  %v14798_v16 = vld [vmem:[#allocation9 + $0x24] ss:$8 sps:$4 sm:$0xff]  }
 0x1ab   : > { %v763_v24 = vpop.f32.mrb[0].mxu1 }
 0x1ac   : > { %v16322_v25 = vadd.f32 %v763_v24, %v470_v22  ;;  %v765_v26 = vpop.f32.mrb[1].mxu1  ;;  %v14796_v24 = vld [vmem:[#allocation9 + $0x20] ss:$8 sps:$4 sm:$0xff]  }
 0x1ad   : > { %v16324_v27 = vadd.f32 %v765_v26, %v474_v23  ;;  %v767_v28 = vpop.f32.mrb[2].mxu1 }
 0x1ae   : > { %v937_v29 = vmax.f32 %v16322_v25, 0.0  ;;  %v768_v30 = vadd.f32 %v767_v28, %v470_v22  ;;  %v769_v31 = vpop.f32.mrb[3].mxu1  ;;  %v14801_v28 = vld [vmem:[#allocation9 + $0x34] ss:$8 sps:$4 sm:$0xff]   ;;  %v14835_v25 = vld [vmem:[#allocation9 + $0x1b0] ss:$8 sps:$4 sm:$0xff]  }
 0x1af   : > { %v938_v32 = vmax.f32 %v16324_v27, 0.0  ;;  %v770_v33 = vadd.f32 %v769_v31, %v474_v23 }
 0x1b0   : > { %965 = vst [vmem:[#allocation2] sm:$0xff] %v937_v29  ;;  %v944_v34 = vmax.f32 %v768_v30, 0.0 }
 0x1b1   : > { %966 = vst [vmem:[#allocation2 + $0x8] sm:$0xff] %v938_v32  ;;  %v945_v35 = vmax.f32 %v770_v33, 0.0 }
 0x1b2   : > { %973 = vst [vmem:[#allocation2 + $0x38] sm:$0xff] %v944_v34  ;;  %v14804_v34 = vld [vmem:[#allocation9 + $0x44] ss:$8 sps:$4 sm:$0xff]  }
 0x1b3   : > { %974 = vst [vmem:[#allocation2 + $0x40] sm:$0xff] %v945_v35  ;;  %v773_v36 = vpop.f32.mrb[4].mxu1 }
 0x1b4   : > { %v774_v37 = vadd.f32 %v773_v36, %v470_v22  ;;  %v775_v38 = vpop.f32.mrb[5].mxu1 }
 0x1b5   : > { %v776_v39 = vadd.f32 %v775_v38, %v474_v23  ;;  %v777_v40 = vpop.f32.mrb[6].mxu1 }
 0x1b6   : > { %v951_v41 = vmax.f32 %v774_v37, 0.0  ;;  %v778_v42 = vadd.f32 %v777_v40, %v470_v22  ;;  %v779_v43 = vpop.f32.mrb[7].mxu1 }
 0x1b7   : > { %v952_v44 = vmax.f32 %v776_v39, 0.0  ;;  %v780_v45 = vadd.f32 %v779_v43, %v474_v23  ;;  %v1387_v48 = vld [vmem:[#allocation2] sm:$0xfe] }
 0x1b8   : > { %980 = vst [vmem:[#allocation2 + $0x70] sm:$0xff] %v951_v41  ;;  %v958_v46 = vmax.f32 %v778_v42, 0.0  ;;  %v1388_v50 = vld [vmem:[#allocation2 + $0x8] sm:$0xfe] }
 0x1b9   : > { %981 = vst [vmem:[#allocation2 + $0x78] sm:$0xff] %v952_v44  ;;  %v959_v47 = vmax.f32 %v780_v45, 0.0  ;;  %v1389_v49 = vld [vmem:[#allocation2 + $0x38] sm:$0x1f] }
 0x1ba   : > { %987 = vst [vmem:[#allocation2 + $0xa8] sm:$0xff] %v958_v46  ;;  %v1390_v51 = vld [vmem:[#allocation2 + $0x40] sm:$0x1f]  ;;  %v1391_v52 = vpack.c.bf16 %v1389_v49, %v1387_v48  ;;  %v14805_v48 = vld [vmem:[#allocation9 + $0x50] ss:$8 sps:$4 sm:$0xff]  }
 0x1bb   : > { %988 = vst [vmem:[#allocation2 + $0xb0] sm:$0xff] %v959_v47  ;;  %v1392_v53 = vpack.c.bf16 %v1390_v51, %v1388_v50  ;;  %v997_v3 = vld [vmem:[#allocation2 + $0x40] sm:$0xf]  ;;  %v14802_v45 = vld [vmem:[#allocation9 + $0x40] ss:$8 sps:$4 sm:$0xff]  }
 0x1bc   : > { %v1421_v54 = vshll.u32 %v1391_v52, 16  ;;  %v1419_v61 = vshrl.u32 %v1391_v52, 16  ;;  %v999_v12 = vpack.c.bf16 %v997_v3, %v938_v32  ;;  %v14799_v32 = vld [vmem:[#allocation9 + $0x30] ss:$8 sps:$4 sm:$0xff]   ;;  %v14807_v47 = vld [vmem:[#allocation9 + $0x54] ss:$8 sps:$4 sm:$0xff]  }
 0x1bd   : > { %v1428_v55 = vshll.u32 %v1392_v53, 16  ;;  %v1426_v58 = vshrl.u32 %v1392_v53, 16  ;;  %v14810_v49 = vld [vmem:[#allocation9 + $0x64] ss:$8 sps:$4 sm:$0xff]   ;;  %v14808_v50 = vld [vmem:[#allocation9 + $0x60] ss:$8 sps:$4 sm:$0xff]  }
 0x1be   : > { %v1423_v56 = vrot.slane %v1421_v54, 1  ;;  %v14813_v51 = vld [vmem:[#allocation9 + $0x74] ss:$8 sps:$4 sm:$0xff]   ;;  %v14811_v52 = vld [vmem:[#allocation9 + $0x70] ss:$8 sps:$4 sm:$0xff]  }
 0x1bf   : > { %v1430_v59 = vrot.slane %v1428_v55, 1  ;;  %v14816_v53 = vld [vmem:[#allocation9 + $0x84] ss:$8 sps:$4 sm:$0xff]   ;;  %v14814_v55 = vld [vmem:[#allocation9 + $0x80] ss:$8 sps:$4 sm:$0xff]  }
 0x1c0   : > { %v16338_v1 = vor.u32 %v1423_v56, %v1419_v61  ;;  %v14819_v56 = vld [vmem:[#allocation9 + $0x94] ss:$8 sps:$4 sm:$0xff]   ;;  %v14817_v61 = vld [vmem:[#allocation9 + $0x90] ss:$8 sps:$4 sm:$0xff]  }
 0x1c1   : > { %v16336_v62 = vor.u32 %v1430_v59, %v1426_v58  ;;  %v1026_v0 = vld [vmem:[#allocation2 + $0xa8] sm:$0xf]  ;;  %v1690_v58 = vld [vmem:[#allocation2 + $0x78] sm:$0xfe] }
 0x1c2   : > { %v1027_v2 = vld [vmem:[#allocation2 + $0xb0] sm:$0xf]  ;;  %v16347_v8 = vpack.c.bf16 %v1026_v0, %v951_v41  ;;  %v869_v0 = vpop.f32.mrb[0].mxu0 }
 0x1c3   : > { %12620 = vmatprep.mubr.msk.bf16.mxu1 %vm971_vm2, %v16336_v62  ;;  %v1029_v5 = vpack.c.bf16 %v1027_v2, %v952_v44  ;;  %v816_v6 = vpop.f32.mrb[8].mxu1  ;;  %v1692_v54 = vld [vmem:[#allocation2 + $0xb0] sm:$0x1f]  ;;  %v493_v2 = vsub.s32 6, %v16308_v18 }
 0x1c4   : > { %1636 = vmatmul.mubr.bf16.vlgmr.msra.gmra.mrb[20].mxu1 %v16338_v1  ;;  %v817_v10 = vadd.f32 %v816_v6, %v478_v4  ;;  %v818_v11 = vpop.f32.mrb[9].mxu1  ;;  %v16358_v59 = vpack.c.bf16 %v1692_v54, %v1690_v58  ;;  %v14843_v54 = vld [vmem:[#allocation9 + $0x1d4] ss:$8 sps:$4 sm:$0xff]  }
 0x1c5   : > { %1647 = vmatpush1.bf16.msra.mxu1 %v14790_v63  ;;  %12569 = vmatprep.mubr.msk.bf16.mxu0 %vm971_vm2, %v1029_v5  ;;  %v819_v14 = vadd.f32 %v818_v11, %v482_v7  ;;  %v820_v15 = vpop.f32.mrb[10].mxu1  ;;  %v14849_v58 = vld [vmem:[#allocation9 + $0x1f4] ss:$8 sps:$4 sm:$0xff]  }
 0x1c6   : > { %12621 = vmatprep.mubr.msk.bf16.mxu1 %vm971_vm2, %v1029_v5  ;;  %1211 = vmatmul.mubr.bf16.vlgmr.msra.gmra.mrb[8].mxu0 %v16347_v8  ;;  %v939_v17 = vmax.f32 %v817_v10, 0.0  ;;  %v821_v22 = vadd.f32 %v820_v15, %v478_v4  ;;  %v822_v23 = vpop.f32.mrb[11].mxu1  ;;  %v1705_v5 = vshll.u32 %v16358_v59, 16  ;;  %v871_v10 = vpop.f32.mrb[1].mxu0 }
 0x1c7   : > { %1345 = vmatpush1.bf16.msra.mxu0 %v14790_v63  ;;  %12594 = vmatprep.mubr.msk.bf16.mxu0 %vm971_vm2, %v999_v12  ;;  %v940_v26 = vmax.f32 %v819_v14, 0.0  ;;  %v823_v27 = vadd.f32 %v822_v23, %v482_v7  ;;  %v16361_v63 = vsub.s32 4, %v16308_v18  ;;  %v873_v12 = vpop.f32.mrb[2].mxu0  ;;  %v14820_v14 = vld [vmem:[#allocation9 + $0xa0] ss:$8 sps:$4 sm:$0xff]  }
 0x1c8   : > { %1648 = vmatprep.subr.bf16.mxu1 %v14795_v9  ;;  %1346 = vmatprep.subr.bf16.mxu0 %v14795_v9  ;;  %967 = vst [vmem:[#allocation2 + $0x10] sm:$0xff] %v939_v17  ;;  %v946_v30 = vmax.f32 %v821_v22, 0.0  ;;  %v16371_v9 = vsub.s32 5, %v16308_v18  ;;  %v875_v23 = vpop.f32.mrb[3].mxu0  ;;  %v14825_v18 = vld [vmem:[#allocation9 + $0xb4] ss:$8 sps:$4 sm:$0xff]  }
 0x1c9   : > { %1649 = vmatpush1.bf16.msra.mxu1 %v14793_v13  ;;  %968 = vst [vmem:[#allocation2 + $0x18] sm:$0xff] %v940_v26  ;;  %v947_v31 = vmax.f32 %v823_v27, 0.0  ;;  %17781 = vst [vmem:[#allocation28_spill] sm:$0xff] %v16361_v63  ;;  %v16367_v6 = vrot.slane %v16316_v21, %v16361_v63  ;;  %v16671_v63 = vld [vmem:[#allocation9 + $0x200] ss:$8 sps:$4 sm:$0xff]  }
 0x1ca   : > { %1650 = vmatprep.subr.bf16.mxu1 %v14798_v16  ;;  %975 = vst [vmem:[#allocation2 + $0x48] sm:$0xff] %v946_v30  ;;  %17782 = vst [vmem:[#allocation29_spill] sm:$0xff] %v16371_v9  ;;  %v16376_v17 = vrot.slane %v16316_v21, %v16371_v9  ;;  %v16674_v9 = vld [vmem:[#allocation9 + $0x214] ss:$8 sps:$4 sm:$0xff]  }
 0x1cb   : > { %1347 = vmatpush1.bf16.msra.mxu0 %v14793_v13  ;;  %976 = vst [vmem:[#allocation2 + $0x50] sm:$0xff] %v947_v31  ;;  %v826_v33 = vpop.f32.mrb[12].mxu1  ;;  %v870_v15 = vadd.f32 %v869_v0, %v16367_v6  ;;  %v874_v26 = vadd.f32 %v873_v12, %v16367_v6  ;;  %v1691_v12 = vld [vmem:[#allocation2 + $0xa8] sm:$0x1f]  ;;  %17792 = vst [vmem:[#allocation39_spill] sm:$0xff] %v16671_v63 }
 0x1cc   : > { %1348 = vmatprep.subr.bf16.mxu0 %v14798_v16  ;;  %v16353_v35 = vadd.f32 %v826_v33, %v478_v4  ;;  %v828_v36 = vpop.f32.mrb[13].mxu1  ;;  %17793 = vst [vmem:[#allocation40_spill] sm:$0xff] %v16674_v9 }
 0x1cd   : > { %1651 = vmatpush1.bf16.msra.mxu1 %v14796_v24  ;;  %v829_v37 = vadd.f32 %v828_v36, %v482_v7  ;;  %v830_v38 = vpop.f32.mrb[14].mxu1  ;;  %v941_v30 = vmax.f32 %v870_v15, 0.0  ;;  %v14850_v15 = vld [vmem:[#allocation9 + $0x200] ss:$8 sps:$4 sm:$0xff]  }
 0x1ce   : > { %1652 = vmatprep.subr.bf16.mxu1 %v14801_v28  ;;  %v953_v39 = vmax.f32 %v16353_v35, 0.0  ;;  %v831_v40 = vadd.f32 %v830_v38, %v478_v4  ;;  %v832_v41 = vpop.f32.mrb[15].mxu1  ;;  %v14822_v4 = vld [vmem:[#allocation9 + $0xa4] ss:$8 sps:$4 sm:$0xff]   ;;  %v14823_v38 = vld [vmem:[#allocation9 + $0xb0] ss:$8 sps:$4 sm:$0xff]  }
 0x1cf   : > { %1349 = vmatpush1.bf16.msra.mxu0 %v14796_v24  ;;  %v954_v42 = vmax.f32 %v829_v37, 0.0  ;;  %v833_v43 = vadd.f32 %v832_v41, %v482_v7  ;;  %v494_v7 = vrot.slane %v16316_v21, %v493_v2  ;;  %v876_v21 = vadd.f32 %v875_v23, %v16376_v17  ;;  %969 = vst [vmem:[#allocation2 + $0x20] sm:$0xff] %v941_v30  ;;  %v14847_v2 = vld [vmem:[#allocation9 + $0x1f0] ss:$8 sps:$4 sm:$0xff]   ;;  %v14855_v23 = vld [vmem:[#allocation9 + $0x214] ss:$8 sps:$4 sm:$0xff]  }
 0x1d0   : > { %1350 = vmatprep.subr.bf16.mxu0 %v14801_v28  ;;  %982 = vst [vmem:[#allocation2 + $0x80] sm:$0xff] %v953_v39  ;;  %v960_v44 = vmax.f32 %v831_v40, 0.0  ;;  %v1703_v40 = vshrl.u32 %v16358_v59, 16  ;;  %v879_v59 = vpop.f32.mrb[4].mxu0  ;;  %v14858_v30 = vld [vmem:[#allocation9 + $0x224] ss:$8 sps:$4 sm:$0xff]  }
 0x1d1   : > { %1653 = vmatpush1.bf16.msra.mxu1 %v14799_v32  ;;  %983 = vst [vmem:[#allocation2 + $0x88] sm:$0xff] %v954_v42  ;;  %v961_v46 = vmax.f32 %v833_v43, 0.0  ;;  %v14828_v42 = vld [vmem:[#allocation9 + $0x184] ss:$8 sps:$4 sm:$0xff]   ;;  %v1707_v43 = vrot.slane %v1705_v5, 1 }
 0x1d2   : > { %1654 = vmatprep.subr.bf16.mxu1 %v14804_v34  ;;  %989 = vst [vmem:[#allocation2 + $0xb8] sm:$0xff] %v960_v44  ;;  %v949_v44 = vmax.f32 %v876_v21, 0.0  ;;  %v14852_v5 = vld [vmem:[#allocation9 + $0x204] ss:$8 sps:$4 sm:$0xff]  }
 0x1d3   : > { %1351 = vmatpush1.bf16.msra.mxu0 %v14799_v32  ;;  %990 = vst [vmem:[#allocation2 + $0xc0] sm:$0xff] %v961_v46  ;;  %v872_v32 = vadd.f32 %v871_v10, %v16376_v17  ;;  %v996_v46 = vld [vmem:[#allocation2 + $0x38] sm:$0xf]  ;;  %v15658_v35 = vld [vmem:[#allocation9 + $0xe4] ss:$8 sps:$4 sm:$0xff]  }
 0x1d4   : > { %1352 = vmatprep.subr.bf16.mxu0 %v14804_v34  ;;  %v948_v34 = vmax.f32 %v874_v26, 0.0  ;;  %978 = vst [vmem:[#allocation2 + $0x60] sm:$0xff] %v949_v44  ;;  %v14853_v26 = vld [vmem:[#allocation9 + $0x210] ss:$8 sps:$4 sm:$0xff]  }
 0x1d5   : > { %1655 = vmatpush1.bf16.msra.mxu1 %v14802_v45  ;;  %v942_v41 = vmax.f32 %v872_v32, 0.0 }
 0x1d6   : > { %1656 = vmatprep.subr.bf16.mxu1 %v14807_v47  ;;  %977 = vst [vmem:[#allocation2 + $0x58] sm:$0xff] %v948_v34  ;;  %v14861_v34 = vld [vmem:[#allocation9 + $0x234] ss:$8 sps:$4 sm:$0xff]   ;;  %v3738_v60 = vld [vmem:[#allocation2 + $0x20] sm:$0xfe] }
 0x1d7   : > { %1353 = vmatpush1.bf16.msra.mxu0 %v14802_v45  ;;  %970 = vst [vmem:[#allocation2 + $0x28] sm:$0xff] %v942_v41  ;;  %v14826_v45 = vld [vmem:[#allocation9 + $0x180] ss:$8 sps:$4 sm:$0xff]  }
 0x1d8   : > { %1354 = vmatprep.subr.bf16.mxu0 %v14807_v47  ;;  %v14831_v47 = vld [vmem:[#allocation9 + $0x194] ss:$8 sps:$4 sm:$0xff]   ;;  %v3255_v57 = vld [vmem:[#allocation2 + $0x80] sm:$0xfe] }
 0x1d9   : > { %1657 = vmatpush1.bf16.msra.mxu1 %v14805_v48  ;;  %v3257_v19 = vld [vmem:[#allocation2 + $0xb8] sm:$0x1f] }
 0x1da   : > { %1658 = vmatprep.subr.bf16.mxu1 %v14810_v49 }
 0x1db   : > { %1355 = vmatpush1.bf16.msra.mxu0 %v14805_v48  ;;  %v14429_v3 = vpop.f32.mrb[16].mxu1  ;;  %v1708_v48 = vor.u32 %v1707_v43, %v1703_v40  ;;  %v1812_v40 = vld [vmem:[#allocation2 + $0xb8] sm:$0xf]  ;;  %v15654_v43 = vld [vmem:[#allocation9 + $0xc4] ss:$8 sps:$4 sm:$0xff]  }
 0x1dc   : > { %1356 = vmatprep.subr.bf16.mxu0 %v14810_v49  ;;  %v922_v11 = vpop.f32.mrb[17].mxu1  ;;  %v931_v16 = vadd.f32 %v14429_v3, %v494_v7  ;;  %v998_v49 = vpack.c.bf16 %v996_v46, %v937_v29  ;;  %v14840_v29 = vld [vmem:[#allocation9 + $0x1c4] ss:$8 sps:$4 sm:$0xff]   ;;  %v880_v3 = vadd.f32 %v879_v59, %v16367_v6  ;;  %v16400_v44 = vpack.c.bf16 %v1812_v40, %v953_v39  ;;  %v15656_v46 = vld [vmem:[#allocation9 + $0xd4] ss:$8 sps:$4 sm:$0xff]  }
 0x1dd   : > { %1659 = vmatpush1.bf16.msra.mxu1 %v14808_v50  ;;  %v14430_v13 = vpop.f32.mrb[18].mxu1  ;;  %v923_v22 = vadd.f32 %v922_v11, %v494_v7  ;;  %v15659_v39 = vld [vmem:[#allocation9 + $0xe0] ss:$8 sps:$4 sm:$0xff]   ;;  %v15672_v59 = vld [vmem:[#allocation9 + $0x154] ss:$8 sps:$4 sm:$0xff]  }
 0x1de   : > { %1660 = vmatprep.subr.bf16.mxu1 %v14813_v51  ;;  %v925_v24 = vpop.f32.mrb[19].mxu1  ;;  %v934_v27 = vadd.f32 %v14430_v13, %v494_v7  ;;  %v957_v31 = vmax.f32 %v931_v16, 0.0  ;;  %v2172_v13 = vld [vmem:[#allocation2 + $0x10] sm:$0xfe]  ;;  %v2473_v40 = vld [vmem:[#allocation2 + $0x80] sm:$0xfe] }
 0x1df   : > { %1357 = vmatpush1.bf16.msra.mxu0 %v14808_v50  ;;  %v926_v28 = vadd.f32 %v925_v24, %v494_v7  ;;  %v943_v33 = vmax.f32 %v923_v22, 0.0  ;;  %v14829_v50 = vld [vmem:[#allocation9 + $0x190] ss:$8 sps:$4 sm:$0xff]   ;;  %v955_v7 = vmax.f32 %v880_v3, 0.0  ;;  %v3740_v20 = vld [vmem:[#allocation2 + $0x58] sm:$0x1f] }
 0x1e0   : > { %1358 = vmatprep.subr.bf16.mxu0 %v14813_v51  ;;  %v964_v36 = vmax.f32 %v934_v27, 0.0  ;;  %986 = vst.msk [vmem:[#allocation2 + $0xa0] sm:$0xff] %vm971_vm2, %v957_v31  ;;  %v14834_v51 = vld [vmem:[#allocation9 + $0x1a4] ss:$8 sps:$4 sm:$0xff]   ;;  %v14856_v31 = vld [vmem:[#allocation9 + $0x220] ss:$8 sps:$4 sm:$0xff]  }
 0x1e1   : > { %1661 = vmatpush1.bf16.msra.mxu1 %v14811_v52  ;;  %v950_v37 = vmax.f32 %v926_v28, 0.0  ;;  %972 = vst.msk [vmem:[#allocation2 + $0x30] sm:$0xff] %vm971_vm2, %v943_v33  ;;  %984 = vst [vmem:[#allocation2 + $0x90] sm:$0xff] %v955_v7 }
 0x1e2   : > { %1662 = vmatprep.subr.bf16.mxu1 %v14816_v53  ;;  %993 = vst.msk [vmem:[#allocation2 + $0xd8] sm:$0xff] %vm971_vm2, %v964_v36 }
 0x1e3   : > { %1359 = vmatpush1.bf16.msra.mxu0 %v14811_v52  ;;  %979 = vst.msk [vmem:[#allocation2 + $0x68] sm:$0xff] %vm971_vm2, %v950_v37  ;;  %v14832_v52 = vld [vmem:[#allocation9 + $0x1a0] ss:$8 sps:$4 sm:$0xff]  }
 0x1e4   : > { %1360 = vmatprep.subr.bf16.mxu0 %v14816_v53  ;;  %v14838_v53 = vld [vmem:[#allocation9 + $0x1c0] ss:$8 sps:$4 sm:$0xff]  }
 0x1e5   : > { %1663 = vmatpush1.bf16.msra.mxu1 %v14814_v55 }
 0x1e6   : > { %1664 = vmatprep.subr.bf16.mxu1 %v14819_v56 }
 0x1e7   : > { %1361 = vmatpush1.bf16.msra.mxu0 %v14814_v55  ;;  %v14841_v55 = vld [vmem:[#allocation9 + $0x1d0] ss:$8 sps:$4 sm:$0xff]  }
 0x1e8   : > { %1362 = vmatprep.subr.bf16.mxu0 %v14819_v56  ;;  %v14844_v56 = vld [vmem:[#allocation9 + $0x1e0] ss:$8 sps:$4 sm:$0xff]  }
 0x1e9   : > { %1665 = vmatpush1.bf16.msra.mxu1 %v14817_v61 }
 0x1ea   : > { %1666 = vmatprep.subr.bf16.mxu1 %v14822_v4 }
 0x1eb   : > { %1363 = vmatpush1.bf16.msra.mxu0 %v14817_v61  ;;  %v881_v61 = vpop.f32.mrb[5].mxu0 }
 0x1ec   : > { %1364 = vmatprep.subr.bf16.mxu0 %v14822_v4  ;;  %v883_v0 = vpop.f32.mrb[6].mxu0  ;;  %v882_v10 = vadd.f32 %v881_v61, %v16376_v17 }
 0x1ed   : > { %1667 = vmatpush1.bf16.msra.mxu1 %v14820_v14  ;;  %v884_v4 = vadd.f32 %v883_v0, %v16367_v6  ;;  %v885_v22 = vpop.f32.mrb[7].mxu0  ;;  %v1689_v6 = vld [vmem:[#allocation2 + $0x70] sm:$0xfe] }
 0x1ee   : > { %1668 = vmatprep.subr.bf16.mxu1 %v14825_v18  ;;  %v956_v16 = vmax.f32 %v882_v10, 0.0  ;;  %v886_v24 = vadd.f32 %v885_v22, %v16376_v17  ;;  %v1693_v27 = vpack.c.bf16 %v1691_v12, %v1689_v6  ;;  %v14859_v17 = vld [vmem:[#allocation9 + $0x230] ss:$8 sps:$4 sm:$0xff]   ;;  %v1811_v10 = vld [vmem:[#allocation2 + $0xb0] sm:$0xf] }
 0x1ef   : > { %1365 = vmatpush1.bf16.msra.mxu0 %v14820_v14  ;;  %v962_v11 = vmax.f32 %v884_v4, 0.0  ;;  %v2174_v14 = vld [vmem:[#allocation2 + $0x48] sm:$0x1f]  ;;  %v15675_v4 = vld [vmem:[#allocation9 + $0x160] ss:$8 sps:$4 sm:$0xff]  }
 0x1f0   : > { %1366 = vmatprep.subr.bf16.mxu0 %v14825_v18  ;;  %985 = vst [vmem:[#allocation2 + $0x98] sm:$0xff] %v956_v16  ;;  %v963_v18 = vmax.f32 %v886_v24, 0.0  ;;  %v2176_v28 = vpack.c.bf16 %v2174_v14, %v2172_v13  ;;  %v1698_v32 = vshll.u32 %v1693_v27, 16  ;;  %v15673_v0 = vld [vmem:[#allocation9 + $0x150] ss:$8 sps:$4 sm:$0xff]  }
 0x1f1   : > { %1669 = vmatpush1.bf16.msra.mxu1 %v14823_v38  ;;  %991 = vst [vmem:[#allocation2 + $0xc8] sm:$0xff] %v962_v11  ;;  %v1782_v11 = vld [vmem:[#allocation2 + $0x48] sm:$0xf]  ;;  %v15677_v12 = vld [vmem:[#allocation9 + $0x170] ss:$8 sps:$4 sm:$0xff]  }
 0x1f2   : > { %1713 = vmatprep.subr.bf16.mxu1 %v14828_v42  ;;  %992 = vst [vmem:[#allocation2 + $0xd0] sm:$0xff] %v963_v18  ;;  %v2211_v33 = vshll.u32 %v2176_v28, 16  ;;  %v2209_v36 = vshrl.u32 %v2176_v28, 16  ;;  %v1700_v37 = vrot.slane %v1698_v32, 1  ;;  %v15678_v14 = vld [vmem:[#allocation9 + $0x4] ss:$8 sps:$4 sm:$0xff]  }
 0x1f3   : > { %1367 = vmatpush1.bf16.msra.mxu0 %v14823_v38  ;;  %v1696_v38 = vshrl.u32 %v1693_v27, 16  ;;  %v15680_v22 = vld [vmem:[#allocation9] ss:$8 sps:$4 sm:$0xff]   ;;  %v15682_v24 = vld [vmem:[#allocation9 + $0x14] ss:$8 sps:$4 sm:$0xff]  }
 0x1f4   : > { %1679 = vmatmul.mubr.bf16.vlgmr.msra.gmra.mrb[20].mxu1 %v16347_v8  ;;  %1556 = vmatprep.subr.bf16.mxu0 %v14828_v42  ;;  %v14837_v8 = vld [vmem:[#allocation9 + $0x1b4] ss:$8 sps:$4 sm:$0xff]   ;;  %v2213_v21 = vrot.slane %v2211_v33, 1  ;;  %v15683_v18 = vld [vmem:[#allocation9 + $0x10] ss:$8 sps:$4 sm:$0xff]  }
 0x1f5   : > { %1714 = vmatpush1.bf16.msra.mxu1 %v14826_v45  ;;  %12622 = vmatprep.mubr.msk.bf16.mxu1 %vm971_vm2, %v1708_v48  ;;  %v1701_v42 = vor.u32 %v1700_v37, %v1696_v38  ;;  %v15660_v48 = vld [vmem:[#allocation9 + $0xf4] ss:$8 sps:$4 sm:$0xff]   ;;  %v15685_v27 = vld [vmem:[#allocation9 + $0x20] ss:$8 sps:$4 sm:$0xff]   ;;  %v15695_v37 = vld [vmem:[#allocation9 + $0x70] ss:$8 sps:$4 sm:$0xff]  }
 0x1f6   : > { %1377 = vmatmul.mubr.bf16.vlgmr.msra.gmra.mrb[8].mxu0 %v998_v49  ;;  %1715 = vmatprep.subr.bf16.mxu1 %v14831_v47  ;;  %v16396_v41 = vor.u32 %v2213_v21, %v2209_v36  ;;  %v15662_v49 = vld [vmem:[#allocation9 + $0x104] ss:$8 sps:$4 sm:$0xff]   ;;  %v15686_v28 = vld [vmem:[#allocation9 + $0x34] ss:$8 sps:$4 sm:$0xff]   ;;  %v15689_v32 = vld [vmem:[#allocation9 + $0x40] ss:$8 sps:$4 sm:$0xff]  }
 0x1f7   : > { %1557 = vmatpush1.bf16.msra.mxu0 %v14826_v45  ;;  %12619 = vmatprep.mubr.msk.bf16.mxu0 %vm971_vm2, %v16336_v62  ;;  %v14846_v62 = vld [vmem:[#allocation9 + $0x1e4] ss:$8 sps:$4 sm:$0xff]   ;;  %v15655_v45 = vld [vmem:[#allocation9 + $0xc0] ss:$8 sps:$4 sm:$0xff]   ;;  %v15690_v33 = vld [vmem:[#allocation9 + $0x54] ss:$8 sps:$4 sm:$0xff]  }
 0x1f8   : > { %1558 = vmatprep.subr.bf16.mxu0 %v14831_v47  ;;  %v15657_v47 = vld [vmem:[#allocation9 + $0xd0] ss:$8 sps:$4 sm:$0xff]   ;;  %v15693_v36 = vld [vmem:[#allocation9 + $0x60] ss:$8 sps:$4 sm:$0xff]   ;;  %v15694_v21 = vld [vmem:[#allocation9 + $0x74] ss:$8 sps:$4 sm:$0xff]  }
 0x1f9   : > { %1716 = vmatpush1.bf16.msra.mxu1 %v14829_v50  ;;  %v15696_v38 = vld [vmem:[#allocation9 + $0x84] ss:$8 sps:$4 sm:$0xff]  }
 0x1fa   : > { %1717 = vmatprep.subr.bf16.mxu1 %v14834_v51 }
 0x1fb   : > { %1559 = vmatpush1.bf16.msra.mxu0 %v14829_v50  ;;  %v15663_v50 = vld [vmem:[#allocation9 + $0x100] ss:$8 sps:$4 sm:$0xff]  }
 0x1fc   : > { %1560 = vmatprep.subr.bf16.mxu0 %v14834_v51  ;;  %v15664_v51 = vld [vmem:[#allocation9 + $0x114] ss:$8 sps:$4 sm:$0xff]  }
 0x1fd   : > { %1718 = vmatpush1.bf16.msra.mxu1 %v14832_v52 }
 0x1fe   : > { %1719 = vmatprep.subr.bf16.mxu1 %v14837_v8 }
 0x1ff   : > { %1561 = vmatpush1.bf16.msra.mxu0 %v14832_v52  ;;  %v15665_v52 = vld [vmem:[#allocation9 + $0x110] ss:$8 sps:$4 sm:$0xff]  }
 0x200   : > { %1562 = vmatprep.subr.bf16.mxu0 %v14837_v8  ;;  %v15666_v8 = vld [vmem:[#allocation9 + $0x124] ss:$8 sps:$4 sm:$0xff]  }
 0x201   : > { %1720 = vmatpush1.bf16.msra.mxu1 %v14835_v25 }
 0x202   : > { %1721 = vmatprep.subr.bf16.mxu1 %v14840_v29 }
 0x203   : > { %1563 = vmatpush1.bf16.msra.mxu0 %v14835_v25  ;;  %v15667_v25 = vld [vmem:[#allocation9 + $0x120] ss:$8 sps:$4 sm:$0xff]  }
 0x204   : > { %1564 = vmatprep.subr.bf16.mxu0 %v14840_v29  ;;  %v15668_v29 = vld [vmem:[#allocation9 + $0x134] ss:$8 sps:$4 sm:$0xff]  }
 0x205   : > { %1722 = vmatpush1.bf16.msra.mxu1 %v14838_v53 }
 0x206   : > { %1723 = vmatprep.subr.bf16.mxu1 %v14843_v54 }
 0x207   : > { %1565 = vmatpush1.bf16.msra.mxu0 %v14838_v53  ;;  %v2173_v53 = vld [vmem:[#allocation2 + $0x40] sm:$0x1f] }
 0x208   : > { %1566 = vmatprep.subr.bf16.mxu0 %v14843_v54  ;;  %v2171_v54 = vld [vmem:[#allocation2 + $0x8] sm:$0xfe] }
 0x209   : > { %1724 = vmatpush1.bf16.msra.mxu1 %v14841_v55 }
 0x20a   : > { %1725 = vmatprep.subr.bf16.mxu1 %v14846_v62 }
 0x20b   : > { %1567 = vmatpush1.bf16.msra.mxu0 %v14841_v55  ;;  %v15669_v55 = vld [vmem:[#allocation9 + $0x130] ss:$8 sps:$4 sm:$0xff]  }
 0x20c   : > { %1568 = vmatprep.subr.bf16.mxu0 %v14846_v62  ;;  %v15670_v62 = vld [vmem:[#allocation9 + $0x144] ss:$8 sps:$4 sm:$0xff]  }
 0x20d   : > { %1726 = vmatpush1.bf16.msra.mxu1 %v14844_v56 }
 0x20e   : > { %1727 = vmatprep.subr.bf16.mxu1 %v14849_v58 }
 0x20f   : > { %1569 = vmatpush1.bf16.msra.mxu0 %v14844_v56  ;;  %v2175_v56 = vpack.c.bf16 %v2173_v53, %v2171_v54  ;;  %v15705_v53 = vld [vmem:[#allocation9 + $0x180] ss:$8 sps:$4 sm:$0xff]   ;;  %v15706_v54 = vld [vmem:[#allocation9 + $0x194] ss:$8 sps:$4 sm:$0xff]  }
 0x210   : > { %1570 = vmatprep.subr.bf16.mxu0 %v14849_v58  ;;  %v15671_v58 = vld [vmem:[#allocation9 + $0x140] ss:$8 sps:$4 sm:$0xff]  }
 0x211   : > { %1728 = vmatpush1.bf16.msra.mxu1 %v14847_v2  ;;  %v2204_v61 = vshll.u32 %v2175_v56, 16  ;;  %v2202_v7 = vshrl.u32 %v2175_v56, 16  ;;  %v15709_v56 = vld [vmem:[#allocation9 + $0x1a0] ss:$8 sps:$4 sm:$0xff]  }
 0x212   : > { %1729 = vmatprep.subr.bf16.mxu1 %v14852_v5 }
 0x213   : > { %1571 = vmatpush1.bf16.msra.mxu0 %v14847_v2  ;;  %v15674_v2 = vld [vmem:[#allocation9 + $0x164] ss:$8 sps:$4 sm:$0xff]   ;;  %v2206_v3 = vrot.slane %v2204_v61, 1 }
 0x214   : > { %1572 = vmatprep.subr.bf16.mxu0 %v14852_v5  ;;  %v15676_v5 = vld [vmem:[#allocation9 + $0x174] ss:$8 sps:$4 sm:$0xff]   ;;  %v15712_v61 = vld [vmem:[#allocation9 + $0x1c4] ss:$8 sps:$4 sm:$0xff]  }
 0x215   : > { %1730 = vmatpush1.bf16.msra.mxu1 %v14850_v15  ;;  %v16407_v13 = vor.u32 %v2206_v3, %v2202_v7  ;;  %v15716_v3 = vld [vmem:[#allocation9 + $0x1e4] ss:$8 sps:$4 sm:$0xff]   ;;  %v2474_v7 = vld [vmem:[#allocation2 + $0xb0] sm:$0x1f] }
 0x216   : > { %1731 = vmatprep.subr.bf16.mxu1 %v14855_v23 }
 0x217   : > { %1573 = vmatpush1.bf16.msra.mxu0 %v14850_v15  ;;  %v15679_v15 = vld [vmem:[#allocation2 + $0x78] sm:$0xff] }
 0x218   : > { %1574 = vmatprep.subr.bf16.mxu0 %v14855_v23  ;;  %v16410_v16 = vpack.c.bf16 %v1811_v10, %v15679_v15  ;;  %v15681_v23 = vld [vmem:[#allocation2 + $0x10] sm:$0xff]  ;;  %v2472_v10 = vld [vmem:[#allocation2 + $0x78] sm:$0xfe] }
 0x219   : > { %1732 = vmatpush1.bf16.msra.mxu1 %v14853_v26  ;;  %v1784_v6 = vpack.c.bf16 %v1782_v11, %v15681_v23  ;;  %v15719_v11 = vld [vmem:[#allocation9 + $0x1f0] ss:$8 sps:$4 sm:$0xff]   ;;  %v2955_v15 = vld [vmem:[#allocation2 + $0x18] sm:$0xfe] }
 0x21a   : > { %1733 = vmatprep.subr.bf16.mxu1 %v14858_v30  ;;  %v15722_v23 = vld [vmem:[#allocation9 + $0x214] ss:$8 sps:$4 sm:$0xff]  }
 0x21b   : > { %1575 = vmatpush1.bf16.msra.mxu0 %v14853_v26  ;;  %v15684_v26 = vld [vmem:[#allocation9 + $0x24] ss:$8 sps:$4 sm:$0xff]  }
 0x21c   : > { %1576 = vmatprep.subr.bf16.mxu0 %v14858_v30  ;;  %v15687_v30 = vld [vmem:[#allocation9 + $0x30] ss:$8 sps:$4 sm:$0xff]  }
 0x21d   : > { %1734 = vmatpush1.bf16.msra.mxu1 %v14856_v31 }
 0x21e   : > { %1735 = vmatprep.subr.bf16.mxu1 %v14861_v34 }
 0x21f   : > { %1577 = vmatpush1.bf16.msra.mxu0 %v14856_v31  ;;  %v15688_v31 = vld [vmem:[#allocation9 + $0x44] ss:$8 sps:$4 sm:$0xff]  }
 0x220   : > { %1578 = vmatprep.subr.bf16.mxu0 %v14861_v34  ;;  %v15691_v34 = vld [vmem:[#allocation9 + $0x50] ss:$8 sps:$4 sm:$0xff]  }
 0x221   : > { %1736 = vmatpush1.bf16.msra.mxu1 %v14859_v17 }
 0x222   : > { %2386 = vmatprep.subr.bf16.mxu1 %v15654_v43 }
 0x223   : > { %1579 = vmatpush1.bf16.msra.mxu0 %v14859_v17  ;;  %v15692_v17 = vld [vmem:[#allocation9 + $0x64] ss:$8 sps:$4 sm:$0xff]  }
 0x224   : > { %1746 = vmatmul.mubr.bf16.vlgmr.msra.gmra.mrb[20].mxu1 %v1701_v42  ;;  %1962 = vmatprep.subr.bf16.mxu0 %v15654_v43  ;;  %v2475_v42 = vld [vmem:[#allocation2 + $0xb8] sm:$0x1f] }
 0x225   : > { %2387 = vmatpush1.bf16.msra.mxu1 %v15655_v45  ;;  %12699 = vmatprep.mubr.msk.bf16.mxu1 %vm971_vm2, %v16396_v41  ;;  %v15697_v43 = vld [vmem:[#allocation9 + $0x80] ss:$8 sps:$4 sm:$0xff]  }
 0x226   : > { %1589 = vmatmul.mubr.bf16.vlgmr.msra.gmra.mrb[8].mxu0 %v16338_v1  ;;  %2388 = vmatprep.subr.bf16.mxu1 %v15656_v46  ;;  %v15661_v1 = vld [vmem:[#allocation9 + $0xf0] ss:$8 sps:$4 sm:$0xff]  }
 0x227   : > { %1963 = vmatpush1.bf16.msra.mxu0 %v15655_v45  ;;  %12648 = vmatprep.mubr.msk.bf16.mxu0 %vm971_vm2, %v16400_v44  ;;  %v2477_v45 = vpack.c.bf16 %v2475_v42, %v2473_v40  ;;  %v2954_v42 = vld [vmem:[#allocation2 + $0x10] sm:$0xfe] }
 0x228   : > { %1964 = vmatprep.subr.bf16.mxu0 %v15656_v46  ;;  %v15699_v46 = vld [vmem:[#allocation9 + $0x90] ss:$8 sps:$4 sm:$0xff]  }
 0x229   : > { %2389 = vmatpush1.bf16.msra.mxu1 %v15657_v47 }
 0x22a   : > { %2390 = vmatprep.subr.bf16.mxu1 %v15658_v35 }
 0x22b   : > { %1965 = vmatpush1.bf16.msra.mxu0 %v15657_v47  ;;  %v15700_v47 = vld [vmem:[#allocation9 + $0xa4] ss:$8 sps:$4 sm:$0xff]  }
 0x22c   : > { %1966 = vmatprep.subr.bf16.mxu0 %v15658_v35  ;;  %v2488_v35 = vshll.u32 %v2477_v45, 16 }
 0x22d   : > { %2391 = vmatpush1.bf16.msra.mxu1 %v15659_v39 }
 0x22e   : > { %2392 = vmatprep.subr.bf16.mxu1 %v15660_v48 }
 0x22f   : > { %1967 = vmatpush1.bf16.msra.mxu0 %v15659_v39  ;;  %v15701_v39 = vld [vmem:[#allocation9 + $0xa0] ss:$8 sps:$4 sm:$0xff]  }
 0x230   : > { %1968 = vmatprep.subr.bf16.mxu0 %v15660_v48  ;;  %v15702_v48 = vld [vmem:[#allocation9 + $0xb4] ss:$8 sps:$4 sm:$0xff]  }
 0x231   : > { %2393 = vmatpush1.bf16.msra.mxu1 %v15661_v1 }
 0x232   : > { %2394 = vmatprep.subr.bf16.mxu1 %v15662_v49 }
 0x233   : > { %1969 = vmatpush1.bf16.msra.mxu0 %v15661_v1  ;;  %v2486_v1 = vshrl.u32 %v2477_v45, 16  ;;  %v2956_v45 = vld [vmem:[#allocation2 + $0x48] sm:$0x1f] }
 0x234   : > { %1970 = vmatprep.subr.bf16.mxu0 %v15662_v49  ;;  %v2490_v49 = vrot.slane %v2488_v35, 1 }
 0x235   : > { %2395 = vmatpush1.bf16.msra.mxu1 %v15663_v50 }
 0x236   : > { %2396 = vmatprep.subr.bf16.mxu1 %v15664_v51 }
 0x237   : > { %1971 = vmatpush1.bf16.msra.mxu0 %v15663_v50  ;;  %v1781_v50 = vld [vmem:[#allocation2 + $0x40] sm:$0xf] }
 0x238   : > { %1972 = vmatprep.subr.bf16.mxu0 %v15664_v51  ;;  %v15703_v51 = vld [vmem:[#allocation9 + $0xb0] ss:$8 sps:$4 sm:$0xff]  }
 0x239   : > { %2397 = vmatpush1.bf16.msra.mxu1 %v15665_v52 }
 0x23a   : > { %2398 = vmatprep.subr.bf16.mxu1 %v15666_v8 }
 0x23b   : > { %1973 = vmatpush1.bf16.msra.mxu0 %v15665_v52  ;;  %v15704_v52 = vld [vmem:[#allocation9 + $0x184] ss:$8 sps:$4 sm:$0xff]  }
 0x23c   : > { %1974 = vmatprep.subr.bf16.mxu0 %v15666_v8  ;;  %v2491_v8 = vor.u32 %v2490_v49, %v2486_v1  ;;  %v14873_v1 = vld [vmem:[#allocation9 + $0xf4] ss:$8 sps:$4 sm:$0xff]   ;;  %v14871_v49 = vld [vmem:[#allocation9 + $0xf0] ss:$8 sps:$4 sm:$0xff]  }
 0x23d   : > { %2399 = vmatpush1.bf16.msra.mxu1 %v15667_v25 }
 0x23e   : > { %2400 = vmatprep.subr.bf16.mxu1 %v15668_v29 }
 0x23f   : > { %1975 = vmatpush1.bf16.msra.mxu0 %v15667_v25  ;;  %v1779_v25 = vld [vmem:[#allocation2 + $0x8] sm:$0xff] }
 0x240   : > { %1976 = vmatprep.subr.bf16.mxu0 %v15668_v29  ;;  %v1783_v29 = vpack.c.bf16 %v1781_v50, %v1779_v25  ;;  %v16435_v25 = vld [vmem:[#allocation9 + $0x114] ss:$8 sps:$4 sm:$0xff]  }
 0x241   : > { %2401 = vmatpush1.bf16.msra.mxu1 %v15669_v55 }
 0x242   : > { %2402 = vmatprep.subr.bf16.mxu1 %v15670_v62 }
 0x243   : > { %1977 = vmatpush1.bf16.msra.mxu0 %v15669_v55  ;;  %v15707_v55 = vld [vmem:[#allocation9 + $0x190] ss:$8 sps:$4 sm:$0xff]  }
 0x244   : > { %1978 = vmatprep.subr.bf16.mxu0 %v15670_v62  ;;  %v15708_v62 = vld [vmem:[#allocation9 + $0x1a4] ss:$8 sps:$4 sm:$0xff]  }
 0x245   : > { %2403 = vmatpush1.bf16.msra.mxu1 %v15671_v58 }
 0x246   : > { %2404 = vmatprep.subr.bf16.mxu1 %v15672_v59 }
 0x247   : > { %1979 = vmatpush1.bf16.msra.mxu0 %v15671_v58  ;;  %v15710_v58 = vld [vmem:[#allocation9 + $0x1b4] ss:$8 sps:$4 sm:$0xff]  }
 0x248   : > { %1980 = vmatprep.subr.bf16.mxu0 %v15672_v59  ;;  %v15711_v59 = vld [vmem:[#allocation9 + $0x1b0] ss:$8 sps:$4 sm:$0xff]  }
 0x249   : > { %2405 = vmatpush1.bf16.msra.mxu1 %v15673_v0 }
 0x24a   : > { %2406 = vmatprep.subr.bf16.mxu1 %v15674_v2 }
 0x24b   : > { %1981 = vmatpush1.bf16.msra.mxu0 %v15673_v0  ;;  %v15714_v0 = vld [vmem:[#allocation9 + $0x1d4] ss:$8 sps:$4 sm:$0xff]  }
 0x24c   : > { %1982 = vmatprep.subr.bf16.mxu0 %v15674_v2  ;;  %v15715_v2 = vld [vmem:[#allocation9 + $0x1d0] ss:$8 sps:$4 sm:$0xff]  }
 0x24d   : > { %2407 = vmatpush1.bf16.msra.mxu1 %v15675_v4 }
 0x24e   : > { %2408 = vmatprep.subr.bf16.mxu1 %v15676_v5 }
 0x24f   : > { %1983 = vmatpush1.bf16.msra.mxu0 %v15675_v4  ;;  %v15717_v4 = vld [vmem:[#allocation9 + $0x1e0] ss:$8 sps:$4 sm:$0xff]  }
 0x250   : > { %1984 = vmatprep.subr.bf16.mxu0 %v15676_v5  ;;  %v15718_v5 = vld [vmem:[#allocation9 + $0x1f4] ss:$8 sps:$4 sm:$0xff]  }
 0x251   : > { %2409 = vmatpush1.bf16.msra.mxu1 %v15677_v12 }
 0x252   : > { %2429 = vmatprep.subr.bf16.mxu1 %v15678_v14 }
 0x253   : > { %1985 = vmatpush1.bf16.msra.mxu0 %v15677_v12  ;;  %v15720_v12 = vld [vmem:[#allocation9 + $0x204] ss:$8 sps:$4 sm:$0xff]  }
 0x254   : > { %2419 = vmatmul.mubr.bf16.vlgmr.msra.gmra.mrb[24].mxu1 %v16407_v13  ;;  %2128 = vmatprep.subr.bf16.mxu0 %v15678_v14  ;;  %v2476_v14 = vpack.c.bf16 %v2474_v7, %v2472_v10  ;;  %v2594_v7 = vld [vmem:[#allocation2 + $0xb8] sm:$0xf]  ;;  %v2565_v10 = vld [vmem:[#allocation2 + $0x50] sm:$0xf] }
 0x255   : > { %2430 = vmatpush1.bf16.msra.mxu1 %v15680_v22  ;;  %12700 = vmatprep.mubr.msk.bf16.mxu1 %vm971_vm2, %v16400_v44  ;;  %v15698_v44 = vld [vmem:[#allocation9 + $0x94] ss:$8 sps:$4 sm:$0xff]  }
 0x256   : > { %1995 = vmatmul.mubr.bf16.vlgmr.msra.gmra.mrb[12].mxu0 %v16410_v16  ;;  %2431 = vmatprep.subr.bf16.mxu1 %v15682_v24 }
 0x257   : > { %2129 = vmatpush1.bf16.msra.mxu0 %v15680_v22  ;;  %12673 = vmatprep.mubr.msk.bf16.mxu0 %vm971_vm2, %v1784_v6  ;;  %v15721_v22 = vld [vmem:[#allocation9 + $0x200] ss:$8 sps:$4 sm:$0xff]   ;;  %v2481_v6 = vshll.u32 %v2476_v14, 16 }
 0x258   : > { %2130 = vmatprep.subr.bf16.mxu0 %v15682_v24 }
 0x259   : > { %2432 = vmatpush1.bf16.msra.mxu1 %v15683_v18 }
 0x25a   : > { %2433 = vmatprep.subr.bf16.mxu1 %v15684_v26 }
 0x25b   : > { %2131 = vmatpush1.bf16.msra.mxu0 %v15683_v18  ;;  %v15723_v18 = vld [vmem:[#allocation9 + $0x210] ss:$8 sps:$4 sm:$0xff]  }
 0x25c   : > { %2132 = vmatprep.subr.bf16.mxu0 %v15684_v26  ;;  %v15724_v26 = vld [vmem:[#allocation9 + $0x224] ss:$8 sps:$4 sm:$0xff]  }
 0x25d   : > { %2434 = vmatpush1.bf16.msra.mxu1 %v15685_v27 }
 0x25e   : > { %2435 = vmatprep.subr.bf16.mxu1 %v15686_v28 }
 0x25f   : > { %2133 = vmatpush1.bf16.msra.mxu0 %v15685_v27  ;;  %v2479_v27 = vshrl.u32 %v2476_v14, 16  ;;  %v16502_v14 = vld [vmem:[#allocation9 + $0x10] ss:$8 sps:$4 sm:$0xff]  }
 0x260   : > { %2134 = vmatprep.subr.bf16.mxu0 %v15686_v28  ;;  %v2483_v28 = vrot.slane %v2481_v6, 1 }
 0x261   : > { %2436 = vmatpush1.bf16.msra.mxu1 %v15687_v30 }
 0x262   : > { %2437 = vmatprep.subr.bf16.mxu1 %v15688_v31  ;;  %v2484_v40 = vor.u32 %v2483_v28, %v2479_v27  ;;  %v16528_v27 = vld [vmem:[#allocation9 + $0x44] ss:$8 sps:$4 sm:$0xff]   ;;  %v16533_v28 = vld [vmem:[#allocation9 + $0x40] ss:$8 sps:$4 sm:$0xff]  }
 0x263   : > { %2135 = vmatpush1.bf16.msra.mxu0 %v15687_v30 }
 0x264   : > { %2136 = vmatprep.subr.bf16.mxu0 %v15688_v31  ;;  %v14864_v31 = vld [vmem:[#allocation9 + $0xc4] ss:$8 sps:$4 sm:$0xff]  }
 0x265   : > { %2438 = vmatpush1.bf16.msra.mxu1 %v15689_v32 }
 0x266   : > { %2439 = vmatprep.subr.bf16.mxu1 %v15690_v33 }
 0x267   : > { %2137 = vmatpush1.bf16.msra.mxu0 %v15689_v32  ;;  %v15725_v32 = vld [vmem:[#allocation9 + $0x220] ss:$8 sps:$4 sm:$0xff]  }
 0x268   : > { %2138 = vmatprep.subr.bf16.mxu0 %v15690_v33  ;;  %v15726_v33 = vld [vmem:[#allocation9 + $0x234] ss:$8 sps:$4 sm:$0xff]  }
 0x269   : > { %2440 = vmatpush1.bf16.msra.mxu1 %v15691_v34 }
 0x26a   : > { %2441 = vmatprep.subr.bf16.mxu1 %v15692_v17 }
 0x26b   : > { %2139 = vmatpush1.bf16.msra.mxu0 %v15691_v34  ;;  %v14862_v34 = vld [vmem:[#allocation9 + $0xc0] ss:$8 sps:$4 sm:$0xff]  }
 0x26c   : > { %2140 = vmatprep.subr.bf16.mxu0 %v15692_v17 }
 0x26d   : > { %2442 = vmatpush1.bf16.msra.mxu1 %v15693_v36 }
 0x26e   : > { %2443 = vmatprep.subr.bf16.mxu1 %v15694_v21 }
 0x26f   : > { %2141 = vmatpush1.bf16.msra.mxu0 %v15693_v36 }
 0x270   : > { %2142 = vmatprep.subr.bf16.mxu0 %v15694_v21  ;;  %v2595_v21 = vld [vmem:[#allocation2 + $0xc0] sm:$0xf] }
 0x271   : > { %2444 = vmatpush1.bf16.msra.mxu1 %v15695_v37 }
 0x272   : > { %2445 = vmatprep.subr.bf16.mxu1 %v15696_v38 }
 0x273   : > { %2143 = vmatpush1.bf16.msra.mxu0 %v15695_v37  ;;  %v14867_v37 = vld [vmem:[#allocation9 + $0xd4] ss:$8 sps:$4 sm:$0xff]  }
 0x274   : > { %2144 = vmatprep.subr.bf16.mxu0 %v15696_v38  ;;  %v15727_v38 = vld [vmem:[#allocation9 + $0x230] ss:$8 sps:$4 sm:$0xff]  }
 0x275   : > { %2446 = vmatpush1.bf16.msra.mxu1 %v15697_v43 }
 0x276   : > { %2447 = vmatprep.subr.bf16.mxu1 %v15698_v44 }
 0x277   : > { %2145 = vmatpush1.bf16.msra.mxu0 %v15697_v43 }
 0x278   : > { %2146 = vmatprep.subr.bf16.mxu0 %v15698_v44  ;;  %v14865_v44 = vld [vmem:[#allocation9 + $0xd0] ss:$8 sps:$4 sm:$0xff]  }
 0x279   : > { %2448 = vmatpush1.bf16.msra.mxu1 %v15699_v46 }
 0x27a   : > { %2449 = vmatprep.subr.bf16.mxu1 %v15700_v47 }
 0x27b   : > { %2147 = vmatpush1.bf16.msra.mxu0 %v15699_v46  ;;  %v14870_v46 = vld [vmem:[#allocation9 + $0xe4] ss:$8 sps:$4 sm:$0xff]  }
 0x27c   : > { %2148 = vmatprep.subr.bf16.mxu0 %v15700_v47  ;;  %v15728_v47 = vld [vmem:[#allocation2 + $0x88] sm:$0xff] }
 0x27d   : > { %2450 = vmatpush1.bf16.msra.mxu1 %v15701_v39  ;;  %v16424_v35 = vpack.c.bf16 %v2595_v21, %v15728_v47 }
 0x27e   : > { %2451 = vmatprep.subr.bf16.mxu1 %v15702_v48 }
 0x27f   : > { %2149 = vmatpush1.bf16.msra.mxu0 %v15701_v39  ;;  %v14868_v39 = vld [vmem:[#allocation9 + $0xe0] ss:$8 sps:$4 sm:$0xff]  }
 0x280   : > { %2150 = vmatprep.subr.bf16.mxu0 %v15702_v48  ;;  %v16429_v48 = vpack.c.bf16 %v2956_v45, %v2954_v42  ;;  %v16555_v42 = vld [vmem:[#allocation10] ss:$0 sm:$0xff]  ;;  %v3256_v45 = vld [vmem:[#allocation2 + $0x88] sm:$0xfe] }
 0x281   : > { %2452 = vmatpush1.bf16.msra.mxu1 %v15703_v51 }
 0x282   : > { %2496 = vmatprep.subr.bf16.mxu1 %v15704_v52  ;;  %v2987_v50 = vshll.u32 %v16429_v48, 16 }
 0x283   : > { %2151 = vmatpush1.bf16.msra.mxu0 %v15703_v51  ;;  %v14876_v51 = vld [vmem:[#allocation9 + $0x104] ss:$8 sps:$4 sm:$0xff]  }
 0x284   : > { %2462 = vmatmul.mubr.bf16.vlgmr.msra.gmra.mrb[24].mxu1 %v16410_v16  ;;  %2339 = vmatprep.subr.bf16.mxu0 %v15704_v52  ;;  %v2957_v16 = vld [vmem:[#allocation2 + $0x50] sm:$0x1f]  ;;  %v2985_v52 = vshrl.u32 %v16429_v48, 16 }
 0x285   : > { %2497 = vmatpush1.bf16.msra.mxu1 %v15705_v53  ;;  %12701 = vmatprep.mubr.msk.bf16.mxu1 %vm971_vm2, %v2491_v8  ;;  %v2959_v24 = vpack.c.bf16 %v2957_v16, %v2955_v15  ;;  %v2989_v8 = vrot.slane %v2987_v50, 1  ;;  %v15729_v15 = vld [vmem:[#allocation2 + $0x80] sm:$0xff] }
 0x286   : > { %2161 = vmatmul.mubr.bf16.vlgmr.msra.gmra.mrb[12].mxu0 %v1783_v29  ;;  %2498 = vmatprep.subr.bf16.mxu1 %v15706_v54  ;;  %v16437_v29 = vld [vmem:[#allocation9 + $0x110] ss:$8 sps:$4 sm:$0xff]   ;;  %v16505_v16 = vpack.c.bf16 %v2594_v7, %v15729_v15  ;;  %v16568_v7 = vld [vmem:[#allocation9 + $0x80] ss:$8 sps:$4 sm:$0xff]   ;;  %v16571_v15 = vld [vmem:[#allocation9 + $0x94] ss:$8 sps:$4 sm:$0xff]  }
 0x287   : > { %2340 = vmatpush1.bf16.msra.mxu0 %v15705_v53  ;;  %12698 = vmatprep.mubr.msk.bf16.mxu0 %vm971_vm2, %v16396_v41  ;;  %v15713_v41 = vld [vmem:[#allocation9 + $0x1c0] ss:$8 sps:$4 sm:$0xff]   ;;  %v2994_v30 = vshll.u32 %v2959_v24, 16  ;;  %v2992_v17 = vshrl.u32 %v2959_v24, 16  ;;  %v16439_v53 = vld [vmem:[#allocation9 + $0x124] ss:$8 sps:$4 sm:$0xff]  }
 0x288   : > { %2341 = vmatprep.subr.bf16.mxu0 %v15706_v54  ;;  %v16444_v54 = vld [vmem:[#allocation9 + $0x120] ss:$8 sps:$4 sm:$0xff]  }
 0x289   : > { %2499 = vmatpush1.bf16.msra.mxu1 %v15707_v55  ;;  %v2996_v36 = vrot.slane %v2994_v30, 1  ;;  %v16517_v24 = vld [vmem:[#allocation9 + $0x20] ss:$8 sps:$4 sm:$0xff]   ;;  %v16536_v30 = vld [vmem:[#allocation9 + $0x54] ss:$8 sps:$4 sm:$0xff]  }
 0x28a   : > { %2500 = vmatprep.subr.bf16.mxu1 %v15708_v62 }
 0x28b   : > { %2342 = vmatpush1.bf16.msra.mxu0 %v15707_v55  ;;  %v16420_v43 = vor.u32 %v2996_v36, %v2992_v17  ;;  %v16447_v55 = vld [vmem:[#allocation9 + $0x134] ss:$8 sps:$4 sm:$0xff]  }
 0x28c   : > { %2343 = vmatprep.subr.bf16.mxu0 %v15708_v62  ;;  %v16452_v62 = vld [vmem:[#allocation9 + $0x130] ss:$8 sps:$4 sm:$0xff]   ;;  %v16552_v36 = vld [vmem:[#allocation9 + $0x74] ss:$8 sps:$4 sm:$0xff]  }
 0x28d   : > { %2501 = vmatpush1.bf16.msra.mxu1 %v15709_v56 }
 0x28e   : > { %2502 = vmatprep.subr.bf16.mxu1 %v15710_v58 }
 0x28f   : > { %2344 = vmatpush1.bf16.msra.mxu0 %v15709_v56  ;;  %v16455_v56 = vld [vmem:[#allocation9 + $0x144] ss:$8 sps:$4 sm:$0xff]  }
 0x290   : > { %2345 = vmatprep.subr.bf16.mxu0 %v15710_v58  ;;  %v16460_v58 = vld [vmem:[#allocation9 + $0x140] ss:$8 sps:$4 sm:$0xff]  }
 0x291   : > { %2503 = vmatpush1.bf16.msra.mxu1 %v15711_v59 }
 0x292   : > { %2504 = vmatprep.subr.bf16.mxu1 %v15712_v61 }
 0x293   : > { %2346 = vmatpush1.bf16.msra.mxu0 %v15711_v59  ;;  %v16463_v59 = vld [vmem:[#allocation9 + $0x154] ss:$8 sps:$4 sm:$0xff]  }
 0x294   : > { %2347 = vmatprep.subr.bf16.mxu0 %v15712_v61  ;;  %v16468_v61 = vld [vmem:[#allocation9 + $0x150] ss:$8 sps:$4 sm:$0xff]  }
 0x295   : > { %2505 = vmatpush1.bf16.msra.mxu1 %v15713_v41 }
 0x296   : > { %2506 = vmatprep.subr.bf16.mxu1 %v15714_v0 }
 0x297   : > { %2348 = vmatpush1.bf16.msra.mxu0 %v15713_v41  ;;  %v16471_v41 = vld [vmem:[#allocation9 + $0x164] ss:$8 sps:$4 sm:$0xff]  }
 0x298   : > { %2349 = vmatprep.subr.bf16.mxu0 %v15714_v0  ;;  %v16476_v0 = vld [vmem:[#allocation9 + $0x160] ss:$8 sps:$4 sm:$0xff]  }
 0x299   : > { %2507 = vmatpush1.bf16.msra.mxu1 %v15715_v2 }
 0x29a   : > { %2508 = vmatprep.subr.bf16.mxu1 %v15716_v3 }
 0x29b   : > { %2350 = vmatpush1.bf16.msra.mxu0 %v15715_v2  ;;  %v16479_v2 = vld [vmem:[#allocation9 + $0x174] ss:$8 sps:$4 sm:$0xff]  }
 0x29c   : > { %2351 = vmatprep.subr.bf16.mxu0 %v15716_v3  ;;  %v16484_v3 = vld [vmem:[#allocation9 + $0x170] ss:$8 sps:$4 sm:$0xff]  }
 0x29d   : > { %2509 = vmatpush1.bf16.msra.mxu1 %v15717_v4 }
 0x29e   : > { %2510 = vmatprep.subr.bf16.mxu1 %v15718_v5 }
 0x29f   : > { %2352 = vmatpush1.bf16.msra.mxu0 %v15717_v4  ;;  %v16487_v4 = vld [vmem:[#allocation9 + $0x4] ss:$8 sps:$4 sm:$0xff]  }
 0x2a0   : > { %2353 = vmatprep.subr.bf16.mxu0 %v15718_v5  ;;  %v16492_v5 = vld [vmem:[#allocation9] ss:$8 sps:$4 sm:$0xff]  }
 0x2a1   : > { %2511 = vmatpush1.bf16.msra.mxu1 %v15719_v11 }
 0x2a2   : > { %2512 = vmatprep.subr.bf16.mxu1 %v15720_v12 }
 0x2a3   : > { %2354 = vmatpush1.bf16.msra.mxu0 %v15719_v11  ;;  %v16495_v11 = vld [vmem:[#allocation9 + $0x14] ss:$8 sps:$4 sm:$0xff]  }
 0x2a4   : > { %2355 = vmatprep.subr.bf16.mxu0 %v15720_v12  ;;  %v16498_v12 = vor.u32 %v2989_v8, %v2985_v52 }
 0x2a5   : > { %2513 = vmatpush1.bf16.msra.mxu1 %v15721_v22 }
 0x2a6   : > { %2514 = vmatprep.subr.bf16.mxu1 %v15722_v23 }
 0x2a7   : > { %2356 = vmatpush1.bf16.msra.mxu0 %v15721_v22  ;;  %v16508_v22 = vld [vmem:[#allocation9 + $0x24] ss:$8 sps:$4 sm:$0xff]  }
 0x2a8   : > { %2357 = vmatprep.subr.bf16.mxu0 %v15722_v23  ;;  %v15730_v23 = vld [vmem:[#allocation2 + $0x18] sm:$0xff] }
 0x2a9   : > { %2515 = vmatpush1.bf16.msra.mxu1 %v15723_v18  ;;  %v2567_v6 = vpack.c.bf16 %v2565_v10, %v15730_v23 }
 0x2aa   : > { %2516 = vmatprep.subr.bf16.mxu1 %v15724_v26 }
 0x2ab   : > { %2358 = vmatpush1.bf16.msra.mxu0 %v15723_v18  ;;  %v16520_v18 = vld [vmem:[#allocation9 + $0x34] ss:$8 sps:$4 sm:$0xff]  }
 0x2ac   : > { %2359 = vmatprep.subr.bf16.mxu0 %v15724_v26  ;;  %v16525_v26 = vld [vmem:[#allocation9 + $0x30] ss:$8 sps:$4 sm:$0xff]  }
 0x2ad   : > { %2517 = vmatpush1.bf16.msra.mxu1 %v15725_v32 }
 0x2ae   : > { %2518 = vmatprep.subr.bf16.mxu1 %v15726_v33 }
 0x2af   : > { %2360 = vmatpush1.bf16.msra.mxu0 %v15725_v32  ;;  %v16544_v32 = vld [vmem:[#allocation9 + $0x64] ss:$8 sps:$4 sm:$0xff]  }
 0x2b0   : > { %2361 = vmatprep.subr.bf16.mxu0 %v15726_v33 }
 0x2b1   : > { %2519 = vmatpush1.bf16.msra.mxu1 %v15727_v38 }
 0x2b2   : > { %3169 = vmatprep.subr.bf16.mxu1 %v14864_v31 }
 0x2b3   : > { %2362 = vmatpush1.bf16.msra.mxu0 %v15727_v38 }
 0x2b4   : > { %2529 = vmatmul.mubr.bf16.vlgmr.msra.gmra.mrb[24].mxu1 %v2484_v40  ;;  %2745 = vmatprep.subr.bf16.mxu0 %v14864_v31  ;;  %v16541_v31 = vld [vmem:[#allocation9 + $0x50] ss:$8 sps:$4 sm:$0xff]  }
 0x2b5   : > { %3170 = vmatpush1.bf16.msra.mxu1 %v14862_v34  ;;  %12778 = vmatprep.mubr.msk.bf16.mxu1 %vm971_vm2, %v16420_v43 }
 0x2b6   : > { %2372 = vmatmul.mubr.bf16.vlgmr.msra.gmra.mrb[12].mxu0 %v16407_v13  ;;  %3171 = vmatprep.subr.bf16.mxu1 %v14867_v37  ;;  %v16432_v13 = vld [vmem:[#allocation9 + $0x100] ss:$8 sps:$4 sm:$0xff]  }
 0x2b7   : > { %2746 = vmatpush1.bf16.msra.mxu0 %v14862_v34  ;;  %12727 = vmatprep.mubr.msk.bf16.mxu0 %vm971_vm2, %v16424_v35  ;;  %v16549_v34 = vld [vmem:[#allocation9 + $0x60] ss:$8 sps:$4 sm:$0xff]  }
 0x2b8   : > { %2747 = vmatprep.subr.bf16.mxu0 %v14867_v37 }
 0x2b9   : > { %3172 = vmatpush1.bf16.msra.mxu1 %v14865_v44 }
 0x2ba   : > { %3173 = vmatprep.subr.bf16.mxu1 %v14870_v46 }
 0x2bb   : > { %2748 = vmatpush1.bf16.msra.mxu0 %v14865_v44 }
 0x2bc   : > { %2749 = vmatprep.subr.bf16.mxu0 %v14870_v46  ;;  %v3258_v46 = vld [vmem:[#allocation2 + $0xc0] sm:$0x1f] }
 0x2bd   : > { %3174 = vmatpush1.bf16.msra.mxu1 %v14868_v39  ;;  %v3260_v10 = vpack.c.bf16 %v3258_v46, %v3256_v45  ;;  %v16598_v45 = vld [vmem:[#allocation9 + $0x184] ss:$8 sps:$4 sm:$0xff]  }
 0x2be   : > { %3175 = vmatprep.subr.bf16.mxu1 %v14873_v1 }
 0x2bf   : > { %2750 = vmatpush1.bf16.msra.mxu0 %v14868_v39  ;;  %v16559_v39 = vld [vmem:[#allocation9 + $0x70] ss:$8 sps:$4 sm:$0xff]   ;;  %v3269_v46 = vshrl.u32 %v3260_v10, 16 }
 0x2c0   : > { %2751 = vmatprep.subr.bf16.mxu0 %v14873_v1 }
 0x2c1   : > { %3176 = vmatpush1.bf16.msra.mxu1 %v14871_v49 }
 0x2c2   : > { %3177 = vmatprep.subr.bf16.mxu1 %v14876_v51 }
 0x2c3   : > { %2752 = vmatpush1.bf16.msra.mxu0 %v14871_v49  ;;  %v16562_v49 = vld [vmem:[#allocation9 + $0x84] ss:$8 sps:$4 sm:$0xff]  }
 0x2c4   : > { %2753 = vmatprep.subr.bf16.mxu0 %v14876_v51 }
 0x2c5   : > { %3178 = vmatpush1.bf16.msra.mxu1 %v16432_v13 }
 0x2c6   : > { %3179 = vmatprep.subr.bf16.mxu1 %v16435_v25 }
 0x2c7   : > { %2754 = vmatpush1.bf16.msra.mxu0 %v16432_v13 }
 0x2c8   : > { %2755 = vmatprep.subr.bf16.mxu0 %v16435_v25 }
 0x2c9   : > { %3180 = vmatpush1.bf16.msra.mxu1 %v16437_v29 }
 0x2ca   : > { %3181 = vmatprep.subr.bf16.mxu1 %v16439_v53 }
 0x2cb   : > { %2756 = vmatpush1.bf16.msra.mxu0 %v16437_v29 }
 0x2cc   : > { %2757 = vmatprep.subr.bf16.mxu0 %v16439_v53 }
 0x2cd   : > { %3182 = vmatpush1.bf16.msra.mxu1 %v16444_v54 }
 0x2ce   : > { %3183 = vmatprep.subr.bf16.mxu1 %v16447_v55 }
 0x2cf   : > { %2758 = vmatpush1.bf16.msra.mxu0 %v16444_v54 }
 0x2d0   : > { %2759 = vmatprep.subr.bf16.mxu0 %v16447_v55 }
 0x2d1   : > { %3184 = vmatpush1.bf16.msra.mxu1 %v16452_v62 }
 0x2d2   : > { %3185 = vmatprep.subr.bf16.mxu1 %v16455_v56 }
 0x2d3   : > { %2760 = vmatpush1.bf16.msra.mxu0 %v16452_v62 }
 0x2d4   : > { %2761 = vmatprep.subr.bf16.mxu0 %v16455_v56 }
 0x2d5   : > { %3186 = vmatpush1.bf16.msra.mxu1 %v16460_v58 }
 0x2d6   : > { %3187 = vmatprep.subr.bf16.mxu1 %v16463_v59 }
 0x2d7   : > { %2762 = vmatpush1.bf16.msra.mxu0 %v16460_v58 }
 0x2d8   : > { %2763 = vmatprep.subr.bf16.mxu0 %v16463_v59 }
 0x2d9   : > { %3188 = vmatpush1.bf16.msra.mxu1 %v16468_v61 }
 0x2da   : > { %3189 = vmatprep.subr.bf16.mxu1 %v16471_v41 }
 0x2db   : > { %2764 = vmatpush1.bf16.msra.mxu0 %v16468_v61 }
 0x2dc   : > { %2765 = vmatprep.subr.bf16.mxu0 %v16471_v41 }
 0x2dd   : > { %3190 = vmatpush1.bf16.msra.mxu1 %v16476_v0 }
 0x2de   : > { %3191 = vmatprep.subr.bf16.mxu1 %v16479_v2 }
 0x2df   : > { %2766 = vmatpush1.bf16.msra.mxu0 %v16476_v0 }
 0x2e0   : > { %2767 = vmatprep.subr.bf16.mxu0 %v16479_v2 }
 0x2e1   : > { %3192 = vmatpush1.bf16.msra.mxu1 %v16484_v3 }
 0x2e2   : > { %3212 = vmatprep.subr.bf16.mxu1 %v16487_v4 }
 0x2e3   : > { %2768 = vmatpush1.bf16.msra.mxu0 %v16484_v3 }
 0x2e4   : > { %3202 = vmatmul.mubr.bf16.vlgmr.msra.gmra.mrb[28].mxu1 %v16498_v12  ;;  %2911 = vmatprep.subr.bf16.mxu0 %v16487_v4 }
 0x2e5   : > { %3213 = vmatpush1.bf16.msra.mxu1 %v16492_v5  ;;  %12779 = vmatprep.mubr.msk.bf16.mxu1 %vm971_vm2, %v16424_v35 }
 0x2e6   : > { %2778 = vmatmul.mubr.bf16.vlgmr.msra.gmra.mrb[16].mxu0 %v16505_v16  ;;  %3214 = vmatprep.subr.bf16.mxu1 %v16495_v11 }
 0x2e7   : > { %2912 = vmatpush1.bf16.msra.mxu0 %v16492_v5  ;;  %12752 = vmatprep.mubr.msk.bf16.mxu0 %vm971_vm2, %v2567_v6 }
 0x2e8   : > { %2913 = vmatprep.subr.bf16.mxu0 %v16495_v11 }
 0x2e9   : > { %3215 = vmatpush1.bf16.msra.mxu1 %v16502_v14 }
 0x2ea   : > { %3216 = vmatprep.subr.bf16.mxu1 %v16508_v22 }
 0x2eb   : > { %2914 = vmatpush1.bf16.msra.mxu0 %v16502_v14 }
 0x2ec   : > { %2915 = vmatprep.subr.bf16.mxu0 %v16508_v22 }
 0x2ed   : > { %3217 = vmatpush1.bf16.msra.mxu1 %v16517_v24 }
 0x2ee   : > { %3218 = vmatprep.subr.bf16.mxu1 %v16520_v18 }
 0x2ef   : > { %2916 = vmatpush1.bf16.msra.mxu0 %v16517_v24 }
 0x2f0   : > { %2917 = vmatprep.subr.bf16.mxu0 %v16520_v18 }
 0x2f1   : > { %3219 = vmatpush1.bf16.msra.mxu1 %v16525_v26 }
 0x2f2   : > { %3220 = vmatprep.subr.bf16.mxu1 %v16528_v27 }
 0x2f3   : > { %2918 = vmatpush1.bf16.msra.mxu0 %v16525_v26 }
 0x2f4   : > { %2919 = vmatprep.subr.bf16.mxu0 %v16528_v27 }
 0x2f5   : > { %3221 = vmatpush1.bf16.msra.mxu1 %v16533_v28 }
 0x2f6   : > { %3222 = vmatprep.subr.bf16.mxu1 %v16536_v30 }
 0x2f7   : > { %v1747_v33 = vpop.f32.mrb[20].mxu1  ;;  %2920 = vmatpush1.bf16.msra.mxu0 %v16533_v28 }
 0x2f8   : > { %v1749_v17 = vpop.f32.mrb[21].mxu1  ;;  %2921 = vmatprep.subr.bf16.mxu0 %v16536_v30 }
 0x2f9   : > { %v1590_v21 = vpop.f32.mrb[8].mxu0  ;;  %v1751_v37 = vpop.f32.mrb[22].mxu1  ;;  %3223 = vmatpush1.bf16.msra.mxu1 %v16541_v31 }
 0x2fa   : > { %v1760_v38 = vmax.f32 %v1590_v21, %v1747_v33  ;;  %v1592_v40 = vpop.f32.mrb[9].mxu0  ;;  %v1753_v44 = vpop.f32.mrb[23].mxu1  ;;  %3224 = vmatprep.subr.bf16.mxu1 %v16544_v32  ;;  %v3271_v21 = vshll.u32 %v3260_v10, 16  ;;  %v16616_v10 = vld [vmem:[#allocation9 + $0x1a4] ss:$8 sps:$4 sm:$0xff]  }
 0x2fb   : > { %v1761_v47 = vmax.f32 %v1592_v40, %v1749_v17  ;;  %v1594_v35 = vpop.f32.mrb[10].mxu0  ;;  %2922 = vmatpush1.bf16.msra.mxu0 %v16541_v31  ;;  %v16577_v17 = vld [vmem:[#allocation9 + $0x90] ss:$8 sps:$4 sm:$0xff]   ;;  %v16588_v40 = vld [vmem:[#allocation9 + $0xb4] ss:$8 sps:$4 sm:$0xff]  }
 0x2fc   : > { %v1762_v48 = vmax.f32 %v1594_v35, %v1751_v37  ;;  %v1596_v1 = vpop.f32.mrb[11].mxu0  ;;  %2923 = vmatprep.subr.bf16.mxu0 %v16544_v32  ;;  %v16580_v37 = vld [vmem:[#allocation9 + $0xa4] ss:$8 sps:$4 sm:$0xff]   ;;  %v16603_v35 = vld [vmem:[#allocation9 + $0x180] ss:$8 sps:$4 sm:$0xff]  }
 0x2fd   : > { %v1764_v50 = vmax.f32 %v1760_v38, %v1761_v47  ;;  %v1763_v51 = vmax.f32 %v1596_v1, %v1753_v44  ;;  %3225 = vmatpush1.bf16.msra.mxu1 %v16549_v34  ;;  %v16585_v38 = vld [vmem:[#allocation9 + $0xa0] ss:$8 sps:$4 sm:$0xff]   ;;  %v16595_v44 = vld [vmem:[#allocation9 + $0xb0] ss:$8 sps:$4 sm:$0xff]   ;;  %v3273_v47 = vrot.slane %v3271_v21, 1 }
 0x2fe   : > { %3226 = vmatprep.subr.bf16.mxu1 %v16552_v36  ;;  %v2564_v1 = vld [vmem:[#allocation2 + $0x48] sm:$0xf]  ;;  %v16642_v21 = vld [vmem:[#allocation9 + $0x1d4] ss:$8 sps:$4 sm:$0xff]  }
 0x2ff   : > { %v1773_v52 = vadd.f32 %v16555_v42, %v1764_v50  ;;  %v1765_v8 = vmax.f32 %v1762_v48, %v1763_v51  ;;  %2924 = vmatpush1.bf16.msra.mxu0 %v16549_v34  ;;  %v2562_v48 = vld [vmem:[#allocation2 + $0x10] sm:$0xff]  ;;  %v3274_v51 = vor.u32 %v3273_v47, %v3269_v46  ;;  %17785 = vst [vmem:[#allocation32_spill] sm:$0xff] %v16642_v21  ;;  %v16650_v47 = vld [vmem:[#allocation9 + $0x1e4] ss:$8 sps:$4 sm:$0xff]  }
 0x300   : > { %2925 = vmatprep.subr.bf16.mxu0 %v16552_v36  ;;  %v16606_v50 = vld [vmem:[#allocation9 + $0x194] ss:$8 sps:$4 sm:$0xff]   ;;  %v16647_v46 = vld [vmem:[#allocation9 + $0x1d0] ss:$8 sps:$4 sm:$0xff]   ;;  %17787 = vst [vmem:[#allocation34_spill] sm:$0xff] %v16650_v47 }
 0x301   : > { %v1775_v23 = vmax.f32 %v1773_v52, 0.0  ;;  %v1774_v6 = vadd.f32 %v16555_v42, %v1765_v8  ;;  %3227 = vmatpush1.bf16.msra.mxu1 %v16559_v39  ;;  %v2566_v52 = vpack.c.bf16 %v2564_v1, %v2562_v48  ;;  %v16613_v8 = vld [vmem:[#allocation9 + $0x190] ss:$8 sps:$4 sm:$0xff]   ;;  %17786 = vst [vmem:[#allocation33_spill] sm:$0xff] %v16647_v46  ;;  %v16655_v48 = vld [vmem:[#allocation9 + $0x1e0] ss:$8 sps:$4 sm:$0xff]  }
 0x302   : > { %3228 = vmatprep.subr.bf16.mxu1 %v16562_v49  ;;  %17788 = vst [vmem:[#allocation35_spill] sm:$0xff] %v16655_v48  ;;  %v16658_v1 = vld [vmem:[#allocation9 + $0x1f4] ss:$8 sps:$4 sm:$0xff]  }
 0x303   : > { %1777 = vst [vmem:[#allocation3] sm:$0xff] %v1775_v23  ;;  %v1776_v33 = vmax.f32 %v1774_v6, 0.0  ;;  %2926 = vmatpush1.bf16.msra.mxu0 %v16559_v39  ;;  %v16626_v23 = vld [vmem:[#allocation9 + $0x1b4] ss:$8 sps:$4 sm:$0xff]   ;;  %v16631_v6 = vld [vmem:[#allocation9 + $0x1b0] ss:$8 sps:$4 sm:$0xff]  }
 0x304   : > { %2927 = vmatprep.subr.bf16.mxu0 %v16562_v49  ;;  %17789 = vst [vmem:[#allocation36_spill] sm:$0xff] %v16658_v1 }
 0x305   : > { %1778 = vst [vmem:[#allocation3 + $0x30] sm:$0xf] %v1776_v33  ;;  %3229 = vmatpush1.bf16.msra.mxu1 %v16568_v7  ;;  %v16639_v33 = vld [vmem:[#allocation9 + $0x1c0] ss:$8 sps:$4 sm:$0xff]  }
 0x306   : > { %3230 = vmatprep.subr.bf16.mxu1 %v16571_v15  ;;  %17784 = vst [vmem:[#allocation31_spill] sm:$0xff] %v16639_v33 }
 0x307   : > { %2928 = vmatpush1.bf16.msra.mxu0 %v16568_v7 }
 0x308   : > { %2929 = vmatprep.subr.bf16.mxu0 %v16571_v15 }
 0x309   : > { %3231 = vmatpush1.bf16.msra.mxu1 %v16577_v17 }
 0x30a   : > { %3232 = vmatprep.subr.bf16.mxu1 %v16580_v37 }
 0x30b   : > { %2930 = vmatpush1.bf16.msra.mxu0 %v16577_v17 }
 0x30c   : > { %2931 = vmatprep.subr.bf16.mxu0 %v16580_v37 }
 0x30d   : > { %3233 = vmatpush1.bf16.msra.mxu1 %v16585_v38 }
 0x30e   : > { %3234 = vmatprep.subr.bf16.mxu1 %v16588_v40 }
 0x30f   : > { %2932 = vmatpush1.bf16.msra.mxu0 %v16585_v38 }
 0x310   : > { %2933 = vmatprep.subr.bf16.mxu0 %v16588_v40 }
 0x311   : > { %3235 = vmatpush1.bf16.msra.mxu1 %v16595_v44 }
 0x312   : > { %3279 = vmatprep.subr.bf16.mxu1 %v16598_v45 }
 0x313   : > { %2934 = vmatpush1.bf16.msra.mxu0 %v16595_v44 }
 0x314   : > { %3245 = vmatmul.mubr.bf16.vlgmr.msra.gmra.mrb[28].mxu1 %v16505_v16  ;;  %3122 = vmatprep.subr.bf16.mxu0 %v16598_v45  ;;  %v16623_v16 = vld [vmem:[#allocation9 + $0x1a0] ss:$8 sps:$4 sm:$0xff]  }
 0x315   : > { %3280 = vmatpush1.bf16.msra.mxu1 %v16603_v35  ;;  %12780 = vmatprep.mubr.msk.bf16.mxu1 %vm971_vm2, %v3274_v51  ;;  %v16663_v51 = vld [vmem:[#allocation9 + $0x1f0] ss:$8 sps:$4 sm:$0xff]  }
 0x316   : > { %2944 = vmatmul.mubr.bf16.vlgmr.msra.gmra.mrb[16].mxu0 %v2566_v52  ;;  %3281 = vmatprep.subr.bf16.mxu1 %v16606_v50  ;;  %17790 = vst [vmem:[#allocation37_spill] sm:$0xff] %v16663_v51  ;;  %v16666_v52 = vld [vmem:[#allocation9 + $0x204] ss:$8 sps:$4 sm:$0xff]  }
 0x317   : > { %3123 = vmatpush1.bf16.msra.mxu0 %v16603_v35  ;;  %12777 = vmatprep.mubr.msk.bf16.mxu0 %vm971_vm2, %v16420_v43  ;;  %v16634_v43 = vld [vmem:[#allocation9 + $0x1c4] ss:$8 sps:$4 sm:$0xff]   ;;  %17791 = vst [vmem:[#allocation38_spill] sm:$0xff] %v16666_v52 }
 0x318   : > { %3124 = vmatprep.subr.bf16.mxu0 %v16606_v50  ;;  %17783 = vst [vmem:[#allocation30_spill] sm:$0xff] %v16634_v43 }
 0x319   : > { %3282 = vmatpush1.bf16.msra.mxu1 %v16613_v8 }
 0x31a   : > { %3283 = vmatprep.subr.bf16.mxu1 %v16616_v10 }
 0x31b   : > { %3125 = vmatpush1.bf16.msra.mxu0 %v16613_v8 }
 0x31c   : > { %3126 = vmatprep.subr.bf16.mxu0 %v16616_v10 }
 0x31d   : > { %3284 = vmatpush1.bf16.msra.mxu1 %v16623_v16 }
 0x31e   : > { %3285 = vmatprep.subr.bf16.mxu1 %v16626_v23 }
 0x31f   : > { %3127 = vmatpush1.bf16.msra.mxu0 %v16623_v16 }
 0x320   : > { %3128 = vmatprep.subr.bf16.mxu0 %v16626_v23 }
 0x321   : > { %3286 = vmatpush1.bf16.msra.mxu1 %v16631_v6 }
 0x322   : > { %3287 = vmatprep.subr.bf16.mxu1 %v16634_v43 }
 0x323   : > { %3129 = vmatpush1.bf16.msra.mxu0 %v16631_v6 }
 0x324   : > { %3130 = vmatprep.subr.bf16.mxu0 %v16634_v43 }
 0x325   : > { %3288 = vmatpush1.bf16.msra.mxu1 %v16639_v33 }
 0x326   : > { %3289 = vmatprep.subr.bf16.mxu1 %v16642_v21 }
 0x327   : > { %3131 = vmatpush1.bf16.msra.mxu0 %v16639_v33 }
 0x328   : > { %3132 = vmatprep.subr.bf16.mxu0 %v16642_v21 }
 0x329   : > { %3290 = vmatpush1.bf16.msra.mxu1 %v16647_v46 }
 0x32a   : > { %3291 = vmatprep.subr.bf16.mxu1 %v16650_v47 }
 0x32b   : > { %3133 = vmatpush1.bf16.msra.mxu0 %v16647_v46  ;;  %v3742_v46 = vpack.c.bf16 %v3740_v20, %v3738_v60 }
 0x32c   : > { %3134 = vmatprep.subr.bf16.mxu0 %v16650_v47  ;;  %v3259_v47 = vpack.c.bf16 %v3257_v19, %v3255_v57  ;;  %v16695_v19 = vld [vmem:[#allocation9 + $0x230] ss:$8 sps:$4 sm:$0xff]  }
 0x32d   : > { %3292 = vmatpush1.bf16.msra.mxu1 %v16655_v48  ;;  %v3777_v33 = vshll.u32 %v3742_v46, 16  ;;  %v3775_v60 = vshrl.u32 %v3742_v46, 16  ;;  %v15734_v46 = vld [vmem:[#allocation9 + $0xd4] ss:$8 sps:$4 sm:$0xff]  }
 0x32e   : > { %3293 = vmatprep.subr.bf16.mxu1 %v16658_v1  ;;  %v3264_v21 = vshll.u32 %v3259_v47, 16  ;;  %v3262_v20 = vshrl.u32 %v3259_v47, 16  ;;  %v15732_v47 = vld [vmem:[#allocation9 + $0xc0] ss:$8 sps:$4 sm:$0xff]  }
 0x32f   : > { %3135 = vmatpush1.bf16.msra.mxu0 %v16655_v48  ;;  %v16679_v48 = vld [vmem:[#allocation9 + $0x210] ss:$8 sps:$4 sm:$0xff]  }
 0x330   : > { %3136 = vmatprep.subr.bf16.mxu0 %v16658_v1  ;;  %17794 = vst [vmem:[#allocation41_spill] sm:$0xff] %v16679_v48  ;;  %v16682_v1 = vld [vmem:[#allocation9 + $0x224] ss:$8 sps:$4 sm:$0xff]   ;;  %v3266_v57 = vrot.slane %v3264_v21, 1 }
 0x331   : > { %3294 = vmatpush1.bf16.msra.mxu1 %v16663_v51  ;;  %17795 = vst [vmem:[#allocation42_spill] sm:$0xff] %v16682_v1 }
 0x332   : > { %3295 = vmatprep.subr.bf16.mxu1 %v16666_v52 }
 0x333   : > { %3137 = vmatpush1.bf16.msra.mxu0 %v16663_v51  ;;  %v16687_v51 = vld [vmem:[#allocation9 + $0x220] ss:$8 sps:$4 sm:$0xff]  }
 0x334   : > { %3138 = vmatprep.subr.bf16.mxu0 %v16666_v52  ;;  %v16690_v52 = vld [vmem:[#allocation9 + $0x234] ss:$8 sps:$4 sm:$0xff]  }
 0x335   : > { %3296 = vmatpush1.bf16.msra.mxu1 %v16671_v63 }
 0x336   : > { %3297 = vmatprep.subr.bf16.mxu1 %v16674_v9 }
 0x337   : > { %3139 = vmatpush1.bf16.msra.mxu0 %v16671_v63  ;;  %v15731_v63 = vld [vmem:[#allocation9 + $0xc4] ss:$8 sps:$4 sm:$0xff]  }
 0x338   : > { %3140 = vmatprep.subr.bf16.mxu0 %v16674_v9  ;;  %v3779_v9 = vrot.slane %v3777_v33, 1  ;;  %v15733_v33 = vld [vmem:[#allocation2 + $0x90] sm:$0xff] }
 0x339   : > { %3298 = vmatpush1.bf16.msra.mxu1 %v16679_v48 }
 0x33a   : > { %3299 = vmatprep.subr.bf16.mxu1 %v16682_v1  ;;  %v16702_v43 = vor.u32 %v3779_v9, %v3775_v60  ;;  %v15735_v9 = vld [vmem:[#allocation9 + $0xd0] ss:$8 sps:$4 sm:$0xff]  }
 0x33b   : > { %3141 = vmatpush1.bf16.msra.mxu0 %v16679_v48  ;;  %v3267_v48 = vor.u32 %v3266_v57, %v3262_v20  ;;  %v15738_v20 = vld [vmem:[#allocation9 + $0xf4] ss:$8 sps:$4 sm:$0xff]  }
 0x33c   : > { %3142 = vmatprep.subr.bf16.mxu0 %v16682_v1  ;;  %v3378_v1 = vld [vmem:[#allocation2 + $0xc8] sm:$0xf] }
 0x33d   : > { %3300 = vmatpush1.bf16.msra.mxu1 %v16687_v51  ;;  %v16706_v21 = vpack.c.bf16 %v3378_v1, %v15733_v33  ;;  %v15740_v1 = vld [vmem:[#allocation9 + $0x104] ss:$8 sps:$4 sm:$0xff]   ;;  %v4039_v33 = vld [vmem:[#allocation2 + $0x90] sm:$0xfe] }
 0x33e   : > { %3301 = vmatprep.subr.bf16.mxu1 %v16690_v52 }
 0x33f   : > { %3143 = vmatpush1.bf16.msra.mxu0 %v16687_v51 }
 0x340   : > { %3144 = vmatprep.subr.bf16.mxu0 %v16690_v52 }
 0x341   : > { %3302 = vmatpush1.bf16.msra.mxu1 %v16695_v19 }
 0x342   : > { %3952 = vmatprep.subr.bf16.mxu1 %v15731_v63 }
 0x343   : > { %3145 = vmatpush1.bf16.msra.mxu0 %v16695_v19 }
 0x344   : > { %3312 = vmatmul.mubr.bf16.vlgmr.msra.gmra.mrb[28].mxu1 %v3267_v48  ;;  %3528 = vmatprep.subr.bf16.mxu0 %v15731_v63  ;;  %v15736_v63 = vld [vmem:[#allocation9 + $0xe4] ss:$8 sps:$4 sm:$0xff]   ;;  %v15737_v48 = vld [vmem:[#allocation9 + $0xe0] ss:$8 sps:$4 sm:$0xff]  }
 0x345   : > { %3953 = vmatpush1.bf16.msra.mxu1 %v15732_v47  ;;  %12857 = vmatprep.mubr.msk.bf16.mxu1 %vm971_vm2, %v16702_v43 }
 0x346   : > { %3155 = vmatmul.mubr.bf16.vlgmr.msra.gmra.mrb[16].mxu0 %v16498_v12  ;;  %3954 = vmatprep.subr.bf16.mxu1 %v15734_v46  ;;  %v15739_v12 = vld [vmem:[#allocation9 + $0xf0] ss:$8 sps:$4 sm:$0xff]  }
 0x347   : > { %3529 = vmatpush1.bf16.msra.mxu0 %v15732_v47  ;;  %12806 = vmatprep.mubr.msk.bf16.mxu0 %vm971_vm2, %v16706_v21 }
 0x348   : > { %3530 = vmatprep.subr.bf16.mxu0 %v15734_v46  ;;  %v17805_v46 = vld [vmem:[#allocation39_spill] sm:$0xff] }
 0x349   : > { %3955 = vmatpush1.bf16.msra.mxu1 %v15735_v9 }
 0x34a   : > { %3956 = vmatprep.subr.bf16.mxu1 %v15736_v63 }
 0x34b   : > { %3531 = vmatpush1.bf16.msra.mxu0 %v15735_v9  ;;  %v17806_v9 = vld [vmem:[#allocation40_spill] sm:$0xff] }
 0x34c   : > { %3532 = vmatprep.subr.bf16.mxu0 %v15736_v63 }
 0x34d   : > { %3957 = vmatpush1.bf16.msra.mxu1 %v15737_v48 }
 0x34e   : > { %3958 = vmatprep.subr.bf16.mxu1 %v15738_v20 }
 0x34f   : > { %3533 = vmatpush1.bf16.msra.mxu0 %v15737_v48 }
 0x350   : > { %3534 = vmatprep.subr.bf16.mxu0 %v15738_v20  ;;  %v17807_v20 = vld [vmem:[#allocation41_spill] sm:$0xff] }
 0x351   : > { %3959 = vmatpush1.bf16.msra.mxu1 %v15739_v12 }
 0x352   : > { %3960 = vmatprep.subr.bf16.mxu1 %v15740_v1 }
 0x353   : > { %3535 = vmatpush1.bf16.msra.mxu0 %v15739_v12  ;;  %v17808_v12 = vld [vmem:[#allocation42_spill] sm:$0xff] }
 0x354   : > { %3536 = vmatprep.subr.bf16.mxu0 %v15740_v1 }
 0x355   : > { %3961 = vmatpush1.bf16.msra.mxu1 %v16432_v13 }
 0x356   : > { %3962 = vmatprep.subr.bf16.mxu1 %v16435_v25 }
 0x357   : > { %3537 = vmatpush1.bf16.msra.mxu0 %v16432_v13  ;;  %v3737_v13 = vld [vmem:[#allocation2 + $0x18] sm:$0xfe] }
 0x358   : > { %3538 = vmatprep.subr.bf16.mxu0 %v16435_v25  ;;  %v3739_v25 = vld [vmem:[#allocation2 + $0x50] sm:$0x1f] }
 0x359   : > { %3963 = vmatpush1.bf16.msra.mxu1 %v16437_v29 }
 0x35a   : > { %3964 = vmatprep.subr.bf16.mxu1 %v16439_v53 }
 0x35b   : > { %3539 = vmatpush1.bf16.msra.mxu0 %v16437_v29  ;;  %v3741_v29 = vpack.c.bf16 %v3739_v25, %v3737_v13 }
 0x35c   : > { %3540 = vmatprep.subr.bf16.mxu0 %v16439_v53 }
 0x35d   : > { %3965 = vmatpush1.bf16.msra.mxu1 %v16444_v54  ;;  %v3770_v53 = vshll.u32 %v3741_v29, 16 }
 0x35e   : > { %3966 = vmatprep.subr.bf16.mxu1 %v16447_v55 }
 0x35f   : > { %3541 = vmatpush1.bf16.msra.mxu0 %v16444_v54  ;;  %v3768_v54 = vshrl.u32 %v3741_v29, 16 }
 0x360   : > { %3542 = vmatprep.subr.bf16.mxu0 %v16447_v55  ;;  %v3772_v55 = vrot.slane %v3770_v53, 1  ;;  %v16851_v53 = vld [vmem:[#allocation9 + $0xc4] ss:$8 sps:$4 sm:$0xff]  }
 0x361   : > { %3967 = vmatpush1.bf16.msra.mxu1 %v16452_v62 }
 0x362   : > { %3968 = vmatprep.subr.bf16.mxu1 %v16455_v56 }
 0x363   : > { %3543 = vmatpush1.bf16.msra.mxu0 %v16452_v62  ;;  %v3375_v62 = vld [vmem:[#allocation2 + $0x88] sm:$0xff] }
 0x364   : > { %3544 = vmatprep.subr.bf16.mxu0 %v16455_v56  ;;  %v3377_v56 = vld [vmem:[#allocation2 + $0xc0] sm:$0xf] }
 0x365   : > { %3969 = vmatpush1.bf16.msra.mxu1 %v16460_v58 }
 0x366   : > { %3970 = vmatprep.subr.bf16.mxu1 %v16463_v59 }
 0x367   : > { %3545 = vmatpush1.bf16.msra.mxu0 %v16460_v58  ;;  %v16740_v58 = vor.u32 %v3772_v55, %v3768_v54 }
 0x368   : > { %3546 = vmatprep.subr.bf16.mxu0 %v16463_v59  ;;  %v16743_v59 = vld [vmem:[#allocation2 + $0x20] sm:$0xff] }
 0x369   : > { %3971 = vmatpush1.bf16.msra.mxu1 %v16468_v61 }
 0x36a   : > { %3972 = vmatprep.subr.bf16.mxu1 %v16471_v41 }
 0x36b   : > { %3547 = vmatpush1.bf16.msra.mxu0 %v16468_v61  ;;  %v3348_v61 = vld [vmem:[#allocation2 + $0x58] sm:$0xf] }
 0x36c   : > { %3548 = vmatprep.subr.bf16.mxu0 %v16471_v41  ;;  %v16747_v41 = vpack.c.bf16 %v3377_v56, %v3375_v62  ;;  %v16856_v62 = vld [vmem:[#allocation9 + $0xc0] ss:$8 sps:$4 sm:$0xff]  }
 0x36d   : > { %3973 = vmatpush1.bf16.msra.mxu1 %v16476_v0 }
 0x36e   : > { %3974 = vmatprep.subr.bf16.mxu1 %v16479_v2 }
 0x36f   : > { %3549 = vmatpush1.bf16.msra.mxu0 %v16476_v0  ;;  %v3350_v0 = vpack.c.bf16 %v3348_v61, %v16743_v59  ;;  %v16859_v61 = vld [vmem:[#allocation2 + $0x98] sm:$0xff] }
 0x370   : > { %3550 = vmatprep.subr.bf16.mxu0 %v16479_v2 }
 0x371   : > { %3975 = vmatpush1.bf16.msra.mxu1 %v16484_v3 }
 0x372   : > { %3995 = vmatprep.subr.bf16.mxu1 %v16487_v4 }
 0x373   : > { %3551 = vmatpush1.bf16.msra.mxu0 %v16484_v3 }
 0x374   : > { %3985 = vmatmul.mubr.bf16.vlgmr.msra.gmra.mrb[32].mxu1 %v16740_v58  ;;  %3694 = vmatprep.subr.bf16.mxu0 %v16487_v4 }
 0x375   : > { %3996 = vmatpush1.bf16.msra.mxu1 %v16492_v5  ;;  %12858 = vmatprep.mubr.msk.bf16.mxu1 %vm971_vm2, %v16706_v21  ;;  %v4041_v21 = vld [vmem:[#allocation2 + $0xc8] sm:$0x1f] }
 0x376   : > { %3561 = vmatmul.mubr.bf16.vlgmr.msra.gmra.mrb[20].mxu0 %v16747_v41  ;;  %3997 = vmatprep.subr.bf16.mxu1 %v16495_v11 }
 0x377   : > { %3695 = vmatpush1.bf16.msra.mxu0 %v16492_v5  ;;  %12831 = vmatprep.mubr.msk.bf16.mxu0 %vm971_vm2, %v3350_v0  ;;  %v16861_v0 = vld [vmem:[#allocation9 + $0xd4] ss:$8 sps:$4 sm:$0xff]  }
 0x378   : > { %3696 = vmatprep.subr.bf16.mxu0 %v16495_v11 }
 0x379   : > { %3998 = vmatpush1.bf16.msra.mxu1 %v16502_v14 }
 0x37a   : > { %3999 = vmatprep.subr.bf16.mxu1 %v16508_v22 }
 0x37b   : > { %3697 = vmatpush1.bf16.msra.mxu0 %v16502_v14 }
 0x37c   : > { %3698 = vmatprep.subr.bf16.mxu0 %v16508_v22 }
 0x37d   : > { %4000 = vmatpush1.bf16.msra.mxu1 %v16517_v24 }
 0x37e   : > { %4001 = vmatprep.subr.bf16.mxu1 %v16520_v18 }
 0x37f   : > { %3699 = vmatpush1.bf16.msra.mxu0 %v16517_v24 }
 0x380   : > { %3700 = vmatprep.subr.bf16.mxu0 %v16520_v18 }
 0x381   : > { %4002 = vmatpush1.bf16.msra.mxu1 %v16525_v26 }
 0x382   : > { %4003 = vmatprep.subr.bf16.mxu1 %v16528_v27 }
 0x383   : > { %3701 = vmatpush1.bf16.msra.mxu0 %v16525_v26 }
 0x384   : > { %3702 = vmatprep.subr.bf16.mxu0 %v16528_v27 }
 0x385   : > { %4004 = vmatpush1.bf16.msra.mxu1 %v16533_v28 }
 0x386   : > { %4005 = vmatprep.subr.bf16.mxu1 %v16536_v30 }
 0x387   : > { %v2530_v2 = vpop.f32.mrb[24].mxu1  ;;  %3703 = vmatpush1.bf16.msra.mxu0 %v16533_v28 }
 0x388   : > { %v2532_v3 = vpop.f32.mrb[25].mxu1  ;;  %3704 = vmatprep.subr.bf16.mxu0 %v16536_v30 }
 0x389   : > { %v2373_v4 = vpop.f32.mrb[12].mxu0  ;;  %v2534_v5 = vpop.f32.mrb[26].mxu1  ;;  %4006 = vmatpush1.bf16.msra.mxu1 %v16541_v31 }
 0x38a   : > { %v2543_v11 = vmax.f32 %v2373_v4, %v2530_v2  ;;  %v2375_v14 = vpop.f32.mrb[13].mxu0  ;;  %v2536_v22 = vpop.f32.mrb[27].mxu1  ;;  %4007 = vmatprep.subr.bf16.mxu1 %v16544_v32  ;;  %v16887_v4 = vld [vmem:[#allocation9 + $0xf4] ss:$8 sps:$4 sm:$0xff]  }
 0x38b   : > { %v2544_v24 = vmax.f32 %v2375_v14, %v2532_v3  ;;  %v2377_v18 = vpop.f32.mrb[14].mxu0  ;;  %3705 = vmatpush1.bf16.msra.mxu0 %v16541_v31  ;;  %v16884_v3 = vld [vmem:[#allocation9 + $0xe0] ss:$8 sps:$4 sm:$0xff]   ;;  %v16903_v14 = vld [vmem:[#allocation9 + $0x114] ss:$8 sps:$4 sm:$0xff]  }
 0x38c   : > { %v2545_v26 = vmax.f32 %v2377_v18, %v2534_v5  ;;  %v2379_v27 = vpop.f32.mrb[15].mxu0  ;;  %3706 = vmatprep.subr.bf16.mxu0 %v16544_v32  ;;  %v16895_v5 = vld [vmem:[#allocation9 + $0x104] ss:$8 sps:$4 sm:$0xff]   ;;  %v16916_v18 = vld [vmem:[#allocation9 + $0x120] ss:$8 sps:$4 sm:$0xff]  }
 0x38d   : > { %v2547_v28 = vmax.f32 %v2543_v11, %v2544_v24  ;;  %v2546_v57 = vmax.f32 %v2379_v27, %v2536_v22  ;;  %4008 = vmatpush1.bf16.msra.mxu1 %v16549_v34  ;;  %v16900_v11 = vld [vmem:[#allocation9 + $0x100] ss:$8 sps:$4 sm:$0xff]   ;;  %v16908_v22 = vld [vmem:[#allocation9 + $0x110] ss:$8 sps:$4 sm:$0xff]   ;;  %v16911_v24 = vld [vmem:[#allocation9 + $0x124] ss:$8 sps:$4 sm:$0xff]  }
 0x38e   : > { %4009 = vmatprep.subr.bf16.mxu1 %v16552_v36  ;;  %v16924_v27 = vld [vmem:[#allocation9 + $0x130] ss:$8 sps:$4 sm:$0xff]  }
 0x38f   : > { %v2556_v30 = vadd.f32 %v16555_v42, %v2547_v28  ;;  %v2548_v60 = vmax.f32 %v2545_v26, %v2546_v57  ;;  %3707 = vmatpush1.bf16.msra.mxu0 %v16549_v34  ;;  %v4043_v34 = vpack.c.bf16 %v4041_v21, %v4039_v33  ;;  %v16919_v26 = vld [vmem:[#allocation9 + $0x134] ss:$8 sps:$4 sm:$0xff]   ;;  %v16927_v28 = vld [vmem:[#allocation9 + $0x144] ss:$8 sps:$4 sm:$0xff]   ;;  %v16932_v57 = vld [vmem:[#allocation9 + $0x140] ss:$8 sps:$4 sm:$0xff]  }
 0x390   : > { %3708 = vmatprep.subr.bf16.mxu0 %v16552_v36  ;;  %v16948_v21 = vld [vmem:[#allocation9 + $0x160] ss:$8 sps:$4 sm:$0xff]  }
 0x391   : > { %v2558_v47 = vmax.f32 %v2556_v30, 0.0  ;;  %v2557_v31 = vadd.f32 %v16555_v42, %v2548_v60  ;;  %4010 = vmatpush1.bf16.msra.mxu1 %v16559_v39  ;;  %v4054_v36 = vshll.u32 %v4043_v34, 16  ;;  %v4052_v42 = vshrl.u32 %v4043_v34, 16  ;;  %v16935_v30 = vld [vmem:[#allocation9 + $0x154] ss:$8 sps:$4 sm:$0xff]  }
 0x392   : > { %4011 = vmatprep.subr.bf16.mxu1 %v16562_v49  ;;  %v4520_v60 = vld [vmem:[#allocation2 + $0x20] sm:$0xfe]  ;;  %v16951_v34 = vld [vmem:[#allocation9 + $0x174] ss:$8 sps:$4 sm:$0xff]  }
 0x393   : > { %2560 = vst [vmem:[#allocation3 + $0x8] sm:$0xff] %v2558_v47  ;;  %v2559_v32 = vmax.f32 %v2557_v31, 0.0  ;;  %3709 = vmatpush1.bf16.msra.mxu0 %v16559_v39  ;;  %v4056_v39 = vrot.slane %v4054_v36, 1  ;;  %v4522_v47 = vld [vmem:[#allocation2 + $0x58] sm:$0x1f] }
 0x394   : > { %3710 = vmatprep.subr.bf16.mxu0 %v16562_v49  ;;  %v3345_v49 = vld [vmem:[#allocation2 + $0x18] sm:$0xff]  ;;  %v16940_v31 = vld [vmem:[#allocation9 + $0x150] ss:$8 sps:$4 sm:$0xff]   ;;  %v4524_v33 = vpack.c.bf16 %v4522_v47, %v4520_v60 }
 0x395   : > { %2561 = vst [vmem:[#allocation3 + $0x38] sm:$0xf] %v2559_v32  ;;  %4012 = vmatpush1.bf16.msra.mxu1 %v16568_v7  ;;  %v16943_v32 = vld [vmem:[#allocation9 + $0x164] ss:$8 sps:$4 sm:$0xff]   ;;  %v17030_v60 = vld [vmem:[#allocation10] ss:$0 sm:$0xff] }
 0x396   : > { %4013 = vmatprep.subr.bf16.mxu1 %v16571_v15  ;;  %v4553_v36 = vshll.u32 %v4524_v33, 16 }
 0x397   : > { %3711 = vmatpush1.bf16.msra.mxu0 %v16568_v7  ;;  %v3347_v7 = vld [vmem:[#allocation2 + $0x50] sm:$0xf] }
 0x398   : > { %3712 = vmatprep.subr.bf16.mxu0 %v16571_v15  ;;  %v4057_v15 = vor.u32 %v4056_v39, %v4052_v42  ;;  %v16956_v42 = vld [vmem:[#allocation9 + $0x170] ss:$8 sps:$4 sm:$0xff]   ;;  %v4551_v39 = vshrl.u32 %v4524_v33, 16 }
 0x399   : > { %4014 = vmatpush1.bf16.msra.mxu1 %v16577_v17 }
 0x39a   : > { %4015 = vmatprep.subr.bf16.mxu1 %v16580_v37 }
 0x39b   : > { %3713 = vmatpush1.bf16.msra.mxu0 %v16577_v17  ;;  %v3349_v17 = vpack.c.bf16 %v3347_v7, %v3345_v49  ;;  %v4555_v49 = vrot.slane %v4553_v36, 1  ;;  %v16959_v7 = vld [vmem:[#allocation9 + $0x4] ss:$8 sps:$4 sm:$0xff]  }
 0x39c   : > { %3714 = vmatprep.subr.bf16.mxu0 %v16580_v37  ;;  %v17796_v37 = vld [vmem:[#allocation30_spill] sm:$0xff] }
 0x39d   : > { %4016 = vmatpush1.bf16.msra.mxu1 %v16585_v38 }
 0x39e   : > { %4017 = vmatprep.subr.bf16.mxu1 %v16588_v40 }
 0x39f   : > { %3715 = vmatpush1.bf16.msra.mxu0 %v16585_v38  ;;  %v17797_v38 = vld [vmem:[#allocation31_spill] sm:$0xff] }
 0x3a0   : > { %3716 = vmatprep.subr.bf16.mxu0 %v16588_v40  ;;  %v17798_v40 = vld [vmem:[#allocation32_spill] sm:$0xff] }
 0x3a1   : > { %4018 = vmatpush1.bf16.msra.mxu1 %v16595_v44 }
 0x3a2   : > { %4062 = vmatprep.subr.bf16.mxu1 %v16598_v45 }
 0x3a3   : > { %3717 = vmatpush1.bf16.msra.mxu0 %v16595_v44  ;;  %v17799_v44 = vld [vmem:[#allocation33_spill] sm:$0xff] }
 0x3a4   : > { %4028 = vmatmul.mubr.bf16.vlgmr.msra.gmra.mrb[32].mxu1 %v16747_v41  ;;  %3905 = vmatprep.subr.bf16.mxu0 %v16598_v45  ;;  %v17800_v45 = vld [vmem:[#allocation34_spill] sm:$0xff] }
 0x3a5   : > { %4063 = vmatpush1.bf16.msra.mxu1 %v16603_v35  ;;  %12859 = vmatprep.mubr.msk.bf16.mxu1 %vm971_vm2, %v4057_v15  ;;  %v4161_v41 = vld [vmem:[#allocation2 + $0xd0] sm:$0xf]  ;;  %v16964_v15 = vld [vmem:[#allocation9] ss:$8 sps:$4 sm:$0xff]  }
 0x3a6   : > { %3727 = vmatmul.mubr.bf16.vlgmr.msra.gmra.mrb[20].mxu0 %v3349_v17  ;;  %4064 = vmatprep.subr.bf16.mxu1 %v16606_v50  ;;  %v4158_v17 = vld [vmem:[#allocation2 + $0x90] sm:$0xff] }
 0x3a7   : > { %3906 = vmatpush1.bf16.msra.mxu0 %v16603_v35  ;;  %12856 = vmatprep.mubr.msk.bf16.mxu0 %vm971_vm2, %v16702_v43  ;;  %v17801_v35 = vld [vmem:[#allocation35_spill] sm:$0xff] }
 0x3a8   : > { %3907 = vmatprep.subr.bf16.mxu0 %v16606_v50  ;;  %v17802_v50 = vld [vmem:[#allocation36_spill] sm:$0xff] }
 0x3a9   : > { %4065 = vmatpush1.bf16.msra.mxu1 %v16613_v8  ;;  %v4523_v43 = vld [vmem:[#allocation2 + $0x60] sm:$0x1f] }
 0x3aa   : > { %4066 = vmatprep.subr.bf16.mxu1 %v16616_v10 }
 0x3ab   : > { %3908 = vmatpush1.bf16.msra.mxu0 %v16613_v8  ;;  %v17803_v8 = vld [vmem:[#allocation37_spill] sm:$0xff] }
 0x3ac   : > { %3909 = vmatprep.subr.bf16.mxu0 %v16616_v10  ;;  %v17804_v10 = vld [vmem:[#allocation38_spill] sm:$0xff] }
 0x3ad   : > { %4067 = vmatpush1.bf16.msra.mxu1 %v16623_v16 }
 0x3ae   : > { %4068 = vmatprep.subr.bf16.mxu1 %v16626_v23 }
 0x3af   : > { %3910 = vmatpush1.bf16.msra.mxu0 %v16623_v16  ;;  %v4038_v16 = vld [vmem:[#allocation2 + $0x88] sm:$0xfe] }
 0x3b0   : > { %3911 = vmatprep.subr.bf16.mxu0 %v16626_v23  ;;  %v4040_v23 = vld [vmem:[#allocation2 + $0xc0] sm:$0x1f] }
 0x3b1   : > { %4069 = vmatpush1.bf16.msra.mxu1 %v16631_v6  ;;  %v4042_v63 = vpack.c.bf16 %v4040_v23, %v4038_v16  ;;  %v16992_v16 = vld [vmem:[#allocation9 + $0x20] ss:$8 sps:$4 sm:$0xff]   ;;  %v16995_v23 = vld [vmem:[#allocation9 + $0x34] ss:$8 sps:$4 sm:$0xff]  }
 0x3b2   : > { %4070 = vmatprep.subr.bf16.mxu1 %v17796_v37 }
 0x3b3   : > { %3912 = vmatpush1.bf16.msra.mxu0 %v16631_v6  ;;  %v4521_v6 = vld [vmem:[#allocation2 + $0x28] sm:$0xfe]  ;;  %v4047_v1 = vshll.u32 %v4042_v63, 16  ;;  %v4045_v25 = vshrl.u32 %v4042_v63, 16 }
 0x3b4   : > { %3913 = vmatprep.subr.bf16.mxu0 %v17796_v37  ;;  %v4525_v48 = vpack.c.bf16 %v4523_v43, %v4521_v6  ;;  %v4160_v37 = vld [vmem:[#allocation2 + $0xc8] sm:$0xf]  ;;  %v17000_v6 = vld [vmem:[#allocation9 + $0x30] ss:$8 sps:$4 sm:$0xff]  }
 0x3b5   : > { %4071 = vmatpush1.bf16.msra.mxu1 %v17797_v38  ;;  %v4049_v29 = vrot.slane %v4047_v1, 1  ;;  %v17003_v43 = vld [vmem:[#allocation9 + $0x44] ss:$8 sps:$4 sm:$0xff]   ;;  %v17016_v63 = vld [vmem:[#allocation9 + $0x50] ss:$8 sps:$4 sm:$0xff]  }
 0x3b6   : > { %4072 = vmatprep.subr.bf16.mxu1 %v17798_v40  ;;  %v4560_v13 = vshll.u32 %v4525_v48, 16  ;;  %v4558_v54 = vshrl.u32 %v4525_v48, 16  ;;  %v17019_v48 = vld [vmem:[#allocation9 + $0x64] ss:$8 sps:$4 sm:$0xff]  }
 0x3b7   : > { %3914 = vmatpush1.bf16.msra.mxu0 %v17797_v38  ;;  %v4050_v56 = vor.u32 %v4049_v29, %v4045_v25  ;;  %v16966_v38 = vor.u32 %v4555_v49, %v4551_v39  ;;  %v17024_v25 = vld [vmem:[#allocation9 + $0x60] ss:$8 sps:$4 sm:$0xff]   ;;  %v17034_v49 = vld [vmem:[#allocation9 + $0x70] ss:$8 sps:$4 sm:$0xff]  }
 0x3b8   : > { %3915 = vmatprep.subr.bf16.mxu0 %v17798_v40  ;;  %v4562_v55 = vrot.slane %v4560_v13, 1  ;;  %v16969_v40 = vld [vmem:[#allocation2 + $0x28] sm:$0xff] }
 0x3b9   : > { %4073 = vmatpush1.bf16.msra.mxu1 %v17799_v44  ;;  %17809 = vst [vmem:[#allocation30_spill] sm:$0xff] %v16969_v40 }
 0x3ba   : > { %4074 = vmatprep.subr.bf16.mxu1 %v17800_v45  ;;  %v16864_v2 = vor.u32 %v4562_v55, %v4558_v54 }
 0x3bb   : > { %3916 = vmatpush1.bf16.msra.mxu0 %v17799_v44  ;;  %v4131_v44 = vld [vmem:[#allocation2 + $0x60] sm:$0xf] }
 0x3bc   : > { %3917 = vmatprep.subr.bf16.mxu0 %v17800_v45  ;;  %v16971_v45 = vld [vmem:[#allocation9 + $0x14] ss:$8 sps:$4 sm:$0xff]  }
 0x3bd   : > { %4075 = vmatpush1.bf16.msra.mxu1 %v17801_v35 }
 0x3be   : > { %4076 = vmatprep.subr.bf16.mxu1 %v17802_v50 }
 0x3bf   : > { %3918 = vmatpush1.bf16.msra.mxu0 %v17801_v35  ;;  %v16975_v35 = vpack.c.bf16 %v4160_v37, %v4158_v17  ;;  %v17037_v17 = vld [vmem:[#allocation9 + $0x84] ss:$8 sps:$4 sm:$0xff]  }
 0x3c0   : > { %3919 = vmatprep.subr.bf16.mxu0 %v17802_v50  ;;  %v4133_v50 = vpack.c.bf16 %v4131_v44, %v16969_v40 }
 0x3c1   : > { %4077 = vmatpush1.bf16.msra.mxu1 %v17803_v8 }
 0x3c2   : > { %4078 = vmatprep.subr.bf16.mxu1 %v17804_v10 }
 0x3c3   : > { %3920 = vmatpush1.bf16.msra.mxu0 %v17803_v8  ;;  %v16982_v8 = vld [vmem:[#allocation9 + $0x10] ss:$8 sps:$4 sm:$0xff]  }
 0x3c4   : > { %3921 = vmatprep.subr.bf16.mxu0 %v17804_v10  ;;  %v16986_v10 = vld [vmem:[#allocation9 + $0x24] ss:$8 sps:$4 sm:$0xff]  }
 0x3c5   : > { %4079 = vmatpush1.bf16.msra.mxu1 %v17805_v46 }
 0x3c6   : > { %4080 = vmatprep.subr.bf16.mxu1 %v17806_v9 }
 0x3c7   : > { %3922 = vmatpush1.bf16.msra.mxu0 %v17805_v46  ;;  %v17008_v46 = vld [vmem:[#allocation9 + $0x40] ss:$8 sps:$4 sm:$0xff]  }
 0x3c8   : > { %3923 = vmatprep.subr.bf16.mxu0 %v17806_v9  ;;  %v17011_v9 = vld [vmem:[#allocation9 + $0x54] ss:$8 sps:$4 sm:$0xff]  }
 0x3c9   : > { %4081 = vmatpush1.bf16.msra.mxu1 %v17807_v20 }
 0x3ca   : > { %4082 = vmatprep.subr.bf16.mxu1 %v17808_v12 }
 0x3cb   : > { %3924 = vmatpush1.bf16.msra.mxu0 %v17807_v20 }
 0x3cc   : > { %3925 = vmatprep.subr.bf16.mxu0 %v17808_v12 }
 0x3cd   : > { %4083 = vmatpush1.bf16.msra.mxu1 %v16687_v51 }
 0x3ce   : > { %4084 = vmatprep.subr.bf16.mxu1 %v16690_v52 }
 0x3cf   : > { %3926 = vmatpush1.bf16.msra.mxu0 %v16687_v51  ;;  %v16871_v51 = vpack.c.bf16 %v4161_v41, %v16859_v61 }
 0x3d0   : > { %3927 = vmatprep.subr.bf16.mxu0 %v16690_v52  ;;  %v16873_v52 = vld [vmem:[#allocation9 + $0xd0] ss:$8 sps:$4 sm:$0xff]  }
 0x3d1   : > { %4085 = vmatpush1.bf16.msra.mxu1 %v16695_v19 }
 0x3d2   : > { %4735 = vmatprep.subr.bf16.mxu1 %v16851_v53 }
 0x3d3   : > { %3928 = vmatpush1.bf16.msra.mxu0 %v16695_v19  ;;  %v16877_v19 = vld [vmem:[#allocation9 + $0xe4] ss:$8 sps:$4 sm:$0xff]  }
 0x3d4   : > { %4095 = vmatmul.mubr.bf16.vlgmr.msra.gmra.mrb[32].mxu1 %v4050_v56  ;;  %4311 = vmatprep.subr.bf16.mxu0 %v16851_v53  ;;  %v17027_v56 = vld [vmem:[#allocation9 + $0x74] ss:$8 sps:$4 sm:$0xff]  }
 0x3d5   : > { %4736 = vmatpush1.bf16.msra.mxu1 %v16856_v62  ;;  %12936 = vmatprep.mubr.msk.bf16.mxu1 %vm971_vm2, %v16864_v2 }
 0x3d6   : > { %3938 = vmatmul.mubr.bf16.vlgmr.msra.gmra.mrb[20].mxu0 %v16740_v58  ;;  %4737 = vmatprep.subr.bf16.mxu1 %v16861_v0  ;;  %v16892_v58 = vld [vmem:[#allocation9 + $0xf0] ss:$8 sps:$4 sm:$0xff]  }
 0x3d7   : > { %4312 = vmatpush1.bf16.msra.mxu0 %v16856_v62  ;;  %12885 = vmatprep.mubr.msk.bf16.mxu0 %vm971_vm2, %v16871_v51 }
 0x3d8   : > { %4313 = vmatprep.subr.bf16.mxu0 %v16861_v0 }
 0x3d9   : > { %4738 = vmatpush1.bf16.msra.mxu1 %v16873_v52 }
 0x3da   : > { %4739 = vmatprep.subr.bf16.mxu1 %v16877_v19 }
 0x3db   : > { %4314 = vmatpush1.bf16.msra.mxu0 %v16873_v52 }
 0x3dc   : > { %4315 = vmatprep.subr.bf16.mxu0 %v16877_v19 }
 0x3dd   : > { %4740 = vmatpush1.bf16.msra.mxu1 %v16884_v3 }
 0x3de   : > { %4741 = vmatprep.subr.bf16.mxu1 %v16887_v4 }
 0x3df   : > { %4316 = vmatpush1.bf16.msra.mxu0 %v16884_v3 }
 0x3e0   : > { %4317 = vmatprep.subr.bf16.mxu0 %v16887_v4 }
 0x3e1   : > { %4742 = vmatpush1.bf16.msra.mxu1 %v16892_v58 }
 0x3e2   : > { %4743 = vmatprep.subr.bf16.mxu1 %v16895_v5 }
 0x3e3   : > { %4318 = vmatpush1.bf16.msra.mxu0 %v16892_v58 }
 0x3e4   : > { %4319 = vmatprep.subr.bf16.mxu0 %v16895_v5 }
 0x3e5   : > { %4744 = vmatpush1.bf16.msra.mxu1 %v16900_v11 }
 0x3e6   : > { %4745 = vmatprep.subr.bf16.mxu1 %v16903_v14 }
 0x3e7   : > { %4320 = vmatpush1.bf16.msra.mxu0 %v16900_v11 }
 0x3e8   : > { %4321 = vmatprep.subr.bf16.mxu0 %v16903_v14 }
 0x3e9   : > { %4746 = vmatpush1.bf16.msra.mxu1 %v16908_v22 }
 0x3ea   : > { %4747 = vmatprep.subr.bf16.mxu1 %v16911_v24 }
 0x3eb   : > { %4322 = vmatpush1.bf16.msra.mxu0 %v16908_v22 }
 0x3ec   : > { %4323 = vmatprep.subr.bf16.mxu0 %v16911_v24 }
 0x3ed   : > { %4748 = vmatpush1.bf16.msra.mxu1 %v16916_v18 }
 0x3ee   : > { %4749 = vmatprep.subr.bf16.mxu1 %v16919_v26 }
 0x3ef   : > { %4324 = vmatpush1.bf16.msra.mxu0 %v16916_v18 }
 0x3f0   : > { %4325 = vmatprep.subr.bf16.mxu0 %v16919_v26 }
 0x3f1   : > { %4750 = vmatpush1.bf16.msra.mxu1 %v16924_v27 }
 0x3f2   : > { %4751 = vmatprep.subr.bf16.mxu1 %v16927_v28 }
 0x3f3   : > { %4326 = vmatpush1.bf16.msra.mxu0 %v16924_v27 }
 0x3f4   : > { %4327 = vmatprep.subr.bf16.mxu0 %v16927_v28 }
 0x3f5   : > { %4752 = vmatpush1.bf16.msra.mxu1 %v16932_v57 }
 0x3f6   : > { %4753 = vmatprep.subr.bf16.mxu1 %v16935_v30 }
 0x3f7   : > { %4328 = vmatpush1.bf16.msra.mxu0 %v16932_v57 }
 0x3f8   : > { %4329 = vmatprep.subr.bf16.mxu0 %v16935_v30 }
 0x3f9   : > { %4754 = vmatpush1.bf16.msra.mxu1 %v16940_v31 }
 0x3fa   : > { %4755 = vmatprep.subr.bf16.mxu1 %v16943_v32 }
 0x3fb   : > { %4330 = vmatpush1.bf16.msra.mxu0 %v16940_v31 }
 0x3fc   : > { %4331 = vmatprep.subr.bf16.mxu0 %v16943_v32 }
 0x3fd   : > { %4756 = vmatpush1.bf16.msra.mxu1 %v16948_v21 }
 0x3fe   : > { %4757 = vmatprep.subr.bf16.mxu1 %v16951_v34 }
 0x3ff   : > { %4332 = vmatpush1.bf16.msra.mxu0 %v16948_v21 }
 0x400   : > { %4333 = vmatprep.subr.bf16.mxu0 %v16951_v34 }
 0x401   : > { %4758 = vmatpush1.bf16.msra.mxu1 %v16956_v42 }
 0x402   : > { %4778 = vmatprep.subr.bf16.mxu1 %v16959_v7 }
 0x403   : > { %4334 = vmatpush1.bf16.msra.mxu0 %v16956_v42 }
 0x404   : > { %4768 = vmatmul.mubr.bf16.vlgmr.msra.gmra.mrb[36].mxu1 %v16966_v38  ;;  %4477 = vmatprep.subr.bf16.mxu0 %v16959_v7 }
 0x405   : > { %4779 = vmatpush1.bf16.msra.mxu1 %v16964_v15  ;;  %12937 = vmatprep.mubr.msk.bf16.mxu1 %vm971_vm2, %v16871_v51 }
 0x406   : > { %4344 = vmatmul.mubr.bf16.vlgmr.msra.gmra.mrb[24].mxu0 %v16975_v35  ;;  %4780 = vmatprep.subr.bf16.mxu1 %v16971_v45 }
 0x407   : > { %4478 = vmatpush1.bf16.msra.mxu0 %v16964_v15  ;;  %12910 = vmatprep.mubr.msk.bf16.mxu0 %vm971_vm2, %v4133_v50 }
 0x408   : > { %4479 = vmatprep.subr.bf16.mxu0 %v16971_v45 }
 0x409   : > { %4781 = vmatpush1.bf16.msra.mxu1 %v16982_v8 }
 0x40a   : > { %4782 = vmatprep.subr.bf16.mxu1 %v16986_v10 }
 0x40b   : > { %4480 = vmatpush1.bf16.msra.mxu0 %v16982_v8 }
 0x40c   : > { %4481 = vmatprep.subr.bf16.mxu0 %v16986_v10 }
 0x40d   : > { %4783 = vmatpush1.bf16.msra.mxu1 %v16992_v16 }
 0x40e   : > { %4784 = vmatprep.subr.bf16.mxu1 %v16995_v23 }
 0x40f   : > { %4482 = vmatpush1.bf16.msra.mxu0 %v16992_v16 }
 0x410   : > { %4483 = vmatprep.subr.bf16.mxu0 %v16995_v23 }
 0x411   : > { %4785 = vmatpush1.bf16.msra.mxu1 %v17000_v6 }
 0x412   : > { %4786 = vmatprep.subr.bf16.mxu1 %v17003_v43 }
 0x413   : > { %4484 = vmatpush1.bf16.msra.mxu0 %v17000_v6 }
 0x414   : > { %4485 = vmatprep.subr.bf16.mxu0 %v17003_v43 }
 0x415   : > { %4787 = vmatpush1.bf16.msra.mxu1 %v17008_v46 }
 0x416   : > { %4788 = vmatprep.subr.bf16.mxu1 %v17011_v9 }
 0x417   : > { %v3313_v20 = vpop.f32.mrb[28].mxu1  ;;  %4486 = vmatpush1.bf16.msra.mxu0 %v17008_v46 }
 0x418   : > { %v3315_v12 = vpop.f32.mrb[29].mxu1  ;;  %4487 = vmatprep.subr.bf16.mxu0 %v17011_v9 }
 0x419   : > { %v3156_v1 = vpop.f32.mrb[16].mxu0  ;;  %v3317_v13 = vpop.f32.mrb[30].mxu1  ;;  %4789 = vmatpush1.bf16.msra.mxu1 %v17016_v63 }
 0x41a   : > { %v3326_v29 = vmax.f32 %v3156_v1, %v3313_v20  ;;  %v3158_v54 = vpop.f32.mrb[17].mxu0  ;;  %v3319_v55 = vpop.f32.mrb[31].mxu1  ;;  %4790 = vmatprep.subr.bf16.mxu1 %v17019_v48  ;;  %v17047_v1 = vld [vmem:[#allocation9 + $0x94] ss:$8 sps:$4 sm:$0xff]  }
 0x41b   : > { %v3327_v41 = vmax.f32 %v3158_v54, %v3315_v12  ;;  %v3160_v51 = vpop.f32.mrb[18].mxu0  ;;  %4488 = vmatpush1.bf16.msra.mxu0 %v17016_v63  ;;  %v17044_v12 = vld [vmem:[#allocation9 + $0x80] ss:$8 sps:$4 sm:$0xff]   ;;  %v4824_v54 = vld [vmem:[#allocation2 + $0xd0] sm:$0x1f] }
 0x41c   : > { %v3328_v47 = vmax.f32 %v3160_v51, %v3317_v13  ;;  %v3162_v33 = vpop.f32.mrb[19].mxu0  ;;  %4489 = vmatprep.subr.bf16.mxu0 %v17019_v48 }
 0x41d   : > { %v3330_v36 = vmax.f32 %v3326_v29, %v3327_v41  ;;  %v3329_v39 = vmax.f32 %v3162_v33, %v3319_v55  ;;  %4791 = vmatpush1.bf16.msra.mxu1 %v17024_v25  ;;  %v4822_v29 = vld [vmem:[#allocation2 + $0x98] sm:$0xfe]  ;;  %v17052_v55 = vld [vmem:[#allocation9 + $0x90] ss:$8 sps:$4 sm:$0xff]   ;;  %v17055_v41 = vld [vmem:[#allocation9 + $0xa4] ss:$8 sps:$4 sm:$0xff]  }
 0x41e   : > { %4792 = vmatprep.subr.bf16.mxu1 %v17027_v56  ;;  %v4826_v51 = vpack.c.bf16 %v4824_v54, %v4822_v29  ;;  %v17063_v33 = vld [vmem:[#allocation9 + $0xb4] ss:$8 sps:$4 sm:$0xff]  }
 0x41f   : > { %v3339_v37 = vadd.f32 %v17030_v60, %v3330_v36  ;;  %v3331_v44 = vmax.f32 %v3328_v47, %v3329_v39  ;;  %4490 = vmatpush1.bf16.msra.mxu0 %v17024_v25  ;;  %v17060_v47 = vld [vmem:[#allocation9 + $0xa0] ss:$8 sps:$4 sm:$0xff]   ;;  %17810 = vst [vmem:[#allocation31_spill] sm:$0xff] %v17063_v33  ;;  %v17068_v39 = vld [vmem:[#allocation9 + $0xb0] ss:$8 sps:$4 sm:$0xff]  }
 0x420   : > { %4491 = vmatprep.subr.bf16.mxu0 %v17027_v56  ;;  %v4837_v36 = vshll.u32 %v4826_v51, 16  ;;  %17811 = vst [vmem:[#allocation32_spill] sm:$0xff] %v17068_v39  ;;  %v17079_v29 = vld [vmem:[#allocation9 + $0x194] ss:$8 sps:$4 sm:$0xff]  }
 0x421   : > { %v3341_v50 = vmax.f32 %v3339_v37, 0.0  ;;  %v3340_v20 = vadd.f32 %v17030_v60, %v3331_v44  ;;  %4793 = vmatpush1.bf16.msra.mxu1 %v17034_v49  ;;  %v17071_v37 = vld [vmem:[#allocation9 + $0x184] ss:$8 sps:$4 sm:$0xff]   ;;  %v4835_v44 = vshrl.u32 %v4826_v51, 16  ;;  %17814 = vst [vmem:[#allocation35_spill] sm:$0xff] %v17079_v29 }
 0x422   : > { %4794 = vmatprep.subr.bf16.mxu1 %v17037_v17  ;;  %17812 = vst [vmem:[#allocation33_spill] sm:$0xff] %v17071_v37  ;;  %v17087_v51 = vld [vmem:[#allocation9 + $0x190] ss:$8 sps:$4 sm:$0xff]  }
 0x423   : > { %3343 = vst [vmem:[#allocation3 + $0x10] sm:$0xff] %v3341_v50  ;;  %v3342_v13 = vmax.f32 %v3340_v20, 0.0  ;;  %4492 = vmatpush1.bf16.msra.mxu0 %v17034_v49  ;;  %v4839_v50 = vrot.slane %v4837_v36, 1  ;;  %v17076_v20 = vld [vmem:[#allocation9 + $0x180] ss:$8 sps:$4 sm:$0xff]   ;;  %17815 = vst [vmem:[#allocation36_spill] sm:$0xff] %v17087_v51 }
 0x424   : > { %4493 = vmatprep.subr.bf16.mxu0 %v17037_v17  ;;  %17813 = vst [vmem:[#allocation34_spill] sm:$0xff] %v17076_v20  ;;  %v17090_v36 = vld [vmem:[#allocation9 + $0x1a4] ss:$8 sps:$4 sm:$0xff]  }
 0x425   : > { %3344 = vst [vmem:[#allocation3 + $0x40] sm:$0xf] %v3342_v13  ;;  %4795 = vmatpush1.bf16.msra.mxu1 %v17044_v12  ;;  %v4130_v13 = vld [vmem:[#allocation2 + $0x58] sm:$0xf]  ;;  %v4840_v54 = vor.u32 %v4839_v50, %v4835_v44  ;;  %17816 = vst [vmem:[#allocation37_spill] sm:$0xff] %v17090_v36 }
 0x426   : > { %4796 = vmatprep.subr.bf16.mxu1 %v17047_v1  ;;  %v4132_v40 = vpack.c.bf16 %v4130_v13, %v16743_v59  ;;  %v17097_v59 = vld [vmem:[#allocation9 + $0x1a0] ss:$8 sps:$4 sm:$0xff]   ;;  %v17116_v50 = vld [vmem:[#allocation9 + $0x1d4] ss:$8 sps:$4 sm:$0xff]   ;;  %v17121_v13 = vld [vmem:[#allocation9 + $0x1d0] ss:$8 sps:$4 sm:$0xff]  }
 0x427   : > { %4494 = vmatpush1.bf16.msra.mxu0 %v17044_v12  ;;  %17817 = vst [vmem:[#allocation38_spill] sm:$0xff] %v17097_v59  ;;  %v17113_v44 = vld [vmem:[#allocation9 + $0x1c0] ss:$8 sps:$4 sm:$0xff]   ;;  %17822 = vst [vmem:[#allocation43_spill] sm:$0xff] %v17116_v50 }
 0x428   : > { %4495 = vmatprep.subr.bf16.mxu0 %v17047_v1  ;;  %17821 = vst [vmem:[#allocation42_spill] sm:$0xff] %v17113_v44  ;;  %17823 = vst [vmem:[#allocation44_spill] sm:$0xff] %v17121_v13 }
 0x429   : > { %4797 = vmatpush1.bf16.msra.mxu1 %v17052_v55 }
 0x42a   : > { %4798 = vmatprep.subr.bf16.mxu1 %v17055_v41 }
 0x42b   : > { %4496 = vmatpush1.bf16.msra.mxu0 %v17052_v55 }
 0x42c   : > { %4497 = vmatprep.subr.bf16.mxu0 %v17055_v41 }
 0x42d   : > { %4799 = vmatpush1.bf16.msra.mxu1 %v17060_v47 }
 0x42e   : > { %4800 = vmatprep.subr.bf16.mxu1 %v17063_v33 }
 0x42f   : > { %4498 = vmatpush1.bf16.msra.mxu0 %v17060_v47 }
 0x430   : > { %4499 = vmatprep.subr.bf16.mxu0 %v17063_v33 }
 0x431   : > { %4801 = vmatpush1.bf16.msra.mxu1 %v17068_v39 }
 0x432   : > { %4845 = vmatprep.subr.bf16.mxu1 %v17071_v37 }
 0x433   : > { %4500 = vmatpush1.bf16.msra.mxu0 %v17068_v39 }
 0x434   : > { %4811 = vmatmul.mubr.bf16.vlgmr.msra.gmra.mrb[36].mxu1 %v16975_v35  ;;  %4688 = vmatprep.subr.bf16.mxu0 %v17071_v37  ;;  %v17100_v35 = vld [vmem:[#allocation9 + $0x1b4] ss:$8 sps:$4 sm:$0xff]  }
 0x435   : > { %4846 = vmatpush1.bf16.msra.mxu1 %v17076_v20  ;;  %12938 = vmatprep.mubr.msk.bf16.mxu1 %vm971_vm2, %v4840_v54  ;;  %17818 = vst [vmem:[#allocation39_spill] sm:$0xff] %v17100_v35  ;;  %v17124_v54 = vld [vmem:[#allocation9 + $0x1e4] ss:$8 sps:$4 sm:$0xff]  }
 0x436   : > { %4510 = vmatmul.mubr.bf16.vlgmr.msra.gmra.mrb[24].mxu0 %v4132_v40  ;;  %4847 = vmatprep.subr.bf16.mxu1 %v17079_v29  ;;  %v17105_v40 = vld [vmem:[#allocation9 + $0x1b0] ss:$8 sps:$4 sm:$0xff]   ;;  %17824 = vst [vmem:[#allocation45_spill] sm:$0xff] %v17124_v54 }
 0x437   : > { %4689 = vmatpush1.bf16.msra.mxu0 %v17076_v20  ;;  %12935 = vmatprep.mubr.msk.bf16.mxu0 %vm971_vm2, %v16864_v2  ;;  %17819 = vst [vmem:[#allocation40_spill] sm:$0xff] %v17105_v40  ;;  %v17108_v2 = vld [vmem:[#allocation9 + $0x1c4] ss:$8 sps:$4 sm:$0xff]  }
 0x438   : > { %4690 = vmatprep.subr.bf16.mxu0 %v17079_v29  ;;  %17820 = vst [vmem:[#allocation41_spill] sm:$0xff] %v17108_v2 }
 0x439   : > { %4848 = vmatpush1.bf16.msra.mxu1 %v17087_v51 }
 0x43a   : > { %4849 = vmatprep.subr.bf16.mxu1 %v17090_v36 }
 0x43b   : > { %4691 = vmatpush1.bf16.msra.mxu0 %v17087_v51  ;;  %v5306_v51 = vld [vmem:[#allocation2 + $0x68] sm:$0x1f] }
 0x43c   : > { %4692 = vmatprep.subr.bf16.mxu0 %v17090_v36  ;;  %v5304_v36 = vld [vmem:[#allocation2 + $0x30] sm:$0xfe] }
 0x43d   : > { %4850 = vmatpush1.bf16.msra.mxu1 %v17097_v59  ;;  %v5308_v20 = vpack.c.bf16 %v5306_v51, %v5304_v36 }
 0x43e   : > { %4851 = vmatprep.subr.bf16.mxu1 %v17100_v35 }
 0x43f   : > { %4693 = vmatpush1.bf16.msra.mxu0 %v17097_v59  ;;  %v4823_v59 = vld [vmem:[#allocation2 + $0xc8] sm:$0x1f]  ;;  %v5343_v39 = vshll.u32 %v5308_v20, 16 }
 0x440   : > { %4694 = vmatprep.subr.bf16.mxu0 %v17100_v35  ;;  %v17129_v35 = vld [vmem:[#allocation9 + $0x1e0] ss:$8 sps:$4 sm:$0xff]  }
 0x441   : > { %4852 = vmatpush1.bf16.msra.mxu1 %v17105_v40  ;;  %17825 = vst [vmem:[#allocation46_spill] sm:$0xff] %v17129_v35 }
 0x442   : > { %4853 = vmatprep.subr.bf16.mxu1 %v17108_v2 }
 0x443   : > { %4695 = vmatpush1.bf16.msra.mxu0 %v17105_v40  ;;  %v17132_v40 = vld [vmem:[#allocation9 + $0x1f4] ss:$8 sps:$4 sm:$0xff]  }
 0x444   : > { %4696 = vmatprep.subr.bf16.mxu0 %v17108_v2  ;;  %17826 = vst [vmem:[#allocation47_spill] sm:$0xff] %v17132_v40  ;;  %v17137_v2 = vld [vmem:[#allocation9 + $0x1f0] ss:$8 sps:$4 sm:$0xff]  }
 0x445   : > { %4854 = vmatpush1.bf16.msra.mxu1 %v17113_v44  ;;  %17827 = vst [vmem:[#allocation48_spill] sm:$0xff] %v17137_v2 }
 0x446   : > { %4855 = vmatprep.subr.bf16.mxu1 %v17116_v50 }
 0x447   : > { %4697 = vmatpush1.bf16.msra.mxu0 %v17113_v44  ;;  %v17140_v44 = vld [vmem:[#allocation9 + $0x204] ss:$8 sps:$4 sm:$0xff]  }
 0x448   : > { %4698 = vmatprep.subr.bf16.mxu0 %v17116_v50  ;;  %17828 = vst [vmem:[#allocation49_spill] sm:$0xff] %v17140_v44  ;;  %v17145_v50 = vld [vmem:[#allocation9 + $0x200] ss:$8 sps:$4 sm:$0xff]  }
 0x449   : > { %4856 = vmatpush1.bf16.msra.mxu1 %v17121_v13  ;;  %17829 = vst [vmem:[#allocation50_spill] sm:$0xff] %v17145_v50 }
 0x44a   : > { %4857 = vmatprep.subr.bf16.mxu1 %v17124_v54 }
 0x44b   : > { %4699 = vmatpush1.bf16.msra.mxu0 %v17121_v13  ;;  %v17148_v13 = vld [vmem:[#allocation9 + $0x214] ss:$8 sps:$4 sm:$0xff]  }
 0x44c   : > { %4700 = vmatprep.subr.bf16.mxu0 %v17124_v54  ;;  %17830 = vst [vmem:[#allocation51_spill] sm:$0xff] %v17148_v13  ;;  %v4821_v54 = vld [vmem:[#allocation2 + $0x90] sm:$0xfe] }
 0x44d   : > { %4858 = vmatpush1.bf16.msra.mxu1 %v17129_v35  ;;  %v4825_v29 = vpack.c.bf16 %v4823_v59, %v4821_v54  ;;  %v17169_v59 = vld [vmem:[#allocation9 + $0x230] ss:$8 sps:$4 sm:$0xff]   ;;  %v5341_v54 = vshrl.u32 %v5308_v20, 16 }
 0x44e   : > { %4859 = vmatprep.subr.bf16.mxu1 %v17132_v40  ;;  %v17845_v20 = vld [vmem:[#allocation42_spill] sm:$0xff] }
 0x44f   : > { %4701 = vmatpush1.bf16.msra.mxu0 %v17129_v35  ;;  %v17153_v35 = vld [vmem:[#allocation9 + $0x210] ss:$8 sps:$4 sm:$0xff]   ;;  %v4830_v37 = vshll.u32 %v4825_v29, 16  ;;  %v4828_v51 = vshrl.u32 %v4825_v29, 16  ;;  %v17846_v29 = vld [vmem:[#allocation43_spill] sm:$0xff] }
 0x450   : > { %4702 = vmatprep.subr.bf16.mxu0 %v17132_v40  ;;  %17831 = vst [vmem:[#allocation52_spill] sm:$0xff] %v17153_v35  ;;  %v17156_v40 = vld [vmem:[#allocation9 + $0x224] ss:$8 sps:$4 sm:$0xff]  }
 0x451   : > { %4860 = vmatpush1.bf16.msra.mxu1 %v17137_v2  ;;  %17832 = vst [vmem:[#allocation53_spill] sm:$0xff] %v17156_v40  ;;  %v4832_v36 = vrot.slane %v4830_v37, 1  ;;  %v17843_v37 = vld [vmem:[#allocation40_spill] sm:$0xff] }
 0x452   : > { %4861 = vmatprep.subr.bf16.mxu1 %v17140_v44 }
 0x453   : > { %4703 = vmatpush1.bf16.msra.mxu0 %v17137_v2  ;;  %v17161_v2 = vld [vmem:[#allocation9 + $0x220] ss:$8 sps:$4 sm:$0xff]  }
 0x454   : > { %4704 = vmatprep.subr.bf16.mxu0 %v17140_v44  ;;  %v17164_v44 = vld [vmem:[#allocation9 + $0x234] ss:$8 sps:$4 sm:$0xff]  }
 0x455   : > { %4862 = vmatpush1.bf16.msra.mxu1 %v17145_v50 }
 0x456   : > { %4863 = vmatprep.subr.bf16.mxu1 %v17148_v13 }
 0x457   : > { %4705 = vmatpush1.bf16.msra.mxu0 %v17145_v50  ;;  %v4944_v50 = vld [vmem:[#allocation2 + $0xd8] sm:$0xf] }
 0x458   : > { %4706 = vmatprep.subr.bf16.mxu0 %v17148_v13  ;;  %v5345_v13 = vrot.slane %v5343_v39, 1 }
 0x459   : > { %4864 = vmatpush1.bf16.msra.mxu1 %v17153_v35 }
 0x45a   : > { %4865 = vmatprep.subr.bf16.mxu1 %v17156_v40  ;;  %v17177_v33 = vor.u32 %v5345_v13, %v5341_v54  ;;  %v17850_v13 = vld [vmem:[#allocation47_spill] sm:$0xff] }
 0x45b   : > { %4707 = vmatpush1.bf16.msra.mxu0 %v17153_v35  ;;  %v4833_v35 = vor.u32 %v4832_v36, %v4828_v51  ;;  %v17851_v51 = vld [vmem:[#allocation48_spill] sm:$0xff]  ;;  %v17852_v36 = vld [vmem:[#allocation49_spill] sm:$0xff]  ;;  %v5604_v54 = vld [vmem:[#allocation2 + $0x98] sm:$0xfe] }
 0x45c   : > { %4708 = vmatprep.subr.bf16.mxu0 %v17156_v40  ;;  %v4942_v40 = vld [vmem:[#allocation2 + $0xa0] sm:$0xff] }
 0x45d   : > { %4866 = vmatpush1.bf16.msra.mxu1 %v17161_v2  ;;  %v17183_v39 = vpack.c.bf16 %v4944_v50, %v4942_v40  ;;  %v17848_v40 = vld [vmem:[#allocation45_spill] sm:$0xff]  ;;  %v17849_v50 = vld [vmem:[#allocation46_spill] sm:$0xff] }
 0x45e   : > { %4867 = vmatprep.subr.bf16.mxu1 %v17164_v44 }
 0x45f   : > { %4709 = vmatpush1.bf16.msra.mxu0 %v17161_v2 }
 0x460   : > { %4710 = vmatprep.subr.bf16.mxu0 %v17164_v44 }
 0x461   : > { %4868 = vmatpush1.bf16.msra.mxu1 %v17169_v59 }
 0x462   : > { %5518 = vmatprep.subr.bf16.mxu1 %v16851_v53 }
 0x463   : > { %4711 = vmatpush1.bf16.msra.mxu0 %v17169_v59 }
 0x464   : > { %4878 = vmatmul.mubr.bf16.vlgmr.msra.gmra.mrb[36].mxu1 %v4833_v35  ;;  %5094 = vmatprep.subr.bf16.mxu0 %v16851_v53  ;;  %v5303_v53 = vld [vmem:[#allocation2 + $0x28] sm:$0xfe] }
 0x465   : > { %5519 = vmatpush1.bf16.msra.mxu1 %v16856_v62  ;;  %13015 = vmatprep.mubr.msk.bf16.mxu1 %vm971_vm2, %v17177_v33  ;;  %v17847_v35 = vld [vmem:[#allocation44_spill] sm:$0xff] }
 0x466   : > { %4721 = vmatmul.mubr.bf16.vlgmr.msra.gmra.mrb[24].mxu0 %v16966_v38  ;;  %5520 = vmatprep.subr.bf16.mxu1 %v16861_v0 }
 0x467   : > { %5095 = vmatpush1.bf16.msra.mxu0 %v16856_v62  ;;  %12964 = vmatprep.mubr.msk.bf16.mxu0 %vm971_vm2, %v17183_v39  ;;  %v5305_v62 = vld [vmem:[#allocation2 + $0x60] sm:$0x1f] }
 0x468   : > { %5096 = vmatprep.subr.bf16.mxu0 %v16861_v0  ;;  %v5307_v0 = vpack.c.bf16 %v5305_v62, %v5303_v53  ;;  %v17853_v53 = vld [vmem:[#allocation50_spill] sm:$0xff]  ;;  %v17854_v62 = vld [vmem:[#allocation51_spill] sm:$0xff] }
 0x469   : > { %5521 = vmatpush1.bf16.msra.mxu1 %v16873_v52 }
 0x46a   : > { %5522 = vmatprep.subr.bf16.mxu1 %v16877_v19 }
 0x46b   : > { %5097 = vmatpush1.bf16.msra.mxu0 %v16873_v52  ;;  %v5336_v52 = vshll.u32 %v5307_v0, 16 }
 0x46c   : > { %5098 = vmatprep.subr.bf16.mxu0 %v16877_v19  ;;  %v5334_v19 = vshrl.u32 %v5307_v0, 16 }
 0x46d   : > { %5523 = vmatpush1.bf16.msra.mxu1 %v16884_v3 }
 0x46e   : > { %5524 = vmatprep.subr.bf16.mxu1 %v16887_v4 }
 0x46f   : > { %5099 = vmatpush1.bf16.msra.mxu0 %v16884_v3  ;;  %v5338_v3 = vrot.slane %v5336_v52, 1  ;;  %v17855_v52 = vld [vmem:[#allocation52_spill] sm:$0xff] }
 0x470   : > { %5100 = vmatprep.subr.bf16.mxu0 %v16887_v4  ;;  %v4943_v4 = vld [vmem:[#allocation2 + $0xd0] sm:$0xf] }
 0x471   : > { %5525 = vmatpush1.bf16.msra.mxu1 %v16892_v58 }
 0x472   : > { %5526 = vmatprep.subr.bf16.mxu1 %v16895_v5 }
 0x473   : > { %5101 = vmatpush1.bf16.msra.mxu0 %v16892_v58  ;;  %v17232_v58 = vor.u32 %v5338_v3, %v5334_v19  ;;  %v17856_v19 = vld [vmem:[#allocation53_spill] sm:$0xff] }
 0x474   : > { %5102 = vmatprep.subr.bf16.mxu0 %v16895_v5  ;;  %v4912_v5 = vld [vmem:[#allocation2 + $0x30] sm:$0xff] }
 0x475   : > { %5527 = vmatpush1.bf16.msra.mxu1 %v16900_v11 }
 0x476   : > { %5528 = vmatprep.subr.bf16.mxu1 %v16903_v14 }
 0x477   : > { %5103 = vmatpush1.bf16.msra.mxu0 %v16900_v11  ;;  %v4914_v11 = vld [vmem:[#allocation2 + $0x68] sm:$0xf] }
 0x478   : > { %5104 = vmatprep.subr.bf16.mxu0 %v16903_v14  ;;  %v17238_v14 = vpack.c.bf16 %v4943_v4, %v16859_v61 }
 0x479   : > { %5529 = vmatpush1.bf16.msra.mxu1 %v16908_v22 }
 0x47a   : > { %5530 = vmatprep.subr.bf16.mxu1 %v16911_v24 }
 0x47b   : > { %5105 = vmatpush1.bf16.msra.mxu0 %v16908_v22  ;;  %v4916_v22 = vpack.c.bf16 %v4914_v11, %v4912_v5  ;;  %v15079_v11 = vld [vmem:[#allocation12 + $0x240] sm:$0xff]  }
 0x47c   : > { %5106 = vmatprep.subr.bf16.mxu0 %v16911_v24 }
 0x47d   : > { %5531 = vmatpush1.bf16.msra.mxu1 %v16916_v18 }
 0x47e   : > { %5532 = vmatprep.subr.bf16.mxu1 %v16919_v26 }
 0x47f   : > { %5107 = vmatpush1.bf16.msra.mxu0 %v16916_v18 }
 0x480   : > { %5108 = vmatprep.subr.bf16.mxu0 %v16919_v26 }
 0x481   : > { %5533 = vmatpush1.bf16.msra.mxu1 %v16924_v27 }
 0x482   : > { %5534 = vmatprep.subr.bf16.mxu1 %v16927_v28 }
 0x483   : > { %5109 = vmatpush1.bf16.msra.mxu0 %v16924_v27 }
 0x484   : > { %5110 = vmatprep.subr.bf16.mxu0 %v16927_v28 }
 0x485   : > { %5535 = vmatpush1.bf16.msra.mxu1 %v16932_v57 }
 0x486   : > { %5536 = vmatprep.subr.bf16.mxu1 %v16935_v30 }
 0x487   : > { %5111 = vmatpush1.bf16.msra.mxu0 %v16932_v57 }
 0x488   : > { %5112 = vmatprep.subr.bf16.mxu0 %v16935_v30 }
 0x489   : > { %5537 = vmatpush1.bf16.msra.mxu1 %v16940_v31 }
 0x48a   : > { %5538 = vmatprep.subr.bf16.mxu1 %v16943_v32 }
 0x48b   : > { %5113 = vmatpush1.bf16.msra.mxu0 %v16940_v31 }
 0x48c   : > { %5114 = vmatprep.subr.bf16.mxu0 %v16943_v32 }
 0x48d   : > { %5539 = vmatpush1.bf16.msra.mxu1 %v16948_v21 }
 0x48e   : > { %5540 = vmatprep.subr.bf16.mxu1 %v16951_v34 }
 0x48f   : > { %5115 = vmatpush1.bf16.msra.mxu0 %v16948_v21 }
 0x490   : > { %5116 = vmatprep.subr.bf16.mxu0 %v16951_v34 }
 0x491   : > { %5541 = vmatpush1.bf16.msra.mxu1 %v16956_v42 }
 0x492   : > { %5561 = vmatprep.subr.bf16.mxu1 %v16959_v7 }
 0x493   : > { %5117 = vmatpush1.bf16.msra.mxu0 %v16956_v42 }
 0x494   : > { %5551 = vmatmul.mubr.bf16.vlgmr.msra.gmra.mrb[40].mxu1 %v17232_v58  ;;  %5260 = vmatprep.subr.bf16.mxu0 %v16959_v7 }
 0x495   : > { %5562 = vmatpush1.bf16.msra.mxu1 %v16964_v15  ;;  %13016 = vmatprep.mubr.msk.bf16.mxu1 %vm971_vm2, %v17183_v39  ;;  %v5606_v39 = vld [vmem:[#allocation2 + $0xd0] sm:$0x1f] }
 0x496   : > { %5127 = vmatmul.mubr.bf16.vlgmr.msra.gmra.mrb[28].mxu0 %v17238_v14  ;;  %5563 = vmatprep.subr.bf16.mxu1 %v16971_v45  ;;  %v5608_v0 = vpack.c.bf16 %v5606_v39, %v5604_v54 }
 0x497   : > { %5261 = vmatpush1.bf16.msra.mxu0 %v16964_v15  ;;  %12989 = vmatprep.mubr.msk.bf16.mxu0 %vm971_vm2, %v4916_v22  ;;  %v15081_v22 = vld [vmem:[#allocation12 + $0x200] sm:$0xff]  }
 0x498   : > { %5262 = vmatprep.subr.bf16.mxu0 %v16971_v45  ;;  %v5613_v3 = vshll.u32 %v5608_v0, 16  ;;  %v5611_v4 = vshrl.u32 %v5608_v0, 16 }
 0x499   : > { %5564 = vmatpush1.bf16.msra.mxu1 %v16982_v8 }
 0x49a   : > { %5565 = vmatprep.subr.bf16.mxu1 %v16986_v10  ;;  %v5615_v5 = vrot.slane %v5613_v3, 1 }
 0x49b   : > { %5263 = vmatpush1.bf16.msra.mxu0 %v16982_v8 }
 0x49c   : > { %5264 = vmatprep.subr.bf16.mxu0 %v16986_v10  ;;  %v5605_v10 = vld [vmem:[#allocation2 + $0xa0] sm:$0xfe] }
 0x49d   : > { %5566 = vmatpush1.bf16.msra.mxu1 %v16992_v16 }
 0x49e   : > { %5567 = vmatprep.subr.bf16.mxu1 %v16995_v23 }
 0x49f   : > { %5265 = vmatpush1.bf16.msra.mxu0 %v16992_v16  ;;  %v5607_v16 = vld [vmem:[#allocation2 + $0xd8] sm:$0x1f] }
 0x4a0   : > { %5266 = vmatprep.subr.bf16.mxu0 %v16995_v23  ;;  %v5609_v23 = vpack.c.bf16 %v5607_v16, %v5605_v10 }
 0x4a1   : > { %5568 = vmatpush1.bf16.msra.mxu1 %v17000_v6 }
 0x4a2   : > { %5569 = vmatprep.subr.bf16.mxu1 %v17003_v43 }
 0x4a3   : > { %5267 = vmatpush1.bf16.msra.mxu0 %v17000_v6  ;;  %v5620_v6 = vshll.u32 %v5609_v23, 16 }
 0x4a4   : > { %5268 = vmatprep.subr.bf16.mxu0 %v17003_v43  ;;  %v17833_v43 = vld [vmem:[#allocation31_spill] sm:$0xff] }
 0x4a5   : > { %5570 = vmatpush1.bf16.msra.mxu1 %v17008_v46 }
 0x4a6   : > { %5571 = vmatprep.subr.bf16.mxu1 %v17011_v9 }
 0x4a7   : > { %v4096_v61 = vpop.f32.mrb[32].mxu1  ;;  %5269 = vmatpush1.bf16.msra.mxu0 %v17008_v46  ;;  %v5618_v46 = vshrl.u32 %v5609_v23, 16 }
 0x4a8   : > { %v4098_v24 = vpop.f32.mrb[33].mxu1  ;;  %5270 = vmatprep.subr.bf16.mxu0 %v17011_v9  ;;  %v5622_v9 = vrot.slane %v5620_v6, 1  ;;  %v15086_v6 = vld [vmem:[#allocation12 + $0x1d0] sm:$0xff]  }
 0x4a9   : > { %v3939_v18 = vpop.f32.mrb[20].mxu0  ;;  %v4100_v26 = vpop.f32.mrb[34].mxu1  ;;  %5572 = vmatpush1.bf16.msra.mxu1 %v17016_v63 }
 0x4aa   : > { %v4109_v27 = vmax.f32 %v3939_v18, %v4096_v61  ;;  %v3941_v28 = vpop.f32.mrb[21].mxu0  ;;  %v4102_v57 = vpop.f32.mrb[35].mxu1  ;;  %5573 = vmatprep.subr.bf16.mxu1 %v17019_v48  ;;  %v5616_v61 = vor.u32 %v5615_v5, %v5611_v4  ;;  %v15080_v18 = vld [vmem:[#allocation12 + $0x180] sm:$0xff]  }
 0x4ab   : > { %v4110_v30 = vmax.f32 %v3941_v28, %v4098_v24  ;;  %v3943_v31 = vpop.f32.mrb[22].mxu0  ;;  %5271 = vmatpush1.bf16.msra.mxu0 %v17016_v63  ;;  %v17834_v63 = vld [vmem:[#allocation32_spill] sm:$0xff] }
 0x4ac   : > { %v4111_v32 = vmax.f32 %v3943_v31, %v4100_v26  ;;  %v3945_v21 = vpop.f32.mrb[23].mxu0  ;;  %5272 = vmatprep.subr.bf16.mxu0 %v17019_v48  ;;  %v4913_v48 = vld [vmem:[#allocation2 + $0x60] sm:$0xf]  ;;  %v15083_v24 = vld [vmem:[#allocation12 + $0x248] sm:$0xff]  }
 0x4ad   : > { %v4113_v34 = vmax.f32 %v4109_v27, %v4110_v30  ;;  %v4112_v42 = vmax.f32 %v3945_v21, %v4102_v57  ;;  %5574 = vmatpush1.bf16.msra.mxu1 %v17024_v25  ;;  %v15082_v26 = vld [vmem:[#allocation12 + $0x1c8] sm:$0xff]  }
 0x4ae   : > { %5575 = vmatprep.subr.bf16.mxu1 %v17027_v56  ;;  %v15085_v27 = vld [vmem:[#allocation12 + $0x208] sm:$0xff]  }
 0x4af   : > { %v4122_v7 = vadd.f32 %v17030_v60, %v4113_v34  ;;  %v4114_v15 = vmax.f32 %v4111_v32, %v4112_v42  ;;  %5273 = vmatpush1.bf16.msra.mxu0 %v17024_v25  ;;  %v17835_v25 = vld [vmem:[#allocation33_spill] sm:$0xff]  ;;  %v17347_v42 = vld [vmem:[#allocation10] ss:$0 sm:$0xff] }
 0x4b0   : > { %5274 = vmatprep.subr.bf16.mxu0 %v17027_v56  ;;  %v5623_v56 = vor.u32 %v5622_v9, %v5618_v46  ;;  %v15088_v46 = vld [vmem:[#allocation12 + $0x190] sm:$0xff]  }
 0x4b1   : > { %v4124_v38 = vmax.f32 %v4122_v7, 0.0  ;;  %v4123_v45 = vadd.f32 %v17030_v60, %v4114_v15  ;;  %5576 = vmatpush1.bf16.msra.mxu1 %v17034_v49  ;;  %v17836_v60 = vld [vmem:[#allocation30_spill] sm:$0xff] }
 0x4b2   : > { %5577 = vmatprep.subr.bf16.mxu1 %v17037_v17  ;;  %v15089_v9 = vld [vmem:[#allocation12 + $0x210] sm:$0xff]  }
 0x4b3   : > { %4126 = vst [vmem:[#allocation3 + $0x18] sm:$0xff] %v4124_v38  ;;  %v4125_v8 = vmax.f32 %v4123_v45, 0.0  ;;  %5275 = vmatpush1.bf16.msra.mxu0 %v17034_v49  ;;  %v4915_v49 = vpack.c.bf16 %v4913_v48, %v17836_v60  ;;  %v15091_v48 = vld [vmem:[#allocation12 + $0x258] sm:$0xff]   ;;  %v15094_v60 = vld [vmem:[#allocation12 + $0x1e0] sm:$0xff]  }
 0x4b4   : > { %5276 = vmatprep.subr.bf16.mxu0 %v17037_v17  ;;  %v17837_v17 = vld [vmem:[#allocation34_spill] sm:$0xff] }
 0x4b5   : > { %4127 = vst [vmem:[#allocation3 + $0x48] sm:$0xf] %v4125_v8  ;;  %5578 = vmatpush1.bf16.msra.mxu1 %v17044_v12 }
 0x4b6   : > { %5579 = vmatprep.subr.bf16.mxu1 %v17047_v1 }
 0x4b7   : > { %5277 = vmatpush1.bf16.msra.mxu0 %v17044_v12  ;;  %v17838_v12 = vld [vmem:[#allocation35_spill] sm:$0xff] }
 0x4b8   : > { %5278 = vmatprep.subr.bf16.mxu0 %v17047_v1  ;;  %v17839_v1 = vld [vmem:[#allocation36_spill] sm:$0xff] }
 0x4b9   : > { %5580 = vmatpush1.bf16.msra.mxu1 %v17052_v55 }
 0x4ba   : > { %5581 = vmatprep.subr.bf16.mxu1 %v17055_v41 }
 0x4bb   : > { %5279 = vmatpush1.bf16.msra.mxu0 %v17052_v55  ;;  %v17840_v55 = vld [vmem:[#allocation37_spill] sm:$0xff] }
 0x4bc   : > { %5280 = vmatprep.subr.bf16.mxu0 %v17055_v41  ;;  %v17841_v41 = vld [vmem:[#allocation38_spill] sm:$0xff] }
 0x4bd   : > { %5582 = vmatpush1.bf16.msra.mxu1 %v17060_v47 }
 0x4be   : > { %5583 = vmatprep.subr.bf16.mxu1 %v17833_v43 }
 0x4bf   : > { %5281 = vmatpush1.bf16.msra.mxu0 %v17060_v47  ;;  %v17842_v47 = vld [vmem:[#allocation39_spill] sm:$0xff] }
 0x4c0   : > { %5282 = vmatprep.subr.bf16.mxu0 %v17833_v43  ;;  %v15087_v43 = vld [vmem:[#allocation12 + $0x250] sm:$0xff]  }
 0x4c1   : > { %5584 = vmatpush1.bf16.msra.mxu1 %v17834_v63 }
 0x4c2   : > { %5628 = vmatprep.subr.bf16.mxu1 %v17835_v25 }
 0x4c3   : > { %5283 = vmatpush1.bf16.msra.mxu0 %v17834_v63  ;;  %v15090_v63 = vld [vmem:[#allocation12 + $0x1d8] sm:$0xff]  }
 0x4c4   : > { %5594 = vmatmul.mubr.bf16.vlgmr.msra.gmra.mrb[40].mxu1 %v17238_v14  ;;  %5471 = vmatprep.subr.bf16.mxu0 %v17835_v25  ;;  %v15078_v14 = vld [vmem:[#allocation12 + $0x1c0] sm:$0xff]   ;;  %v15092_v25 = vld [vmem:[#allocation12 + $0x198] sm:$0xff]  }
 0x4c5   : > { %5629 = vmatpush1.bf16.msra.mxu1 %v17837_v17  ;;  %13017 = vmatprep.mubr.msk.bf16.mxu1 %vm971_vm2, %v5623_v56  ;;  %v15093_v56 = vld [vmem:[#allocation12 + $0x218] sm:$0xff]  }
 0x4c6   : > { %5293 = vmatmul.mubr.bf16.vlgmr.msra.gmra.mrb[28].mxu0 %v4915_v49  ;;  %5630 = vmatprep.subr.bf16.mxu1 %v17838_v12  ;;  %v15095_v49 = vld [vmem:[#allocation12 + $0x260] sm:$0xff]  }
 0x4c7   : > { %5472 = vmatpush1.bf16.msra.mxu0 %v17837_v17  ;;  %13014 = vmatprep.mubr.msk.bf16.mxu0 %vm971_vm2, %v17177_v33  ;;  %v17844_v33 = vld [vmem:[#allocation41_spill] sm:$0xff]  ;;  %v15096_v17 = vld [vmem:[#allocation12 + $0x1a0] sm:$0xff]  }
 0x4c8   : > { %5473 = vmatprep.subr.bf16.mxu0 %v17838_v12  ;;  %v15097_v12 = vld [vmem:[#allocation12 + $0x220] sm:$0xff]  }
 0x4c9   : > { %5631 = vmatpush1.bf16.msra.mxu1 %v17839_v1 }
 0x4ca   : > { %5632 = vmatprep.subr.bf16.mxu1 %v17840_v55 }
 0x4cb   : > { %5474 = vmatpush1.bf16.msra.mxu0 %v17839_v1  ;;  %v15098_v1 = vld [vmem:[#allocation12 + $0x1e8] sm:$0xff]  }
 0x4cc   : > { %5475 = vmatprep.subr.bf16.mxu0 %v17840_v55  ;;  %v15099_v55 = vld [vmem:[#allocation12 + $0x268] sm:$0xff]  }
 0x4cd   : > { %5633 = vmatpush1.bf16.msra.mxu1 %v17841_v41 }
 0x4ce   : > { %5634 = vmatprep.subr.bf16.mxu1 %v17842_v47 }
 0x4cf   : > { %5476 = vmatpush1.bf16.msra.mxu0 %v17841_v41  ;;  %v15100_v41 = vld [vmem:[#allocation12 + $0x1a8] sm:$0xff]  }
 0x4d0   : > { %5477 = vmatprep.subr.bf16.mxu0 %v17842_v47  ;;  %v15101_v47 = vld [vmem:[#allocation12 + $0x228] sm:$0xff]  }
 0x4d1   : > { %5635 = vmatpush1.bf16.msra.mxu1 %v17843_v37 }
 0x4d2   : > { %5636 = vmatprep.subr.bf16.mxu1 %v17844_v33 }
 0x4d3   : > { %5478 = vmatpush1.bf16.msra.mxu0 %v17843_v37  ;;  %v15102_v37 = vld [vmem:[#allocation12 + $0x1f0] sm:$0xff]  }
 0x4d4   : > { %5479 = vmatprep.subr.bf16.mxu0 %v17844_v33  ;;  %v15103_v33 = vld [vmem:[#allocation12 + $0x270] sm:$0xff]  }
 0x4d5   : > { %5637 = vmatpush1.bf16.msra.mxu1 %v17845_v20 }
 0x4d6   : > { %5638 = vmatprep.subr.bf16.mxu1 %v17846_v29 }
 0x4d7   : > { %5480 = vmatpush1.bf16.msra.mxu0 %v17845_v20  ;;  %v15104_v20 = vld [vmem:[#allocation12 + $0x1b0] sm:$0xff]  }
 0x4d8   : > { %5481 = vmatprep.subr.bf16.mxu0 %v17846_v29  ;;  %v15105_v29 = vld [vmem:[#allocation12 + $0x230] sm:$0xff]  }
 0x4d9   : > { %5639 = vmatpush1.bf16.msra.mxu1 %v17847_v35 }
 0x4da   : > { %5640 = vmatprep.subr.bf16.mxu1 %v17848_v40 }
 0x4db   : > { %5482 = vmatpush1.bf16.msra.mxu0 %v17847_v35  ;;  %v15106_v35 = vld [vmem:[#allocation12 + $0x1f8] sm:$0xff]  }
 0x4dc   : > { %5483 = vmatprep.subr.bf16.mxu0 %v17848_v40  ;;  %v15107_v40 = vld [vmem:[#allocation12 + $0x278] sm:$0xff]  }
 0x4dd   : > { %5641 = vmatpush1.bf16.msra.mxu1 %v17849_v50 }
 0x4de   : > { %5642 = vmatprep.subr.bf16.mxu1 %v17850_v13 }
 0x4df   : > { %5484 = vmatpush1.bf16.msra.mxu0 %v17849_v50  ;;  %v15108_v50 = vld [vmem:[#allocation12 + $0x1b8] sm:$0xff]  }
 0x4e0   : > { %5485 = vmatprep.subr.bf16.mxu0 %v17850_v13  ;;  %v15109_v13 = vld [vmem:[#allocation12 + $0x238] sm:$0xff]  }
 0x4e1   : > { %5643 = vmatpush1.bf16.msra.mxu1 %v17851_v51 }
 0x4e2   : > { %5644 = vmatprep.subr.bf16.mxu1 %v17852_v36 }
 0x4e3   : > { %5486 = vmatpush1.bf16.msra.mxu0 %v17851_v51  ;;  %v15110_v51 = vld [vmem:[#allocation12 + $0x2c0] sm:$0xff]  }
 0x4e4   : > { %5487 = vmatprep.subr.bf16.mxu0 %v17852_v36  ;;  %v15111_v36 = vld [vmem:[#allocation12 + $0x40] sm:$0xff]  }
 0x4e5   : > { %5645 = vmatpush1.bf16.msra.mxu1 %v17853_v53 }
 0x4e6   : > { %5646 = vmatprep.subr.bf16.mxu1 %v17854_v62 }
 0x4e7   : > { %5488 = vmatpush1.bf16.msra.mxu0 %v17853_v53 }
 0x4e8   : > { %5489 = vmatprep.subr.bf16.mxu0 %v17854_v62 }
 0x4e9   : > { %5647 = vmatpush1.bf16.msra.mxu1 %v17855_v52 }
 0x4ea   : > { %5648 = vmatprep.subr.bf16.mxu1 %v17856_v19 }
 0x4eb   : > { %5490 = vmatpush1.bf16.msra.mxu0 %v17855_v52 }
 0x4ec   : > { %5491 = vmatprep.subr.bf16.mxu0 %v17856_v19 }
 0x4ed   : > { %5649 = vmatpush1.bf16.msra.mxu1 %v17161_v2 }
 0x4ee   : > { %5650 = vmatprep.subr.bf16.mxu1 %v17164_v44 }
 0x4ef   : > { %5492 = vmatpush1.bf16.msra.mxu0 %v17161_v2  ;;  %v15084_v2 = vld [vmem:[#allocation12 + $0x188] sm:$0xff]  }
 0x4f0   : > { %5493 = vmatprep.subr.bf16.mxu0 %v17164_v44 }
 0x4f1   : > { %5651 = vmatpush1.bf16.msra.mxu1 %v17169_v59 }
 0x4f2   : > { %13628 = vmatprep.subr.bf16.mxu1 %v15079_v11 }
 0x4f3   : > { %5494 = vmatpush1.bf16.msra.mxu0 %v17169_v59 }
 0x4f4   : > { %5661 = vmatmul.mubr.bf16.vlgmr.msra.gmra.mrb[40].mxu1 %v5616_v61  ;;  %13606 = vmatprep.subr.bf16.mxu0 %v15078_v14 }
 0x4f5   : > { %13629 = vmatpush3.bf16.msra.mxu1 %v15081_v22 }
 0x4f6   : > { %5504 = vmatmul.mubr.bf16.vlgmr.msra.gmra.mrb[28].mxu0 %v17232_v58  ;;  %13630 = vmatprep.subr.bf16.mxu1 %v15083_v24 }
 0x4f7   : > { %13607 = vmatpush3.bf16.msra.mxu0 %v15080_v18 }
 0x4f8   : > { %13608 = vmatprep.subr.bf16.mxu0 %v15082_v26 }
 0x4f9   : > { %13631 = vmatpush3.bf16.msra.mxu1 %v15085_v27 }
 0x4fa   : > { %13632 = vmatprep.subr.bf16.mxu1 %v15087_v43  ;;  %v15112_v43 = vld [vmem:[#allocation12 + $0x280] sm:$0xff]  }
 0x4fb   : > { %13609 = vmatpush3.bf16.msra.mxu0 %v15084_v2  ;;  %v5831_v2 = vld [vmem:[#allocation3 + $0x1] ss:$8 sm:$0xf] }
 0x4fc   : > { %13610 = vmatprep.subr.bf16.mxu0 %v15086_v6 }
 0x4fd   : > { %13633 = vmatpush3.bf16.msra.mxu1 %v15089_v9  ;;  %v15114_v9 = vld [vmem:[#allocation12 + $0x2c8] sm:$0xff]  }
 0x4fe   : > { %13634 = vmatprep.subr.bf16.mxu1 %v15091_v48 }
 0x4ff   : > { %13611 = vmatpush3.bf16.msra.mxu0 %v15088_v46  ;;  %v15113_v46 = vld [vmem:[#allocation12] sm:$0xff]  }
 0x500   : > { %13612 = vmatprep.subr.bf16.mxu0 %v15090_v63  ;;  %v15115_v63 = vld [vmem:[#allocation12 + $0x48] sm:$0xff]  }
 0x501   : > { %13635 = vmatpush3.bf16.msra.mxu1 %v15093_v56  ;;  %v15116_v56 = vld [vmem:[#allocation12 + $0x288] sm:$0xff]  }
 0x502   : > { %13636 = vmatprep.subr.bf16.mxu1 %v15095_v49  ;;  %v15118_v49 = vld [vmem:[#allocation12 + $0x2d0] sm:$0xff]  }
 0x503   : > { %13613 = vmatpush3.bf16.msra.mxu0 %v15092_v25 }
 0x504   : > { %13614 = vmatprep.subr.bf16.mxu0 %v15094_v60  ;;  %v15117_v60 = vld [vmem:[#allocation12 + $0x8] sm:$0xff]  }
 0x505   : > { %13637 = vmatpush3.bf16.msra.mxu1 %v15097_v12  ;;  %v15120_v12 = vld [vmem:[#allocation12 + $0x290] sm:$0xff]  }
 0x506   : > { %13638 = vmatprep.subr.bf16.mxu1 %v15099_v55  ;;  %v15122_v55 = vld [vmem:[#allocation12 + $0x2d8] sm:$0xff]  }
 0x507   : > { %13615 = vmatpush3.bf16.msra.mxu0 %v15096_v17  ;;  %v15119_v17 = vld [vmem:[#allocation12 + $0x50] sm:$0xff]  }
 0x508   : > { %13616 = vmatprep.subr.bf16.mxu0 %v15098_v1  ;;  %v15121_v1 = vld [vmem:[#allocation12 + $0x10] sm:$0xff]  }
 0x509   : > { %13639 = vmatpush3.bf16.msra.mxu1 %v15101_v47  ;;  %v15124_v47 = vld [vmem:[#allocation12 + $0x298] sm:$0xff]  }
 0x50a   : > { %13640 = vmatprep.subr.bf16.mxu1 %v15103_v33  ;;  %v15126_v33 = vld [vmem:[#allocation12 + $0x2e0] sm:$0xff]  }
 0x50b   : > { %13617 = vmatpush3.bf16.msra.mxu0 %v15100_v41  ;;  %v15123_v41 = vld [vmem:[#allocation12 + $0x58] sm:$0xff]  }
 0x50c   : > { %13618 = vmatprep.subr.bf16.mxu0 %v15102_v37  ;;  %v15125_v37 = vld [vmem:[#allocation12 + $0x18] sm:$0xff]  }
 0x50d   : > { %13641 = vmatpush3.bf16.msra.mxu1 %v15105_v29  ;;  %v15128_v29 = vld [vmem:[#allocation12 + $0x2a0] sm:$0xff]  }
 0x50e   : > { %13642 = vmatprep.subr.bf16.mxu1 %v15107_v40  ;;  %v15130_v40 = vld [vmem:[#allocation12 + $0x2e8] sm:$0xff]  }
 0x50f   : > { %13619 = vmatpush3.bf16.msra.mxu0 %v15104_v20  ;;  %v15127_v20 = vld [vmem:[#allocation12 + $0x60] sm:$0xff]  }
 0x510   : > { %13620 = vmatprep.subr.bf16.mxu0 %v15106_v35  ;;  %v15129_v35 = vld [vmem:[#allocation12 + $0x20] sm:$0xff]  }
 0x511   : > { %13643 = vmatpush3.bf16.msra.mxu1 %v15109_v13  ;;  %v15132_v13 = vld [vmem:[#allocation12 + $0x2a8] sm:$0xff]  }
 0x512   : > { %13672 = vmatprep.subr.bf16.mxu1 %v15111_v36  ;;  %v15134_v36 = vld [vmem:[#allocation12 + $0x2f0] sm:$0xff]  }
 0x513   : > { %13621 = vmatpush3.bf16.msra.mxu0 %v15108_v50  ;;  %v15131_v50 = vld [vmem:[#allocation12 + $0x68] sm:$0xff]  }
 0x514   : > { %13650 = vmatprep.subr.bf16.mxu0 %v15110_v51  ;;  %v15133_v51 = vld [vmem:[#allocation12 + $0x28] sm:$0xff]  }
 0x537   : > { %v4879_v44 = vpop.f32.mrb[36].mxu1 }
 0x538   : > { %v4881_v28 = vpop.f32.mrb[37].mxu1 }
 0x539   : > { %v4722_v57 = vpop.f32.mrb[24].mxu0  ;;  %v4883_v30 = vpop.f32.mrb[38].mxu1 }
 0x53a   : > { %v4892_v31 = vmax.f32 %v4722_v57, %v4879_v44  ;;  %v4724_v59 = vpop.f32.mrb[25].mxu0  ;;  %v4885_v32 = vpop.f32.mrb[39].mxu1  ;;  %v5694_v44 = vld [vmem:[#allocation3] ss:$8 sm:$0xf] }
 0x53b   : > { %v4893_v21 = vmax.f32 %v4724_v59, %v4881_v28  ;;  %v4726_v34 = vpop.f32.mrb[26].mxu0  ;;  %v17857_v59 = vld [vmem:[#allocation25_spill] sm:$0xff] }
 0x53c   : > { %v4894_v7 = vmax.f32 %v4726_v34, %v4883_v30  ;;  %v4728_v15 = vpop.f32.mrb[27].mxu0 }
 0x53d   : > { %v4896_v58 = vmax.f32 %v4892_v31, %v4893_v21  ;;  %v4895_v38 = vmax.f32 %v4728_v15, %v4885_v32  ;;  %v17858_v21 = vld [vmem:[#allocation27_spill] sm:$0xff]  ;;  %v17860_v15 = vld [vmem:[#allocation26_spill] sm:$0xff] }
 0x53f   : > { %v4905_v45 = vadd.f32 %v17347_v42, %v4896_v58  ;;  %v4897_v8 = vmax.f32 %v4894_v7, %v4895_v38  ;;  %v17859_v7 = vld [vmem:[#allocation24_spill] sm:$0xff]  ;;  %v17861_v38 = vld [vmem:[#allocation29_spill] sm:$0xff] }
 0x541   : > { %v4907_v10 = vmax.f32 %v4905_v45, 0.0  ;;  %v4906_v16 = vadd.f32 %v17347_v42, %v4897_v8 }
 0x543   : > { %4909 = vst [vmem:[#allocation3 + $0x20] sm:$0xff] %v4907_v10  ;;  %v4908_v23 = vmax.f32 %v4906_v16, 0.0 }
 0x545   : > { %4910 = vst [vmem:[#allocation3 + $0x50] sm:$0xf] %v4908_v23 }
 0x5c7   : > { %v5662_v54 = vpop.f32.mrb[40].mxu1 }
 0x5c8   : > { %v5664_v39 = vpop.f32.mrb[41].mxu1 }
 0x5c9   : > { %v5505_v53 = vpop.f32.mrb[28].mxu0  ;;  %v5666_v62 = vpop.f32.mrb[42].mxu1 }
 0x5ca   : > { %v5675_v0 = vmax.f32 %v5505_v53, %v5662_v54  ;;  %v5507_v52 = vpop.f32.mrb[29].mxu0  ;;  %v5668_v19 = vpop.f32.mrb[43].mxu1  ;;  %v15135_v54 = vld [vmem:[#allocation12 + $0x70] sm:$0xff]  }
 0x5cb   : > { %v5676_v3 = vmax.f32 %v5507_v52, %v5664_v39  ;;  %v5509_v4 = vpop.f32.mrb[30].mxu0  ;;  %v15136_v39 = vld [vmem:[#allocation12 + $0x2b0] sm:$0xff]   ;;  %v15140_v52 = vld [vmem:[#allocation12 + $0x2b8] sm:$0xff]  }
 0x5cc   : > { %v5677_v5 = vmax.f32 %v5509_v4, %v5666_v62  ;;  %v5511_v11 = vpop.f32.mrb[31].mxu0  ;;  %v15137_v53 = vld [vmem:[#allocation12 + $0x30] sm:$0xff]   ;;  %v15138_v62 = vld [vmem:[#allocation12 + $0x2f8] sm:$0xff]  }
 0x5cd   : > { %v5679_v14 = vmax.f32 %v5675_v0, %v5676_v3  ;;  %v5678_v22 = vmax.f32 %v5511_v11, %v5668_v19  ;;  %v15139_v0 = vld [vmem:[#allocation12 + $0x78] sm:$0xff]   ;;  %v17862_v3 = vld [vmem:[#allocation28_spill] sm:$0xff] }
 0x5ce   : > { %v15141_v19 = vld [vmem:[#allocation12 + $0x38] sm:$0xff]   ;;  %v15142_v11 = vld [vmem:[#allocation12 + $0xc0] sm:$0xff]  }
 0x5cf   : > { %v5688_v61 = vadd.f32 %v17347_v42, %v5679_v14  ;;  %v5680_v24 = vmax.f32 %v5677_v5, %v5678_v22  ;;  %v15143_v14 = vld [vmem:[#allocation12 + $0x140] sm:$0xff]  }
 0x5d1   : > { %v5690_v18 = vmax.f32 %v5688_v61, 0.0  ;;  %v5689_v26 = vadd.f32 %v17347_v42, %v5680_v24  ;;  %v15144_v24 = vld [vmem:[#allocation12 + $0x80] sm:$0xff]  }
 0x5d3   : > { %5692 = vst [vmem:[#allocation3 + $0x28] sm:$0xff] %v5690_v18  ;;  %v5691_v27 = vmax.f32 %v5689_v26, 0.0 }
 0x5d5   : > { %5693 = vst [vmem:[#allocation3 + $0x58] sm:$0xf] %v5691_v27  ;;  %v15145_v27 = vld [vmem:[#allocation12 + $0x100] sm:$0xff]  }
 0x5da   : > { %v5832_v28 = vld [vmem:[#allocation3 + $0x1] ss:$8 sm:$0x30]  ;;  %v5695_v57 = vld [vmem:[#allocation3] ss:$8 sm:$0x30] }
 0x5db   : > { %v17353_v30 = vor.u32 %v5832_v28, %v5831_v2  ;;  %v17355_v31 = vor.u32 %v5695_v57, %v5694_v44  ;;  %v15146_v44 = vld [vmem:[#allocation12 + $0xc8] sm:$0xff]  }
 0x5dc   : > { %v15147_v28 = vld [vmem:[#allocation12 + $0x148] sm:$0xff]  }
 0x5dd   : > { %v5842_v32 = vrot.slane %v17353_v30, %v17857_v59  ;;  %v5850_v34 = vrot.slane %v17353_v30, %v17858_v21  ;;  %v5838_v42 = vrot.slane %v17353_v30, %v17859_v7  ;;  %v5846_v58 = vrot.slane %v17353_v30, %v17860_v15 }
 0x5de   : > { %v5858_v45 = vrot.slane %v17353_v30, %v17861_v38  ;;  %v5705_v8 = vrot.slane %v17355_v31, %v17857_v59  ;;  %v5854_v4 = vrot.slane %v17353_v30, %v17862_v3  ;;  %v5701_v5 = vrot.slane %v17355_v31, %v17859_v7  ;;  %v15148_v30 = vld [vmem:[#allocation12 + $0x88] sm:$0xff]  }
 0x5df   : > { %v5866_v10 = vpack.c.bf16 %v5842_v32, %v5842_v32  ;;  %v5868_v16 = vpack.c.bf16 %v5850_v34, %v5850_v34  ;;  %v5865_v23 = vpack.c.bf16 %v5838_v42, %v5838_v42  ;;  %v5867_v6 = vpack.c.bf16 %v5846_v58, %v5846_v58  ;;  %v15149_v32 = vld [vmem:[#allocation12 + $0x108] sm:$0xff]   ;;  %v15150_v34 = vld [vmem:[#allocation12 + $0xd0] sm:$0xff]  }
 0x5e0   : > { %v5870_v48 = vpack.c.bf16 %v5858_v45, %v5858_v45  ;;  %v5729_v25 = vpack.c.bf16 %v5705_v8, %v5705_v8  ;;  %v5713_v22 = vrot.slane %v17355_v31, %v17858_v21  ;;  %v5721_v61 = vrot.slane %v17355_v31, %v17861_v38  ;;  %v15151_v42 = vld [vmem:[#allocation12 + $0x150] sm:$0xff]   ;;  %v15154_v8 = vld [vmem:[#allocation12 + $0xd8] sm:$0xff]  }
 0x5e1   : > { %6288 = vmatprep.mubr.bf16.mxu0 %v5866_v10  ;;  %6328 = vmatprep.mubr.bf16.mxu1 %v5868_v16  ;;  %v5869_v18 = vpack.c.bf16 %v5854_v4, %v5854_v4  ;;  %v5728_v26 = vpack.c.bf16 %v5701_v5, %v5701_v5  ;;  %v15152_v58 = vld [vmem:[#allocation12 + $0x90] sm:$0xff]   ;;  %v15155_v10 = vld [vmem:[#allocation12 + $0x158] sm:$0xff]   ;;  %v15181_v4 = vld [vmem:[#allocation12 + $0x388] sm:$0xff]  }
 0x5e2   : > { %6289 = vmatmul.mubr.bf16.vlgmr.msra.gmra.mrb[32].mxu0 %v5865_v23  ;;  %6329 = vmatmul.mubr.bf16.vlgmr.msra.gmra.mrb[44].mxu1 %v5867_v6  ;;  %v5731_v2 = vpack.c.bf16 %v5713_v22, %v5713_v22  ;;  %v5733_v57 = vpack.c.bf16 %v5721_v61, %v5721_v61  ;;  %v15153_v45 = vld [vmem:[#allocation12 + $0x110] sm:$0xff]   ;;  %v15156_v16 = vld [vmem:[#allocation12 + $0x98] sm:$0xff]   ;;  %v15158_v6 = vld [vmem:[#allocation12 + $0xe0] sm:$0xff]  }
 0x5e3   : > { %13651 = vmatpush3.bf16.msra.mxu0 %v15112_v43  ;;  %13673 = vmatpush3.bf16.msra.mxu1 %v15113_v46  ;;  %v15157_v23 = vld [vmem:[#allocation12 + $0x118] sm:$0xff]   ;;  %v15159_v43 = vld [vmem:[#allocation12 + $0x160] sm:$0xff]   ;;  %v15182_v5 = vld [vmem:[#allocation12 + $0x350] sm:$0xff]  }
 0x5e4   : > { %6368 = vmatprep.mubr.bf16.mxu0 %v5870_v48  ;;  %6696 = vmatprep.mubr.bf16.mxu1 %v5729_v25  ;;  %v15160_v46 = vld [vmem:[#allocation12 + $0xa0] sm:$0xff]   ;;  %v15163_v48 = vld [vmem:[#allocation12 + $0x168] sm:$0xff]   ;;  %v15185_v22 = vld [vmem:[#allocation12 + $0x390] sm:$0xff]  }
 0x5e5   : > { %13652 = vmatprep.subr.bf16.mxu0 %v15114_v9  ;;  %13674 = vmatprep.subr.bf16.mxu1 %v15115_v63  ;;  %v15161_v9 = vld [vmem:[#allocation12 + $0x120] sm:$0xff]   ;;  %v15162_v63 = vld [vmem:[#allocation12 + $0xe8] sm:$0xff]   ;;  %v15186_v61 = vld [vmem:[#allocation12 + $0x358] sm:$0xff]  }
 0x5e6   : > { %v15164_v25 = vld [vmem:[#allocation12 + $0xa8] sm:$0xff]  }
 0x5e7   : > { %13653 = vmatpush3.bf16.msra.mxu0 %v15116_v56  ;;  %13675 = vmatpush3.bf16.msra.mxu1 %v15117_v60  ;;  %v15165_v56 = vld [vmem:[#allocation12 + $0x128] sm:$0xff]   ;;  %v15166_v60 = vld [vmem:[#allocation12 + $0xf0] sm:$0xff]  }
 0x5e8   : > { %13654 = vmatprep.subr.bf16.mxu0 %v15118_v49  ;;  %13676 = vmatprep.subr.bf16.mxu1 %v15119_v17  ;;  %v15167_v49 = vld [vmem:[#allocation12 + $0x170] sm:$0xff]  }
 0x5e9   : > { %v15168_v17 = vld [vmem:[#allocation12 + $0xb0] sm:$0xff]  }
 0x5eb   : > { %13655 = vmatpush3.bf16.msra.mxu0 %v15120_v12  ;;  %13677 = vmatpush3.bf16.msra.mxu1 %v15121_v1  ;;  %v6786_v12 = vld [vmem:[#allocation3 + $0x2] ss:$8 sm:$0x30]  ;;  %v15169_v1 = vld [vmem:[#allocation12 + $0x130] sm:$0xff]  }
 0x5ec   : > { %13656 = vmatprep.subr.bf16.mxu0 %v15122_v55  ;;  %13678 = vmatprep.subr.bf16.mxu1 %v15123_v41  ;;  %v15170_v55 = vld [vmem:[#allocation12 + $0xf8] sm:$0xff]  }
 0x5ed   : > { %v15171_v41 = vld [vmem:[#allocation12 + $0x178] sm:$0xff]  }
 0x5ef   : > { %13657 = vmatpush3.bf16.msra.mxu0 %v15124_v47  ;;  %13679 = vmatpush3.bf16.msra.mxu1 %v15125_v37  ;;  %v6785_v47 = vld [vmem:[#allocation3 + $0x2] ss:$8 sm:$0xf] }
 0x5f0   : > { %13658 = vmatprep.subr.bf16.mxu0 %v15126_v33  ;;  %13680 = vmatprep.subr.bf16.mxu1 %v15127_v20  ;;  %v17377_v37 = vor.u32 %v6786_v12, %v6785_v47  ;;  %v15172_v33 = vld [vmem:[#allocation12 + $0xb8] sm:$0xff]  }
 0x5f1   : > { %v15173_v20 = vld [vmem:[#allocation12 + $0x138] sm:$0xff]  }
 0x5f3   : > { %13659 = vmatpush3.bf16.msra.mxu0 %v15128_v29  ;;  %13681 = vmatpush3.bf16.msra.mxu1 %v15129_v35  ;;  %v5709_v29 = vrot.slane %v17355_v31, %v17860_v15  ;;  %v15174_v35 = vld [vmem:[#allocation12 + $0x340] sm:$0xff]  }
 0x5f4   : > { %13660 = vmatprep.subr.bf16.mxu0 %v15130_v40  ;;  %13682 = vmatprep.subr.bf16.mxu1 %v15131_v50  ;;  %v5717_v40 = vrot.slane %v17355_v31, %v17862_v3  ;;  %v15175_v50 = vld [vmem:[#allocation12 + $0x3c0] sm:$0xff]  }
 0x5f7   : > { %13661 = vmatpush3.bf16.msra.mxu0 %v15132_v13  ;;  %13683 = vmatpush3.bf16.msra.mxu1 %v15133_v51  ;;  %v6796_v13 = vrot.slane %v17377_v37, %v17857_v59  ;;  %v15176_v51 = vld [vmem:[#allocation12 + $0x300] sm:$0xff]  }
 0x5f8   : > { %13662 = vmatprep.subr.bf16.mxu0 %v15134_v36  ;;  %13684 = vmatprep.subr.bf16.mxu1 %v15135_v54  ;;  %v6804_v36 = vrot.slane %v17377_v37, %v17858_v21  ;;  %v5730_v54 = vpack.c.bf16 %v5709_v29, %v5709_v29  ;;  %v15212_v29 = vld [vmem:[#allocation12 + $0x408] sm:$0xff]  }
 0x5fa   : > { %v6822_v31 = vpack.c.bf16 %v6804_v36, %v6804_v36  ;;  %v15218_v36 = vld [vmem:[#allocation12 + $0x458] sm:$0xff]  }
 0x5fb   : > { %13663 = vmatpush3.bf16.msra.mxu0 %v15136_v39  ;;  %13685 = vmatpush3.bf16.msra.mxu1 %v15137_v53  ;;  %v15177_v39 = vld [vmem:[#allocation12 + $0x380] sm:$0xff]   ;;  %v5732_v53 = vpack.c.bf16 %v5717_v40, %v5717_v40  ;;  %v15214_v40 = vld [vmem:[#allocation12 + $0x450] sm:$0xff]  }
 0x5fc   : > { %13664 = vmatprep.subr.bf16.mxu0 %v15138_v62  ;;  %13686 = vmatprep.subr.bf16.mxu1 %v15139_v0  ;;  %v15178_v62 = vld [vmem:[#allocation12 + $0x348] sm:$0xff]   ;;  %v6820_v0 = vpack.c.bf16 %v6796_v13, %v6796_v13  ;;  %v15216_v13 = vld [vmem:[#allocation12 + $0x410] sm:$0xff]  }
 0x5ff   : > { %13665 = vmatpush3.bf16.msra.mxu0 %v15140_v52  ;;  %13687 = vmatpush3.bf16.msra.mxu1 %v15141_v19  ;;  %v15179_v52 = vld [vmem:[#allocation12 + $0x3c8] sm:$0xff]  }
 0x600   : > { %13694 = vmatprep.subr.bf16.mxu0 %v15142_v11  ;;  %13716 = vmatprep.subr.bf16.mxu1 %v15143_v14  ;;  %v15180_v19 = vld [vmem:[#allocation12 + $0x308] sm:$0xff]   ;;  %v15183_v11 = vld [vmem:[#allocation12 + $0x3d0] sm:$0xff]  }
 0x601   : > { %v15184_v14 = vld [vmem:[#allocation12 + $0x310] sm:$0xff]  }
 0x602   : > { %6369 = vmatmul.mubr.bf16.vlgmr.msra.gmra.mrb[36].mxu0 %v5869_v18  ;;  %6697 = vmatmul.mubr.bf16.vlgmr.msra.gmra.mrb[48].mxu1 %v5728_v26  ;;  %v15188_v18 = vld [vmem:[#allocation12 + $0x318] sm:$0xff]  }
 0x603   : > { %13695 = vmatpush3.bf16.msra.mxu0 %v15144_v24  ;;  %6736 = vmatprep.mubr.bf16.mxu0 %v5731_v2  ;;  %v15187_v24 = vld [vmem:[#allocation12 + $0x3d8] sm:$0xff]   ;;  %v15191_v2 = vld [vmem:[#allocation12 + $0x3e0] sm:$0xff]  }
 0x604   : > { %13717 = vmatpush3.bf16.msra.mxu1 %v15145_v27  ;;  %6776 = vmatprep.mubr.bf16.mxu1 %v5733_v57  ;;  %v15189_v26 = vld [vmem:[#allocation12 + $0x398] sm:$0xff]   ;;  %v15190_v27 = vld [vmem:[#allocation12 + $0x360] sm:$0xff]   ;;  %v15194_v57 = vld [vmem:[#allocation12 + $0x368] sm:$0xff]  }
 0x605   : > { %13696 = vmatprep.subr.bf16.mxu0 %v15146_v44  ;;  %13718 = vmatprep.subr.bf16.mxu1 %v15147_v28  ;;  %v15192_v44 = vld [vmem:[#allocation12 + $0x320] sm:$0xff]  }
 0x606   : > { %v15193_v28 = vld [vmem:[#allocation12 + $0x3a0] sm:$0xff]  }
 0x607   : > { %13697 = vmatpush3.bf16.msra.mxu0 %v15148_v30  ;;  %v15195_v30 = vld [vmem:[#allocation12 + $0x3e8] sm:$0xff]  }
 0x608   : > { %13719 = vmatpush3.bf16.msra.mxu1 %v15149_v32  ;;  %13698 = vmatprep.subr.bf16.mxu0 %v15150_v34  ;;  %v15196_v32 = vld [vmem:[#allocation12 + $0x328] sm:$0xff]  }
 0x609   : > { %13720 = vmatprep.subr.bf16.mxu1 %v15151_v42  ;;  %v15197_v34 = vld [vmem:[#allocation12 + $0x3a8] sm:$0xff]   ;;  %v15198_v42 = vld [vmem:[#allocation12 + $0x370] sm:$0xff]  }
 0x60b   : > { %13699 = vmatpush3.bf16.msra.mxu0 %v15152_v58  ;;  %v15199_v58 = vld [vmem:[#allocation12 + $0x3f0] sm:$0xff]  }
 0x60c   : > { %13721 = vmatpush3.bf16.msra.mxu1 %v15153_v45  ;;  %13700 = vmatprep.subr.bf16.mxu0 %v15154_v8  ;;  %v15200_v45 = vld [vmem:[#allocation12 + $0x330] sm:$0xff]  }
 0x60d   : > { %13722 = vmatprep.subr.bf16.mxu1 %v15155_v10  ;;  %v15201_v8 = vld [vmem:[#allocation12 + $0x3b0] sm:$0xff]   ;;  %v15202_v10 = vld [vmem:[#allocation12 + $0x378] sm:$0xff]  }
 0x60f   : > { %13701 = vmatpush3.bf16.msra.mxu0 %v15156_v16  ;;  %v7333_v16 = vld [vmem:[#allocation3 + $0x3] ss:$8 sm:$0x30] }
 0x610   : > { %13723 = vmatpush3.bf16.msra.mxu1 %v15157_v23  ;;  %13702 = vmatprep.subr.bf16.mxu0 %v15158_v6  ;;  %v15203_v23 = vld [vmem:[#allocation12 + $0x3f8] sm:$0xff]  }
 0x611   : > { %13724 = vmatprep.subr.bf16.mxu1 %v15159_v43  ;;  %v7332_v6 = vld [vmem:[#allocation3 + $0x3] ss:$8 sm:$0xf] }
 0x612   : > { %v15204_v43 = vld [vmem:[#allocation12 + $0x338] sm:$0xff]  }
 0x613   : > { %13703 = vmatpush3.bf16.msra.mxu0 %v15160_v46  ;;  %v17387_v46 = vor.u32 %v7333_v16, %v7332_v6  ;;  %v15243_v16 = vld [vmem:[#allocation12 + $0x5c8] sm:$0xff]  }
 0x614   : > { %13725 = vmatpush3.bf16.msra.mxu1 %v15161_v9  ;;  %13704 = vmatprep.subr.bf16.mxu0 %v15162_v63  ;;  %v15205_v9 = vld [vmem:[#allocation12 + $0x3b8] sm:$0xff]   ;;  %v6792_v63 = vrot.slane %v17377_v37, %v17859_v7  ;;  %v15244_v6 = vld [vmem:[#allocation12 + $0x508] sm:$0xff]  }
 0x615   : > { %13726 = vmatprep.subr.bf16.mxu1 %v15163_v48  ;;  %v15206_v48 = vld [vmem:[#allocation12 + $0x440] sm:$0xff]  }
 0x616   : > { %v6819_v12 = vpack.c.bf16 %v6792_v63, %v6792_v63  ;;  %v15247_v63 = vld [vmem:[#allocation12 + $0x5d0] sm:$0xff]  }
 0x617   : > { %13705 = vmatpush3.bf16.msra.mxu0 %v15164_v25  ;;  %v6800_v25 = vrot.slane %v17377_v37, %v17860_v15 }
 0x618   : > { %13727 = vmatpush3.bf16.msra.mxu1 %v15165_v56  ;;  %13706 = vmatprep.subr.bf16.mxu0 %v15166_v60  ;;  %v15207_v56 = vld [vmem:[#allocation12 + $0x4c0] sm:$0xff]   ;;  %v6812_v60 = vrot.slane %v17377_v37, %v17861_v38 }
 0x619   : > { %13728 = vmatprep.subr.bf16.mxu1 %v15167_v49  ;;  %v15208_v49 = vld [vmem:[#allocation12 + $0x400] sm:$0xff]  }
 0x61a   : > { %v6824_v47 = vpack.c.bf16 %v6812_v60, %v6812_v60  ;;  %v15251_v60 = vld [vmem:[#allocation12 + $0x5d8] sm:$0xff]  }
 0x61b   : > { %13707 = vmatpush3.bf16.msra.mxu0 %v15168_v17  ;;  %v7343_v17 = vrot.slane %v17387_v46, %v17857_v59 }
 0x61c   : > { %13729 = vmatpush3.bf16.msra.mxu1 %v15169_v1  ;;  %13708 = vmatprep.subr.bf16.mxu0 %v15170_v55  ;;  %v15209_v1 = vld [vmem:[#allocation12 + $0x480] sm:$0xff]   ;;  %v6821_v55 = vpack.c.bf16 %v6800_v25, %v6800_v25  ;;  %v15249_v25 = vld [vmem:[#allocation12 + $0x590] sm:$0xff]  }
 0x61d   : > { %13730 = vmatprep.subr.bf16.mxu1 %v15171_v41  ;;  %v15210_v41 = vld [vmem:[#allocation12 + $0x448] sm:$0xff]  }
 0x61f   : > { %13709 = vmatpush3.bf16.msra.mxu0 %v15172_v33  ;;  %v15211_v33 = vld [vmem:[#allocation12 + $0x4c8] sm:$0xff]  }
 0x620   : > { %13731 = vmatpush3.bf16.msra.mxu1 %v15173_v20  ;;  %13738 = vmatprep.subr.bf16.mxu0 %v15174_v35  ;;  %v7367_v20 = vpack.c.bf16 %v7343_v17, %v7343_v17  ;;  %v15213_v35 = vld [vmem:[#allocation12 + $0x488] sm:$0xff]   ;;  %v15253_v17 = vld [vmem:[#allocation12 + $0x598] sm:$0xff]  }
 0x621   : > { %13760 = vmatprep.subr.bf16.mxu1 %v15175_v50  ;;  %v15215_v50 = vld [vmem:[#allocation12 + $0x4d0] sm:$0xff]  }
 0x622   : > { %6737 = vmatmul.mubr.bf16.vlgmr.msra.gmra.mrb[40].mxu0 %v5730_v54  ;;  %v15219_v54 = vld [vmem:[#allocation12 + $0x4d8] sm:$0xff]  }
 0x623   : > { %6777 = vmatmul.mubr.bf16.vlgmr.msra.gmra.mrb[52].mxu1 %v5732_v53  ;;  %13739 = vmatpush3.bf16.msra.mxu0 %v15176_v51  ;;  %v15217_v51 = vld [vmem:[#allocation12 + $0x490] sm:$0xff]   ;;  %v15221_v53 = vld [vmem:[#allocation12 + $0x498] sm:$0xff]  }
 0x624   : > { %7242 = vmatprep.mubr.bf16.mxu0 %v6820_v0  ;;  %13761 = vmatpush3.bf16.msra.mxu1 %v15177_v39  ;;  %v15220_v39 = vld [vmem:[#allocation12 + $0x418] sm:$0xff]   ;;  %v15223_v0 = vld [vmem:[#allocation12 + $0x4e0] sm:$0xff]  }
 0x625   : > { %7282 = vmatprep.mubr.bf16.mxu1 %v6822_v31  ;;  %13740 = vmatprep.subr.bf16.mxu0 %v15178_v62  ;;  %v15222_v62 = vld [vmem:[#allocation12 + $0x460] sm:$0xff]  }
 0x626   : > { %13762 = vmatprep.subr.bf16.mxu1 %v15179_v52  ;;  %v15224_v52 = vld [vmem:[#allocation12 + $0x420] sm:$0xff]  }
 0x627   : > { %13741 = vmatpush3.bf16.msra.mxu0 %v15180_v19  ;;  %v15225_v31 = vld [vmem:[#allocation12 + $0x4a0] sm:$0xff]   ;;  %v15226_v19 = vld [vmem:[#allocation12 + $0x468] sm:$0xff]  }
 0x628   : > { %13763 = vmatpush3.bf16.msra.mxu1 %v15181_v4  ;;  %13742 = vmatprep.subr.bf16.mxu0 %v15182_v5  ;;  %v15227_v4 = vld [vmem:[#allocation12 + $0x4e8] sm:$0xff]  }
 0x629   : > { %13764 = vmatprep.subr.bf16.mxu1 %v15183_v11  ;;  %v15228_v5 = vld [vmem:[#allocation12 + $0x428] sm:$0xff]  }
 0x62a   : > { %v15229_v11 = vld [vmem:[#allocation12 + $0x4a8] sm:$0xff]  }
 0x62b   : > { %13743 = vmatpush3.bf16.msra.mxu0 %v15184_v14  ;;  %v15230_v14 = vld [vmem:[#allocation12 + $0x470] sm:$0xff]  }
 0x62c   : > { %13765 = vmatpush3.bf16.msra.mxu1 %v15185_v22  ;;  %13744 = vmatprep.subr.bf16.mxu0 %v15186_v61  ;;  %v15231_v22 = vld [vmem:[#allocation12 + $0x4f0] sm:$0xff]  }
 0x62d   : > { %13766 = vmatprep.subr.bf16.mxu1 %v15187_v24  ;;  %v15232_v61 = vld [vmem:[#allocation12 + $0x430] sm:$0xff]  }
 0x62e   : > { %v15233_v24 = vld [vmem:[#allocation12 + $0x4b0] sm:$0xff]  }
 0x62f   : > { %13745 = vmatpush3.bf16.msra.mxu0 %v15188_v18  ;;  %v15234_v18 = vld [vmem:[#allocation12 + $0x478] sm:$0xff]  }
 0x630   : > { %13767 = vmatpush3.bf16.msra.mxu1 %v15189_v26  ;;  %13746 = vmatprep.subr.bf16.mxu0 %v15190_v27  ;;  %v15235_v26 = vld [vmem:[#allocation12 + $0x4f8] sm:$0xff]  }
 0x631   : > { %13768 = vmatprep.subr.bf16.mxu1 %v15191_v2  ;;  %v15236_v27 = vld [vmem:[#allocation12 + $0x438] sm:$0xff]  }
 0x632   : > { %v15237_v2 = vld [vmem:[#allocation12 + $0x4b8] sm:$0xff]  }
 0x633   : > { %13747 = vmatpush3.bf16.msra.mxu0 %v15192_v44  ;;  %v6808_v44 = vrot.slane %v17377_v37, %v17862_v3  ;;  %v15242_v37 = vld [vmem:[#allocation12 + $0x548] sm:$0xff]  }
 0x634   : > { %13769 = vmatpush3.bf16.msra.mxu1 %v15193_v28  ;;  %13748 = vmatprep.subr.bf16.mxu0 %v15194_v57  ;;  %v15238_v28 = vld [vmem:[#allocation12 + $0x540] sm:$0xff]   ;;  %v7339_v57 = vrot.slane %v17387_v46, %v17859_v7 }
 0x635   : > { %13770 = vmatprep.subr.bf16.mxu1 %v15195_v30  ;;  %v15239_v30 = vld [vmem:[#allocation12 + $0x5c0] sm:$0xff]  }
 0x637   : > { %13749 = vmatpush3.bf16.msra.mxu0 %v15196_v32  ;;  %v7351_v32 = vrot.slane %v17387_v46, %v17858_v21 }
 0x638   : > { %13771 = vmatpush3.bf16.msra.mxu1 %v15197_v34  ;;  %13750 = vmatprep.subr.bf16.mxu0 %v15198_v42  ;;  %v15240_v34 = vld [vmem:[#allocation12 + $0x500] sm:$0xff]   ;;  %v7359_v42 = vrot.slane %v17387_v46, %v17861_v38 }
 0x639   : > { %13772 = vmatprep.subr.bf16.mxu1 %v15199_v58  ;;  %v6823_v58 = vpack.c.bf16 %v6808_v44, %v6808_v44  ;;  %v15277_v44 = vld [vmem:[#allocation12 + $0x688] sm:$0xff]  }
 0x63b   : > { %13751 = vmatpush3.bf16.msra.mxu0 %v15200_v45  ;;  %v15241_v45 = vld [vmem:[#allocation12 + $0x580] sm:$0xff]  }
 0x63c   : > { %13773 = vmatpush3.bf16.msra.mxu1 %v15201_v8  ;;  %13752 = vmatprep.subr.bf16.mxu0 %v15202_v10  ;;  %v7366_v8 = vpack.c.bf16 %v7339_v57, %v7339_v57  ;;  %v7369_v10 = vpack.c.bf16 %v7351_v32, %v7351_v32  ;;  %v15279_v57 = vld [vmem:[#allocation12 + $0x6d0] sm:$0xff]  }
 0x63d   : > { %13774 = vmatprep.subr.bf16.mxu1 %v15203_v23  ;;  %v7371_v23 = vpack.c.bf16 %v7359_v42, %v7359_v42  ;;  %v15281_v32 = vld [vmem:[#allocation12 + $0x690] sm:$0xff]   ;;  %v15283_v42 = vld [vmem:[#allocation12 + $0x6d8] sm:$0xff]  }
 0x63f   : > { %13753 = vmatpush3.bf16.msra.mxu0 %v15204_v43  ;;  %v15245_v43 = vld [vmem:[#allocation12 + $0x588] sm:$0xff]  }
 0x640   : > { %13775 = vmatpush3.bf16.msra.mxu1 %v15205_v9  ;;  %13782 = vmatprep.subr.bf16.mxu0 %v15206_v48  ;;  %v15246_v9 = vld [vmem:[#allocation12 + $0x550] sm:$0xff]  }
 0x641   : > { %13804 = vmatprep.subr.bf16.mxu1 %v15207_v56  ;;  %v15248_v48 = vld [vmem:[#allocation12 + $0x510] sm:$0xff]   ;;  %v15250_v56 = vld [vmem:[#allocation12 + $0x558] sm:$0xff]  }
 0x642   : > { %7243 = vmatmul.mubr.bf16.vlgmr.msra.gmra.mrb[44].mxu0 %v6819_v12  ;;  %v15254_v12 = vld [vmem:[#allocation12 + $0x560] sm:$0xff]  }
 0x643   : > { %7283 = vmatmul.mubr.bf16.vlgmr.msra.gmra.mrb[56].mxu1 %v6821_v55  ;;  %13783 = vmatpush3.bf16.msra.mxu0 %v15208_v49  ;;  %v15252_v49 = vld [vmem:[#allocation12 + $0x518] sm:$0xff]   ;;  %v15256_v55 = vld [vmem:[#allocation12 + $0x520] sm:$0xff]  }
 0x644   : > { %7322 = vmatprep.mubr.bf16.mxu0 %v6824_v47  ;;  %13805 = vmatpush3.bf16.msra.mxu1 %v15209_v1  ;;  %v15255_v1 = vld [vmem:[#allocation12 + $0x5e0] sm:$0xff]   ;;  %v15258_v47 = vld [vmem:[#allocation12 + $0x568] sm:$0xff]  }
 0x645   : > { %7789 = vmatprep.mubr.bf16.mxu1 %v7367_v20  ;;  %13784 = vmatprep.subr.bf16.mxu0 %v15210_v41  ;;  %v15257_v41 = vld [vmem:[#allocation12 + $0x5a0] sm:$0xff]   ;;  %v15260_v20 = vld [vmem:[#allocation12 + $0x528] sm:$0xff]  }
 0x646   : > { %13806 = vmatprep.subr.bf16.mxu1 %v15211_v33  ;;  %v15259_v33 = vld [vmem:[#allocation12 + $0x5e8] sm:$0xff]  }
 0x647   : > { %13785 = vmatpush3.bf16.msra.mxu0 %v15212_v29  ;;  %v15261_v29 = vld [vmem:[#allocation12 + $0x5a8] sm:$0xff]  }
 0x648   : > { %13807 = vmatpush3.bf16.msra.mxu1 %v15213_v35  ;;  %13786 = vmatprep.subr.bf16.mxu0 %v15214_v40  ;;  %v15262_v35 = vld [vmem:[#allocation12 + $0x570] sm:$0xff]  }
 0x649   : > { %13808 = vmatprep.subr.bf16.mxu1 %v15215_v50  ;;  %v15263_v40 = vld [vmem:[#allocation12 + $0x5f0] sm:$0xff]  }
 0x64a   : > { %v15264_v50 = vld [vmem:[#allocation12 + $0x530] sm:$0xff]  }
 0x64b   : > { %13787 = vmatpush3.bf16.msra.mxu0 %v15216_v13  ;;  %v7880_v13 = vld [vmem:[#allocation3 + $0x4] ss:$8 sm:$0x30] }
 0x64c   : > { %13809 = vmatpush3.bf16.msra.mxu1 %v15217_v51  ;;  %13788 = vmatprep.subr.bf16.mxu0 %v15218_v36  ;;  %v15265_v51 = vld [vmem:[#allocation12 + $0x5b0] sm:$0xff]   ;;  %v15266_v36 = vld [vmem:[#allocation12 + $0x578] sm:$0xff]  }
 0x64d   : > { %13810 = vmatprep.subr.bf16.mxu1 %v15219_v54  ;;  %v15267_v54 = vld [vmem:[#allocation12 + $0x5f8] sm:$0xff]  }
 0x64f   : > { %13789 = vmatpush3.bf16.msra.mxu0 %v15220_v39  ;;  %v7879_v39 = vld [vmem:[#allocation3 + $0x4] ss:$8 sm:$0xf] }
 0x650   : > { %13811 = vmatpush3.bf16.msra.mxu1 %v15221_v53  ;;  %13790 = vmatprep.subr.bf16.mxu0 %v15222_v62  ;;  %v17405_v53 = vor.u32 %v7880_v13, %v7879_v39  ;;  %v15268_v62 = vld [vmem:[#allocation12 + $0x538] sm:$0xff]  }
 0x651   : > { %13812 = vmatprep.subr.bf16.mxu1 %v15223_v0  ;;  %v15269_v0 = vld [vmem:[#allocation12 + $0x5b8] sm:$0xff]  }
 0x653   : > { %13791 = vmatpush3.bf16.msra.mxu0 %v15224_v52  ;;  %v7347_v52 = vrot.slane %v17387_v46, %v17860_v15 }
 0x654   : > { %13813 = vmatpush3.bf16.msra.mxu1 %v15225_v31  ;;  %13792 = vmatprep.subr.bf16.mxu0 %v15226_v19  ;;  %v15270_v31 = vld [vmem:[#allocation12 + $0x640] sm:$0xff]   ;;  %v7355_v19 = vrot.slane %v17387_v46, %v17862_v3 }
 0x655   : > { %13814 = vmatprep.subr.bf16.mxu1 %v15227_v4  ;;  %v15271_v4 = vld [vmem:[#allocation12 + $0x6c0] sm:$0xff]  }
 0x657   : > { %13793 = vmatpush3.bf16.msra.mxu0 %v15228_v5  ;;  %v7890_v5 = vrot.slane %v17405_v53, %v17857_v59 }
 0x658   : > { %13815 = vmatpush3.bf16.msra.mxu1 %v15229_v11  ;;  %13794 = vmatprep.subr.bf16.mxu0 %v15230_v14  ;;  %v15272_v11 = vld [vmem:[#allocation12 + $0x600] sm:$0xff]   ;;  %v7898_v14 = vrot.slane %v17405_v53, %v17858_v21 }
 0x659   : > { %13816 = vmatprep.subr.bf16.mxu1 %v15231_v22  ;;  %v7368_v22 = vpack.c.bf16 %v7347_v52, %v7347_v52  ;;  %v15308_v52 = vld [vmem:[#allocation12 + $0x708] sm:$0xff]  }
 0x65a   : > { %v7916_v46 = vpack.c.bf16 %v7898_v14, %v7898_v14  ;;  %v15314_v14 = vld [vmem:[#allocation12 + $0x758] sm:$0xff]  }
 0x65b   : > { %13795 = vmatpush3.bf16.msra.mxu0 %v15232_v61  ;;  %v15273_v61 = vld [vmem:[#allocation12 + $0x680] sm:$0xff]  }
 0x65c   : > { %13817 = vmatpush3.bf16.msra.mxu1 %v15233_v24  ;;  %13796 = vmatprep.subr.bf16.mxu0 %v15234_v18  ;;  %v7370_v24 = vpack.c.bf16 %v7355_v19, %v7355_v19  ;;  %v15274_v18 = vld [vmem:[#allocation12 + $0x648] sm:$0xff]   ;;  %v15310_v19 = vld [vmem:[#allocation12 + $0x750] sm:$0xff]  }
 0x65d   : > { %13818 = vmatprep.subr.bf16.mxu1 %v15235_v26  ;;  %v7914_v26 = vpack.c.bf16 %v7890_v5, %v7890_v5  ;;  %v15312_v5 = vld [vmem:[#allocation12 + $0x710] sm:$0xff]  }
 0x65f   : > { %13797 = vmatpush3.bf16.msra.mxu0 %v15236_v27  ;;  %v15275_v27 = vld [vmem:[#allocation12 + $0x6c8] sm:$0xff]  }
 0x660   : > { %13819 = vmatpush3.bf16.msra.mxu1 %v15237_v2  ;;  %13826 = vmatprep.subr.bf16.mxu0 %v15238_v28  ;;  %v15276_v2 = vld [vmem:[#allocation12 + $0x608] sm:$0xff]   ;;  %v15278_v28 = vld [vmem:[#allocation12 + $0x650] sm:$0xff]  }
 0x661   : > { %13848 = vmatprep.subr.bf16.mxu1 %v15239_v30  ;;  %v15280_v30 = vld [vmem:[#allocation12 + $0x610] sm:$0xff]  }
 0x662   : > { %7323 = vmatmul.mubr.bf16.vlgmr.msra.gmra.mrb[48].mxu0 %v6823_v58  ;;  %v15284_v58 = vld [vmem:[#allocation12 + $0x618] sm:$0xff]  }
 0x663   : > { %7790 = vmatmul.mubr.bf16.vlgmr.msra.gmra.mrb[60].mxu1 %v7366_v8  ;;  %13827 = vmatpush3.bf16.msra.mxu0 %v15240_v34  ;;  %v15282_v34 = vld [vmem:[#allocation12 + $0x658] sm:$0xff]   ;;  %v15286_v8 = vld [vmem:[#allocation12 + $0x660] sm:$0xff]  }
 0x664   : > { %7829 = vmatprep.mubr.bf16.mxu0 %v7369_v10  ;;  %13849 = vmatpush3.bf16.msra.mxu1 %v15241_v45  ;;  %v15285_v45 = vld [vmem:[#allocation12 + $0x698] sm:$0xff]   ;;  %v15288_v10 = vld [vmem:[#allocation12 + $0x620] sm:$0xff]  }
 0x665   : > { %7869 = vmatprep.mubr.bf16.mxu1 %v7371_v23  ;;  %13828 = vmatprep.subr.bf16.mxu0 %v15242_v37  ;;  %v15287_v37 = vld [vmem:[#allocation12 + $0x6e0] sm:$0xff]   ;;  %v15290_v23 = vld [vmem:[#allocation12 + $0x668] sm:$0xff]  }
 0x666   : > { %13850 = vmatprep.subr.bf16.mxu1 %v15243_v16  ;;  %v15289_v16 = vld [vmem:[#allocation12 + $0x6a0] sm:$0xff]  }
 0x667   : > { %13829 = vmatpush3.bf16.msra.mxu0 %v15244_v6  ;;  %v15291_v6 = vld [vmem:[#allocation12 + $0x6e8] sm:$0xff]  }
 0x668   : > { %13851 = vmatpush3.bf16.msra.mxu1 %v15245_v43  ;;  %13830 = vmatprep.subr.bf16.mxu0 %v15246_v9  ;;  %v15292_v43 = vld [vmem:[#allocation12 + $0x628] sm:$0xff]  }
 0x669   : > { %13852 = vmatprep.subr.bf16.mxu1 %v15247_v63  ;;  %v15293_v9 = vld [vmem:[#allocation12 + $0x6a8] sm:$0xff]   ;;  %v15294_v63 = vld [vmem:[#allocation12 + $0x670] sm:$0xff]  }
 0x66b   : > { %13831 = vmatpush3.bf16.msra.mxu0 %v15248_v48  ;;  %v15295_v48 = vld [vmem:[#allocation12 + $0x6f0] sm:$0xff]  }
 0x66c   : > { %13853 = vmatpush3.bf16.msra.mxu1 %v15249_v25  ;;  %13832 = vmatprep.subr.bf16.mxu0 %v15250_v56  ;;  %v15296_v25 = vld [vmem:[#allocation12 + $0x630] sm:$0xff]  }
 0x66d   : > { %13854 = vmatprep.subr.bf16.mxu1 %v15251_v60  ;;  %v15297_v56 = vld [vmem:[#allocation12 + $0x6b0] sm:$0xff]   ;;  %v15298_v60 = vld [vmem:[#allocation12 + $0x678] sm:$0xff]  }
 0x66f   : > { %13833 = vmatpush3.bf16.msra.mxu0 %v15252_v49  ;;  %v8427_v49 = vld [vmem:[#allocation3 + $0x5] ss:$8 sm:$0x30] }
 0x670   : > { %13855 = vmatpush3.bf16.msra.mxu1 %v15253_v17  ;;  %13834 = vmatprep.subr.bf16.mxu0 %v15254_v12  ;;  %v15299_v17 = vld [vmem:[#allocation12 + $0x6f8] sm:$0xff]  }
 0x671   : > { %13856 = vmatprep.subr.bf16.mxu1 %v15255_v1  ;;  %v8426_v12 = vld [vmem:[#allocation3 + $0x5] ss:$8 sm:$0xf] }
 0x672   : > { %v15300_v1 = vld [vmem:[#allocation12 + $0x638] sm:$0xff]  }
 0x673   : > { %13835 = vmatpush3.bf16.msra.mxu0 %v15256_v55  ;;  %v17415_v55 = vor.u32 %v8427_v49, %v8426_v12  ;;  %v7902_v49 = vrot.slane %v17405_v53, %v17862_v3 }
 0x674   : > { %13857 = vmatpush3.bf16.msra.mxu1 %v15257_v41  ;;  %13836 = vmatprep.subr.bf16.mxu0 %v15258_v47  ;;  %v15301_v41 = vld [vmem:[#allocation12 + $0x6b8] sm:$0xff]   ;;  %v7886_v47 = vrot.slane %v17405_v53, %v17859_v7 }
 0x675   : > { %13858 = vmatprep.subr.bf16.mxu1 %v15259_v33  ;;  %v15302_v33 = vld [vmem:[#allocation12 + $0x740] sm:$0xff]   ;;  %v8433_v12 = vrot.slane %v17415_v55, %v17859_v7 }
 0x676   : > { %v7913_v13 = vpack.c.bf16 %v7886_v47, %v7886_v47  ;;  %v15336_v47 = vld [vmem:[#allocation12 + $0x800] sm:$0xff]  }
 0x677   : > { %13837 = vmatpush3.bf16.msra.mxu0 %v15260_v20  ;;  %v7894_v20 = vrot.slane %v17405_v53, %v17860_v15 }
 0x678   : > { %13859 = vmatpush3.bf16.msra.mxu1 %v15261_v29  ;;  %13838 = vmatprep.subr.bf16.mxu0 %v15262_v35  ;;  %v15303_v29 = vld [vmem:[#allocation12 + $0x7c0] sm:$0xff]   ;;  %v7906_v35 = vrot.slane %v17405_v53, %v17861_v38  ;;  %v15338_v53 = vld [vmem:[#allocation12 + $0x848] sm:$0xff]  }
 0x679   : > { %13860 = vmatprep.subr.bf16.mxu1 %v15263_v40  ;;  %v15304_v40 = vld [vmem:[#allocation12 + $0x700] sm:$0xff]  }
 0x67a   : > { %v7918_v39 = vpack.c.bf16 %v7906_v35, %v7906_v35  ;;  %v8460_v35 = vpack.c.bf16 %v8433_v12, %v8433_v12 }
 0x67b   : > { %13839 = vmatpush3.bf16.msra.mxu0 %v15264_v50  ;;  %v8437_v50 = vrot.slane %v17415_v55, %v17857_v59 }
 0x67c   : > { %13861 = vmatpush3.bf16.msra.mxu1 %v15265_v51  ;;  %13840 = vmatprep.subr.bf16.mxu0 %v15266_v36  ;;  %v15305_v51 = vld [vmem:[#allocation12 + $0x780] sm:$0xff]   ;;  %v7915_v36 = vpack.c.bf16 %v7894_v20, %v7894_v20  ;;  %v7917_v20 = vpack.c.bf16 %v7902_v49, %v7902_v49 }
 0x67d   : > { %13862 = vmatprep.subr.bf16.mxu1 %v15267_v54  ;;  %v15306_v54 = vld [vmem:[#allocation12 + $0x748] sm:$0xff]   ;;  %v15366_v49 = vld [vmem:[#allocation12 + $0x940] sm:$0xff]  }
 0x67f   : > { %13841 = vmatpush3.bf16.msra.mxu0 %v15268_v62  ;;  %v15307_v62 = vld [vmem:[#allocation12 + $0x7c8] sm:$0xff]  }
 0x680   : > { %13863 = vmatpush3.bf16.msra.mxu1 %v15269_v0  ;;  %13870 = vmatprep.subr.bf16.mxu0 %v15270_v31  ;;  %v8461_v0 = vpack.c.bf16 %v8437_v50, %v8437_v50  ;;  %v15309_v31 = vld [vmem:[#allocation12 + $0x788] sm:$0xff]  }
 0x681   : > { %13892 = vmatprep.subr.bf16.mxu1 %v15271_v4  ;;  %v15311_v4 = vld [vmem:[#allocation12 + $0x7d0] sm:$0xff]   ;;  %v15339_v50 = vld [vmem:[#allocation12 + $0x8c8] sm:$0xff]  }
 0x682   : > { %7830 = vmatmul.mubr.bf16.vlgmr.msra.gmra.mrb[52].mxu0 %v7368_v22  ;;  %v15315_v22 = vld [vmem:[#allocation12 + $0x7d8] sm:$0xff]  }
 0x683   : > { %7870 = vmatmul.mubr.bf16.vlgmr.msra.gmra.mrb[64].mxu1 %v7370_v24  ;;  %13871 = vmatpush3.bf16.msra.mxu0 %v15272_v11  ;;  %v15313_v11 = vld [vmem:[#allocation12 + $0x790] sm:$0xff]   ;;  %v15317_v24 = vld [vmem:[#allocation12 + $0x798] sm:$0xff]  }
 0x684   : > { %8336 = vmatprep.mubr.bf16.mxu0 %v7914_v26  ;;  %13893 = vmatpush3.bf16.msra.mxu1 %v15273_v61  ;;  %v15316_v61 = vld [vmem:[#allocation12 + $0x718] sm:$0xff]   ;;  %v15319_v26 = vld [vmem:[#allocation12 + $0x7e0] sm:$0xff]  }
 0x685   : > { %8376 = vmatprep.mubr.bf16.mxu1 %v7916_v46  ;;  %13872 = vmatprep.subr.bf16.mxu0 %v15274_v18  ;;  %v15318_v18 = vld [vmem:[#allocation12 + $0x760] sm:$0xff]  }
 0x686   : > { %13894 = vmatprep.subr.bf16.mxu1 %v15275_v27  ;;  %v15320_v27 = vld [vmem:[#allocation12 + $0x720] sm:$0xff]  }
 0x687   : > { %13873 = vmatpush3.bf16.msra.mxu0 %v15276_v2  ;;  %v15321_v46 = vld [vmem:[#allocation12 + $0x7a0] sm:$0xff]   ;;  %v15322_v2 = vld [vmem:[#allocation12 + $0x768] sm:$0xff]  }
 0x688   : > { %13895 = vmatpush3.bf16.msra.mxu1 %v15277_v44  ;;  %13874 = vmatprep.subr.bf16.mxu0 %v15278_v28  ;;  %v15323_v44 = vld [vmem:[#allocation12 + $0x7e8] sm:$0xff]  }
 0x689   : > { %13896 = vmatprep.subr.bf16.mxu1 %v15279_v57  ;;  %v15324_v28 = vld [vmem:[#allocation12 + $0x728] sm:$0xff]  }
 0x68a   : > { %v15325_v57 = vld [vmem:[#allocation12 + $0x7a8] sm:$0xff]  }
 0x68b   : > { %13875 = vmatpush3.bf16.msra.mxu0 %v15280_v30  ;;  %v15326_v30 = vld [vmem:[#allocation12 + $0x770] sm:$0xff]  }
 0x68c   : > { %13897 = vmatpush3.bf16.msra.mxu1 %v15281_v32  ;;  %13876 = vmatprep.subr.bf16.mxu0 %v15282_v34 }
 0x68d   : > { %13898 = vmatprep.subr.bf16.mxu1 %v15283_v42  ;;  %v15327_v42 = vld [vmem:[#allocation12 + $0x7f0] sm:$0xff]  }
 0x68f   : > { %13877 = vmatpush3.bf16.msra.mxu0 %v15284_v58 }
 0x690   : > { %13899 = vmatpush3.bf16.msra.mxu1 %v15285_v45  ;;  %13878 = vmatprep.subr.bf16.mxu0 %v15286_v8 }
 0x691   : > { %13900 = vmatprep.subr.bf16.mxu1 %v15287_v37 }
 0x693   : > { %13879 = vmatpush3.bf16.msra.mxu0 %v15288_v10 }
 0x694   : > { %13901 = vmatpush3.bf16.msra.mxu1 %v15289_v16  ;;  %13880 = vmatprep.subr.bf16.mxu0 %v15290_v23  ;;  %v15328_v23 = vld [vmem:[#allocation12 + $0x730] sm:$0xff]  }
 0x695   : > { %13902 = vmatprep.subr.bf16.mxu1 %v15291_v6 }
 0x697   : > { %13881 = vmatpush3.bf16.msra.mxu0 %v15292_v43 }
 0x698   : > { %13903 = vmatpush3.bf16.msra.mxu1 %v15293_v9  ;;  %13882 = vmatprep.subr.bf16.mxu0 %v15294_v63  ;;  %v15329_v9 = vld [vmem:[#allocation12 + $0x7b0] sm:$0xff]   ;;  %v15330_v63 = vld [vmem:[#allocation12 + $0x778] sm:$0xff]  }
 0x699   : > { %13904 = vmatprep.subr.bf16.mxu1 %v15295_v48 }
 0x69b   : > { %13883 = vmatpush3.bf16.msra.mxu0 %v15296_v25  ;;  %v15331_v25 = vld [vmem:[#allocation12 + $0x7f8] sm:$0xff]  }
 0x69c   : > { %13905 = vmatpush3.bf16.msra.mxu1 %v15297_v56  ;;  %13884 = vmatprep.subr.bf16.mxu0 %v15298_v60  ;;  %v15332_v56 = vld [vmem:[#allocation12 + $0x738] sm:$0xff]  }
 0x69d   : > { %13906 = vmatprep.subr.bf16.mxu1 %v15299_v17  ;;  %v15333_v60 = vld [vmem:[#allocation12 + $0x7b8] sm:$0xff]   ;;  %v15334_v17 = vld [vmem:[#allocation12 + $0x840] sm:$0xff]  }
 0x69f   : > { %13885 = vmatpush3.bf16.msra.mxu0 %v15300_v1  ;;  %v15335_v1 = vld [vmem:[#allocation12 + $0x8c0] sm:$0xff]  }
 0x6a0   : > { %13907 = vmatpush3.bf16.msra.mxu1 %v15301_v41  ;;  %13914 = vmatprep.subr.bf16.mxu0 %v15302_v33  ;;  %v8445_v41 = vrot.slane %v17415_v55, %v17858_v21  ;;  %v8453_v33 = vrot.slane %v17415_v55, %v17861_v38 }
 0x6a1   : > { %13936 = vmatprep.subr.bf16.mxu1 %v15303_v29  ;;  %v15337_v29 = vld [vmem:[#allocation12 + $0x880] sm:$0xff]  }
 0x6a2   : > { %8337 = vmatmul.mubr.bf16.vlgmr.msra.gmra.mrb[56].mxu0 %v7913_v13  ;;  %v8465_v13 = vpack.c.bf16 %v8453_v33, %v8453_v33  ;;  %v15369_v33 = vld [vmem:[#allocation12 + $0x980] sm:$0xff]  }
 0x6a3   : > { %8377 = vmatmul.mubr.bf16.vlgmr.msra.gmra.mrb[68].mxu1 %v7915_v36  ;;  %13915 = vmatpush3.bf16.msra.mxu0 %v15304_v40  ;;  %v8463_v40 = vpack.c.bf16 %v8445_v41, %v8445_v41  ;;  %v15341_v36 = vld [vmem:[#allocation12 + $0x888] sm:$0xff]  }
 0x6a4   : > { %8416 = vmatprep.mubr.bf16.mxu0 %v7918_v39  ;;  %13937 = vmatpush3.bf16.msra.mxu1 %v15305_v51  ;;  %v15340_v51 = vld [vmem:[#allocation12 + $0x808] sm:$0xff]   ;;  %v15343_v39 = vld [vmem:[#allocation12 + $0x8d0] sm:$0xff]  }
 0x6a5   : > { %8883 = vmatprep.mubr.bf16.mxu1 %v8461_v0  ;;  %13916 = vmatprep.subr.bf16.mxu0 %v15306_v54  ;;  %v15342_v54 = vld [vmem:[#allocation12 + $0x850] sm:$0xff]  }
 0x6a6   : > { %13938 = vmatprep.subr.bf16.mxu1 %v15307_v62  ;;  %v15344_v62 = vld [vmem:[#allocation12 + $0x810] sm:$0xff]  }
 0x6a7   : > { %13917 = vmatpush3.bf16.msra.mxu0 %v15308_v52  ;;  %v15345_v0 = vld [vmem:[#allocation12 + $0x890] sm:$0xff]   ;;  %v15346_v52 = vld [vmem:[#allocation12 + $0x858] sm:$0xff]  }
 0x6a8   : > { %13939 = vmatpush3.bf16.msra.mxu1 %v15309_v31  ;;  %13918 = vmatprep.subr.bf16.mxu0 %v15310_v19  ;;  %v15347_v31 = vld [vmem:[#allocation12 + $0x8d8] sm:$0xff]  }
 0x6a9   : > { %13940 = vmatprep.subr.bf16.mxu1 %v15311_v4  ;;  %v15348_v19 = vld [vmem:[#allocation12 + $0x818] sm:$0xff]  }
 0x6aa   : > { %v15349_v4 = vld [vmem:[#allocation12 + $0x898] sm:$0xff]  }
 0x6ab   : > { %13919 = vmatpush3.bf16.msra.mxu0 %v15312_v5  ;;  %v15350_v5 = vld [vmem:[#allocation12 + $0x860] sm:$0xff]  }
 0x6ac   : > { %13941 = vmatpush3.bf16.msra.mxu1 %v15313_v11  ;;  %13920 = vmatprep.subr.bf16.mxu0 %v15314_v14  ;;  %v15351_v11 = vld [vmem:[#allocation12 + $0x8e0] sm:$0xff]  }
 0x6ad   : > { %13942 = vmatprep.subr.bf16.mxu1 %v15315_v22  ;;  %v15352_v14 = vld [vmem:[#allocation12 + $0x820] sm:$0xff]  }
 0x6ae   : > { %v15353_v22 = vld [vmem:[#allocation12 + $0x8a0] sm:$0xff]  }
 0x6af   : > { %13921 = vmatpush3.bf16.msra.mxu0 %v15316_v61  ;;  %v15354_v61 = vld [vmem:[#allocation12 + $0x868] sm:$0xff]  }
 0x6b0   : > { %13943 = vmatpush3.bf16.msra.mxu1 %v15317_v24  ;;  %13922 = vmatprep.subr.bf16.mxu0 %v15318_v18  ;;  %v15355_v24 = vld [vmem:[#allocation12 + $0x8e8] sm:$0xff]  }
 0x6b1   : > { %13944 = vmatprep.subr.bf16.mxu1 %v15319_v26  ;;  %v15356_v18 = vld [vmem:[#allocation12 + $0x828] sm:$0xff]  }
 0x6b2   : > { %v15357_v26 = vld [vmem:[#allocation12 + $0x8a8] sm:$0xff]  }
 0x6b3   : > { %13923 = vmatpush3.bf16.msra.mxu0 %v15320_v27  ;;  %v15358_v27 = vld [vmem:[#allocation12 + $0x870] sm:$0xff]  }
 0x6b4   : > { %13945 = vmatpush3.bf16.msra.mxu1 %v15321_v46  ;;  %13924 = vmatprep.subr.bf16.mxu0 %v15322_v2 }
 0x6b5   : > { %v13622_v32 = vpop.f32.mrb[32].mxu0  ;;  %v13644_v34 = vpop.f32.mrb[44].mxu1  ;;  %13946 = vmatprep.subr.bf16.mxu1 %v15323_v44  ;;  %v15359_v44 = vld [vmem:[#allocation12 + $0x8f0] sm:$0xff]  }
 0x6b6   : > { %v13623_v58 = vpop.f32.mrb[33].mxu0  ;;  %v13645_v45 = vpop.f32.mrb[45].mxu1 }
 0x6b7   : > { %v13624_v8 = vadd.f32 %v13623_v58, %v13622_v32  ;;  %v13646_v37 = vadd.f32 %v13645_v45, %v13644_v34  ;;  %13925 = vmatpush3.bf16.msra.mxu0 %v15324_v28  ;;  %v13625_v10 = vpop.f32.mrb[34].mxu0  ;;  %v13647_v16 = vpop.f32.mrb[46].mxu1  ;;  %v15360_v58 = vld [vmem:[#allocation12 + $0x830] sm:$0xff]  }
 0x6b8   : > { %13947 = vmatpush3.bf16.msra.mxu1 %v15325_v57  ;;  %v13626_v6 = vpop.f32.mrb[35].mxu0  ;;  %v13648_v43 = vpop.f32.mrb[47].mxu1  ;;  %13926 = vmatprep.subr.bf16.mxu0 %v15326_v30  ;;  %v8974_v45 = vld [vmem:[#allocation3 + $0x6] ss:$8 sm:$0x30]  ;;  %v15362_v16 = vld [vmem:[#allocation12 + $0x878] sm:$0xff]  }
 0x6b9   : > { %v17425_v48 = vadd.f32 %v13646_v37, %v13624_v8  ;;  %13948 = vmatprep.subr.bf16.mxu1 %v15327_v42  ;;  %v15361_v10 = vld [vmem:[#allocation12 + $0x8b0] sm:$0xff]   ;;  %v15363_v6 = vld [vmem:[#allocation12 + $0x8f8] sm:$0xff]  }
 0x6ba   : > { %v8973_v43 = vld [vmem:[#allocation3 + $0x6] ss:$8 sm:$0xf] }
 0x6bb   : > { %13927 = vmatpush3.bf16.msra.mxu0 %v15328_v23 }
 0x6bc   : > { %13949 = vmatpush3.bf16.msra.mxu1 %v15329_v9  ;;  %13928 = vmatprep.subr.bf16.mxu0 %v15330_v63  ;;  %v17436_v9 = vor.u32 %v8974_v45, %v8973_v43  ;;  %v15394_v45 = vld [vmem:[#allocation12 + $0x978] sm:$0xff]  }
 0x6bd   : > { %13950 = vmatprep.subr.bf16.mxu1 %v15331_v25  ;;  %v15364_v25 = vld [vmem:[#allocation12 + $0x838] sm:$0xff]  }
 0x6be   : > { %v8984_v12 = vrot.slane %v17436_v9, %v17857_v59  ;;  %v8992_v41 = vrot.slane %v17436_v9, %v17858_v21 }
 0x6bf   : > { %13929 = vmatpush3.bf16.msra.mxu0 %v15332_v56  ;;  %v15365_v56 = vld [vmem:[#allocation12 + $0x8b8] sm:$0xff]  }
 0x6c0   : > { %13951 = vmatpush3.bf16.msra.mxu1 %v15333_v60  ;;  %13958 = vmatprep.subr.bf16.mxu0 %v15334_v17  ;;  %v8441_v60 = vrot.slane %v17415_v55, %v17860_v15  ;;  %v15367_v17 = vld [vmem:[#allocation12 + $0x9c0] sm:$0xff]  }
 0x6c1   : > { %13980 = vmatprep.subr.bf16.mxu1 %v15335_v1  ;;  %v15368_v1 = vld [vmem:[#allocation12 + $0x900] sm:$0xff]  }
 0x6c2   : > { %8417 = vmatmul.mubr.bf16.vlgmr.msra.gmra.mrb[60].mxu0 %v7917_v20 }
 0x6c3   : > { %8884 = vmatmul.mubr.bf16.vlgmr.msra.gmra.mrb[72].mxu1 %v8460_v35  ;;  %13959 = vmatpush3.bf16.msra.mxu0 %v15336_v47  ;;  %v8462_v47 = vpack.c.bf16 %v8441_v60, %v8441_v60  ;;  %v9008_v35 = vpack.c.bf16 %v8984_v12, %v8984_v12  ;;  %v15398_v60 = vld [vmem:[#allocation12 + $0xa40] sm:$0xff]  }
 0x6c4   : > { %8923 = vmatprep.mubr.bf16.mxu0 %v8463_v40  ;;  %13981 = vmatpush3.bf16.msra.mxu1 %v15337_v29  ;;  %v15370_v29 = vld [vmem:[#allocation12 + $0x948] sm:$0xff]  }
 0x6c5   : > { %8963 = vmatprep.mubr.bf16.mxu1 %v8465_v13  ;;  %13960 = vmatprep.subr.bf16.mxu0 %v15338_v53  ;;  %v15371_v53 = vld [vmem:[#allocation12 + $0x9c8] sm:$0xff]   ;;  %v15374_v13 = vld [vmem:[#allocation12 + $0x950] sm:$0xff]  }
 0x6c6   : > { %13982 = vmatprep.subr.bf16.mxu1 %v15339_v50  ;;  %v15372_v40 = vld [vmem:[#allocation12 + $0x908] sm:$0xff]  }
 0x6c7   : > { %13961 = vmatpush3.bf16.msra.mxu0 %v15340_v51  ;;  %v15373_v50 = vld [vmem:[#allocation12 + $0x988] sm:$0xff]   ;;  %v15375_v51 = vld [vmem:[#allocation12 + $0x9d0] sm:$0xff]  }
 0x6c8   : > { %13983 = vmatpush3.bf16.msra.mxu1 %v15341_v36  ;;  %13962 = vmatprep.subr.bf16.mxu0 %v15342_v54  ;;  %v15376_v36 = vld [vmem:[#allocation12 + $0x910] sm:$0xff]  }
 0x6c9   : > { %13984 = vmatprep.subr.bf16.mxu1 %v15343_v39  ;;  %v15377_v54 = vld [vmem:[#allocation12 + $0x990] sm:$0xff]   ;;  %v15378_v39 = vld [vmem:[#allocation12 + $0x958] sm:$0xff]  }
 0x6cb   : > { %13963 = vmatpush3.bf16.msra.mxu0 %v15344_v62  ;;  %v15379_v62 = vld [vmem:[#allocation12 + $0x9d8] sm:$0xff]  }
 0x6cc   : > { %13985 = vmatpush3.bf16.msra.mxu1 %v15345_v0  ;;  %13964 = vmatprep.subr.bf16.mxu0 %v15346_v52  ;;  %v15380_v0 = vld [vmem:[#allocation12 + $0x918] sm:$0xff]  }
 0x6cd   : > { %13986 = vmatprep.subr.bf16.mxu1 %v15347_v31  ;;  %v15381_v52 = vld [vmem:[#allocation12 + $0x998] sm:$0xff]   ;;  %v15382_v31 = vld [vmem:[#allocation12 + $0x960] sm:$0xff]  }
 0x6cf   : > { %13965 = vmatpush3.bf16.msra.mxu0 %v15348_v19  ;;  %v15383_v19 = vld [vmem:[#allocation12 + $0x9e0] sm:$0xff]  }
 0x6d0   : > { %13987 = vmatpush3.bf16.msra.mxu1 %v15349_v4  ;;  %13966 = vmatprep.subr.bf16.mxu0 %v15350_v5  ;;  %v15384_v4 = vld [vmem:[#allocation12 + $0x920] sm:$0xff]  }
 0x6d1   : > { %13988 = vmatprep.subr.bf16.mxu1 %v15351_v11  ;;  %v15385_v5 = vld [vmem:[#allocation12 + $0x9a0] sm:$0xff]   ;;  %v15386_v11 = vld [vmem:[#allocation12 + $0x968] sm:$0xff]  }
 0x6d3   : > { %13967 = vmatpush3.bf16.msra.mxu0 %v15352_v14  ;;  %v15387_v14 = vld [vmem:[#allocation12 + $0x9e8] sm:$0xff]  }
 0x6d4   : > { %13989 = vmatpush3.bf16.msra.mxu1 %v15353_v22  ;;  %13968 = vmatprep.subr.bf16.mxu0 %v15354_v61  ;;  %v15388_v22 = vld [vmem:[#allocation12 + $0x928] sm:$0xff]  }
 0x6d5   : > { %v13666_v46 = vpop.f32.mrb[36].mxu0  ;;  %v13688_v2 = vpop.f32.mrb[48].mxu1  ;;  %13990 = vmatprep.subr.bf16.mxu1 %v15355_v24  ;;  %v15389_v61 = vld [vmem:[#allocation12 + $0x9a8] sm:$0xff]   ;;  %v15390_v24 = vld [vmem:[#allocation12 + $0x970] sm:$0xff]  }
 0x6d6   : > { %v13667_v28 = vpop.f32.mrb[37].mxu0  ;;  %v13689_v57 = vpop.f32.mrb[49].mxu1 }
 0x6d7   : > { %v13668_v30 = vadd.f32 %v13667_v28, %v13666_v46  ;;  %v13690_v32 = vadd.f32 %v13689_v57, %v13688_v2  ;;  %v13669_v34 = vpop.f32.mrb[38].mxu0  ;;  %v13691_v42 = vpop.f32.mrb[50].mxu1  ;;  %13969 = vmatpush3.bf16.msra.mxu0 %v15356_v18  ;;  %v15392_v57 = vld [vmem:[#allocation12 + $0x930] sm:$0xff]  }
 0x6d8   : > { %13991 = vmatpush3.bf16.msra.mxu1 %v15357_v26  ;;  %v13670_v8 = vpop.f32.mrb[39].mxu0  ;;  %v13692_v37 = vpop.f32.mrb[51].mxu1  ;;  %13970 = vmatprep.subr.bf16.mxu0 %v15358_v27  ;;  %v15391_v26 = vld [vmem:[#allocation12 + $0x9f0] sm:$0xff]  }
 0x6d9   : > { %v6371_v23 = vadd.f32 %v13668_v30, %v17425_v48  ;;  %13992 = vmatprep.subr.bf16.mxu1 %v15359_v44  ;;  %v8449_v48 = vrot.slane %v17415_v55, %v17862_v3  ;;  %v9010_v55 = vpack.c.bf16 %v8992_v41, %v8992_v41  ;;  %v9521_v30 = vld [vmem:[#allocation3 + $0x7] ss:$8 sm:$0x30]  ;;  %v15401_v41 = vld [vmem:[#allocation12 + $0xa80] sm:$0xff]  }
 0x6db   : > { %v17438_v63 = vadd.f32 %v13690_v32, %v6371_v23  ;;  %13971 = vmatpush3.bf16.msra.mxu0 %v15360_v58  ;;  %v8464_v20 = vpack.c.bf16 %v8449_v48, %v8449_v48  ;;  %v15393_v58 = vld [vmem:[#allocation12 + $0x9b0] sm:$0xff]   ;;  %v9000_v48 = vrot.slane %v17436_v9, %v17861_v38 }
 0x6dc   : > { %13993 = vmatpush3.bf16.msra.mxu1 %v15361_v10  ;;  %13972 = vmatprep.subr.bf16.mxu0 %v15362_v16  ;;  %v15395_v10 = vld [vmem:[#allocation12 + $0x9f8] sm:$0xff]  }
 0x6dd   : > { %13994 = vmatprep.subr.bf16.mxu1 %v15363_v6  ;;  %v9520_v16 = vld [vmem:[#allocation3 + $0x7] ss:$8 sm:$0xf] }
 0x6de   : > { %v15396_v6 = vld [vmem:[#allocation12 + $0x938] sm:$0xff]   ;;  %v17451_v43 = vor.u32 %v9521_v30, %v9520_v16  ;;  %v15430_v16 = vld [vmem:[#allocation12 + $0xb40] sm:$0xff]  }
 0x6df   : > { %13973 = vmatpush3.bf16.msra.mxu0 %v15364_v25  ;;  %v15397_v25 = vld [vmem:[#allocation12 + $0x9b8] sm:$0xff]  }
 0x6e0   : > { %13995 = vmatpush3.bf16.msra.mxu1 %v15365_v56  ;;  %14002 = vmatprep.subr.bf16.mxu0 %v15366_v49  ;;  %v8980_v56 = vrot.slane %v17436_v9, %v17859_v7  ;;  %v15399_v49 = vld [vmem:[#allocation12 + $0xac0] sm:$0xff]   ;;  %v9531_v12 = vrot.slane %v17451_v43, %v17857_v59 }
 0x6e1   : > { %14024 = vmatprep.subr.bf16.mxu1 %v15367_v17  ;;  %v15400_v17 = vld [vmem:[#allocation12 + $0xa00] sm:$0xff]  }
 0x6e2   : > { %8924 = vmatmul.mubr.bf16.vlgmr.msra.gmra.mrb[64].mxu0 %v8462_v47 }
 0x6e3   : > { %8964 = vmatmul.mubr.bf16.vlgmr.msra.gmra.mrb[76].mxu1 %v8464_v20  ;;  %14003 = vmatpush3.bf16.msra.mxu0 %v15368_v1  ;;  %v9007_v1 = vpack.c.bf16 %v8980_v56, %v8980_v56  ;;  %v9012_v20 = vpack.c.bf16 %v9000_v48, %v9000_v48  ;;  %v9539_v56 = vrot.slane %v17451_v43, %v17858_v21  ;;  %v15433_v48 = vld [vmem:[#allocation12 + $0xb80] sm:$0xff]  }
 0x6e4   : > { %9430 = vmatprep.mubr.bf16.mxu0 %v9008_v35  ;;  %14025 = vmatpush3.bf16.msra.mxu1 %v15369_v33  ;;  %v15402_v33 = vld [vmem:[#allocation12 + $0xa48] sm:$0xff]   ;;  %v9555_v35 = vpack.c.bf16 %v9531_v12, %v9531_v12 }
 0x6e5   : > { %9470 = vmatprep.mubr.bf16.mxu1 %v9010_v55  ;;  %14004 = vmatprep.subr.bf16.mxu0 %v15370_v29  ;;  %v15403_v29 = vld [vmem:[#allocation12 + $0xac8] sm:$0xff]   ;;  %v9557_v12 = vpack.c.bf16 %v9539_v56, %v9539_v56 }
 0x6e6   : > { %14026 = vmatprep.subr.bf16.mxu1 %v15371_v53  ;;  %v15404_v53 = vld [vmem:[#allocation12 + $0xa08] sm:$0xff]  }
 0x6e7   : > { %14005 = vmatpush3.bf16.msra.mxu0 %v15372_v40  ;;  %v15405_v55 = vld [vmem:[#allocation12 + $0xa88] sm:$0xff]   ;;  %v15406_v40 = vld [vmem:[#allocation12 + $0xa50] sm:$0xff]  }
 0x6e8   : > { %14027 = vmatpush3.bf16.msra.mxu1 %v15373_v50  ;;  %14006 = vmatprep.subr.bf16.mxu0 %v15374_v13  ;;  %v15407_v50 = vld [vmem:[#allocation12 + $0xad0] sm:$0xff]  }
 0x6e9   : > { %14028 = vmatprep.subr.bf16.mxu1 %v15375_v51  ;;  %v15408_v13 = vld [vmem:[#allocation12 + $0xa10] sm:$0xff]  }
 0x6ea   : > { %v15409_v51 = vld [vmem:[#allocation12 + $0xa90] sm:$0xff]  }
 0x6eb   : > { %14007 = vmatpush3.bf16.msra.mxu0 %v15376_v36  ;;  %v15410_v36 = vld [vmem:[#allocation12 + $0xa58] sm:$0xff]  }
 0x6ec   : > { %14029 = vmatpush3.bf16.msra.mxu1 %v15377_v54  ;;  %14008 = vmatprep.subr.bf16.mxu0 %v15378_v39  ;;  %v15411_v54 = vld [vmem:[#allocation12 + $0xad8] sm:$0xff]  }
 0x6ed   : > { %14030 = vmatprep.subr.bf16.mxu1 %v15379_v62  ;;  %v15412_v39 = vld [vmem:[#allocation12 + $0xa18] sm:$0xff]  }
 0x6ee   : > { %v15413_v62 = vld [vmem:[#allocation12 + $0xa98] sm:$0xff]  }
 0x6ef   : > { %14009 = vmatpush3.bf16.msra.mxu0 %v15380_v0  ;;  %v15414_v0 = vld [vmem:[#allocation12 + $0xa60] sm:$0xff]  }
 0x6f0   : > { %14031 = vmatpush3.bf16.msra.mxu1 %v15381_v52  ;;  %14010 = vmatprep.subr.bf16.mxu0 %v15382_v31  ;;  %v15415_v52 = vld [vmem:[#allocation12 + $0xae0] sm:$0xff]  }
 0x6f1   : > { %14032 = vmatprep.subr.bf16.mxu1 %v15383_v19  ;;  %v15416_v31 = vld [vmem:[#allocation12 + $0xa20] sm:$0xff]  }
 0x6f2   : > { %v15417_v19 = vld [vmem:[#allocation12 + $0xaa0] sm:$0xff]  }
 0x6f3   : > { %14011 = vmatpush3.bf16.msra.mxu0 %v15384_v4  ;;  %v15418_v4 = vld [vmem:[#allocation12 + $0xa68] sm:$0xff]  }
 0x6f4   : > { %14033 = vmatpush3.bf16.msra.mxu1 %v15385_v5  ;;  %14012 = vmatprep.subr.bf16.mxu0 %v15386_v11  ;;  %v15419_v5 = vld [vmem:[#allocation12 + $0xae8] sm:$0xff]  }
 0x6f5   : > { %v13710_v18 = vpop.f32.mrb[40].mxu0  ;;  %14034 = vmatprep.subr.bf16.mxu1 %v15387_v14  ;;  %v15420_v11 = vld [vmem:[#allocation12 + $0xa28] sm:$0xff]  }
 0x6f6   : > { %v13732_v27 = vpop.f32.mrb[52].mxu1  ;;  %v13711_v46 = vpop.f32.mrb[41].mxu0  ;;  %v15421_v14 = vld [vmem:[#allocation12 + $0xaa8] sm:$0xff]  }
 0x6f7   : > { %v13712_v2 = vadd.f32 %v13711_v46, %v13710_v18  ;;  %v13733_v44 = vpop.f32.mrb[53].mxu1  ;;  %v13713_v28 = vpop.f32.mrb[42].mxu0  ;;  %14013 = vmatpush3.bf16.msra.mxu0 %v15388_v22  ;;  %v15422_v22 = vld [vmem:[#allocation12 + $0xa70] sm:$0xff]  }
 0x6f8   : > { %v13734_v32 = vadd.f32 %v13733_v44, %v13732_v27  ;;  %v13735_v34 = vpop.f32.mrb[54].mxu1  ;;  %14035 = vmatpush3.bf16.msra.mxu1 %v15389_v61  ;;  %v13714_v42 = vpop.f32.mrb[43].mxu0  ;;  %14014 = vmatprep.subr.bf16.mxu0 %v15390_v24  ;;  %v15423_v24 = vld [vmem:[#allocation12 + $0xaf0] sm:$0xff]  }
 0x6f9   : > { %v6739_v8 = vadd.f32 %v13712_v2, %v17438_v63  ;;  %v13736_v37 = vpop.f32.mrb[55].mxu1  ;;  %14036 = vmatprep.subr.bf16.mxu1 %v15391_v26  ;;  %v8988_v63 = vrot.slane %v17436_v9, %v17860_v15  ;;  %v15424_v44 = vld [vmem:[#allocation12 + $0xa30] sm:$0xff]   ;;  %v15426_v34 = vld [vmem:[#allocation12 + $0xa78] sm:$0xff]  }
 0x6fa   : > { %v15429_v37 = vld [vmem:[#allocation12 + $0xab8] sm:$0xff]  }
 0x6fb   : > { %v17449_v23 = vadd.f32 %v13734_v32, %v6739_v8  ;;  %14015 = vmatpush3.bf16.msra.mxu0 %v15392_v57  ;;  %v9009_v47 = vpack.c.bf16 %v8988_v63, %v8988_v63  ;;  %v15425_v32 = vld [vmem:[#allocation12 + $0xab0] sm:$0xff]   ;;  %v15428_v8 = vld [vmem:[#allocation12 + $0xa38] sm:$0xff]   ;;  %v9547_v63 = vrot.slane %v17451_v43, %v17861_v38 }
 0x6fc   : > { %14037 = vmatpush3.bf16.msra.mxu1 %v15393_v58  ;;  %14016 = vmatprep.subr.bf16.mxu0 %v15394_v45  ;;  %v15427_v58 = vld [vmem:[#allocation12 + $0xaf8] sm:$0xff]  }
 0x6fd   : > { %14038 = vmatprep.subr.bf16.mxu1 %v15395_v10  ;;  %v8996_v10 = vrot.slane %v17436_v9, %v17862_v3  ;;  %v15434_v9 = vld [vmem:[#allocation12 + $0xb48] sm:$0xff]  }
 0x6ff   : > { %14017 = vmatpush3.bf16.msra.mxu0 %v15396_v6  ;;  %v9527_v6 = vrot.slane %v17451_v43, %v17859_v7 }
 0x700   : > { %14039 = vmatpush3.bf16.msra.mxu1 %v15397_v25  ;;  %14046 = vmatprep.subr.bf16.mxu0 %v15398_v60  ;;  %v15431_v25 = vld [vmem:[#allocation12 + $0xbc0] sm:$0xff]  }
 0x701   : > { %14068 = vmatprep.subr.bf16.mxu1 %v15399_v49  ;;  %v15432_v60 = vld [vmem:[#allocation12 + $0xb00] sm:$0xff]   ;;  %v9011_v49 = vpack.c.bf16 %v8996_v10, %v8996_v10  ;;  %v9535_v10 = vrot.slane %v17451_v43, %v17860_v15 }
 0x702   : > { %9431 = vmatmul.mubr.bf16.vlgmr.msra.gmra.mrb[68].mxu0 %v9007_v1  ;;  %v15435_v1 = vld [vmem:[#allocation12 + $0xbc8] sm:$0xff]  }
 0x703   : > { %9471 = vmatmul.mubr.bf16.vlgmr.msra.gmra.mrb[80].mxu1 %v9009_v47  ;;  %14047 = vmatpush3.bf16.msra.mxu0 %v15400_v17  ;;  %v9554_v17 = vpack.c.bf16 %v9527_v6, %v9527_v6  ;;  %v15436_v47 = vld [vmem:[#allocation12 + $0xb08] sm:$0xff]   ;;  %v15463_v6 = vld [vmem:[#allocation12 + $0xcc0] sm:$0xff]  }
 0x704   : > { %9510 = vmatprep.mubr.bf16.mxu0 %v9012_v20  ;;  %14069 = vmatpush3.bf16.msra.mxu1 %v15401_v41  ;;  %v9559_v41 = vpack.c.bf16 %v9547_v63, %v9547_v63  ;;  %v15438_v20 = vld [vmem:[#allocation12 + $0xb50] sm:$0xff]   ;;  %v15465_v63 = vld [vmem:[#allocation12 + $0xc80] sm:$0xff]  }
 0x705   : > { %9977 = vmatprep.mubr.bf16.mxu1 %v9555_v35  ;;  %14048 = vmatprep.subr.bf16.mxu0 %v15402_v33  ;;  %v15437_v33 = vld [vmem:[#allocation12 + $0xb88] sm:$0xff]   ;;  %v15440_v35 = vld [vmem:[#allocation12 + $0xb10] sm:$0xff]  }
 0x706   : > { %14070 = vmatprep.subr.bf16.mxu1 %v15403_v29  ;;  %v15439_v29 = vld [vmem:[#allocation12 + $0xbd0] sm:$0xff]  }
 0x707   : > { %14049 = vmatpush3.bf16.msra.mxu0 %v15404_v53  ;;  %v15441_v53 = vld [vmem:[#allocation12 + $0xb90] sm:$0xff]  }
 0x708   : > { %14071 = vmatpush3.bf16.msra.mxu1 %v15405_v55  ;;  %14050 = vmatprep.subr.bf16.mxu0 %v15406_v40  ;;  %v15442_v55 = vld [vmem:[#allocation12 + $0xb58] sm:$0xff]  }
 0x709   : > { %14072 = vmatprep.subr.bf16.mxu1 %v15407_v50  ;;  %v15443_v40 = vld [vmem:[#allocation12 + $0xbd8] sm:$0xff]  }
 0x70a   : > { %v15444_v50 = vld [vmem:[#allocation12 + $0xb18] sm:$0xff]  }
 0x70b   : > { %14051 = vmatpush3.bf16.msra.mxu0 %v15408_v13  ;;  %v15445_v13 = vld [vmem:[#allocation12 + $0xb98] sm:$0xff]  }
 0x70c   : > { %14073 = vmatpush3.bf16.msra.mxu1 %v15409_v51  ;;  %14052 = vmatprep.subr.bf16.mxu0 %v15410_v36  ;;  %v15446_v51 = vld [vmem:[#allocation12 + $0xb60] sm:$0xff]  }
 0x70d   : > { %14074 = vmatprep.subr.bf16.mxu1 %v15411_v54  ;;  %v15447_v36 = vld [vmem:[#allocation12 + $0xbe0] sm:$0xff]  }
 0x70e   : > { %v15448_v54 = vld [vmem:[#allocation12 + $0xb20] sm:$0xff]  }
 0x70f   : > { %14053 = vmatpush3.bf16.msra.mxu0 %v15412_v39  ;;  %v15449_v39 = vld [vmem:[#allocation12 + $0xba0] sm:$0xff]  }
 0x710   : > { %14075 = vmatpush3.bf16.msra.mxu1 %v15413_v62  ;;  %14054 = vmatprep.subr.bf16.mxu0 %v15414_v0  ;;  %v15450_v62 = vld [vmem:[#allocation12 + $0xb68] sm:$0xff]  }
 0x711   : > { %14076 = vmatprep.subr.bf16.mxu1 %v15415_v52  ;;  %v15451_v0 = vld [vmem:[#allocation12 + $0xbe8] sm:$0xff]  }
 0x712   : > { %v15452_v52 = vld [vmem:[#allocation12 + $0xb28] sm:$0xff]  }
 0x713   : > { %14055 = vmatpush3.bf16.msra.mxu0 %v15416_v31  ;;  %v15453_v31 = vld [vmem:[#allocation12 + $0xba8] sm:$0xff]  }
 0x714   : > { %14077 = vmatpush3.bf16.msra.mxu1 %v15417_v19  ;;  %14056 = vmatprep.subr.bf16.mxu0 %v15418_v4  ;;  %v15454_v19 = vld [vmem:[#allocation12 + $0xb70] sm:$0xff]  }
 0x715   : > { %v13754_v61 = vpop.f32.mrb[44].mxu0  ;;  %14078 = vmatprep.subr.bf16.mxu1 %v15419_v5  ;;  %v15455_v5 = vld [vmem:[#allocation12 + $0xbf0] sm:$0xff]  }
 0x716   : > { %v13776_v18 = vpop.f32.mrb[56].mxu1  ;;  %v13755_v26 = vpop.f32.mrb[45].mxu0 }
 0x717   : > { %v13756_v27 = vadd.f32 %v13755_v26, %v13754_v61  ;;  %v13777_v46 = vpop.f32.mrb[57].mxu1  ;;  %v13757_v2 = vpop.f32.mrb[46].mxu0  ;;  %14057 = vmatpush3.bf16.msra.mxu0 %v15420_v11  ;;  %v10068_v26 = vld [vmem:[#allocation3 + $0x30] ss:$8 sm:$0x30] }
 0x718   : > { %v13778_v28 = vadd.f32 %v13777_v46, %v13776_v18  ;;  %v13779_v57 = vpop.f32.mrb[58].mxu1  ;;  %14079 = vmatpush3.bf16.msra.mxu1 %v15421_v14  ;;  %v13758_v30 = vpop.f32.mrb[47].mxu0  ;;  %14058 = vmatprep.subr.bf16.mxu0 %v15422_v22  ;;  %v15456_v18 = vld [vmem:[#allocation12 + $0xb30] sm:$0xff]  }
 0x719   : > { %v13780_v42 = vpop.f32.mrb[59].mxu1  ;;  %14080 = vmatprep.subr.bf16.mxu1 %v15423_v24 }
 0x71a   : > { %v17461_v45 = vadd.f32 %v13778_v28, %v13756_v27  ;;  %v15458_v28 = vld [vmem:[#allocation12 + $0xb78] sm:$0xff]  }
 0x71b   : > { %14059 = vmatpush3.bf16.msra.mxu0 %v15424_v44  ;;  %v15457_v44 = vld [vmem:[#allocation12 + $0xbb0] sm:$0xff]  }
 0x71c   : > { %14081 = vmatpush3.bf16.msra.mxu1 %v15425_v32  ;;  %14060 = vmatprep.subr.bf16.mxu0 %v15426_v34  ;;  %v15459_v32 = vld [vmem:[#allocation12 + $0xbf8] sm:$0xff]  }
 0x71d   : > { %14082 = vmatprep.subr.bf16.mxu1 %v15427_v58  ;;  %v10067_v34 = vld [vmem:[#allocation3 + $0x30] ss:$8 sm:$0xf] }
 0x71e   : > { %v17474_v42 = vor.u32 %v10068_v26, %v10067_v34  ;;  %v15492_v34 = vld [vmem:[#allocation12 + $0xc38] sm:$0xff]  }
 0x71f   : > { %14061 = vmatpush3.bf16.msra.mxu0 %v15428_v8  ;;  %v15460_v8 = vld [vmem:[#allocation12 + $0xb38] sm:$0xff]  }
 0x720   : > { %14083 = vmatpush3.bf16.msra.mxu1 %v15429_v37  ;;  %14090 = vmatprep.subr.bf16.mxu0 %v15430_v16  ;;  %v15461_v37 = vld [vmem:[#allocation12 + $0xbb8] sm:$0xff]   ;;  %v15462_v16 = vld [vmem:[#allocation12 + $0xc40] sm:$0xff]   ;;  %v10086_v56 = vrot.slane %v17474_v42, %v17858_v21 }
 0x721   : > { %14112 = vmatprep.subr.bf16.mxu1 %v15431_v25  ;;  %v10078_v25 = vrot.slane %v17474_v42, %v17857_v59 }
 0x722   : > { %9511 = vmatmul.mubr.bf16.vlgmr.msra.gmra.mrb[72].mxu0 %v9011_v49 }
 0x723   : > { %9978 = vmatmul.mubr.bf16.vlgmr.msra.gmra.mrb[84].mxu1 %v9554_v17  ;;  %14091 = vmatpush3.bf16.msra.mxu0 %v15432_v60  ;;  %v9556_v60 = vpack.c.bf16 %v9535_v10, %v9535_v10  ;;  %v10102_v17 = vpack.c.bf16 %v10078_v25, %v10078_v25  ;;  %v10074_v10 = vrot.slane %v17474_v42, %v17859_v7 }
 0x724   : > { %10017 = vmatprep.mubr.bf16.mxu0 %v9557_v12  ;;  %14113 = vmatpush3.bf16.msra.mxu1 %v15433_v48  ;;  %v15466_v48 = vld [vmem:[#allocation12 + $0xc48] sm:$0xff]   ;;  %v10094_v25 = vrot.slane %v17474_v42, %v17861_v38 }
 0x725   : > { %10057 = vmatprep.mubr.bf16.mxu1 %v9559_v41  ;;  %14092 = vmatprep.subr.bf16.mxu0 %v15434_v9  ;;  %v15467_v9 = vld [vmem:[#allocation12 + $0xcc8] sm:$0xff]   ;;  %v15470_v41 = vld [vmem:[#allocation12 + $0xc50] sm:$0xff]  }
 0x726   : > { %14114 = vmatprep.subr.bf16.mxu1 %v15435_v1  ;;  %v15468_v12 = vld [vmem:[#allocation12 + $0xc08] sm:$0xff]  }
 0x727   : > { %14093 = vmatpush3.bf16.msra.mxu0 %v15436_v47  ;;  %v15469_v1 = vld [vmem:[#allocation12 + $0xc88] sm:$0xff]   ;;  %v15471_v47 = vld [vmem:[#allocation12 + $0xcd0] sm:$0xff]  }
 0x728   : > { %14115 = vmatpush3.bf16.msra.mxu1 %v15437_v33  ;;  %14094 = vmatprep.subr.bf16.mxu0 %v15438_v20  ;;  %v15472_v33 = vld [vmem:[#allocation12 + $0xc10] sm:$0xff]  }
 0x729   : > { %14116 = vmatprep.subr.bf16.mxu1 %v15439_v29  ;;  %v15473_v20 = vld [vmem:[#allocation12 + $0xc90] sm:$0xff]   ;;  %v15474_v29 = vld [vmem:[#allocation12 + $0xc58] sm:$0xff]  }
 0x72b   : > { %14095 = vmatpush3.bf16.msra.mxu0 %v15440_v35  ;;  %v15475_v35 = vld [vmem:[#allocation12 + $0xcd8] sm:$0xff]  }
 0x72c   : > { %14117 = vmatpush3.bf16.msra.mxu1 %v15441_v53  ;;  %14096 = vmatprep.subr.bf16.mxu0 %v15442_v55  ;;  %v15476_v53 = vld [vmem:[#allocation12 + $0xc18] sm:$0xff]  }
 0x72d   : > { %14118 = vmatprep.subr.bf16.mxu1 %v15443_v40  ;;  %v15477_v55 = vld [vmem:[#allocation12 + $0xc98] sm:$0xff]   ;;  %v15478_v40 = vld [vmem:[#allocation12 + $0xc60] sm:$0xff]  }
 0x72f   : > { %14097 = vmatpush3.bf16.msra.mxu0 %v15444_v50  ;;  %v15479_v50 = vld [vmem:[#allocation12 + $0xce0] sm:$0xff]  }
 0x730   : > { %14119 = vmatpush3.bf16.msra.mxu1 %v15445_v13  ;;  %14098 = vmatprep.subr.bf16.mxu0 %v15446_v51  ;;  %v15480_v13 = vld [vmem:[#allocation12 + $0xc20] sm:$0xff]  }
 0x731   : > { %14120 = vmatprep.subr.bf16.mxu1 %v15447_v36  ;;  %v15481_v51 = vld [vmem:[#allocation12 + $0xca0] sm:$0xff]   ;;  %v15482_v36 = vld [vmem:[#allocation12 + $0xc68] sm:$0xff]  }
 0x733   : > { %14099 = vmatpush3.bf16.msra.mxu0 %v15448_v54  ;;  %v15483_v54 = vld [vmem:[#allocation12 + $0xce8] sm:$0xff]  }
 0x734   : > { %14121 = vmatpush3.bf16.msra.mxu1 %v15449_v39  ;;  %14100 = vmatprep.subr.bf16.mxu0 %v15450_v62  ;;  %v15484_v39 = vld [vmem:[#allocation12 + $0xc28] sm:$0xff]  }
 0x735   : > { %v13798_v4 = vpop.f32.mrb[48].mxu0  ;;  %14122 = vmatprep.subr.bf16.mxu1 %v15451_v0  ;;  %v15485_v62 = vld [vmem:[#allocation12 + $0xca8] sm:$0xff]   ;;  %v15486_v0 = vld [vmem:[#allocation12 + $0xc70] sm:$0xff]  }
 0x736   : > { %v13820_v11 = vpop.f32.mrb[60].mxu1  ;;  %v13799_v14 = vpop.f32.mrb[49].mxu0 }
 0x737   : > { %v13800_v22 = vadd.f32 %v13799_v14, %v13798_v4  ;;  %v13821_v61 = vpop.f32.mrb[61].mxu1  ;;  %v13801_v24 = vpop.f32.mrb[50].mxu0  ;;  %14101 = vmatpush3.bf16.msra.mxu0 %v15452_v52 }
 0x738   : > { %v17471_v27 = vadd.f32 %v13821_v61, %v13820_v11  ;;  %v13823_v46 = vpop.f32.mrb[62].mxu1  ;;  %14123 = vmatpush3.bf16.msra.mxu1 %v15453_v31  ;;  %v13802_v2 = vpop.f32.mrb[51].mxu0  ;;  %14102 = vmatprep.subr.bf16.mxu0 %v15454_v19  ;;  %v15487_v31 = vld [vmem:[#allocation12 + $0xcf0] sm:$0xff]  }
 0x739   : > { %v7325_v57 = vadd.f32 %v13800_v22, %v17461_v45  ;;  %v13824_v30 = vpop.f32.mrb[63].mxu1  ;;  %14124 = vmatprep.subr.bf16.mxu1 %v15455_v5  ;;  %v9543_v45 = vrot.slane %v17451_v43, %v17862_v3  ;;  %v10104_v43 = vpack.c.bf16 %v10086_v56, %v10086_v56  ;;  %v15488_v22 = vld [vmem:[#allocation12 + $0xc30] sm:$0xff]   ;;  %v15490_v2 = vld [vmem:[#allocation12 + $0xc78] sm:$0xff]  }
 0x73a   : > { %v10615_v61 = vld [vmem:[#allocation3 + $0x31] ss:$8 sm:$0x30] }
 0x73b   : > { %v17477_v58 = vadd.f32 %v7325_v57, %v17449_v23  ;;  %14103 = vmatpush3.bf16.msra.mxu0 %v15456_v18  ;;  %v15464_v23 = vld [vmem:[#allocation12 + $0xc00] sm:$0xff]   ;;  %v9558_v49 = vpack.c.bf16 %v9543_v45, %v9543_v45  ;;  %v15489_v46 = vld [vmem:[#allocation12 + $0xcb0] sm:$0xff]   ;;  %v15491_v57 = vld [vmem:[#allocation12 + $0xcf8] sm:$0xff]  }
 0x73c   : > { %14125 = vmatpush3.bf16.msra.mxu1 %v15457_v44  ;;  %14104 = vmatprep.subr.bf16.mxu0 %v15458_v28  ;;  %v10614_v30 = vld [vmem:[#allocation3 + $0x31] ss:$8 sm:$0xf] }
 0x73d   : > { %14126 = vmatprep.subr.bf16.mxu1 %v15459_v32 }
 0x73f   : > { %14105 = vmatpush3.bf16.msra.mxu0 %v15460_v8  ;;  %v17488_v8 = vor.u32 %v10615_v61, %v10614_v30  ;;  %v10090_v30 = vrot.slane %v17474_v42, %v17862_v3 }
 0x740   : > { %14127 = vmatpush3.bf16.msra.mxu1 %v15461_v37  ;;  %14134 = vmatprep.subr.bf16.mxu0 %v15462_v16  ;;  %v15493_v37 = vld [vmem:[#allocation12 + $0xcb8] sm:$0xff]   ;;  %v15494_v16 = vld [vmem:[#allocation12 + $0xd40] sm:$0xff]  }
 0x741   : > { %14156 = vmatprep.subr.bf16.mxu1 %v15463_v6  ;;  %v15495_v6 = vld [vmem:[#allocation12 + $0xdc0] sm:$0xff]   ;;  %v10625_v56 = vrot.slane %v17488_v8, %v17857_v59 }
 0x742   : > { %10018 = vmatmul.mubr.bf16.vlgmr.msra.gmra.mrb[76].mxu0 %v9556_v60  ;;  %v10101_v60 = vpack.c.bf16 %v10074_v10, %v10074_v10  ;;  %v10633_v10 = vrot.slane %v17488_v8, %v17858_v21 }
 0x743   : > { %10058 = vmatmul.mubr.bf16.vlgmr.msra.gmra.mrb[88].mxu1 %v9558_v49  ;;  %14135 = vmatpush3.bf16.msra.mxu0 %v15464_v23  ;;  %v15496_v23 = vld [vmem:[#allocation12 + $0xd00] sm:$0xff]  }
 0x744   : > { %10524 = vmatprep.mubr.bf16.mxu0 %v10102_v17  ;;  %14157 = vmatpush3.bf16.msra.mxu1 %v15465_v63  ;;  %v15497_v63 = vld [vmem:[#allocation12 + $0xd80] sm:$0xff]   ;;  %v15499_v17 = vld [vmem:[#allocation12 + $0xdc8] sm:$0xff]  }
 0x745   : > { %10564 = vmatprep.mubr.bf16.mxu1 %v10104_v43  ;;  %14136 = vmatprep.subr.bf16.mxu0 %v15466_v48  ;;  %v10106_v48 = vpack.c.bf16 %v10094_v25, %v10094_v25  ;;  %v15500_v43 = vld [vmem:[#allocation12 + $0xd08] sm:$0xff]   ;;  %v15529_v25 = vld [vmem:[#allocation12 + $0xe80] sm:$0xff]  }
 0x746   : > { %14158 = vmatprep.subr.bf16.mxu1 %v15467_v9  ;;  %v10649_v9 = vpack.c.bf16 %v10625_v56, %v10625_v56  ;;  %v10651_v56 = vpack.c.bf16 %v10633_v10, %v10633_v10 }
 0x747   : > { %14137 = vmatpush3.bf16.msra.mxu0 %v15468_v12  ;;  %v15501_v12 = vld [vmem:[#allocation12 + $0xd88] sm:$0xff]  }
 0x748   : > { %14159 = vmatpush3.bf16.msra.mxu1 %v15469_v1  ;;  %14138 = vmatprep.subr.bf16.mxu0 %v15470_v41  ;;  %v15502_v1 = vld [vmem:[#allocation12 + $0xd50] sm:$0xff]  }
 0x749   : > { %14160 = vmatprep.subr.bf16.mxu1 %v15471_v47  ;;  %v15503_v41 = vld [vmem:[#allocation12 + $0xdd0] sm:$0xff]  }
 0x74a   : > { %v15504_v47 = vld [vmem:[#allocation12 + $0xd10] sm:$0xff]  }
 0x74b   : > { %14139 = vmatpush3.bf16.msra.mxu0 %v15472_v33  ;;  %v15505_v33 = vld [vmem:[#allocation12 + $0xd90] sm:$0xff]  }
 0x74c   : > { %14161 = vmatpush3.bf16.msra.mxu1 %v15473_v20  ;;  %14140 = vmatprep.subr.bf16.mxu0 %v15474_v29  ;;  %v15506_v20 = vld [vmem:[#allocation12 + $0xd58] sm:$0xff]  }
 0x74d   : > { %14162 = vmatprep.subr.bf16.mxu1 %v15475_v35  ;;  %v15507_v29 = vld [vmem:[#allocation12 + $0xdd8] sm:$0xff]  }
 0x74e   : > { %v15508_v35 = vld [vmem:[#allocation12 + $0xd18] sm:$0xff]  }
 0x74f   : > { %14141 = vmatpush3.bf16.msra.mxu0 %v15476_v53  ;;  %v15509_v53 = vld [vmem:[#allocation12 + $0xd98] sm:$0xff]  }
 0x750   : > { %14163 = vmatpush3.bf16.msra.mxu1 %v15477_v55  ;;  %14142 = vmatprep.subr.bf16.mxu0 %v15478_v40  ;;  %v15510_v55 = vld [vmem:[#allocation12 + $0xd60] sm:$0xff]  }
 0x751   : > { %14164 = vmatprep.subr.bf16.mxu1 %v15479_v50  ;;  %v15511_v40 = vld [vmem:[#allocation12 + $0xde0] sm:$0xff]  }
 0x752   : > { %v15512_v50 = vld [vmem:[#allocation12 + $0xd20] sm:$0xff]  }
 0x753   : > { %14143 = vmatpush3.bf16.msra.mxu0 %v15480_v13  ;;  %v15513_v13 = vld [vmem:[#allocation12 + $0xda0] sm:$0xff]  }
 0x754   : > { %14165 = vmatpush3.bf16.msra.mxu1 %v15481_v51  ;;  %14144 = vmatprep.subr.bf16.mxu0 %v15482_v36  ;;  %v15514_v51 = vld [vmem:[#allocation12 + $0xd68] sm:$0xff]  }
 0x755   : > { %v13842_v52 = vpop.f32.mrb[52].mxu0  ;;  %14166 = vmatprep.subr.bf16.mxu1 %v15483_v54  ;;  %v15515_v36 = vld [vmem:[#allocation12 + $0xde8] sm:$0xff]  }
 0x756   : > { %v13864_v19 = vpop.f32.mrb[64].mxu1  ;;  %v13843_v4 = vpop.f32.mrb[53].mxu0  ;;  %v15516_v54 = vld [vmem:[#allocation12 + $0xd28] sm:$0xff]  }
 0x757   : > { %v13844_v5 = vadd.f32 %v13843_v4, %v13842_v52  ;;  %v13865_v11 = vpop.f32.mrb[65].mxu1  ;;  %v13845_v14 = vpop.f32.mrb[54].mxu0  ;;  %14145 = vmatpush3.bf16.msra.mxu0 %v15484_v39  ;;  %v15517_v39 = vld [vmem:[#allocation12 + $0xda8] sm:$0xff]   ;;  %v15519_v52 = vld [vmem:[#allocation12 + $0xdf0] sm:$0xff]  }
 0x758   : > { %v13866_v24 = vadd.f32 %v13865_v11, %v13864_v19  ;;  %v13867_v18 = vpop.f32.mrb[66].mxu1  ;;  %14167 = vmatpush3.bf16.msra.mxu1 %v15485_v62  ;;  %v13846_v26 = vpop.f32.mrb[55].mxu0  ;;  %14146 = vmatprep.subr.bf16.mxu0 %v15486_v0  ;;  %v15518_v62 = vld [vmem:[#allocation12 + $0xd70] sm:$0xff]  }
 0x759   : > { %v7832_v44 = vadd.f32 %v13844_v5, %v17471_v27  ;;  %v13868_v28 = vpop.f32.mrb[67].mxu1  ;;  %14168 = vmatprep.subr.bf16.mxu1 %v15487_v31  ;;  %v10082_v27 = vrot.slane %v17474_v42, %v17860_v15  ;;  %v15520_v14 = vld [vmem:[#allocation12 + $0xd30] sm:$0xff]   ;;  %v15522_v26 = vld [vmem:[#allocation12 + $0xd78] sm:$0xff]   ;;  %v15530_v42 = vld [vmem:[#allocation12 + $0xe48] sm:$0xff]  }
 0x75a   : > { %v15521_v18 = vld [vmem:[#allocation12 + $0xdb0] sm:$0xff]   ;;  %v15524_v28 = vld [vmem:[#allocation12 + $0xd38] sm:$0xff]  }
 0x75b   : > { %v7872_v32 = vadd.f32 %v13866_v24, %v7832_v44  ;;  %14147 = vmatpush3.bf16.msra.mxu0 %v15488_v22  ;;  %v10103_v49 = vpack.c.bf16 %v10082_v27, %v10082_v27  ;;  %v10641_v27 = vrot.slane %v17488_v8, %v17861_v38 }
 0x75c   : > { %14169 = vmatpush3.bf16.msra.mxu1 %v15489_v46  ;;  %14148 = vmatprep.subr.bf16.mxu0 %v15490_v2  ;;  %v15523_v2 = vld [vmem:[#allocation12 + $0xdf8] sm:$0xff]  }
 0x75d   : > { %v17493_v45 = vadd.f32 %v7872_v32, %v17477_v58  ;;  %14170 = vmatprep.subr.bf16.mxu1 %v15491_v57  ;;  %v15498_v58 = vld [vmem:[#allocation12 + $0xd48] sm:$0xff]   ;;  %v15525_v57 = vld [vmem:[#allocation12 + $0xdb8] sm:$0xff]   ;;  %v15526_v32 = vld [vmem:[#allocation12 + $0xe40] sm:$0xff]  }
 0x75f   : > { %14149 = vmatpush3.bf16.msra.mxu0 %v15492_v34  ;;  %v10621_v34 = vrot.slane %v17488_v8, %v17859_v7 }
 0x760   : > { %14171 = vmatpush3.bf16.msra.mxu1 %v15493_v37  ;;  %14178 = vmatprep.subr.bf16.mxu0 %v15494_v16  ;;  %v15527_v37 = vld [vmem:[#allocation12 + $0xec0] sm:$0xff]  }
 0x761   : > { %14200 = vmatprep.subr.bf16.mxu1 %v15495_v6  ;;  %v15528_v16 = vld [vmem:[#allocation12 + $0xe00] sm:$0xff]   ;;  %v10105_v6 = vpack.c.bf16 %v10090_v30, %v10090_v30  ;;  %v10629_v30 = vrot.slane %v17488_v8, %v17860_v15 }
 0x762   : > { %10525 = vmatmul.mubr.bf16.vlgmr.msra.gmra.mrb[80].mxu0 %v10101_v60  ;;  %v15531_v60 = vld [vmem:[#allocation12 + $0xec8] sm:$0xff]  }
 0x763   : > { %10565 = vmatmul.mubr.bf16.vlgmr.msra.gmra.mrb[92].mxu1 %v10103_v49  ;;  %14179 = vmatpush3.bf16.msra.mxu0 %v15496_v23  ;;  %v10648_v23 = vpack.c.bf16 %v10621_v34, %v10621_v34  ;;  %v15532_v49 = vld [vmem:[#allocation12 + $0xe08] sm:$0xff]   ;;  %v15559_v34 = vld [vmem:[#allocation12 + $0xfc0] sm:$0xff]  }
 0x764   : > { %10604 = vmatprep.mubr.bf16.mxu0 %v10106_v48  ;;  %14201 = vmatpush3.bf16.msra.mxu1 %v15497_v63  ;;  %v10653_v63 = vpack.c.bf16 %v10641_v27, %v10641_v27  ;;  %v15534_v48 = vld [vmem:[#allocation12 + $0xe50] sm:$0xff]   ;;  %v15561_v27 = vld [vmem:[#allocation12 + $0xf80] sm:$0xff]  }
 0x765   : > { %11071 = vmatprep.mubr.bf16.mxu1 %v10649_v9  ;;  %14180 = vmatprep.subr.bf16.mxu0 %v15498_v58  ;;  %v15533_v58 = vld [vmem:[#allocation12 + $0xe88] sm:$0xff]   ;;  %v15536_v9 = vld [vmem:[#allocation12 + $0xe10] sm:$0xff]  }
 0x766   : > { %14202 = vmatprep.subr.bf16.mxu1 %v15499_v17  ;;  %v15535_v17 = vld [vmem:[#allocation12 + $0xed0] sm:$0xff]  }
 0x767   : > { %14181 = vmatpush3.bf16.msra.mxu0 %v15500_v43  ;;  %v15537_v43 = vld [vmem:[#allocation12 + $0xe90] sm:$0xff]  }
 0x768   : > { %14203 = vmatpush3.bf16.msra.mxu1 %v15501_v12  ;;  %14182 = vmatprep.subr.bf16.mxu0 %v15502_v1  ;;  %v15538_v12 = vld [vmem:[#allocation12 + $0xe58] sm:$0xff]  }
 0x769   : > { %14204 = vmatprep.subr.bf16.mxu1 %v15503_v41  ;;  %v15539_v1 = vld [vmem:[#allocation12 + $0xed8] sm:$0xff]  }
 0x76a   : > { %v15540_v41 = vld [vmem:[#allocation12 + $0xe18] sm:$0xff]  }
 0x76b   : > { %14183 = vmatpush3.bf16.msra.mxu0 %v15504_v47  ;;  %v15541_v47 = vld [vmem:[#allocation12 + $0xe98] sm:$0xff]  }
 0x76c   : > { %14205 = vmatpush3.bf16.msra.mxu1 %v15505_v33  ;;  %14184 = vmatprep.subr.bf16.mxu0 %v15506_v20  ;;  %v15542_v33 = vld [vmem:[#allocation12 + $0xe60] sm:$0xff]  }
 0x76d   : > { %14206 = vmatprep.subr.bf16.mxu1 %v15507_v29  ;;  %v15543_v20 = vld [vmem:[#allocation12 + $0xee0] sm:$0xff]  }
 0x76e   : > { %v15544_v29 = vld [vmem:[#allocation12 + $0xe20] sm:$0xff]  }
 0x76f   : > { %14185 = vmatpush3.bf16.msra.mxu0 %v15508_v35  ;;  %v15545_v35 = vld [vmem:[#allocation12 + $0xea0] sm:$0xff]  }
 0x770   : > { %14207 = vmatpush3.bf16.msra.mxu1 %v15509_v53  ;;  %14186 = vmatprep.subr.bf16.mxu0 %v15510_v55  ;;  %v15546_v53 = vld [vmem:[#allocation12 + $0xe68] sm:$0xff]  }
 0x771   : > { %14208 = vmatprep.subr.bf16.mxu1 %v15511_v40  ;;  %v15547_v55 = vld [vmem:[#allocation12 + $0xee8] sm:$0xff]  }
 0x772   : > { %v15548_v40 = vld [vmem:[#allocation12 + $0xe28] sm:$0xff]  }
 0x773   : > { %14187 = vmatpush3.bf16.msra.mxu0 %v15512_v50  ;;  %v15549_v50 = vld [vmem:[#allocation12 + $0xea8] sm:$0xff]  }
 0x774   : > { %14209 = vmatpush3.bf16.msra.mxu1 %v15513_v13  ;;  %14188 = vmatprep.subr.bf16.mxu0 %v15514_v51  ;;  %v15550_v13 = vld [vmem:[#allocation12 + $0xe70] sm:$0xff]  }
 0x775   : > { %v13886_v0 = vpop.f32.mrb[56].mxu0  ;;  %14210 = vmatprep.subr.bf16.mxu1 %v15515_v36  ;;  %v15551_v36 = vld [vmem:[#allocation12 + $0xef0] sm:$0xff]  }
 0x776   : > { %v13908_v31 = vpop.f32.mrb[68].mxu1  ;;  %v13887_v19 = vpop.f32.mrb[57].mxu0 }
 0x777   : > { %v13888_v4 = vadd.f32 %v13887_v19, %v13886_v0  ;;  %v13909_v5 = vpop.f32.mrb[69].mxu1  ;;  %v13889_v11 = vpop.f32.mrb[58].mxu0  ;;  %14189 = vmatpush3.bf16.msra.mxu0 %v15516_v54  ;;  %v11162_v19 = vld [vmem:[#allocation3 + $0x32] ss:$8 sm:$0x30] }
 0x778   : > { %v13910_v22 = vadd.f32 %v13909_v5, %v13908_v31  ;;  %v13911_v61 = vpop.f32.mrb[70].mxu1  ;;  %14211 = vmatpush3.bf16.msra.mxu1 %v15517_v39  ;;  %v13890_v24 = vpop.f32.mrb[59].mxu0  ;;  %14190 = vmatprep.subr.bf16.mxu0 %v15518_v62  ;;  %v15552_v31 = vld [vmem:[#allocation12 + $0xe30] sm:$0xff]  }
 0x779   : > { %v13912_v46 = vpop.f32.mrb[71].mxu1  ;;  %14212 = vmatprep.subr.bf16.mxu1 %v15519_v52 }
 0x77a   : > { %v17501_v44 = vadd.f32 %v13910_v22, %v13888_v4  ;;  %v15554_v22 = vld [vmem:[#allocation12 + $0xe78] sm:$0xff]  }
 0x77b   : > { %14191 = vmatpush3.bf16.msra.mxu0 %v15520_v14  ;;  %v15553_v14 = vld [vmem:[#allocation12 + $0xeb0] sm:$0xff]  }
 0x77c   : > { %14213 = vmatpush3.bf16.msra.mxu1 %v15521_v18  ;;  %14192 = vmatprep.subr.bf16.mxu0 %v15522_v26  ;;  %v15555_v18 = vld [vmem:[#allocation12 + $0xef8] sm:$0xff]  }
 0x77d   : > { %14214 = vmatprep.subr.bf16.mxu1 %v15523_v2  ;;  %v11161_v26 = vld [vmem:[#allocation3 + $0x32] ss:$8 sm:$0xf] }
 0x77e   : > { %v17514_v46 = vor.u32 %v11162_v19, %v11161_v26  ;;  %v15588_v26 = vld [vmem:[#allocation12 + $0xf38] sm:$0xff]  }
 0x77f   : > { %14193 = vmatpush3.bf16.msra.mxu0 %v15524_v28  ;;  %v15556_v28 = vld [vmem:[#allocation12 + $0xe38] sm:$0xff]  }
 0x780   : > { %14215 = vmatpush3.bf16.msra.mxu1 %v15525_v57  ;;  %14222 = vmatprep.subr.bf16.mxu0 %v15526_v32  ;;  %v15557_v57 = vld [vmem:[#allocation12 + $0xeb8] sm:$0xff]   ;;  %v15558_v32 = vld [vmem:[#allocation12 + $0xf40] sm:$0xff]   ;;  %v11180_v10 = vrot.slane %v17514_v46, %v17858_v21 }
 0x781   : > { %14244 = vmatprep.subr.bf16.mxu1 %v15527_v37  ;;  %v11172_v37 = vrot.slane %v17514_v46, %v17857_v59 }
 0x782   : > { %10605 = vmatmul.mubr.bf16.vlgmr.msra.gmra.mrb[84].mxu0 %v10105_v6 }
 0x783   : > { %11072 = vmatmul.mubr.bf16.vlgmr.msra.gmra.mrb[96].mxu1 %v10648_v23  ;;  %14223 = vmatpush3.bf16.msra.mxu0 %v15528_v16  ;;  %v10650_v16 = vpack.c.bf16 %v10629_v30, %v10629_v30  ;;  %v11196_v23 = vpack.c.bf16 %v11172_v37, %v11172_v37  ;;  %v11168_v30 = vrot.slane %v17514_v46, %v17859_v7 }
 0x784   : > { %11111 = vmatprep.mubr.bf16.mxu0 %v10651_v56  ;;  %14245 = vmatpush3.bf16.msra.mxu1 %v15529_v25  ;;  %v15562_v25 = vld [vmem:[#allocation12 + $0xf48] sm:$0xff]   ;;  %v11188_v37 = vrot.slane %v17514_v46, %v17861_v38 }
 0x785   : > { %11151 = vmatprep.mubr.bf16.mxu1 %v10653_v63  ;;  %14224 = vmatprep.subr.bf16.mxu0 %v15530_v42  ;;  %v15563_v42 = vld [vmem:[#allocation12 + $0xfc8] sm:$0xff]   ;;  %v15566_v63 = vld [vmem:[#allocation12 + $0xf50] sm:$0xff]  }
 0x786   : > { %14246 = vmatprep.subr.bf16.mxu1 %v15531_v60  ;;  %v15564_v56 = vld [vmem:[#allocation12 + $0xf08] sm:$0xff]  }
 0x787   : > { %14225 = vmatpush3.bf16.msra.mxu0 %v15532_v49  ;;  %v15565_v60 = vld [vmem:[#allocation12 + $0xf88] sm:$0xff]   ;;  %v15567_v49 = vld [vmem:[#allocation12 + $0xfd0] sm:$0xff]  }
 0x788   : > { %14247 = vmatpush3.bf16.msra.mxu1 %v15533_v58  ;;  %14226 = vmatprep.subr.bf16.mxu0 %v15534_v48  ;;  %v15568_v58 = vld [vmem:[#allocation12 + $0xf10] sm:$0xff]  }
 0x789   : > { %14248 = vmatprep.subr.bf16.mxu1 %v15535_v17  ;;  %v15569_v48 = vld [vmem:[#allocation12 + $0xf90] sm:$0xff]   ;;  %v15570_v17 = vld [vmem:[#allocation12 + $0xf58] sm:$0xff]  }
 0x78b   : > { %14227 = vmatpush3.bf16.msra.mxu0 %v15536_v9  ;;  %v15571_v9 = vld [vmem:[#allocation12 + $0xfd8] sm:$0xff]  }
 0x78c   : > { %14249 = vmatpush3.bf16.msra.mxu1 %v15537_v43  ;;  %14228 = vmatprep.subr.bf16.mxu0 %v15538_v12  ;;  %v15572_v43 = vld [vmem:[#allocation12 + $0xf18] sm:$0xff]  }
 0x78d   : > { %14250 = vmatprep.subr.bf16.mxu1 %v15539_v1  ;;  %v15573_v12 = vld [vmem:[#allocation12 + $0xf98] sm:$0xff]   ;;  %v15574_v1 = vld [vmem:[#allocation12 + $0xf60] sm:$0xff]  }
 0x78f   : > { %14229 = vmatpush3.bf16.msra.mxu0 %v15540_v41  ;;  %v15575_v41 = vld [vmem:[#allocation12 + $0xfe0] sm:$0xff]  }
 0x790   : > { %14251 = vmatpush3.bf16.msra.mxu1 %v15541_v47  ;;  %14230 = vmatprep.subr.bf16.mxu0 %v15542_v33  ;;  %v15576_v47 = vld [vmem:[#allocation12 + $0xf20] sm:$0xff]  }
 0x791   : > { %14252 = vmatprep.subr.bf16.mxu1 %v15543_v20  ;;  %v15577_v33 = vld [vmem:[#allocation12 + $0xfa0] sm:$0xff]   ;;  %v15578_v20 = vld [vmem:[#allocation12 + $0xf68] sm:$0xff]  }
 0x793   : > { %14231 = vmatpush3.bf16.msra.mxu0 %v15544_v29  ;;  %v15579_v29 = vld [vmem:[#allocation12 + $0xfe8] sm:$0xff]  }
 0x794   : > { %14253 = vmatpush3.bf16.msra.mxu1 %v15545_v35  ;;  %14232 = vmatprep.subr.bf16.mxu0 %v15546_v53  ;;  %v15580_v35 = vld [vmem:[#allocation12 + $0xf28] sm:$0xff]  }
 0x795   : > { %v13930_v51 = vpop.f32.mrb[60].mxu0  ;;  %14254 = vmatprep.subr.bf16.mxu1 %v15547_v55  ;;  %v15581_v53 = vld [vmem:[#allocation12 + $0xfa8] sm:$0xff]   ;;  %v15582_v55 = vld [vmem:[#allocation12 + $0xf70] sm:$0xff]  }
 0x796   : > { %v13952_v54 = vpop.f32.mrb[72].mxu1  ;;  %v13931_v39 = vpop.f32.mrb[61].mxu0 }
 0x797   : > { %v13932_v62 = vadd.f32 %v13931_v39, %v13930_v51  ;;  %v13953_v0 = vpop.f32.mrb[73].mxu1  ;;  %v13933_v52 = vpop.f32.mrb[62].mxu0  ;;  %14233 = vmatpush3.bf16.msra.mxu0 %v15548_v40 }
 0x798   : > { %v17511_v4 = vadd.f32 %v13953_v0, %v13952_v54  ;;  %v13955_v5 = vpop.f32.mrb[74].mxu1  ;;  %14255 = vmatpush3.bf16.msra.mxu1 %v15549_v50  ;;  %v13934_v11 = vpop.f32.mrb[63].mxu0  ;;  %14234 = vmatprep.subr.bf16.mxu0 %v15550_v13  ;;  %v15583_v50 = vld [vmem:[#allocation12 + $0xff0] sm:$0xff]  }
 0x799   : > { %v8419_v61 = vadd.f32 %v13932_v62, %v17501_v44  ;;  %v13956_v24 = vpop.f32.mrb[75].mxu1  ;;  %14256 = vmatprep.subr.bf16.mxu1 %v15551_v36  ;;  %v10637_v44 = vrot.slane %v17488_v8, %v17862_v3  ;;  %v11198_v8 = vpack.c.bf16 %v11180_v10, %v11180_v10  ;;  %v15584_v62 = vld [vmem:[#allocation12 + $0xf30] sm:$0xff]   ;;  %v15586_v11 = vld [vmem:[#allocation12 + $0xf78] sm:$0xff]  }
 0x79a   : > { %v11709_v0 = vld [vmem:[#allocation3 + $0x33] ss:$8 sm:$0x30] }
 0x79b   : > { %v17517_v2 = vadd.f32 %v8419_v61, %v17493_v45  ;;  %14235 = vmatpush3.bf16.msra.mxu0 %v15552_v31  ;;  %v15560_v45 = vld [vmem:[#allocation12 + $0xf00] sm:$0xff]   ;;  %v10652_v6 = vpack.c.bf16 %v10637_v44, %v10637_v44  ;;  %v15585_v5 = vld [vmem:[#allocation12 + $0xfb0] sm:$0xff]   ;;  %v15587_v61 = vld [vmem:[#allocation12 + $0xff8] sm:$0xff]  }
 0x79c   : > { %14257 = vmatpush3.bf16.msra.mxu1 %v15553_v14  ;;  %14236 = vmatprep.subr.bf16.mxu0 %v15554_v22  ;;  %v11708_v24 = vld [vmem:[#allocation3 + $0x33] ss:$8 sm:$0xf] }
 0x79d   : > { %14258 = vmatprep.subr.bf16.mxu1 %v15555_v18 }
 0x79f   : > { %14237 = vmatpush3.bf16.msra.mxu0 %v15556_v28  ;;  %v17528_v28 = vor.u32 %v11709_v0, %v11708_v24  ;;  %v15622_v24 = vld [vmem:[#allocation12 + $0x1140] sm:$0xff]  }
 0x7a0   : > { %14259 = vmatpush3.bf16.msra.mxu1 %v15557_v57  ;;  %14266 = vmatprep.subr.bf16.mxu0 %v15558_v32  ;;  %v15589_v57 = vld [vmem:[#allocation12 + $0xfb8] sm:$0xff]   ;;  %v15590_v32 = vld [vmem:[#allocation12 + $0x1040] sm:$0xff]  }
 0x7a1   : > { %14288 = vmatprep.subr.bf16.mxu1 %v15559_v34  ;;  %v15591_v34 = vld [vmem:[#allocation12 + $0x10c0] sm:$0xff]   ;;  %v11719_v10 = vrot.slane %v17528_v28, %v17857_v59  ;;  %v15599_v59 = vld [vmem:[#allocation12 + $0x10d0] sm:$0xff]  }
 0x7a2   : > { %11112 = vmatmul.mubr.bf16.vlgmr.msra.gmra.mrb[88].mxu0 %v10650_v16  ;;  %v11195_v16 = vpack.c.bf16 %v11168_v30, %v11168_v30  ;;  %v15624_v30 = vld [vmem:[#allocation12 + $0x1100] sm:$0xff]  }
 0x7a3   : > { %11152 = vmatmul.mubr.bf16.vlgmr.msra.gmra.mrb[100].mxu1 %v10652_v6  ;;  %14267 = vmatpush3.bf16.msra.mxu0 %v15560_v45  ;;  %v15592_v45 = vld [vmem:[#allocation12 + $0x1000] sm:$0xff]  }
 0x7a4   : > { %11618 = vmatprep.mubr.bf16.mxu0 %v11196_v23  ;;  %14289 = vmatpush3.bf16.msra.mxu1 %v15561_v27  ;;  %v15593_v27 = vld [vmem:[#allocation12 + $0x1080] sm:$0xff]   ;;  %v15595_v23 = vld [vmem:[#allocation12 + $0x10c8] sm:$0xff]  }
 0x7a5   : > { %11658 = vmatprep.mubr.bf16.mxu1 %v11198_v8  ;;  %14268 = vmatprep.subr.bf16.mxu0 %v15562_v25  ;;  %v11200_v25 = vpack.c.bf16 %v11188_v37, %v11188_v37  ;;  %v15596_v8 = vld [vmem:[#allocation12 + $0x1008] sm:$0xff]  }
 0x7a6   : > { %14290 = vmatprep.subr.bf16.mxu1 %v15563_v42  ;;  %v11743_v42 = vpack.c.bf16 %v11719_v10, %v11719_v10  ;;  %v15627_v10 = vld [vmem:[#allocation12 + $0x11c8] sm:$0xff]  }
 0x7a7   : > { %14269 = vmatpush3.bf16.msra.mxu0 %v15564_v56  ;;  %v15597_v56 = vld [vmem:[#allocation12 + $0x1088] sm:$0xff]  }
 0x7a8   : > { %14291 = vmatpush3.bf16.msra.mxu1 %v15565_v60  ;;  %14270 = vmatprep.subr.bf16.mxu0 %v15566_v63  ;;  %v15598_v60 = vld [vmem:[#allocation12 + $0x1050] sm:$0xff]  }
 0x7a9   : > { %14292 = vmatprep.subr.bf16.mxu1 %v15567_v49  ;;  %v15600_v63 = vld [vmem:[#allocation12 + $0x1010] sm:$0xff]  }
 0x7aa   : > { %v15601_v49 = vld [vmem:[#allocation12 + $0x1090] sm:$0xff]  }
 0x7ab   : > { %14271 = vmatpush3.bf16.msra.mxu0 %v15568_v58  ;;  %v15602_v58 = vld [vmem:[#allocation12 + $0x1058] sm:$0xff]  }
 0x7ac   : > { %14293 = vmatpush3.bf16.msra.mxu1 %v15569_v48  ;;  %14272 = vmatprep.subr.bf16.mxu0 %v15570_v17  ;;  %v15603_v48 = vld [vmem:[#allocation12 + $0x10d8] sm:$0xff]  }
 0x7ad   : > { %14294 = vmatprep.subr.bf16.mxu1 %v15571_v9  ;;  %v15604_v17 = vld [vmem:[#allocation12 + $0x1018] sm:$0xff]  }
 0x7ae   : > { %v15605_v9 = vld [vmem:[#allocation12 + $0x1098] sm:$0xff]  }
 0x7af   : > { %14273 = vmatpush3.bf16.msra.mxu0 %v15572_v43  ;;  %v15606_v43 = vld [vmem:[#allocation12 + $0x1060] sm:$0xff]  }
 0x7b0   : > { %14295 = vmatpush3.bf16.msra.mxu1 %v15573_v12  ;;  %14274 = vmatprep.subr.bf16.mxu0 %v15574_v1  ;;  %v15607_v12 = vld [vmem:[#allocation12 + $0x10e0] sm:$0xff]  }
 0x7b1   : > { %14296 = vmatprep.subr.bf16.mxu1 %v15575_v41  ;;  %v15608_v1 = vld [vmem:[#allocation12 + $0x1020] sm:$0xff]  }
 0x7b2   : > { %v15609_v41 = vld [vmem:[#allocation12 + $0x10a0] sm:$0xff]  }
 0x7b3   : > { %14275 = vmatpush3.bf16.msra.mxu0 %v15576_v47  ;;  %v15610_v47 = vld [vmem:[#allocation12 + $0x1068] sm:$0xff]  }
 0x7b4   : > { %14297 = vmatpush3.bf16.msra.mxu1 %v15577_v33  ;;  %14276 = vmatprep.subr.bf16.mxu0 %v15578_v20  ;;  %v15611_v33 = vld [vmem:[#allocation12 + $0x10e8] sm:$0xff]  }
 0x7b5   : > { %v13974_v40 = vpop.f32.mrb[64].mxu0  ;;  %14298 = vmatprep.subr.bf16.mxu1 %v15579_v29  ;;  %v15612_v20 = vld [vmem:[#allocation12 + $0x1028] sm:$0xff]  }
 0x7b6   : > { %v13996_v13 = vpop.f32.mrb[76].mxu1  ;;  %v13975_v51 = vpop.f32.mrb[65].mxu0  ;;  %v15613_v29 = vld [vmem:[#allocation12 + $0x10a8] sm:$0xff]  }
 0x7b7   : > { %v13976_v36 = vadd.f32 %v13975_v51, %v13974_v40  ;;  %v13997_v54 = vpop.f32.mrb[77].mxu1  ;;  %v13977_v39 = vpop.f32.mrb[66].mxu0  ;;  %14277 = vmatpush3.bf16.msra.mxu0 %v15580_v35  ;;  %v15614_v35 = vld [vmem:[#allocation12 + $0x1070] sm:$0xff]  }
 0x7b8   : > { %v13998_v52 = vadd.f32 %v13997_v54, %v13996_v13  ;;  %v13999_v31 = vpop.f32.mrb[78].mxu1  ;;  %14299 = vmatpush3.bf16.msra.mxu1 %v15581_v53  ;;  %v13978_v19 = vpop.f32.mrb[67].mxu0  ;;  %14278 = vmatprep.subr.bf16.mxu0 %v15582_v55  ;;  %v15615_v55 = vld [vmem:[#allocation12 + $0x10f0] sm:$0xff]  }
 0x7b9   : > { %v8926_v14 = vadd.f32 %v13976_v36, %v17511_v4  ;;  %v14000_v22 = vpop.f32.mrb[79].mxu1  ;;  %14300 = vmatprep.subr.bf16.mxu1 %v15583_v50  ;;  %v11176_v4 = vrot.slane %v17514_v46, %v17860_v15  ;;  %v15616_v54 = vld [vmem:[#allocation12 + $0x1030] sm:$0xff]   ;;  %v15618_v31 = vld [vmem:[#allocation12 + $0x1078] sm:$0xff]  }
 0x7ba   : > { %v15621_v22 = vld [vmem:[#allocation12 + $0x10b8] sm:$0xff]  }
 0x7bb   : > { %v8966_v18 = vadd.f32 %v13998_v52, %v8926_v14  ;;  %14279 = vmatpush3.bf16.msra.mxu0 %v15584_v62  ;;  %v11197_v6 = vpack.c.bf16 %v11176_v4, %v11176_v4  ;;  %v15617_v52 = vld [vmem:[#allocation12 + $0x10b0] sm:$0xff]   ;;  %v15620_v14 = vld [vmem:[#allocation12 + $0x1038] sm:$0xff]  }
 0x7bc   : > { %14301 = vmatpush3.bf16.msra.mxu1 %v15585_v5  ;;  %14280 = vmatprep.subr.bf16.mxu0 %v15586_v11  ;;  %v15619_v5 = vld [vmem:[#allocation12 + $0x10f8] sm:$0xff]  }
 0x7bd   : > { %v17533_v44 = vadd.f32 %v8966_v18, %v17517_v2  ;;  %14302 = vmatprep.subr.bf16.mxu1 %v15587_v61  ;;  %v15594_v2 = vld [vmem:[#allocation12 + $0x1048] sm:$0xff]   ;;  %v11184_v61 = vrot.slane %v17514_v46, %v17862_v3  ;;  %v11715_v18 = vrot.slane %v17528_v28, %v17859_v7 }
 0x7be   : > { %v15626_v46 = vld [vmem:[#allocation12 + $0x1148] sm:$0xff]  }
 0x7bf   : > { %14281 = vmatpush3.bf16.msra.mxu0 %v15588_v26  ;;  %v15623_v26 = vld [vmem:[#allocation12 + $0x11c0] sm:$0xff]   ;;  %v11199_v4 = vpack.c.bf16 %v11184_v61, %v11184_v61  ;;  %v11742_v37 = vpack.c.bf16 %v11715_v18, %v11715_v18 }
 0x7c0   : > { %14303 = vmatpush3.bf16.msra.mxu1 %v15589_v57  ;;  %14310 = vmatprep.subr.bf16.mxu0 %v15590_v32  ;;  %v11727_v57 = vrot.slane %v17528_v28, %v17858_v21  ;;  %v11735_v32 = vrot.slane %v17528_v28, %v17861_v38  ;;  %v15629_v21 = vld [vmem:[#allocation12 + $0x1188] sm:$0xff]   ;;  %v15631_v38 = vld [vmem:[#allocation12 + $0x11d0] sm:$0xff]  }
 0x7c1   : > { %14332 = vmatprep.subr.bf16.mxu1 %v15591_v34  ;;  %v15625_v34 = vld [vmem:[#allocation12 + $0x1180] sm:$0xff]  }
 0x7c2   : > { %11619 = vmatmul.mubr.bf16.vlgmr.msra.gmra.mrb[92].mxu0 %v11195_v16  ;;  %v11747_v7 = vpack.c.bf16 %v11735_v32, %v11735_v32  ;;  %v15628_v16 = vld [vmem:[#allocation12 + $0x1108] sm:$0xff]  }
 0x7c3   : > { %11659 = vmatmul.mubr.bf16.vlgmr.msra.gmra.mrb[104].mxu1 %v11197_v6  ;;  %14311 = vmatpush3.bf16.msra.mxu0 %v15592_v45  ;;  %v11745_v45 = vpack.c.bf16 %v11727_v57, %v11727_v57  ;;  %v15632_v6 = vld [vmem:[#allocation12 + $0x1110] sm:$0xff]  }
 0x7c4   : > { %11698 = vmatprep.mubr.bf16.mxu0 %v11200_v25  ;;  %14333 = vmatpush3.bf16.msra.mxu1 %v15593_v27  ;;  %v15630_v27 = vld [vmem:[#allocation12 + $0x1150] sm:$0xff]   ;;  %v15634_v25 = vld [vmem:[#allocation12 + $0x1158] sm:$0xff]  }
 0x7c5   : > { %12165 = vmatprep.mubr.bf16.mxu1 %v11743_v42  ;;  %14312 = vmatprep.subr.bf16.mxu0 %v15594_v2  ;;  %v15633_v2 = vld [vmem:[#allocation12 + $0x1190] sm:$0xff]   ;;  %v15636_v42 = vld [vmem:[#allocation12 + $0x1118] sm:$0xff]  }
 0x7c6   : > { %14334 = vmatprep.subr.bf16.mxu1 %v15595_v23  ;;  %v15635_v23 = vld [vmem:[#allocation12 + $0x11d8] sm:$0xff]  }
 0x7c7   : > { %14313 = vmatpush3.bf16.msra.mxu0 %v15596_v8  ;;  %v15637_v8 = vld [vmem:[#allocation12 + $0x1198] sm:$0xff]  }
 0x7c8   : > { %14335 = vmatpush3.bf16.msra.mxu1 %v15597_v56  ;;  %14314 = vmatprep.subr.bf16.mxu0 %v15598_v60  ;;  %v15638_v56 = vld [vmem:[#allocation12 + $0x1160] sm:$0xff]  }
 0x7c9   : > { %14336 = vmatprep.subr.bf16.mxu1 %v15599_v59  ;;  %v15639_v60 = vld [vmem:[#allocation12 + $0x11e0] sm:$0xff]  }
 0x7ca   : > { %v15640_v59 = vld [vmem:[#allocation12 + $0x1120] sm:$0xff]  }
 0x7cb   : > { %14315 = vmatpush3.bf16.msra.mxu0 %v15600_v63  ;;  %v15641_v63 = vld [vmem:[#allocation12 + $0x11a0] sm:$0xff]  }
 0x7cc   : > { %14337 = vmatpush3.bf16.msra.mxu1 %v15601_v49  ;;  %14316 = vmatprep.subr.bf16.mxu0 %v15602_v58  ;;  %v15642_v49 = vld [vmem:[#allocation12 + $0x1168] sm:$0xff]  }
 0x7cd   : > { %14338 = vmatprep.subr.bf16.mxu1 %v15603_v48  ;;  %v15643_v58 = vld [vmem:[#allocation12 + $0x11e8] sm:$0xff]  }
 0x7ce   : > { %v15644_v48 = vld [vmem:[#allocation12 + $0x1128] sm:$0xff]  }
 0x7cf   : > { %14317 = vmatpush3.bf16.msra.mxu0 %v15604_v17  ;;  %v15645_v17 = vld [vmem:[#allocation12 + $0x11a8] sm:$0xff]  }
 0x7d0   : > { %14339 = vmatpush3.bf16.msra.mxu1 %v15605_v9  ;;  %14318 = vmatprep.subr.bf16.mxu0 %v15606_v43  ;;  %v15646_v9 = vld [vmem:[#allocation12 + $0x1170] sm:$0xff]  }
 0x7d1   : > { %14340 = vmatprep.subr.bf16.mxu1 %v15607_v12  ;;  %v15647_v12 = vld [vmem:[#allocation12 + $0x11f0] sm:$0xff]  }
 0x7d3   : > { %14319 = vmatpush3.bf16.msra.mxu0 %v15608_v1 }
 0x7d4   : > { %14341 = vmatpush3.bf16.msra.mxu1 %v15609_v41  ;;  %14320 = vmatprep.subr.bf16.mxu0 %v15610_v47 }
 0x7d5   : > { %v14018_v53 = vpop.f32.mrb[68].mxu0  ;;  %14342 = vmatprep.subr.bf16.mxu1 %v15611_v33 }
 0x7d6   : > { %v14040_v40 = vpop.f32.mrb[80].mxu1  ;;  %v14019_v50 = vpop.f32.mrb[69].mxu0 }
 0x7d7   : > { %v14020_v13 = vadd.f32 %v14019_v50, %v14018_v53  ;;  %v14041_v51 = vpop.f32.mrb[81].mxu1  ;;  %v14021_v36 = vpop.f32.mrb[70].mxu0  ;;  %14321 = vmatpush3.bf16.msra.mxu0 %v15612_v20  ;;  %v15650_v50 = vld [vmem:[#allocation12 + $0x1178] sm:$0xff]  }
 0x7d8   : > { %v14042_v39 = vadd.f32 %v14041_v51, %v14040_v40  ;;  %v14043_v62 = vpop.f32.mrb[82].mxu1  ;;  %14343 = vmatpush3.bf16.msra.mxu1 %v15613_v29  ;;  %v14022_v0 = vpop.f32.mrb[71].mxu0  ;;  %14322 = vmatprep.subr.bf16.mxu0 %v15614_v35  ;;  %v15648_v29 = vld [vmem:[#allocation12 + $0x1130] sm:$0xff]   ;;  %v15651_v36 = vld [vmem:[#allocation12 + $0x11f8] sm:$0xff]  }
 0x7d9   : > { %v14044_v19 = vpop.f32.mrb[83].mxu1  ;;  %14344 = vmatprep.subr.bf16.mxu1 %v15615_v55  ;;  %v15649_v40 = vld [vmem:[#allocation12 + $0x11b0] sm:$0xff]   ;;  %v15653_v62 = vld [vmem:[#allocation12 + $0x11b8] sm:$0xff]   ;;  %v11723_v0 = vrot.slane %v17528_v28, %v17860_v15 }
 0x7da   : > { %v17541_v11 = vadd.f32 %v14042_v39, %v14020_v13  ;;  %v15652_v39 = vld [vmem:[#allocation12 + $0x1138] sm:$0xff]  }
 0x7db   : > { %14323 = vmatpush3.bf16.msra.mxu0 %v15616_v54 }
 0x7dc   : > { %14345 = vmatpush3.bf16.msra.mxu1 %v15617_v52  ;;  %14324 = vmatprep.subr.bf16.mxu0 %v15618_v31  ;;  %v11731_v52 = vrot.slane %v17528_v28, %v17862_v3  ;;  %v11744_v31 = vpack.c.bf16 %v11723_v0, %v11723_v0  ;;  %v12272_v0 = vld [vmem:[%s17662_s7 + $0x78] sm:$0xff] }
 0x7dd   : > { %14346 = vmatprep.subr.bf16.mxu1 %v15619_v5 }
 0x7de   : > { %v11746_v19 = vpack.c.bf16 %v11731_v52, %v11731_v52 }
 0x7df   : > { %14325 = vmatpush3.bf16.msra.mxu0 %v15620_v14 }
 0x7e0   : > { %14347 = vmatpush3.bf16.msra.mxu1 %v15621_v22  ;;  %14354 = vmatprep.subr.bf16.mxu0 %v15622_v24 }
 0x7e1   : > { %14376 = vmatprep.subr.bf16.mxu1 %v15623_v26 }
 0x7e2   : > { %11699 = vmatmul.mubr.bf16.vlgmr.msra.gmra.mrb[96].mxu0 %v11199_v4 }
 0x7e3   : > { %12166 = vmatmul.mubr.bf16.vlgmr.msra.gmra.mrb[108].mxu1 %v11742_v37  ;;  %14355 = vmatpush3.bf16.msra.mxu0 %v15624_v30 }
 0x7e4   : > { %12205 = vmatprep.mubr.bf16.mxu0 %v11745_v45  ;;  %14377 = vmatpush3.bf16.msra.mxu1 %v15625_v34 }
 0x7e5   : > { %12245 = vmatprep.mubr.bf16.mxu1 %v11747_v7  ;;  %14356 = vmatprep.subr.bf16.mxu0 %v15626_v46 }
 0x7e6   : > { %14378 = vmatprep.subr.bf16.mxu1 %v15627_v10 }
 0x7e7   : > { %14357 = vmatpush3.bf16.msra.mxu0 %v15628_v16 }
 0x7e8   : > { %14379 = vmatpush3.bf16.msra.mxu1 %v15629_v21  ;;  %14358 = vmatprep.subr.bf16.mxu0 %v15630_v27  ;;  %v12257_v27 = vld [vmem:[%s17662_s7] sm:$0xff] }
 0x7e9   : > { %14380 = vmatprep.subr.bf16.mxu1 %v15631_v38  ;;  %v12258_v38 = vld [vmem:[%s17662_s7 + $0x8] sm:$0xff] }
 0x7eb   : > { %14359 = vmatpush3.bf16.msra.mxu0 %v15632_v6  ;;  %v12259_v6 = vld [vmem:[%s17662_s7 + $0x10] sm:$0xff] }
 0x7ec   : > { %14381 = vmatpush3.bf16.msra.mxu1 %v15633_v2  ;;  %14360 = vmatprep.subr.bf16.mxu0 %v15634_v25  ;;  %v16002_v2 = vmov 0.0|0.0   ;;  %v14467_v25 = vpack.c.bf16 %v12258_v38, %v12257_v27 }
 0x7ed   : > { %14382 = vmatprep.subr.bf16.mxu1 %v15635_v23  ;;  %v12260_v23 = vld [vmem:[%s17662_s7 + $0x18] sm:$0xff] }
 0x7ef   : > { %14361 = vmatpush3.bf16.msra.mxu0 %v15636_v42  ;;  %v14470_v42 = vpack.c.bf16 %v12260_v23, %v12259_v6 }
 0x7f0   : > { %14383 = vmatpush3.bf16.msra.mxu1 %v15637_v8  ;;  %14362 = vmatprep.subr.bf16.mxu0 %v15638_v56  ;;  %v12261_v8 = vld [vmem:[%s17662_s7 + $0x20] sm:$0xff]  ;;  %v12262_v56 = vld [vmem:[%s17662_s7 + $0x28] sm:$0xff] }
 0x7f1   : > { %14384 = vmatprep.subr.bf16.mxu1 %v15639_v60  ;;  %v14473_v60 = vpack.c.bf16 %v12262_v56, %v12261_v8 }
 0x7f3   : > { %14363 = vmatpush3.bf16.msra.mxu0 %v15640_v59  ;;  %v12263_v59 = vld [vmem:[%s17662_s7 + $0x30] sm:$0xff] }
 0x7f4   : > { %14385 = vmatpush3.bf16.msra.mxu1 %v15641_v63  ;;  %14364 = vmatprep.subr.bf16.mxu0 %v15642_v49  ;;  %v12264_v63 = vld [vmem:[%s17662_s7 + $0x38] sm:$0xff] }
 0x7f5   : > { %v14062_v43 = vpop.f32.mrb[72].mxu0  ;;  %14386 = vmatprep.subr.bf16.mxu1 %v15643_v58  ;;  %v14476_v49 = vpack.c.bf16 %v12264_v63, %v12263_v59  ;;  %v12265_v58 = vld [vmem:[%s17662_s7 + $0x40] sm:$0xff] }
 0x7f6   : > { %v14084_v1 = vpop.f32.mrb[84].mxu1  ;;  %v14063_v41 = vpop.f32.mrb[73].mxu0 }
 0x7f7   : > { %v14064_v47 = vadd.f32 %v14063_v41, %v14062_v43  ;;  %v14085_v33 = vpop.f32.mrb[85].mxu1  ;;  %v14065_v20 = vpop.f32.mrb[74].mxu0  ;;  %14365 = vmatpush3.bf16.msra.mxu0 %v15644_v48  ;;  %v12266_v48 = vld [vmem:[%s17662_s7 + $0x48] sm:$0xff] }
 0x7f8   : > { %v14086_v35 = vadd.f32 %v14085_v33, %v14084_v1  ;;  %v14087_v53 = vpop.f32.mrb[86].mxu1  ;;  %14387 = vmatpush3.bf16.msra.mxu1 %v15645_v17  ;;  %v14066_v55 = vpop.f32.mrb[75].mxu0  ;;  %14366 = vmatprep.subr.bf16.mxu0 %v15646_v9  ;;  %v14479_v17 = vpack.c.bf16 %v12266_v48, %v12265_v58 }
 0x7f9   : > { %v9513_v13 = vadd.f32 %v14064_v47, %v17541_v11  ;;  %v14088_v51 = vpop.f32.mrb[87].mxu1  ;;  %14388 = vmatprep.subr.bf16.mxu1 %v15647_v12 }
 0x7fb   : > { %v9518_v54 = vadd.f32 %v9513_v13, %v17533_v44  ;;  %14367 = vmatpush3.bf16.msra.mxu0 %v15648_v29  ;;  %v12269_v13 = vld [vmem:[%s17662_s7 + $0x60] sm:$0xff] }
 0x7fc   : > { %14389 = vmatpush3.bf16.msra.mxu1 %v15649_v40  ;;  %14368 = vmatprep.subr.bf16.mxu0 %v15650_v50  ;;  %v12267_v40 = vld [vmem:[%s17662_s7 + $0x50] sm:$0xff]  ;;  %v12268_v50 = vld [vmem:[%s17662_s7 + $0x58] sm:$0xff] }
 0x7fd   : > { %14390 = vmatprep.subr.bf16.mxu1 %v15651_v36  ;;  %v14482_v51 = vpack.c.bf16 %v12268_v50, %v12267_v40  ;;  %v12270_v36 = vld [vmem:[%s17662_s7 + $0x68] sm:$0xff] }
 0x7ff   : > { %14369 = vmatpush3.bf16.msra.mxu0 %v15652_v39  ;;  %v14485_v39 = vpack.c.bf16 %v12270_v36, %v12269_v13 }
 0x800   : > { %14391 = vmatpush3.bf16.msra.mxu1 %v15653_v62  ;;  %14466 = vmatprep.subr.bf16.mxu0 %v16002_v2  ;;  %v12271_v62 = vld [vmem:[%s17662_s7 + $0x70] sm:$0xff] }
 0x801   : > { %v14488_v52 = vpack.c.bf16 %v12272_v0, %v12271_v62 }
 0x802   : > { %12206 = vmatmul.mubr.bf16.vlgmr.msra.gmra.mrb[100].mxu0 %v11744_v31 }
 0x803   : > { %12246 = vmatmul.mubr.bf16.vlgmr.msra.gmra.mrb[112].mxu1 %v11746_v19  ;;  %14468 = vmatpush3.bf16.msra.mxu0 %v14467_v25 }
 0x804   : > { %14469 = vmatprep.subr.bf16.mxu0 %v16002_v2 }
 0x807   : > { %14471 = vmatpush3.bf16.msra.mxu0 %v14470_v42 }
 0x808   : > { %14472 = vmatprep.subr.bf16.mxu0 %v16002_v2 }
 0x80b   : > { %14474 = vmatpush3.bf16.msra.mxu0 %v14473_v60 }
 0x80c   : > { %14475 = vmatprep.subr.bf16.mxu0 %v16002_v2 }
 0x80f   : > { %14477 = vmatpush3.bf16.msra.mxu0 %v14476_v49 }
 0x810   : > { %14478 = vmatprep.subr.bf16.mxu0 %v16002_v2 }
 0x813   : > { %14480 = vmatpush3.bf16.msra.mxu0 %v14479_v17 }
 0x814   : > { %14481 = vmatprep.subr.bf16.mxu0 %v16002_v2 }
 0x815   : > { %v14106_v5 = vpop.f32.mrb[76].mxu0 }
 0x816   : > { %v14128_v44 = vpop.f32.mrb[88].mxu1  ;;  %v14107_v11 = vpop.f32.mrb[77].mxu0 }
 0x817   : > { %v14108_v14 = vadd.f32 %v14107_v11, %v14106_v5  ;;  %v14129_v22 = vpop.f32.mrb[89].mxu1  ;;  %v14109_v61 = vpop.f32.mrb[78].mxu0  ;;  %14483 = vmatpush3.bf16.msra.mxu0 %v14482_v51 }
 0x818   : > { %v14130_v24 = vadd.f32 %v14129_v22, %v14128_v44  ;;  %v14131_v18 = vpop.f32.mrb[90].mxu1  ;;  %v14110_v26 = vpop.f32.mrb[79].mxu0  ;;  %14484 = vmatprep.subr.bf16.mxu0 %v16002_v2 }
 0x819   : > { %v10020_v15 = vadd.f32 %v14108_v14, %v14086_v35  ;;  %v14132_v57 = vpop.f32.mrb[91].mxu1 }
 0x81b   : > { %v10060_v30 = vadd.f32 %v14130_v24, %v10020_v15  ;;  %14486 = vmatpush3.bf16.msra.mxu0 %v14485_v39 }
 0x81c   : > { %14487 = vmatprep.subr.bf16.mxu0 %v16002_v2 }
 0x81d   : > { %v10065_v32 = vadd.f32 %v10060_v30, %v9518_v54  ;;  %v16004_v54 = vmov 0.0  }
 0x81e   : > { %14463 = vmatprep.mubr.msk.f32.mxu0 %vm16003_vm3, %v16004_v54 }
 0x81f   : > { %14489 = vmatpush3.bf16.msra.mxu0 %v14488_v52 }
 0x835   : > { %v14150_v3 = vpop.f32.mrb[80].mxu0 }
 0x836   : > { %v14172_v28 = vpop.f32.mrb[92].mxu1  ;;  %v14151_v4 = vpop.f32.mrb[81].mxu0 }
 0x837   : > { %v14152_v34 = vadd.f32 %v14151_v4, %v14150_v3  ;;  %v14173_v37 = vpop.f32.mrb[93].mxu1  ;;  %v14153_v46 = vpop.f32.mrb[82].mxu0 }
 0x838   : > { %v14174_v45 = vadd.f32 %v14173_v37, %v14172_v28  ;;  %v14175_v10 = vpop.f32.mrb[94].mxu1  ;;  %v14154_v7 = vpop.f32.mrb[83].mxu0 }
 0x839   : > { %v14176_v16 = vpop.f32.mrb[95].mxu1 }
 0x83a   : > { %v10567_v21 = vadd.f32 %v14174_v45, %v14152_v34 }
 0x855   : > { %v14194_v9 = vpop.f32.mrb[84].mxu0 }
 0x856   : > { %v14216_v43 = vpop.f32.mrb[96].mxu1  ;;  %v14195_v12 = vpop.f32.mrb[85].mxu0 }
 0x857   : > { %v14196_v1 = vadd.f32 %v14195_v12, %v14194_v9  ;;  %v14217_v41 = vpop.f32.mrb[97].mxu1  ;;  %v14197_v47 = vpop.f32.mrb[86].mxu0 }
 0x858   : > { %v14218_v33 = vadd.f32 %v14217_v41, %v14216_v43  ;;  %v14219_v20 = vpop.f32.mrb[98].mxu1  ;;  %v14198_v29 = vpop.f32.mrb[87].mxu0 }
 0x859   : > { %v10607_v35 = vadd.f32 %v14196_v1, %v10567_v21  ;;  %v14220_v53 = vpop.f32.mrb[99].mxu1 }
 0x85a   : > { %v12273_v53 = vld [vmem:[%s17663_s8] sm:$0x1] }
 0x85b   : > { %v10612_v55 = vadd.f32 %v10607_v35, %v10065_v32 }
 0x875   : > { %v14238_v31 = vpop.f32.mrb[88].mxu0 }
 0x876   : > { %v14260_v19 = vpop.f32.mrb[100].mxu1  ;;  %v14239_v5 = vpop.f32.mrb[89].mxu0 }
 0x877   : > { %v14240_v44 = vadd.f32 %v14239_v5, %v14238_v31  ;;  %v14261_v11 = vpop.f32.mrb[101].mxu1  ;;  %v14241_v14 = vpop.f32.mrb[90].mxu0 }
 0x878   : > { %v14262_v22 = vadd.f32 %v14261_v11, %v14260_v19  ;;  %v14263_v61 = vpop.f32.mrb[102].mxu1  ;;  %v14242_v24 = vpop.f32.mrb[91].mxu0 }
 0x879   : > { %v11114_v18 = vadd.f32 %v14240_v44, %v14218_v33  ;;  %v14264_v26 = vpop.f32.mrb[103].mxu1  ;;  %v12254_v33 = vld [vmem:[#allocation13] sm:$0x1] }
 0x87b   : > { %v11154_v15 = vadd.f32 %v14262_v22, %v11114_v18 }
 0x87d   : > { %v11159_v57 = vadd.f32 %v11154_v15, %v10612_v55 }
 0x895   : > { %v14282_v30 = vpop.f32.mrb[92].mxu0 }
 0x896   : > { %v14304_v32 = vpop.f32.mrb[104].mxu1  ;;  %v14283_v3 = vpop.f32.mrb[93].mxu0 }
 0x897   : > { %v14284_v28 = vadd.f32 %v14283_v3, %v14282_v30  ;;  %v14305_v4 = vpop.f32.mrb[105].mxu1  ;;  %v14285_v34 = vpop.f32.mrb[94].mxu0 }
 0x898   : > { %v14306_v37 = vadd.f32 %v14305_v4, %v14304_v32  ;;  %v14307_v46 = vpop.f32.mrb[106].mxu1  ;;  %v14286_v45 = vpop.f32.mrb[95].mxu0 }
 0x899   : > { %v14308_v10 = vpop.f32.mrb[107].mxu1 }
 0x89a   : > { %v11661_v7 = vadd.f32 %v14306_v37, %v14284_v28 }
 0x8b5   : > { %v14326_v16 = vpop.f32.mrb[96].mxu0 }
 0x8b6   : > { %v14348_v21 = vpop.f32.mrb[108].mxu1  ;;  %v14327_v27 = vpop.f32.mrb[97].mxu0 }
 0x8b7   : > { %v14328_v38 = vadd.f32 %v14327_v27, %v14326_v16  ;;  %v14349_v6 = vpop.f32.mrb[109].mxu1  ;;  %v14329_v2 = vpop.f32.mrb[98].mxu0 }
 0x8b8   : > { %v14350_v25 = vadd.f32 %v14349_v6, %v14348_v21  ;;  %v14351_v23 = vpop.f32.mrb[110].mxu1  ;;  %v14330_v42 = vpop.f32.mrb[99].mxu0 }
 0x8b9   : > { %v11701_v8 = vadd.f32 %v14328_v38, %v11661_v7  ;;  %v14352_v56 = vpop.f32.mrb[111].mxu1 }
 0x8bb   : > { %v11706_v60 = vadd.f32 %v11701_v8, %v11159_v57 }
 0x8d5   : > { %v14370_v59 = vpop.f32.mrb[100].mxu0 }
 0x8d6   : > { %v14392_v63 = vpop.f32.mrb[112].mxu1  ;;  %v14371_v49 = vpop.f32.mrb[101].mxu0 }
 0x8d7   : > { %v14372_v58 = vadd.f32 %v14371_v49, %v14370_v59  ;;  %v14393_v48 = vpop.f32.mrb[113].mxu1  ;;  %v14373_v17 = vpop.f32.mrb[102].mxu0 }
 0x8d8   : > { %v14394_v9 = vadd.f32 %v14393_v48, %v14392_v63  ;;  %v14395_v43 = vpop.f32.mrb[114].mxu1  ;;  %v14374_v12 = vpop.f32.mrb[103].mxu0 }
 0x8d9   : > { %v12208_v1 = vadd.f32 %v14372_v58, %v14350_v25  ;;  %v14396_v41 = vpop.f32.mrb[115].mxu1 }
 0x8db   : > { %v12248_v47 = vadd.f32 %v14394_v9, %v12208_v1 }
 0x8dd   : > { %v12253_v20 = vadd.f32 %v12248_v47, %v11706_v60 }
 0x8df   : > { %v12255_v29 = vadd.f32 %v12254_v33, %v12253_v20 }
 0x8e1   : > { %v12256_v35 = vmax.f32 %v12255_v29, 0.0 }
 0x8e3   : > { %14464 = vmatmul.mubr.f32.vlgmr.msra.gmra.mrb[104].mxu0 %v12256_v35 }
 0x9b6   : > { %v12340_v55 = vpop.f32.mrb[104].mxu0 }
 0x9b7   : > { %v12341_v40 = vadd.f32 %v12340_v55, %v12273_v53  ;;  %v14465_v50 = vpop.f32.mrb[105].mxu0 }
 0x9b9   : > { %12345 = vst.msk [vmem:[%s407_s29] sm:$0x1] %vm12344_vm4, %v12341_v40 }
 0x9ba   : > { %15922 = shalt.err (!%p15919_p6)
}
 0x9bb   : > { %s15923_s2 = scalar_lea.hbm %s17613_s28, 16  ;;  %s15927_s24 = scalar_lea.hbm %s17664_s9, 32 }
 0x9bc   : > { %p15924_p5 = scmp.ne.s32.totalorder %s17613_s28, %s15923_s2  ;;  %p15928_p10 = scmp.lt.u32.totalorder %s17613_s28, %s17664_s9 }
 0x9bd   : > { %p15929_p2 = scmp.lt.u32.totalorder %s15927_s24, %s15923_s2  ;;  %p15931_p4 = scmp.lt.u32.totalorder %s15923_s2, %s17613_s28 }
 0x9be   : > { %p15925_p9 = pnand %p15924_p5, %p17863_p7 }
 0x9bf   : > { %p15930_p3 = por %p15929_p2, %p15928_p10 }
 0x9c0   : > { %p15926_p12 = pneg %p15925_p9 }
 0x9c1   : > { %p15932_p8 = por %p15931_p4, %p15930_p3 }
 0x9c3   : > { %p15933_p11 = pnand %p15932_p8, %p15926_p12 }
 0x9c5   : > { %15936 = shalt.err (!%p15933_p11)
}
 0x9c6   : > { %14611 = dma.vmem_to_hbm [thread:$0]  (%p17863_p7), %s17615_s14, 16, %s17613_s28, %s12347_s16  }
 0x9c7 PF: > { %p14648_p13 = scmp.ge.s32.totalorder %s15987_s12, 2  ;;  %s12371_s18 = sand.u32 1, %s15975_s30  }
 0x9c8   : > { %p17864_p1 = scmp.ne.s32.totalorder %s17762_s20, 0  ;;  %s12372_s27 = scalar_lea.sflag [#allocation6], %s12371_s18 }
 0x9ca   : > { %p14633_p0 = pnand %p14648_p13, %p17864_p1 }
 0x9cc   : > { %15970 = dma.done.wait (!%p14633_p0), %s12372_s27, 16  }
 0x9cd   : > { %15972 = vsyncadd (!%p14633_p0), %s12372_s27, 4294967280  ;;  %s17865_s12 = sld [smem:[#allocation22_spill]]  ;;  %s17866_s29 = sld [smem:[#allocation21_spill]] }
 0x9ce   : > { %s17867_s11 = sld [smem:[#allocation23_spill]]  ;;  %s17868_s30 = smov %s15979_s10 }
 0x9d3   : > { %p23_p6 = scmp.ge.s32.totalorder %s17865_s12, 4   ;;  %s17869_s10 = smov %s17866_s29 }
 0x9d5   :  { %25 = sbr.rel (!%p23_p6) target bundleno = 10 (0xa), region = 140 }
 0x9dc   :  { %12376 = vsyncpa [#allocation5], 1 }
 0x9dd   :  { %12378 = vsyncpa [#allocation5 + $0x1], 1 }
 0x9de   :  { %12379 = vsyncpa [#allocation8], 1 }
 0x9df   :  { %12380 = vsyncpa [#allocation11], 1 }
 0x9e0   :  { %12381 = vsyncpa [#allocation14], 1 }
 0x9e1   :  { %12382 = vsyncpa [#allocation6], 1 }
 0x9e2   :  { %12384 = vsyncpa [#allocation6 + $0x1], 1 }

</bundles_post_ra>
